<compile_context>
chip_gen: v5e
topology: v5e:2x2
jax: 0.10.0
libtpu: 0.0.40
codegen_flags: <defaults>
</compile_context>

<pallas_src>
import functools

import jax
import jax.numpy as jnp
import numpy as np
from jax.experimental import pallas as pl
from jax.experimental.pallas import tpu as pltpu

_LANE = 128      # vreg lane width; every gate slot / state array is padded to it
_SUBLANE = 8     # f32 vreg sublane count; batch padded to a multiple of this
_HP = jax.lax.Precision.HIGHEST


def _sigmoid(x):
  # Single tanh transcendental (EUP) instead of exp + reciprocal; also keeps
  # kernel and XLA reference numerically identical for the gate nonlinearity.
  return 0.5 * (jnp.tanh(0.5 * x) + 1.0)


def _round_up(x, m):
  return ((x + m - 1) // m) * m


# ----------------------------------------------------------------------------
# Fused kernel: time-chunked QURNNCell recurrence + output head
# ----------------------------------------------------------------------------
def _qurnn_kernel(
    xp_ref, h0_ref, ce0_ref, ct0_ref,                 # activations / init state
    wh3_ref, wehh_ref,                                # h-side recurrent weights
    w1_ref, b1_ref, g_ref, beta_ref, w2_ref, b2_ref,  # output head params
    out_ref, hN_ref, ceN_ref, ctN_ref, y_ref,         # outputs
    h_s, ce_s, ct_s,                                  # persistent VMEM state
    *, t_chunk, t_real, b_real, unroll, guard):
  chunk = pl.program_id(0)

  @pl.when(chunk == 0)
  def _():
    h_s[...] = h0_ref[...]
    ce_s[...] = ce0_ref[...]
    ct_s[...] = ct0_ref[...]

  # Hoist constant recurrent weights out of the time loop.
  wh3 = wh3_ref[...]    # (128, 3*128)  fused W_time/W_absorb/h_weight h-parts
  wehh = wehh_ref[...]  # (128, 128)    energy_h h-part (applied to h * energy)

  def step(t, carry):
    h, ce, ct = carry
    # Precomputed x-projections + biases, one 128-lane slot per gate:
    # [ time | absorb | h_weight | energy_h ]  ->  (B_pad, 4*128).
    xp = xp_ref[t]

    pre3 = (jnp.dot(h, wh3, preferred_element_type=jnp.float32, precision=_HP)
            + xp[:, :3 * _LANE])
    up_time = jnp.tanh(pre3[:, :_LANE])
    absorb = _sigmoid(pre3[:, _LANE:2 * _LANE])
    h_weight = _sigmoid(pre3[:, 2 * _LANE:3 * _LANE])

    # time cell / leap
    tc = jnp.maximum(ct + up_time, 0.0) - 1.0
    leap = tc <= 0.0
    time_cell = jnp.where(leap, 0.0, tc)               # (1 - leap) * tc

    # energy release / absorb
    energy = jnp.where(leap, ce, 0.0)                  # leap * excited_cell
    excited = jnp.maximum(jnp.where(leap, 0.0, ce) + absorb, 0.0)

    # hidden state update
    h_up = h * energy
    h_state = jnp.tanh(
        xp[:, 3 * _LANE:]
        + jnp.dot(h_up, wehh, preferred_element_type=jnp.float32, precision=_HP))
    h_next = jnp.tanh((1.0 - h_weight) * h + h_weight * h_state)

    if guard:  # only emitted when T was padded up to a multiple of t_chunk
      valid = chunk * t_chunk + t < t_real
      h_next = jnp.where(valid, h_next, h)
      excited = jnp.where(valid, excited, ce)
      time_cell = jnp.where(valid, time_cell, ct)

    out_ref[t] = h_next                                # lane-dense (8,128) store
    # NOTE: the cell also returns 1 - leap (delta_time); QURNN collects it but
    # never uses it, so it is not emitted.
    return (h_next, excited, time_cell)

  h, ce, ct = jax.lax.fori_loop(
      0, t_chunk, step, (h_s[...], ce_s[...], ct_s[...]), unroll=unroll)
  h_s[...] = h
  ce_s[...] = ce
  ct_s[...] = ct

  @pl.when(chunk == pl.num_programs(0) - 1)
  def _():
    hN_ref[...] = h
    ceN_ref[...] = ce
    ctN_ref[...] = ct
    # Output head: Linear -> BatchNorm1d (training-mode batch statistics over
    # the REAL batch rows only) -> ReLU -> Linear.
    y1 = (jnp.dot(h, w1_ref[...], preferred_element_type=jnp.float32,
                  precision=_HP) + b1_ref[...])
    row = jax.lax.broadcasted_iota(jnp.int32, y1.shape, 0)
    bmask = (row < b_real).astype(jnp.float32)
    inv_b = 1.0 / b_real
    mean = jnp.sum(y1 * bmask, axis=0, keepdims=True) * inv_b
    var = jnp.sum(bmask * jnp.square(y1 - mean), axis=0, keepdims=True) * inv_b
    y = (y1 - mean) * jax.lax.rsqrt(var + 1e-5) * g_ref[...] + beta_ref[...]
    y = jnp.maximum(y, 0.0)
    y_ref[...] = (jnp.dot(y, w2_ref[...], preferred_element_type=jnp.float32,
                          precision=_HP) + b2_ref[...])


def _qurnn_pallas(xp, h0, ce0, ct0, wh3, wehh, w1, b1, g, beta, w2, b2,
                  *, t_chunk, t_real, b_real):
  t_pad, b_pad, gdim = xp.shape
  n_chunks = t_pad // t_chunk
  unroll = min(t_chunk, 8)

  kernel = functools.partial(
      _qurnn_kernel, t_chunk=t_chunk, t_real=t_real, b_real=b_real,
      unroll=unroll, guard=(t_pad != t_real))

  def full2d(a):
    return pl.BlockSpec(a.shape, lambda i: (0, 0))

  state = jax.ShapeDtypeStruct((b_pad, _LANE), jnp.float32)
  return pl.pallas_call(
      kernel,
      out_shape=(
          jax.ShapeDtypeStruct((t_pad, b_pad, _LANE), jnp.float32),
          state, state, state, state),
      grid_spec=pltpu.PrefetchScalarGridSpec(
          num_scalar_prefetch=0,
          grid=(n_chunks,),
          in_specs=[
              pl.BlockSpec((t_chunk, b_pad, gdim), lambda i: (i, 0, 0)),
              full2d(h0), full2d(ce0), full2d(ct0),
              full2d(wh3), full2d(wehh),
              full2d(w1), full2d(b1), full2d(g), full2d(beta),
              full2d(w2), full2d(b2),
          ],
          out_specs=(
              pl.BlockSpec((t_chunk, b_pad, _LANE), lambda i: (i, 0, 0)),
              pl.BlockSpec((b_pad, _LANE), lambda i: (0, 0)),
              pl.BlockSpec((b_pad, _LANE), lambda i: (0, 0)),
              pl.BlockSpec((b_pad, _LANE), lambda i: (0, 0)),
              pl.BlockSpec((b_pad, _LANE), lambda i: (0, 0)),
          ),
          scratch_shapes=[pltpu.VMEM((b_pad, _LANE), jnp.float32)] * 3,
      ),
      compiler_params=pltpu.CompilerParams(
          dimension_semantics=("arbitrary",),     # recurrence is sequential in time
          vmem_limit_bytes=32 * 1024 * 1024,
      ),
  )(xp, h0, ce0, ct0, wh3, wehh, w1, b1, g, beta, w2, b2)


# ----------------------------------------------------------------------------
# Weight packing (128-lane slot per gate) and padding helpers
# ----------------------------------------------------------------------------
def _pack_cell_weights(cell_params, c_dim, h_dim, cd_dim):
  (wt_x, wt_h, bt, wa_x, wa_h, ba,
   weh_x, weh_h, beh, whw_x, whw_h, bhw) = cell_params
  # x-side weights + all four biases: [ time | absorb | h_weight | energy_h ]
  wx = jnp.zeros((c_dim, 4 * _LANE), jnp.float32)
  wx = wx.at[:, 0 * _LANE:0 * _LANE + cd_dim].set(wt_x)
  wx = wx.at[:, 1 * _LANE:1 * _LANE + cd_dim].set(wa_x)
  wx = wx.at[:, 2 * _LANE:2 * _LANE + h_dim].set(whw_x)
  wx = wx.at[:, 3 * _LANE:3 * _LANE + h_dim].set(weh_x)
  ball = jnp.zeros((1, 4 * _LANE), jnp.float32)
  ball = ball.at[:, 0 * _LANE:0 * _LANE + cd_dim].set(bt)
  ball = ball.at[:, 1 * _LANE:1 * _LANE + cd_dim].set(ba)
  ball = ball.at[:, 2 * _LANE:2 * _LANE + h_dim].set(bhw)
  ball = ball.at[:, 3 * _LANE:3 * _LANE + h_dim].set(beh)
  # h-side weights of the three gates evaluated on h (energy_h consumes h_up).
  wh3 = jnp.zeros((_LANE, 3 * _LANE), jnp.float32)
  wh3 = wh3.at[:h_dim, 0 * _LANE:0 * _LANE + cd_dim].set(wt_h)
  wh3 = wh3.at[:h_dim, 1 * _LANE:1 * _LANE + cd_dim].set(wa_h)
  wh3 = wh3.at[:h_dim, 2 * _LANE:2 * _LANE + h_dim].set(whw_h)
  wehh = jnp.zeros((_LANE, _LANE), jnp.float32).at[:h_dim, :h_dim].set(weh_h)
  return wx, ball, wh3, wehh


def _pad_head_weights(head_params, h_dim, o_dim):
  w1, b1, g, beta, w2, b2 = head_params
  w1p = jnp.zeros((_LANE, _LANE), jnp.float32).at[:h_dim, :h_dim].set(w1)
  b1p = jnp.zeros((1, _LANE), jnp.float32).at[:, :h_dim].set(b1)
  gp = jnp.ones((1, _LANE), jnp.float32).at[:, :h_dim].set(g)
  betap = jnp.zeros((1, _LANE), jnp.float32).at[:, :h_dim].set(beta)
  w2p = jnp.zeros((_LANE, _LANE), jnp.float32).at[:h_dim, :o_dim].set(w2)
  b2p = jnp.zeros((1, _LANE), jnp.float32).at[:, :o_dim].set(b2)
  return w1p, b1p, gp, betap, w2p, b2p


# ----------------------------------------------------------------------------
# Full forward (num_layers = 1, batch_first = True, return_all_layers = False)
# ----------------------------------------------------------------------------
@functools.partial(jax.jit, static_argnames=("t_chunk",))
def qurnn_forward(x_btc, h0, ce0, ct0, cell_params, head_params, *, t_chunk=32):
  b, t, c = x_btc.shape
  h_dim = h0.shape[1]
  cd_dim = ce0.shape[1]
  o_dim = head_params[4].shape[1]

  t_chunk = min(int(t_chunk), t)
  t_pad = _round_up(t, t_chunk)
  b_pad = max(_SUBLANE, _round_up(b, _SUBLANE))

  wx, ball, wh3, wehh = _pack_cell_weights(cell_params, c, h_dim, cd_dim)
  w1p, b1p, gp, betap, w2p, b2p = _pad_head_weights(head_params, h_dim, o_dim)

  # Hoisted input projection (+ all four biases), amortized over the sequence.
  x_tbc = jnp.transpose(x_btc, (1, 0, 2))                       # (T, B, C)
  x_tbc = jnp.pad(x_tbc, ((0, t_pad - t), (0, b_pad - b), (0, 0)))
  xp = jnp.einsum("tbc,cg->tbg", x_tbc, wx, precision=_HP) + ball

  def pad_state(s, width):
    out = jnp.zeros((b_pad, _LANE), jnp.float32)
    return out.at[:b, :width].set(s)

  h0p = pad_state(h0, h_dim)
  ce0p = pad_state(ce0, cd_dim)
  ct0p = pad_state(ct0, cd_dim)

  out, h_n, ce_n, ct_n, y = _qurnn_pallas(
      xp, h0p, ce0p, ct0p, wh3, wehh, w1p, b1p, gp, betap, w2p, b2p,
      t_chunk=t_chunk, t_real=t, b_real=b)

  layer_output = jnp.transpose(out[:t, :b, :h_dim], (1, 0, 2))  # (B, T, H)
  return (layer_output,
          (h_n[:b, :h_dim], ce_n[:b, :cd_dim], ct_n[:b, :cd_dim]),
          y[:b, :o_dim])


# ----------------------------------------------------------------------------
# Parameter construction (deterministic, PyTorch-Linear-like uniform init)
# ----------------------------------------------------------------------------
def linear_init(key, fan_in, fan_out):
  bound = 1.0 / np.sqrt(fan_in)
  kw, kb = jax.random.split(key)
  w = jax.random.uniform(kw, (fan_in, fan_out), jnp.float32, -bound, bound)
  b = jax.random.uniform(kb, (1, fan_out), jnp.float32, -bound, bound)
  return w, b


def make_params(key, input_dim, hidden_dim, cell_dim, output_dim):
  keys = jax.random.split(key, 8)
  # cell linears over cat([x, h]) stored as split (x-part, h-part) weights.
  wt, bt = linear_init(keys[0], input_dim + hidden_dim, cell_dim)
  wa, ba = linear_init(keys[1], input_dim + hidden_dim, cell_dim)
  weh, beh = linear_init(keys[2], input_dim + hidden_dim, hidden_dim)
  whw, bhw = linear_init(keys[3], input_dim + hidden_dim, hidden_dim)
  cell = (wt[:input_dim], wt[input_dim:], bt,
          wa[:input_dim], wa[input_dim:], ba,
          weh[:input_dim], weh[input_dim:], beh,
          whw[:input_dim], whw[input_dim:], bhw)
  # output head
  w1, b1 = linear_init(keys[4], hidden_dim, hidden_dim)
  gamma = jnp.ones((1, hidden_dim), jnp.float32)
  beta = jnp.zeros((1, hidden_dim), jnp.float32)
  w2, b2 = linear_init(keys[5], hidden_dim, output_dim)
  head = (w1, b1, gamma, beta, w2, b2)
  # note: state_linear / time_ratio / energy_init / time exist in __init__ but
  # are unused in the active forward, so they are not materialized.
  return cell, head


# ----------------------------------------------------------------------------
# Pure-JAX reference for validation (natural, unpacked form)
# ----------------------------------------------------------------------------
def qurnn_reference(x_btc, h0, ce0, ct0, cell_params, head_params):
  (wt_x, wt_h, bt, wa_x, wa_h, ba,
   weh_x, weh_h, beh, whw_x, whw_h, bhw) = cell_params

  def mm(a, w):
    return jnp.dot(a, w, precision=_HP)

  B, T, C = x_btc.shape
  h, ce, ct = h0, ce0, ct0
  outs = []
  for t in range(T):
    x = x_btc[:, t, :]
    up_time = jnp.tanh(mm(x, wt_x) + mm(h, wt_h) + bt)
    ct = jnp.maximum(ct + up_time, 0.0) - 1.0
    leap = (ct <= 0.0).astype(jnp.float32)
    ct = (1.0 - leap) * ct
    energy = leap * ce
    ce = ce - energy
    absorb = _sigmoid(mm(x, wa_x) + mm(h, wa_h) + ba)
    ce = jnp.maximum(ce + absorb, 0.0)
    h_up = h * energy
    h_state = jnp.tanh(mm(x, weh_x) + mm(h_up, weh_h) + beh)
    h_weight = _sigmoid(mm(x, whw_x) + mm(h, whw_h) + bhw)
    h = jnp.tanh((1.0 - h_weight) * h + h_weight * h_state)
    outs.append(h)
  layer_output = jnp.stack(outs, axis=1)
  w1, b1, gamma, beta, w2, b2 = head_params
  y = mm(h, w1) + b1
  mean = jnp.mean(y, axis=0, keepdims=True)
  var = jnp.mean((y - mean) ** 2, axis=0, keepdims=True)   # biased, BN train mode
  y = (y - mean) * jax.lax.rsqrt(var + 1e-5) * gamma + beta
  y = jnp.maximum(y, 0.0)
  output = mm(y, w2) + b2
  return layer_output, (h, ce, ct), output


if __name__ == "__main__":
  B, T, C = 2, 8, 4           # batch, seq, input channels
  H = Cd = 32                 # hidden_dim == cell_dim (required by h_cur * energy)
  O = 8                       # output_dim

  root = jax.random.PRNGKey(0)
  k_x, k_h, k_ce, k_ct, k_p = jax.random.split(root, 5)

  x = jax.random.normal(k_x, (B, T, C), jnp.float32)
  # init_hidden uses torch.rand -> uniform [0, 1)
  h0 = jax.random.uniform(k_h, (B, H), jnp.float32)
  ce0 = jax.random.uniform(k_ce, (B, Cd), jnp.float32)
  ct0 = jax.random.uniform(k_ct, (B, Cd), jnp.float32)

  cell_params, head_params = make_params(k_p, C, H, Cd, O)

  # t_chunk=4 -> two grid steps: exercises the persistent-scratch state carry
  # and the pl.when init / finalize paths.
  layer_out, (h_n, ce_n, ct_n), out = qurnn_forward(
      x, h0, ce0, ct0, cell_params, head_params, t_chunk=4)
  jax.block_until_ready((layer_out, h_n, ce_n, ct_n, out))

  ref_layer_out, (rh, rce, rct), ref_out = qurnn_reference(
      x, h0, ce0, ct0, cell_params, head_params)

  # Tolerances tightened vs. the previous 5e-2 (HIGHEST-precision matmuls and
  # identical tanh-based sigmoid keep kernel and reference closely matched);
  # residual slack covers Mosaic-vs-XLA transcendental-approximation
  # differences.  The head check is looser because BatchNorm over B=2 samples
  # amplifies tiny differences.
  tol = dict(rtol=2e-3, atol=2e-3)
  assert np.allclose(np.asarray(layer_out), np.asarray(ref_layer_out), **tol)
  assert np.allclose(np.asarray(h_n), np.asarray(rh), **tol)
  assert np.allclose(np.asarray(ce_n), np.asarray(rce), **tol)
  assert np.allclose(np.asarray(ct_n), np.asarray(rct), **tol)
  assert np.allclose(np.asarray(out), np.asarray(ref_out), rtol=1e-2, atol=1e-2)

  print("KERNEL_OK")
</pallas_src>

<mosaic_0001>
module attributes {stable_mosaic.version = 11 : i64} {
  func.func @_qurnn_kernel(%arg0: i32, %arg1: memref<4x8x512xf32, #tpu.memory_space<vmem>>, %arg2: memref<8x128xf32, #tpu.memory_space<vmem>>, %arg3: memref<8x128xf32, #tpu.memory_space<vmem>>, %arg4: memref<8x128xf32, #tpu.memory_space<vmem>>, %arg5: memref<128x384xf32, #tpu.memory_space<vmem>>, %arg6: memref<128x128xf32, #tpu.memory_space<vmem>>, %arg7: memref<128x128xf32, #tpu.memory_space<vmem>>, %arg8: memref<1x128xf32, #tpu.memory_space<vmem>>, %arg9: memref<1x128xf32, #tpu.memory_space<vmem>>, %arg10: memref<1x128xf32, #tpu.memory_space<vmem>>, %arg11: memref<128x128xf32, #tpu.memory_space<vmem>>, %arg12: memref<1x128xf32, #tpu.memory_space<vmem>>, %arg13: memref<4x8x128xf32, #tpu.memory_space<vmem>>, %arg14: memref<8x128xf32, #tpu.memory_space<vmem>>, %arg15: memref<8x128xf32, #tpu.memory_space<vmem>>, %arg16: memref<8x128xf32, #tpu.memory_space<vmem>>, %arg17: memref<8x128xf32, #tpu.memory_space<vmem>>, %arg18: memref<8x128xf32, #tpu.memory_space<vmem>>, %arg19: memref<8x128xf32, #tpu.memory_space<vmem>>, %arg20: memref<8x128xf32, #tpu.memory_space<vmem>>) attributes {dimension_semantics = [#tpu.dimension_semantics<arbitrary>], iteration_bounds = array<i64: 2>, scalar_prefetch = 0 : i64, scratch_operands = 3 : i64, tpu.core_type = #tpu.core_type<tc>, window_params = [{transform_indices = @transform_0, window_bounds = array<i64: 4, 8, 512>}, {pipeline_mode = #tpu.pipeline_mode<synchronous>, transform_indices = @transform_1, window_bounds = array<i64: 8, 128>}, {pipeline_mode = #tpu.pipeline_mode<synchronous>, transform_indices = @transform_2, window_bounds = array<i64: 8, 128>}, {pipeline_mode = #tpu.pipeline_mode<synchronous>, transform_indices = @transform_3, window_bounds = array<i64: 8, 128>}, {pipeline_mode = #tpu.pipeline_mode<synchronous>, transform_indices = @transform_4, window_bounds = array<i64: 128, 384>}, {pipeline_mode = #tpu.pipeline_mode<synchronous>, transform_indices = @transform_5, window_bounds = array<i64: 128, 128>}, {pipeline_mode = #tpu.pipeline_mode<synchronous>, transform_indices = @transform_6, window_bounds = array<i64: 128, 128>}, {pipeline_mode = #tpu.pipeline_mode<synchronous>, transform_indices = @transform_7, window_bounds = array<i64: 1, 128>}, {pipeline_mode = #tpu.pipeline_mode<synchronous>, transform_indices = @transform_8, window_bounds = array<i64: 1, 128>}, {pipeline_mode = #tpu.pipeline_mode<synchronous>, transform_indices = @transform_9, window_bounds = array<i64: 1, 128>}, {pipeline_mode = #tpu.pipeline_mode<synchronous>, transform_indices = @transform_10, window_bounds = array<i64: 128, 128>}, {pipeline_mode = #tpu.pipeline_mode<synchronous>, transform_indices = @transform_11, window_bounds = array<i64: 1, 128>}, {transform_indices = @transform_12, window_bounds = array<i64: 4, 8, 128>}, {pipeline_mode = #tpu.pipeline_mode<synchronous>, transform_indices = @transform_13, window_bounds = array<i64: 8, 128>}, {pipeline_mode = #tpu.pipeline_mode<synchronous>, transform_indices = @transform_14, window_bounds = array<i64: 8, 128>}, {pipeline_mode = #tpu.pipeline_mode<synchronous>, transform_indices = @transform_15, window_bounds = array<i64: 8, 128>}, {pipeline_mode = #tpu.pipeline_mode<synchronous>, transform_indices = @transform_16, window_bounds = array<i64: 8, 128>}]} {
    %c0_i32 = arith.constant 0 : i32
    %0 = arith.cmpi eq, %arg0, %c0_i32 : i32
    %1 = arith.extui %0 : i1 to i32
    %c0_i32_0 = arith.constant 0 : i32
    %2 = arith.cmpi ne, %1, %c0_i32_0 : i32
    scf.if %2 {
      %c0_98 = arith.constant 0 : index
      %c0_99 = arith.constant 0 : index
      %234 = vector.load %arg2[%c0_98, %c0_99] : memref<8x128xf32, #tpu.memory_space<vmem>>, vector<8x128xf32>
      %c0_100 = arith.constant 0 : index
      %c0_101 = arith.constant 0 : index
      %235 = vector.load %arg18[%c0_100, %c0_101] : memref<8x128xf32, #tpu.memory_space<vmem>>, vector<8x128xf32>
      tpu.vector_store %arg18[%c0_100, %c0_101], %234 {strides = array<i32>} : memref<8x128xf32, #tpu.memory_space<vmem>>, vector<8x128xf32>,
      %c0_102 = arith.constant 0 : index
      %c0_103 = arith.constant 0 : index
      %236 = vector.load %arg3[%c0_102, %c0_103] : memref<8x128xf32, #tpu.memory_space<vmem>>, vector<8x128xf32>
      %c0_104 = arith.constant 0 : index
      %c0_105 = arith.constant 0 : index
      %237 = vector.load %arg19[%c0_104, %c0_105] : memref<8x128xf32, #tpu.memory_space<vmem>>, vector<8x128xf32>
      tpu.vector_store %arg19[%c0_104, %c0_105], %236 {strides = array<i32>} : memref<8x128xf32, #tpu.memory_space<vmem>>, vector<8x128xf32>,
      %c0_106 = arith.constant 0 : index
      %c0_107 = arith.constant 0 : index
      %238 = vector.load %arg4[%c0_106, %c0_107] : memref<8x128xf32, #tpu.memory_space<vmem>>, vector<8x128xf32>
      %c0_108 = arith.constant 0 : index
      %c0_109 = arith.constant 0 : index
      %239 = vector.load %arg20[%c0_108, %c0_109] : memref<8x128xf32, #tpu.memory_space<vmem>>, vector<8x128xf32>
      tpu.vector_store %arg20[%c0_108, %c0_109], %238 {strides = array<i32>} : memref<8x128xf32, #tpu.memory_space<vmem>>, vector<8x128xf32>,
    } else {
    }
    %c0 = arith.constant 0 : index
    %c0_1 = arith.constant 0 : index
    %3 = vector.load %arg5[%c0, %c0_1] : memref<128x384xf32, #tpu.memory_space<vmem>>, vector<128x384xf32>
    %c0_2 = arith.constant 0 : index
    %c0_3 = arith.constant 0 : index
    %4 = vector.load %arg6[%c0_2, %c0_3] : memref<128x128xf32, #tpu.memory_space<vmem>>, vector<128x128xf32>
    %c0_4 = arith.constant 0 : index
    %c0_5 = arith.constant 0 : index
    %5 = vector.load %arg18[%c0_4, %c0_5] : memref<8x128xf32, #tpu.memory_space<vmem>>, vector<8x128xf32>
    %c0_6 = arith.constant 0 : index
    %c0_7 = arith.constant 0 : index
    %6 = vector.load %arg19[%c0_6, %c0_7] : memref<8x128xf32, #tpu.memory_space<vmem>>, vector<8x128xf32>
    %c0_8 = arith.constant 0 : index
    %c0_9 = arith.constant 0 : index
    %7 = vector.load %arg20[%c0_8, %c0_9] : memref<8x128xf32, #tpu.memory_space<vmem>>, vector<8x128xf32>
    %c0_i32_10 = arith.constant 0 : i32
    %8 = arith.index_cast %c0_i32_10 : i32 to index
    %c0_11 = arith.constant 0 : index
    %c0_12 = arith.constant 0 : index
    %9 = vector.load %arg1[%8, %c0_11, %c0_12] : memref<4x8x512xf32, #tpu.memory_space<vmem>>, vector<1x8x512xf32>
    %10 = vector.shape_cast %9 : vector<1x8x512xf32> to vector<8x512xf32>
    %cst = arith.constant dense<0.000000e+00> : vector<8x384xf32>
    %11 = tpu.matmul %5, %3, %cst {dimension_numbers = #tpu.dot_dimension_numbers<[1], [0], [0], [1], [0, 0, 1, 1], [], []>, precision = #tpu.contract_precision<fp32>} : vector<8x128xf32>, vector<128x384xf32>, vector<8x384xf32> -> vector<8x384xf32>
    %12 = vector.extract_strided_slice %10 {offsets = [0, 0], sizes = [8, 384], strides = [1, 1]} : vector<8x512xf32> to vector<8x384xf32>
    %13 = arith.addf %11, %12 : vector<8x384xf32>
    %14 = vector.extract_strided_slice %13 {offsets = [0, 0], sizes = [8, 128], strides = [1, 1]} : vector<8x384xf32> to vector<8x128xf32>
    %15 = math.tanh %14 : vector<8x128xf32>
    %16 = vector.extract_strided_slice %13 {offsets = [0, 128], sizes = [8, 128], strides = [1, 1]} : vector<8x384xf32> to vector<8x128xf32>
    %cst_13 = arith.constant 5.000000e-01 : f32
    %17 = vector.broadcast %cst_13 : f32 to vector<8x128xf32>
    %18 = arith.mulf %17, %16 : vector<8x128xf32>
    %19 = math.tanh %18 : vector<8x128xf32>
    %cst_14 = arith.constant 1.000000e+00 : f32
    %20 = vector.broadcast %cst_14 : f32 to vector<8x128xf32>
    %21 = arith.addf %19, %20 : vector<8x128xf32>
    %cst_15 = arith.constant 5.000000e-01 : f32
    %22 = vector.broadcast %cst_15 : f32 to vector<8x128xf32>
    %23 = arith.mulf %22, %21 : vector<8x128xf32>
    %24 = vector.extract_strided_slice %13 {offsets = [0, 256], sizes = [8, 128], strides = [1, 1]} : vector<8x384xf32> to vector<8x128xf32>
    %cst_16 = arith.constant 5.000000e-01 : f32
    %25 = vector.broadcast %cst_16 : f32 to vector<8x128xf32>
    %26 = arith.mulf %25, %24 : vector<8x128xf32>
    %27 = math.tanh %26 : vector<8x128xf32>
    %cst_17 = arith.constant 1.000000e+00 : f32
    %28 = vector.broadcast %cst_17 : f32 to vector<8x128xf32>
    %29 = arith.addf %27, %28 : vector<8x128xf32>
    %cst_18 = arith.constant 5.000000e-01 : f32
    %30 = vector.broadcast %cst_18 : f32 to vector<8x128xf32>
    %31 = arith.mulf %30, %29 : vector<8x128xf32>
    %32 = arith.addf %7, %15 : vector<8x128xf32>
    %cst_19 = arith.constant 0.000000e+00 : f32
    %33 = vector.broadcast %cst_19 : f32 to vector<8x128xf32>
    %34 = arith.maximumf %32, %33 : vector<8x128xf32>
    %cst_20 = arith.constant 1.000000e+00 : f32
    %35 = vector.broadcast %cst_20 : f32 to vector<8x128xf32>
    %36 = arith.subf %34, %35 : vector<8x128xf32>
    %cst_21 = arith.constant 0.000000e+00 : f32
    %37 = vector.broadcast %cst_21 : f32 to vector<8x128xf32>
    %38 = arith.cmpf ole, %36, %37 : vector<8x128xf32>
    %cst_22 = arith.constant 0.000000e+00 : f32
    %39 = vector.broadcast %cst_22 : f32 to vector<8x128xf32>
    %40 = arith.select %38, %39, %36 : vector<8x128xi1>, vector<8x128xf32>
    %cst_23 = arith.constant 0.000000e+00 : f32
    %41 = vector.broadcast %cst_23 : f32 to vector<8x128xf32>
    %42 = arith.select %38, %6, %41 : vector<8x128xi1>, vector<8x128xf32>
    %cst_24 = arith.constant 0.000000e+00 : f32
    %43 = vector.broadcast %cst_24 : f32 to vector<8x128xf32>
    %44 = arith.select %38, %43, %6 : vector<8x128xi1>, vector<8x128xf32>
    %45 = arith.addf %44, %23 : vector<8x128xf32>
    %cst_25 = arith.constant 0.000000e+00 : f32
    %46 = vector.broadcast %cst_25 : f32 to vector<8x128xf32>
    %47 = arith.maximumf %45, %46 : vector<8x128xf32>
    %48 = arith.mulf %5, %42 : vector<8x128xf32>
    %49 = vector.extract_strided_slice %10 {offsets = [0, 384], sizes = [8, 128], strides = [1, 1]} : vector<8x512xf32> to vector<8x128xf32>
    %cst_26 = arith.constant dense<0.000000e+00> : vector<8x128xf32>
    %50 = tpu.matmul %48, %4, %cst_26 {dimension_numbers = #tpu.dot_dimension_numbers<[1], [0], [0], [1], [0, 0, 1, 1], [], []>, precision = #tpu.contract_precision<fp32>} : vector<8x128xf32>, vector<128x128xf32>, vector<8x128xf32> -> vector<8x128xf32>
    %51 = arith.addf %49, %50 : vector<8x128xf32>
    %52 = math.tanh %51 : vector<8x128xf32>
    %cst_27 = arith.constant 1.000000e+00 : f32
    %53 = vector.broadcast %cst_27 : f32 to vector<8x128xf32>
    %54 = arith.subf %53, %31 : vector<8x128xf32>
    %55 = arith.mulf %54, %5 : vector<8x128xf32>
    %56 = arith.mulf %31, %52 : vector<8x128xf32>
    %57 = arith.addf %55, %56 : vector<8x128xf32>
    %58 = math.tanh %57 : vector<8x128xf32>
    %59 = arith.index_cast %c0_i32_10 : i32 to index
    %c0_28 = arith.constant 0 : index
    %c0_29 = arith.constant 0 : index
    %60 = vector.load %arg13[%59, %c0_28, %c0_29] : memref<4x8x128xf32, #tpu.memory_space<vmem>>, vector<1x8x128xf32>
    %61 = vector.shape_cast %60 : vector<1x8x128xf32> to vector<8x128xf32>
    %62 = vector.shape_cast %58 : vector<8x128xf32> to vector<1x8x128xf32>
    tpu.vector_store %arg13[%59, %c0_28, %c0_29], %62 {strides = array<i32>} : memref<4x8x128xf32, #tpu.memory_space<vmem>>, vector<1x8x128xf32>,
    %c1_i32 = arith.constant 1 : i32
    %63 = arith.index_cast %c1_i32 : i32 to index
    %c0_30 = arith.constant 0 : index
    %c0_31 = arith.constant 0 : index
    %64 = vector.load %arg1[%63, %c0_30, %c0_31] : memref<4x8x512xf32, #tpu.memory_space<vmem>>, vector<1x8x512xf32>
    %65 = vector.shape_cast %64 : vector<1x8x512xf32> to vector<8x512xf32>
    %cst_32 = arith.constant dense<0.000000e+00> : vector<8x384xf32>
    %66 = tpu.matmul %58, %3, %cst_32 {dimension_numbers = #tpu.dot_dimension_numbers<[1], [0], [0], [1], [0, 0, 1, 1], [], []>, precision = #tpu.contract_precision<fp32>} : vector<8x128xf32>, vector<128x384xf32>, vector<8x384xf32> -> vector<8x384xf32>
    %67 = vector.extract_strided_slice %65 {offsets = [0, 0], sizes = [8, 384], strides = [1, 1]} : vector<8x512xf32> to vector<8x384xf32>
    %68 = arith.addf %66, %67 : vector<8x384xf32>
    %69 = vector.extract_strided_slice %68 {offsets = [0, 0], sizes = [8, 128], strides = [1, 1]} : vector<8x384xf32> to vector<8x128xf32>
    %70 = math.tanh %69 : vector<8x128xf32>
    %71 = vector.extract_strided_slice %68 {offsets = [0, 128], sizes = [8, 128], strides = [1, 1]} : vector<8x384xf32> to vector<8x128xf32>
    %cst_33 = arith.constant 5.000000e-01 : f32
    %72 = vector.broadcast %cst_33 : f32 to vector<8x128xf32>
    %73 = arith.mulf %72, %71 : vector<8x128xf32>
    %74 = math.tanh %73 : vector<8x128xf32>
    %cst_34 = arith.constant 1.000000e+00 : f32
    %75 = vector.broadcast %cst_34 : f32 to vector<8x128xf32>
    %76 = arith.addf %74, %75 : vector<8x128xf32>
    %cst_35 = arith.constant 5.000000e-01 : f32
    %77 = vector.broadcast %cst_35 : f32 to vector<8x128xf32>
    %78 = arith.mulf %77, %76 : vector<8x128xf32>
    %79 = vector.extract_strided_slice %68 {offsets = [0, 256], sizes = [8, 128], strides = [1, 1]} : vector<8x384xf32> to vector<8x128xf32>
    %cst_36 = arith.constant 5.000000e-01 : f32
    %80 = vector.broadcast %cst_36 : f32 to vector<8x128xf32>
    %81 = arith.mulf %80, %79 : vector<8x128xf32>
    %82 = math.tanh %81 : vector<8x128xf32>
    %cst_37 = arith.constant 1.000000e+00 : f32
    %83 = vector.broadcast %cst_37 : f32 to vector<8x128xf32>
    %84 = arith.addf %82, %83 : vector<8x128xf32>
    %cst_38 = arith.constant 5.000000e-01 : f32
    %85 = vector.broadcast %cst_38 : f32 to vector<8x128xf32>
    %86 = arith.mulf %85, %84 : vector<8x128xf32>
    %87 = arith.addf %40, %70 : vector<8x128xf32>
    %cst_39 = arith.constant 0.000000e+00 : f32
    %88 = vector.broadcast %cst_39 : f32 to vector<8x128xf32>
    %89 = arith.maximumf %87, %88 : vector<8x128xf32>
    %cst_40 = arith.constant 1.000000e+00 : f32
    %90 = vector.broadcast %cst_40 : f32 to vector<8x128xf32>
    %91 = arith.subf %89, %90 : vector<8x128xf32>
    %cst_41 = arith.constant 0.000000e+00 : f32
    %92 = vector.broadcast %cst_41 : f32 to vector<8x128xf32>
    %93 = arith.cmpf ole, %91, %92 : vector<8x128xf32>
    %cst_42 = arith.constant 0.000000e+00 : f32
    %94 = vector.broadcast %cst_42 : f32 to vector<8x128xf32>
    %95 = arith.select %93, %94, %91 : vector<8x128xi1>, vector<8x128xf32>
    %cst_43 = arith.constant 0.000000e+00 : f32
    %96 = vector.broadcast %cst_43 : f32 to vector<8x128xf32>
    %97 = arith.select %93, %47, %96 : vector<8x128xi1>, vector<8x128xf32>
    %cst_44 = arith.constant 0.000000e+00 : f32
    %98 = vector.broadcast %cst_44 : f32 to vector<8x128xf32>
    %99 = arith.select %93, %98, %47 : vector<8x128xi1>, vector<8x128xf32>
    %100 = arith.addf %99, %78 : vector<8x128xf32>
    %cst_45 = arith.constant 0.000000e+00 : f32
    %101 = vector.broadcast %cst_45 : f32 to vector<8x128xf32>
    %102 = arith.maximumf %100, %101 : vector<8x128xf32>
    %103 = arith.mulf %58, %97 : vector<8x128xf32>
    %104 = vector.extract_strided_slice %65 {offsets = [0, 384], sizes = [8, 128], strides = [1, 1]} : vector<8x512xf32> to vector<8x128xf32>
    %cst_46 = arith.constant dense<0.000000e+00> : vector<8x128xf32>
    %105 = tpu.matmul %103, %4, %cst_46 {dimension_numbers = #tpu.dot_dimension_numbers<[1], [0], [0], [1], [0, 0, 1, 1], [], []>, precision = #tpu.contract_precision<fp32>} : vector<8x128xf32>, vector<128x128xf32>, vector<8x128xf32> -> vector<8x128xf32>
    %106 = arith.addf %104, %105 : vector<8x128xf32>
    %107 = math.tanh %106 : vector<8x128xf32>
    %cst_47 = arith.constant 1.000000e+00 : f32
    %108 = vector.broadcast %cst_47 : f32 to vector<8x128xf32>
    %109 = arith.subf %108, %86 : vector<8x128xf32>
    %110 = arith.mulf %109, %58 : vector<8x128xf32>
    %111 = arith.mulf %86, %107 : vector<8x128xf32>
    %112 = arith.addf %110, %111 : vector<8x128xf32>
    %113 = math.tanh %112 : vector<8x128xf32>
    %114 = arith.index_cast %c1_i32 : i32 to index
    %c0_48 = arith.constant 0 : index
    %c0_49 = arith.constant 0 : index
    %115 = vector.load %arg13[%114, %c0_48, %c0_49] : memref<4x8x128xf32, #tpu.memory_space<vmem>>, vector<1x8x128xf32>
    %116 = vector.shape_cast %115 : vector<1x8x128xf32> to vector<8x128xf32>
    %117 = vector.shape_cast %113 : vector<8x128xf32> to vector<1x8x128xf32>
    tpu.vector_store %arg13[%114, %c0_48, %c0_49], %117 {strides = array<i32>} : memref<4x8x128xf32, #tpu.memory_space<vmem>>, vector<1x8x128xf32>,
    %c2_i32 = arith.constant 2 : i32
    %118 = arith.index_cast %c2_i32 : i32 to index
    %c0_50 = arith.constant 0 : index
    %c0_51 = arith.constant 0 : index
    %119 = vector.load %arg1[%118, %c0_50, %c0_51] : memref<4x8x512xf32, #tpu.memory_space<vmem>>, vector<1x8x512xf32>
    %120 = vector.shape_cast %119 : vector<1x8x512xf32> to vector<8x512xf32>
    %cst_52 = arith.constant dense<0.000000e+00> : vector<8x384xf32>
    %121 = tpu.matmul %113, %3, %cst_52 {dimension_numbers = #tpu.dot_dimension_numbers<[1], [0], [0], [1], [0, 0, 1, 1], [], []>, precision = #tpu.contract_precision<fp32>} : vector<8x128xf32>, vector<128x384xf32>, vector<8x384xf32> -> vector<8x384xf32>
    %122 = vector.extract_strided_slice %120 {offsets = [0, 0], sizes = [8, 384], strides = [1, 1]} : vector<8x512xf32> to vector<8x384xf32>
    %123 = arith.addf %121, %122 : vector<8x384xf32>
    %124 = vector.extract_strided_slice %123 {offsets = [0, 0], sizes = [8, 128], strides = [1, 1]} : vector<8x384xf32> to vector<8x128xf32>
    %125 = math.tanh %124 : vector<8x128xf32>
    %126 = vector.extract_strided_slice %123 {offsets = [0, 128], sizes = [8, 128], strides = [1, 1]} : vector<8x384xf32> to vector<8x128xf32>
    %cst_53 = arith.constant 5.000000e-01 : f32
    %127 = vector.broadcast %cst_53 : f32 to vector<8x128xf32>
    %128 = arith.mulf %127, %126 : vector<8x128xf32>
    %129 = math.tanh %128 : vector<8x128xf32>
    %cst_54 = arith.constant 1.000000e+00 : f32
    %130 = vector.broadcast %cst_54 : f32 to vector<8x128xf32>
    %131 = arith.addf %129, %130 : vector<8x128xf32>
    %cst_55 = arith.constant 5.000000e-01 : f32
    %132 = vector.broadcast %cst_55 : f32 to vector<8x128xf32>
    %133 = arith.mulf %132, %131 : vector<8x128xf32>
    %134 = vector.extract_strided_slice %123 {offsets = [0, 256], sizes = [8, 128], strides = [1, 1]} : vector<8x384xf32> to vector<8x128xf32>
    %cst_56 = arith.constant 5.000000e-01 : f32
    %135 = vector.broadcast %cst_56 : f32 to vector<8x128xf32>
    %136 = arith.mulf %135, %134 : vector<8x128xf32>
    %137 = math.tanh %136 : vector<8x128xf32>
    %cst_57 = arith.constant 1.000000e+00 : f32
    %138 = vector.broadcast %cst_57 : f32 to vector<8x128xf32>
    %139 = arith.addf %137, %138 : vector<8x128xf32>
    %cst_58 = arith.constant 5.000000e-01 : f32
    %140 = vector.broadcast %cst_58 : f32 to vector<8x128xf32>
    %141 = arith.mulf %140, %139 : vector<8x128xf32>
    %142 = arith.addf %95, %125 : vector<8x128xf32>
    %cst_59 = arith.constant 0.000000e+00 : f32
    %143 = vector.broadcast %cst_59 : f32 to vector<8x128xf32>
    %144 = arith.maximumf %142, %143 : vector<8x128xf32>
    %cst_60 = arith.constant 1.000000e+00 : f32
    %145 = vector.broadcast %cst_60 : f32 to vector<8x128xf32>
    %146 = arith.subf %144, %145 : vector<8x128xf32>
    %cst_61 = arith.constant 0.000000e+00 : f32
    %147 = vector.broadcast %cst_61 : f32 to vector<8x128xf32>
    %148 = arith.cmpf ole, %146, %147 : vector<8x128xf32>
    %cst_62 = arith.constant 0.000000e+00 : f32
    %149 = vector.broadcast %cst_62 : f32 to vector<8x128xf32>
    %150 = arith.select %148, %149, %146 : vector<8x128xi1>, vector<8x128xf32>
    %cst_63 = arith.constant 0.000000e+00 : f32
    %151 = vector.broadcast %cst_63 : f32 to vector<8x128xf32>
    %152 = arith.select %148, %102, %151 : vector<8x128xi1>, vector<8x128xf32>
    %cst_64 = arith.constant 0.000000e+00 : f32
    %153 = vector.broadcast %cst_64 : f32 to vector<8x128xf32>
    %154 = arith.select %148, %153, %102 : vector<8x128xi1>, vector<8x128xf32>
    %155 = arith.addf %154, %133 : vector<8x128xf32>
    %cst_65 = arith.constant 0.000000e+00 : f32
    %156 = vector.broadcast %cst_65 : f32 to vector<8x128xf32>
    %157 = arith.maximumf %155, %156 : vector<8x128xf32>
    %158 = arith.mulf %113, %152 : vector<8x128xf32>
    %159 = vector.extract_strided_slice %120 {offsets = [0, 384], sizes = [8, 128], strides = [1, 1]} : vector<8x512xf32> to vector<8x128xf32>
    %cst_66 = arith.constant dense<0.000000e+00> : vector<8x128xf32>
    %160 = tpu.matmul %158, %4, %cst_66 {dimension_numbers = #tpu.dot_dimension_numbers<[1], [0], [0], [1], [0, 0, 1, 1], [], []>, precision = #tpu.contract_precision<fp32>} : vector<8x128xf32>, vector<128x128xf32>, vector<8x128xf32> -> vector<8x128xf32>
    %161 = arith.addf %159, %160 : vector<8x128xf32>
    %162 = math.tanh %161 : vector<8x128xf32>
    %cst_67 = arith.constant 1.000000e+00 : f32
    %163 = vector.broadcast %cst_67 : f32 to vector<8x128xf32>
    %164 = arith.subf %163, %141 : vector<8x128xf32>
    %165 = arith.mulf %164, %113 : vector<8x128xf32>
    %166 = arith.mulf %141, %162 : vector<8x128xf32>
    %167 = arith.addf %165, %166 : vector<8x128xf32>
    %168 = math.tanh %167 : vector<8x128xf32>
    %169 = arith.index_cast %c2_i32 : i32 to index
    %c0_68 = arith.constant 0 : index
    %c0_69 = arith.constant 0 : index
    %170 = vector.load %arg13[%169, %c0_68, %c0_69] : memref<4x8x128xf32, #tpu.memory_space<vmem>>, vector<1x8x128xf32>
    %171 = vector.shape_cast %170 : vector<1x8x128xf32> to vector<8x128xf32>
    %172 = vector.shape_cast %168 : vector<8x128xf32> to vector<1x8x128xf32>
    tpu.vector_store %arg13[%169, %c0_68, %c0_69], %172 {strides = array<i32>} : memref<4x8x128xf32, #tpu.memory_space<vmem>>, vector<1x8x128xf32>,
    %c3_i32 = arith.constant 3 : i32
    %173 = arith.index_cast %c3_i32 : i32 to index
    %c0_70 = arith.constant 0 : index
    %c0_71 = arith.constant 0 : index
    %174 = vector.load %arg1[%173, %c0_70, %c0_71] : memref<4x8x512xf32, #tpu.memory_space<vmem>>, vector<1x8x512xf32>
    %175 = vector.shape_cast %174 : vector<1x8x512xf32> to vector<8x512xf32>
    %cst_72 = arith.constant dense<0.000000e+00> : vector<8x384xf32>
    %176 = tpu.matmul %168, %3, %cst_72 {dimension_numbers = #tpu.dot_dimension_numbers<[1], [0], [0], [1], [0, 0, 1, 1], [], []>, precision = #tpu.contract_precision<fp32>} : vector<8x128xf32>, vector<128x384xf32>, vector<8x384xf32> -> vector<8x384xf32>
    %177 = vector.extract_strided_slice %175 {offsets = [0, 0], sizes = [8, 384], strides = [1, 1]} : vector<8x512xf32> to vector<8x384xf32>
    %178 = arith.addf %176, %177 : vector<8x384xf32>
    %179 = vector.extract_strided_slice %178 {offsets = [0, 0], sizes = [8, 128], strides = [1, 1]} : vector<8x384xf32> to vector<8x128xf32>
    %180 = math.tanh %179 : vector<8x128xf32>
    %181 = vector.extract_strided_slice %178 {offsets = [0, 128], sizes = [8, 128], strides = [1, 1]} : vector<8x384xf32> to vector<8x128xf32>
    %cst_73 = arith.constant 5.000000e-01 : f32
    %182 = vector.broadcast %cst_73 : f32 to vector<8x128xf32>
    %183 = arith.mulf %182, %181 : vector<8x128xf32>
    %184 = math.tanh %183 : vector<8x128xf32>
    %cst_74 = arith.constant 1.000000e+00 : f32
    %185 = vector.broadcast %cst_74 : f32 to vector<8x128xf32>
    %186 = arith.addf %184, %185 : vector<8x128xf32>
    %cst_75 = arith.constant 5.000000e-01 : f32
    %187 = vector.broadcast %cst_75 : f32 to vector<8x128xf32>
    %188 = arith.mulf %187, %186 : vector<8x128xf32>
    %189 = vector.extract_strided_slice %178 {offsets = [0, 256], sizes = [8, 128], strides = [1, 1]} : vector<8x384xf32> to vector<8x128xf32>
    %cst_76 = arith.constant 5.000000e-01 : f32
    %190 = vector.broadcast %cst_76 : f32 to vector<8x128xf32>
    %191 = arith.mulf %190, %189 : vector<8x128xf32>
    %192 = math.tanh %191 : vector<8x128xf32>
    %cst_77 = arith.constant 1.000000e+00 : f32
    %193 = vector.broadcast %cst_77 : f32 to vector<8x128xf32>
    %194 = arith.addf %192, %193 : vector<8x128xf32>
    %cst_78 = arith.constant 5.000000e-01 : f32
    %195 = vector.broadcast %cst_78 : f32 to vector<8x128xf32>
    %196 = arith.mulf %195, %194 : vector<8x128xf32>
    %197 = arith.addf %150, %180 : vector<8x128xf32>
    %cst_79 = arith.constant 0.000000e+00 : f32
    %198 = vector.broadcast %cst_79 : f32 to vector<8x128xf32>
    %199 = arith.maximumf %197, %198 : vector<8x128xf32>
    %cst_80 = arith.constant 1.000000e+00 : f32
    %200 = vector.broadcast %cst_80 : f32 to vector<8x128xf32>
    %201 = arith.subf %199, %200 : vector<8x128xf32>
    %cst_81 = arith.constant 0.000000e+00 : f32
    %202 = vector.broadcast %cst_81 : f32 to vector<8x128xf32>
    %203 = arith.cmpf ole, %201, %202 : vector<8x128xf32>
    %cst_82 = arith.constant 0.000000e+00 : f32
    %204 = vector.broadcast %cst_82 : f32 to vector<8x128xf32>
    %205 = arith.select %203, %204, %201 : vector<8x128xi1>, vector<8x128xf32>
    %cst_83 = arith.constant 0.000000e+00 : f32
    %206 = vector.broadcast %cst_83 : f32 to vector<8x128xf32>
    %207 = arith.select %203, %157, %206 : vector<8x128xi1>, vector<8x128xf32>
    %cst_84 = arith.constant 0.000000e+00 : f32
    %208 = vector.broadcast %cst_84 : f32 to vector<8x128xf32>
    %209 = arith.select %203, %208, %157 : vector<8x128xi1>, vector<8x128xf32>
    %210 = arith.addf %209, %188 : vector<8x128xf32>
    %cst_85 = arith.constant 0.000000e+00 : f32
    %211 = vector.broadcast %cst_85 : f32 to vector<8x128xf32>
    %212 = arith.maximumf %210, %211 : vector<8x128xf32>
    %213 = arith.mulf %168, %207 : vector<8x128xf32>
    %214 = vector.extract_strided_slice %175 {offsets = [0, 384], sizes = [8, 128], strides = [1, 1]} : vector<8x512xf32> to vector<8x128xf32>
    %cst_86 = arith.constant dense<0.000000e+00> : vector<8x128xf32>
    %215 = tpu.matmul %213, %4, %cst_86 {dimension_numbers = #tpu.dot_dimension_numbers<[1], [0], [0], [1], [0, 0, 1, 1], [], []>, precision = #tpu.contract_precision<fp32>} : vector<8x128xf32>, vector<128x128xf32>, vector<8x128xf32> -> vector<8x128xf32>
    %216 = arith.addf %214, %215 : vector<8x128xf32>
    %217 = math.tanh %216 : vector<8x128xf32>
    %cst_87 = arith.constant 1.000000e+00 : f32
    %218 = vector.broadcast %cst_87 : f32 to vector<8x128xf32>
    %219 = arith.subf %218, %196 : vector<8x128xf32>
    %220 = arith.mulf %219, %168 : vector<8x128xf32>
    %221 = arith.mulf %196, %217 : vector<8x128xf32>
    %222 = arith.addf %220, %221 : vector<8x128xf32>
    %223 = math.tanh %222 : vector<8x128xf32>
    %224 = arith.index_cast %c3_i32 : i32 to index
    %c0_88 = arith.constant 0 : index
    %c0_89 = arith.constant 0 : index
    %225 = vector.load %arg13[%224, %c0_88, %c0_89] : memref<4x8x128xf32, #tpu.memory_space<vmem>>, vector<1x8x128xf32>
    %226 = vector.shape_cast %225 : vector<1x8x128xf32> to vector<8x128xf32>
    %227 = vector.shape_cast %223 : vector<8x128xf32> to vector<1x8x128xf32>
    tpu.vector_store %arg13[%224, %c0_88, %c0_89], %227 {strides = array<i32>} : memref<4x8x128xf32, #tpu.memory_space<vmem>>, vector<1x8x128xf32>,
    %c4_i32 = arith.constant 4 : i32
    %c0_90 = arith.constant 0 : index
    %c0_91 = arith.constant 0 : index
    %228 = vector.load %arg18[%c0_90, %c0_91] : memref<8x128xf32, #tpu.memory_space<vmem>>, vector<8x128xf32>
    tpu.vector_store %arg18[%c0_90, %c0_91], %223 {strides = array<i32>} : memref<8x128xf32, #tpu.memory_space<vmem>>, vector<8x128xf32>,
    %c0_92 = arith.constant 0 : index
    %c0_93 = arith.constant 0 : index
    %229 = vector.load %arg19[%c0_92, %c0_93] : memref<8x128xf32, #tpu.memory_space<vmem>>, vector<8x128xf32>
    tpu.vector_store %arg19[%c0_92, %c0_93], %212 {strides = array<i32>} : memref<8x128xf32, #tpu.memory_space<vmem>>, vector<8x128xf32>,
    %c0_94 = arith.constant 0 : index
    %c0_95 = arith.constant 0 : index
    %230 = vector.load %arg20[%c0_94, %c0_95] : memref<8x128xf32, #tpu.memory_space<vmem>>, vector<8x128xf32>
    tpu.vector_store %arg20[%c0_94, %c0_95], %205 {strides = array<i32>} : memref<8x128xf32, #tpu.memory_space<vmem>>, vector<8x128xf32>,
    %c1_i32_96 = arith.constant 1 : i32
    %231 = arith.cmpi eq, %arg0, %c1_i32_96 : i32
    %232 = arith.extui %231 : i1 to i32
    %c0_i32_97 = arith.constant 0 : i32
    %233 = arith.cmpi ne, %232, %c0_i32_97 : i32
    scf.if %233 {
      %c0_98 = arith.constant 0 : index
      %c0_99 = arith.constant 0 : index
      %234 = vector.load %arg14[%c0_98, %c0_99] : memref<8x128xf32, #tpu.memory_space<vmem>>, vector<8x128xf32>
      tpu.vector_store %arg14[%c0_98, %c0_99], %223 {strides = array<i32>} : memref<8x128xf32, #tpu.memory_space<vmem>>, vector<8x128xf32>,
      %c0_100 = arith.constant 0 : index
      %c0_101 = arith.constant 0 : index
      %235 = vector.load %arg15[%c0_100, %c0_101] : memref<8x128xf32, #tpu.memory_space<vmem>>, vector<8x128xf32>
      tpu.vector_store %arg15[%c0_100, %c0_101], %212 {strides = array<i32>} : memref<8x128xf32, #tpu.memory_space<vmem>>, vector<8x128xf32>,
      %c0_102 = arith.constant 0 : index
      %c0_103 = arith.constant 0 : index
      %236 = vector.load %arg16[%c0_102, %c0_103] : memref<8x128xf32, #tpu.memory_space<vmem>>, vector<8x128xf32>
      tpu.vector_store %arg16[%c0_102, %c0_103], %205 {strides = array<i32>} : memref<8x128xf32, #tpu.memory_space<vmem>>, vector<8x128xf32>,
      %c0_104 = arith.constant 0 : index
      %c0_105 = arith.constant 0 : index
      %237 = vector.load %arg7[%c0_104, %c0_105] : memref<128x128xf32, #tpu.memory_space<vmem>>, vector<128x128xf32>
      %cst_106 = arith.constant dense<0.000000e+00> : vector<8x128xf32>
      %238 = tpu.matmul %223, %237, %cst_106 {dimension_numbers = #tpu.dot_dimension_numbers<[1], [0], [0], [1], [0, 0, 1, 1], [], []>, precision = #tpu.contract_precision<fp32>} : vector<8x128xf32>, vector<128x128xf32>, vector<8x128xf32> -> vector<8x128xf32>
      %c0_107 = arith.constant 0 : index
      %c0_108 = arith.constant 0 : index
      %239 = vector.load %arg8[%c0_107, %c0_108] : memref<1x128xf32, #tpu.memory_space<vmem>>, vector<1x128xf32>
      %240 = vector.broadcast %239 : vector<1x128xf32> to vector<8x128xf32>
      %241 = arith.addf %238, %240 : vector<8x128xf32>
      %242 = tpu.iota {dimensions = array<i32: 0>} : vector<8x128xi32>
      %c2_i32_109 = arith.constant 2 : i32
      %243 = vector.broadcast %c2_i32_109 : i32 to vector<8x128xi32>
      %244 = arith.cmpi slt, %242, %243 : vector<8x128xi32>
      %245 = arith.extui %244 : vector<8x128xi1> to vector<8x128xi32>
      %246 = arith.sitofp %245 : vector<8x128xi32> to vector<8x128xf32>
      %247 = arith.mulf %241, %246 : vector<8x128xf32>
      %cst_110 = arith.constant dense<0.000000e+00> : vector<128xf32>
      %248 = vector.multi_reduction <add>, %247, %cst_110 [0] : vector<8x128xf32> to vector<128xf32>
      %249 = vector.shape_cast %248 : vector<128xf32> to vector<1x128xf32>
      %cst_111 = arith.constant 5.000000e-01 : f32
      %250 = vector.broadcast %cst_111 : f32 to vector<1x128xf32>
      %251 = arith.mulf %249, %250 : vector<1x128xf32>
      %252 = vector.broadcast %251 : vector<1x128xf32> to vector<8x128xf32>
      %253 = arith.subf %241, %252 : vector<8x128xf32>
      %254 = arith.mulf %253, %253 : vector<8x128xf32>
      %255 = arith.mulf %246, %254 : vector<8x128xf32>
      %cst_112 = arith.constant dense<0.000000e+00> : vector<128xf32>
      %256 = vector.multi_reduction <add>, %255, %cst_112 [0] : vector<8x128xf32> to vector<128xf32>
      %257 = vector.shape_cast %256 : vector<128xf32> to vector<1x128xf32>
      %cst_113 = arith.constant 5.000000e-01 : f32
      %258 = vector.broadcast %cst_113 : f32 to vector<1x128xf32>
      %259 = arith.mulf %257, %258 : vector<1x128xf32>
      %260 = vector.broadcast %251 : vector<1x128xf32> to vector<8x128xf32>
      %261 = arith.subf %241, %260 : vector<8x128xf32>
      %cst_114 = arith.constant 9.99999974E-6 : f32
      %262 = vector.broadcast %cst_114 : f32 to vector<1x128xf32>
      %263 = arith.addf %259, %262 : vector<1x128xf32>
      %264 = math.rsqrt %263 : vector<1x128xf32>
      %265 = vector.broadcast %264 : vector<1x128xf32> to vector<8x128xf32>
      %266 = arith.mulf %261, %265 : vector<8x128xf32>
      %c0_115 = arith.constant 0 : index
      %c0_116 = arith.constant 0 : index
      %267 = vector.load %arg9[%c0_115, %c0_116] : memref<1x128xf32, #tpu.memory_space<vmem>>, vector<1x128xf32>
      %268 = vector.broadcast %267 : vector<1x128xf32> to vector<8x128xf32>
      %269 = arith.mulf %266, %268 : vector<8x128xf32>
      %c0_117 = arith.constant 0 : index
      %c0_118 = arith.constant 0 : index
      %270 = vector.load %arg10[%c0_117, %c0_118] : memref<1x128xf32, #tpu.memory_space<vmem>>, vector<1x128xf32>
      %271 = vector.broadcast %270 : vector<1x128xf32> to vector<8x128xf32>
      %272 = arith.addf %269, %271 : vector<8x128xf32>
      %cst_119 = arith.constant 0.000000e+00 : f32
      %273 = vector.broadcast %cst_119 : f32 to vector<8x128xf32>
      %274 = arith.maximumf %272, %273 : vector<8x128xf32>
      %c0_120 = arith.constant 0 : index
      %c0_121 = arith.constant 0 : index
      %275 = vector.load %arg11[%c0_120, %c0_121] : memref<128x128xf32, #tpu.memory_space<vmem>>, vector<128x128xf32>
      %cst_122 = arith.constant dense<0.000000e+00> : vector<8x128xf32>
      %276 = tpu.matmul %274, %275, %cst_122 {dimension_numbers = #tpu.dot_dimension_numbers<[1], [0], [0], [1], [0, 0, 1, 1], [], []>, precision = #tpu.contract_precision<fp32>} : vector<8x128xf32>, vector<128x128xf32>, vector<8x128xf32> -> vector<8x128xf32>
      %c0_123 = arith.constant 0 : index
      %c0_124 = arith.constant 0 : index
      %277 = vector.load %arg12[%c0_123, %c0_124] : memref<1x128xf32, #tpu.memory_space<vmem>>, vector<1x128xf32>
      %278 = vector.broadcast %277 : vector<1x128xf32> to vector<8x128xf32>
      %279 = arith.addf %276, %278 : vector<8x128xf32>
      %c0_125 = arith.constant 0 : index
      %c0_126 = arith.constant 0 : index
      %280 = vector.load %arg17[%c0_125, %c0_126] : memref<8x128xf32, #tpu.memory_space<vmem>>, vector<8x128xf32>
      tpu.vector_store %arg17[%c0_125, %c0_126], %279 {strides = array<i32>} : memref<8x128xf32, #tpu.memory_space<vmem>>, vector<8x128xf32>,
    } else {
    }
    return
  }
  func.func @transform_0(%arg0: i32) -> (i32, i32, i32) {
    %c0_i32 = arith.constant 0 : i32
    %c0_i32_0 = arith.constant 0 : i32
    %c0_i32_1 = arith.constant 0 : i32
    return %arg0, %c0_i32, %c0_i32_0 : i32, i32, i32
  }
  func.func @transform_1(%arg0: i32) -> (i32, i32) {
    %c0_i32 = arith.constant 0 : i32
    %c0_i32_0 = arith.constant 0 : i32
    %c0_i32_1 = arith.constant 0 : i32
    return %c0_i32, %c0_i32_0 : i32, i32
  }
  func.func @transform_2(%arg0: i32) -> (i32, i32) {
    %c0_i32 = arith.constant 0 : i32
    %c0_i32_0 = arith.constant 0 : i32
    %c0_i32_1 = arith.constant 0 : i32
    return %c0_i32, %c0_i32_0 : i32, i32
  }
  func.func @transform_3(%arg0: i32) -> (i32, i32) {
    %c0_i32 = arith.constant 0 : i32
    %c0_i32_0 = arith.constant 0 : i32
    %c0_i32_1 = arith.constant 0 : i32
    return %c0_i32, %c0_i32_0 : i32, i32
  }
  func.func @transform_4(%arg0: i32) -> (i32, i32) {
    %c0_i32 = arith.constant 0 : i32
    %c0_i32_0 = arith.constant 0 : i32
    %c0_i32_1 = arith.constant 0 : i32
    return %c0_i32, %c0_i32_0 : i32, i32
  }
  func.func @transform_5(%arg0: i32) -> (i32, i32) {
    %c0_i32 = arith.constant 0 : i32
    %c0_i32_0 = arith.constant 0 : i32
    %c0_i32_1 = arith.constant 0 : i32
    return %c0_i32, %c0_i32_0 : i32, i32
  }
  func.func @transform_6(%arg0: i32) -> (i32, i32) {
    %c0_i32 = arith.constant 0 : i32
    %c0_i32_0 = arith.constant 0 : i32
    %c0_i32_1 = arith.constant 0 : i32
    return %c0_i32, %c0_i32_0 : i32, i32
  }
  func.func @transform_7(%arg0: i32) -> (i32, i32) {
    %c0_i32 = arith.constant 0 : i32
    %c0_i32_0 = arith.constant 0 : i32
    %c0_i32_1 = arith.constant 0 : i32
    return %c0_i32, %c0_i32_0 : i32, i32
  }
  func.func @transform_8(%arg0: i32) -> (i32, i32) {
    %c0_i32 = arith.constant 0 : i32
    %c0_i32_0 = arith.constant 0 : i32
    %c0_i32_1 = arith.constant 0 : i32
    return %c0_i32, %c0_i32_0 : i32, i32
  }
  func.func @transform_9(%arg0: i32) -> (i32, i32) {
    %c0_i32 = arith.constant 0 : i32
    %c0_i32_0 = arith.constant 0 : i32
    %c0_i32_1 = arith.constant 0 : i32
    return %c0_i32, %c0_i32_0 : i32, i32
  }
  func.func @transform_10(%arg0: i32) -> (i32, i32) {
    %c0_i32 = arith.constant 0 : i32
    %c0_i32_0 = arith.constant 0 : i32
    %c0_i32_1 = arith.constant 0 : i32
    return %c0_i32, %c0_i32_0 : i32, i32
  }
  func.func @transform_11(%arg0: i32) -> (i32, i32) {
    %c0_i32 = arith.constant 0 : i32
    %c0_i32_0 = arith.constant 0 : i32
    %c0_i32_1 = arith.constant 0 : i32
    return %c0_i32, %c0_i32_0 : i32, i32
  }
  func.func @transform_12(%arg0: i32) -> (i32, i32, i32) {
    %c0_i32 = arith.constant 0 : i32
    %c0_i32_0 = arith.constant 0 : i32
    %c0_i32_1 = arith.constant 0 : i32
    return %arg0, %c0_i32, %c0_i32_0 : i32, i32, i32
  }
  func.func @transform_13(%arg0: i32) -> (i32, i32) {
    %c0_i32 = arith.constant 0 : i32
    %c0_i32_0 = arith.constant 0 : i32
    %c0_i32_1 = arith.constant 0 : i32
    return %c0_i32, %c0_i32_0 : i32, i32
  }
  func.func @transform_14(%arg0: i32) -> (i32, i32) {
    %c0_i32 = arith.constant 0 : i32
    %c0_i32_0 = arith.constant 0 : i32
    %c0_i32_1 = arith.constant 0 : i32
    return %c0_i32, %c0_i32_0 : i32, i32
  }
  func.func @transform_15(%arg0: i32) -> (i32, i32) {
    %c0_i32 = arith.constant 0 : i32
    %c0_i32_0 = arith.constant 0 : i32
    %c0_i32_1 = arith.constant 0 : i32
    return %c0_i32, %c0_i32_0 : i32, i32
  }
  func.func @transform_16(%arg0: i32) -> (i32, i32) {
    %c0_i32 = arith.constant 0 : i32
    %c0_i32_0 = arith.constant 0 : i32
    %c0_i32_1 = arith.constant 0 : i32
    return %c0_i32, %c0_i32_0 : i32, i32
  }
}

</mosaic_0001>

<bundles_post_ra>
// kernel: qurnn_forward.1
= control target key start
LH: loop header
LB: loop body
LE: loop exit
PB: predicated region body
PF: predicated region fallthrough
CT: control target
= control target key end

     0   :  { %s7224_s21 = smov 0   ;;  %s10559_s0 = inlined_call_operand.vmem [shape: f32[8,8,512], index: 0, kind: input, shape index: {}]   ;;  %s10560_s1 = inlined_call_operand.vmem [shape: f32[8,128], index: 1, kind: input, shape index: {}]   ;;  %s10561_s2 = inlined_call_operand.vmem [shape: f32[8,128], index: 2, kind: input, shape index: {}]   ;;  %s10562_s3 = inlined_call_operand.vmem [shape: f32[8,128], index: 3, kind: input, shape index: {}]   ;;  %s10563_s4 = inlined_call_operand.vmem [shape: f32[128,384], index: 4, kind: input, shape index: {}]   ;;  %s10564_s5 = inlined_call_operand.vmem [shape: f32[128,128], index: 5, kind: input, shape index: {}]   ;;  %s10565_s6 = inlined_call_operand.vmem [shape: f32[128,128], index: 6, kind: input, shape index: {}]   ;;  %s10566_s7 = inlined_call_operand.vmem [shape: f32[1,128], index: 7, kind: input, shape index: {}]   ;;  %s10567_s8 = inlined_call_operand.vmem [shape: f32[1,128], index: 8, kind: input, shape index: {}]   ;;  %s10568_s9 = inlined_call_operand.vmem [shape: f32[1,128], index: 9, kind: input, shape index: {}]   ;;  %s10569_s10 = inlined_call_operand.vmem [shape: f32[128,128], index: 10, kind: input, shape index: {}]   ;;  %s10570_s11 = inlined_call_operand.vmem [shape: f32[1,128], index: 11, kind: input, shape index: {}]   ;;  %s10571_s12 = inlined_call_operand.vmem [shape: f32[8,8,128], index: 12, kind: output, shape index: {0}]   ;;  %s10572_s13 = inlined_call_operand.vmem [shape: f32[8,128], index: 13, kind: output, shape index: {1}]   ;;  %s10573_s14 = inlined_call_operand.vmem [shape: f32[8,128], index: 14, kind: output, shape index: {2}]   ;;  %s10574_s15 = inlined_call_operand.vmem [shape: f32[8,128], index: 15, kind: output, shape index: {3}]   ;;  %s10575_s16 = inlined_call_operand.vmem [shape: f32[8,128], index: 16, kind: output, shape index: {4}]  }
   0x1   :  { %11140 = sst [smem:[#allocation263_spill]] %s10559_s0 }
   0x2 LB: > { %11141 = sst [smem:[#allocation5_spill]] %s7136_s21  ;;  %s7230_s22 = sadd.s32 4294967295, %s7136_s21   ;;  %s7136_s21 = sphi %s7224_s21, %s27_s21  }
   0x3   : > { %p7043_p0 = scmp.ge.s32.totalorder %s7136_s21, 1  ;;  %p453_p1 = scmp.lt.s32.totalorder %s7136_s21, 3 }
   0x5   : > { %p454_p2 = pnand %p7043_p0, %p453_p1 }
   0x7   : > { %457 = sbr.rel (%p454_p2) target bundleno = 1947 (0x79b), region = 68 }
   0xc   : > { %s7044_s23 = sshll.u32 %s7230_s22, 2  ;;  %s11142_s28 = sld [smem:[#allocation263_spill]] }
   0xd   : > { %p505_p3 = scmp.lt.s32.totalorder %s7044_s23, 7  ;;  %p7049_p4 = scmp.ne.s32.totalorder %s7230_s22, 0 }
   0xf   : > { %s12095_s23 = smov (!%p505_p3, %s7044_s23), 7  ;;  %520 = sbr.rel (%p7049_p4) target bundleno = 24 (0x18), region = 72 }
  0x10   : > { %s7073_s24 = sshll.u32 %s12095_s23, 5  ;;  %s7048_s25 = sshll.u32 %s12095_s23, 3 }
  0x11   : > { %s7243_s17 = scalar_lea.vmem %s10571_s12, %s7048_s25 }
  0x12   : > { %s7238_s29 = scalar_lea.vmem %s11142_s28, %s7073_s24 }
  0x14   : > { %v521_v0 = vld [vmem:[%s10560_s1] sm:$0xff] }
  0x15   : > { %v523_v1 = vld [vmem:[%s10561_s2] sm:$0xff]  ;;  %522 = vst [vmem:[#allocation2] sm:$0xff] %v521_v0 }
  0x16   : > { %v525_v2 = vld [vmem:[%s10562_s3] sm:$0xff]  ;;  %524 = vst [vmem:[#allocation3] sm:$0xff] %v523_v1 }
  0x17   : > { %526 = vst [vmem:[#allocation4] sm:$0xff] %v525_v2 }
  0x18 PF: > { %v572_v3 = vld [vmem:[%s10563_s4 + $0x168] sm:$0xff]  ;;  %v569_v4 = vld [vmem:[%s10563_s4 + $0x150] sm:$0xff]  ;;  %v566_v5 = vld [vmem:[%s10563_s4 + $0x138] sm:$0xff]  ;;  %p7069_p5 = scmp.ne.s32.totalorder %s7230_s22, 1 }
  0x19   : > { %v7264_v6 = vand.u32 4294901760, %v572_v3  ;;  %v7266_v7 = vand.u32 4294901760, %v569_v4  ;;  %v7268_v8 = vand.u32 4294901760, %v566_v5  ;;  %v563_v9 = vld [vmem:[%s10563_s4 + $0x120] sm:$0xff]  ;;  %v560_v10 = vld [vmem:[%s10563_s4 + $0x108] sm:$0xff]  ;;  %v557_v11 = vld [vmem:[%s10563_s4 + $0xf0] sm:$0xff] }
  0x1a   : > { %v7279_v12 = vand.u32 4294901760, %v563_v9  ;;  %v7281_v13 = vand.u32 4294901760, %v560_v10  ;;  %v7283_v14 = vand.u32 4294901760, %v557_v11  ;;  %v554_v15 = vld [vmem:[%s10563_s4 + $0xd8] sm:$0xff]  ;;  %v551_v16 = vld [vmem:[%s10563_s4 + $0xc0] sm:$0xff]  ;;  %v548_v28 = vld [vmem:[%s10563_s4 + $0xa8] sm:$0xff] }
  0x1b   : > { %11143 = vst [vmem:[#allocation6_spill] sm:$0xff] %v7264_v6  ;;  %v7292_v17 = vsub.f32 %v572_v3, %v7264_v6  ;;  %599 = vmatpush.msra.mxu0 %v7264_v6  ;;  %v7296_v18 = vsub.f32 %v569_v4, %v7266_v7  ;;  %795 = vmatpush.msra.mxu3 %v7264_v6  ;;  %v7302_v20 = vand.u32 4294901760, %v554_v15  ;;  %v7324_v27 = vand.u32 4294901760, %v551_v16  ;;  %v545_v37 = vld [vmem:[%s10563_s4 + $0x90] sm:$0xff]  ;;  %v542_v38 = vld [vmem:[%s10563_s4 + $0x78] sm:$0xff]  ;;  %v539_v43 = vld [vmem:[%s10563_s4 + $0x60] sm:$0xff] }
  0x1c   : > { %11144 = vst [vmem:[#allocation7_spill] sm:$0xff] %v7266_v7  ;;  %v7300_v19 = vsub.f32 %v566_v5, %v7268_v8  ;;  %v7305_v21 = vsub.f32 %v563_v9, %v7279_v12  ;;  %v7308_v22 = vsub.f32 %v560_v10, %v7281_v13  ;;  %v7311_v23 = vsub.f32 %v557_v11, %v7283_v14  ;;  %v536_v51 = vld [vmem:[%s10563_s4 + $0x48] sm:$0xff]  ;;  %v533_v56 = vld [vmem:[%s10563_s4 + $0x30] sm:$0xff]  ;;  %v530_v62 = vld [vmem:[%s10563_s4 + $0x18] sm:$0xff] }
  0x1d   : > { %11145 = vst [vmem:[#allocation8_spill] sm:$0xff] %v7268_v8  ;;  %742 = vmatpush.msra.mxu2 %v7292_v17  ;;  %601 = vmatpush.msra.mxu0 %v7266_v7  ;;  %v7316_v24 = vand.u32 4294901760, %v7292_v17  ;;  %v7319_v25 = vand.u32 4294901760, %v7296_v18  ;;  %v7337_v31 = vsub.f32 %v554_v15, %v7302_v20  ;;  %v7351_v36 = vand.u32 4294901760, %v548_v28  ;;  %v573_v63 = vld [vmem:[%s10563_s4 + $0x170] sm:$0xff]  ;;  %v570_v2 = vld [vmem:[%s10563_s4 + $0x158] sm:$0xff] }
  0x1e   : > { %11146 = vst [vmem:[#allocation9_spill] sm:$0xff] %v7279_v12  ;;  %v7322_v26 = vand.u32 4294901760, %v7300_v19  ;;  %797 = vmatpush.msra.mxu3 %v7266_v7  ;;  %v7331_v29 = vand.u32 4294901760, %v7305_v21  ;;  %v7334_v30 = vand.u32 4294901760, %v7308_v22  ;;  %v7349_v35 = vand.u32 4294901760, %v7311_v23  ;;  %v527_v9 = vld [vmem:[%s10563_s4] sm:$0xff] }
  0x1f   : > { %11147 = vst [vmem:[#allocation10_spill] sm:$0xff] %v7281_v13  ;;  %745 = vmatpush.msra.mxu2 %v7296_v18  ;;  %v642_v32 = vsub.f32 %v7292_v17, %v7316_v24  ;;  %603 = vmatpush.msra.mxu0 %v7268_v8  ;;  %v648_v33 = vsub.f32 %v7296_v18, %v7319_v25  ;;  %v7377_v45 = vand.u32 4294901760, %v7337_v31  ;;  %v7386_v48 = vand.u32 4294901760, %v545_v37 }
  0x20   : > { %11148 = vst [vmem:[#allocation11_spill] sm:$0xff] %v7283_v14  ;;  %v654_v34 = vsub.f32 %v7300_v19, %v7322_v26  ;;  %799 = vmatpush.msra.mxu3 %v7268_v8  ;;  %v660_v41 = vsub.f32 %v7305_v21, %v7331_v29  ;;  %v7368_v42 = vsub.f32 %v551_v16, %v7324_v27  ;;  %v7388_v49 = vand.u32 4294901760, %v542_v38  ;;  %v567_v16 = vld [vmem:[%s10563_s4 + $0x140] sm:$0xff] }
  0x21   : > { %11149 = vst [vmem:[#allocation12_spill] sm:$0xff] %v7292_v17  ;;  %v7359_v39 = vand.u32 4294901760, %v642_v32  ;;  %748 = vmatpush.msra.mxu2 %v7300_v19  ;;  %v7362_v40 = vand.u32 4294901760, %v648_v33  ;;  %605 = vmatpush.msra.mxu0 %v7279_v12  ;;  %v666_v44 = vsub.f32 %v7308_v22, %v7334_v30  ;;  %v7384_v47 = vsub.f32 %v548_v28, %v7351_v36 }
  0x22   : > { %11150 = vst [vmem:[#allocation13_spill] sm:$0xff] %v7296_v18  ;;  %801 = vmatpush.msra.mxu3 %v7279_v12  ;;  %v7381_v46 = vand.u32 4294901760, %v654_v34  ;;  %v7392_v50 = vand.u32 4294901760, %v539_v43  ;;  %v7399_v52 = vand.u32 4294901760, %v660_v41  ;;  %v672_v53 = vsub.f32 %v7311_v23, %v7349_v35 }
  0x23   : > { %11151 = vst [vmem:[#allocation14_spill] sm:$0xff] %v7300_v19  ;;  %644 = vmatpush.msra.mxu1 %v7359_v39  ;;  %751 = vmatpush.msra.mxu2 %v7305_v21  ;;  %v7404_v54 = vand.u32 4294901760, %v7368_v42  ;;  %v7407_v55 = vsub.f32 %v545_v37, %v7386_v48  ;;  %v678_v57 = vsub.f32 %v7337_v31, %v7377_v45  ;;  %v7418_v58 = vand.u32 4294901760, %v666_v44 }
  0x24   : > { %11152 = vst [vmem:[#allocation15_spill] sm:$0xff] %v7302_v20  ;;  %607 = vmatpush.msra.mxu0 %v7281_v13  ;;  %803 = vmatpush.msra.mxu3 %v7281_v13  ;;  %v7421_v59 = vand.u32 4294901760, %v7384_v47  ;;  %v7424_v60 = vsub.f32 %v542_v38, %v7388_v49  ;;  %v7426_v61 = vand.u32 4294901760, %v536_v51  ;;  %v7437_v0 = vsub.f32 %v539_v43, %v7392_v50  ;;  %v564_v43 = vld [vmem:[%s10563_s4 + $0x128] sm:$0xff] }
  0x25   : > { %11153 = vst [vmem:[#allocation16_spill] sm:$0xff] %v7305_v21  ;;  %650 = vmatpush.msra.mxu1 %v7362_v40  ;;  %754 = vmatpush.msra.mxu2 %v7308_v22  ;;  %v7439_v1 = vand.u32 4294901760, %v533_v56  ;;  %v7446_v3 = vand.u32 4294901760, %v672_v53  ;;  %v684_v4 = vsub.f32 %v7368_v42, %v7404_v54  ;;  %v7451_v5 = vand.u32 4294901760, %v7407_v55 }
  0x26   : > { %11154 = vst [vmem:[#allocation17_spill] sm:$0xff] %v7308_v22  ;;  %609 = vmatpush.msra.mxu0 %v7283_v14  ;;  %805 = vmatpush.msra.mxu3 %v7283_v14  ;;  %v7457_v10 = vand.u32 4294901760, %v678_v57  ;;  %v7460_v11 = vand.u32 4294901760, %v530_v62  ;;  %v7462_v15 = vand.u32 4294901760, %v573_v63  ;;  %v690_v28 = vsub.f32 %v7384_v47, %v7421_v59  ;;  %v561_v57 = vld [vmem:[%s10563_s4 + $0x110] sm:$0xff] }
  0x27   : > { %11155 = vst [vmem:[#allocation18_spill] sm:$0xff] %v7311_v23  ;;  %656 = vmatpush.msra.mxu1 %v7381_v46  ;;  %757 = vmatpush.msra.mxu2 %v7311_v23  ;;  %v7472_v32 = vand.u32 4294901760, %v7424_v60  ;;  %v7475_v33 = vsub.f32 %v536_v51, %v7426_v61  ;;  %v7477_v34 = vand.u32 4294901760, %v570_v2  ;;  %v7482_v37 = vand.u32 4294901760, %v7437_v0 }
  0x28   : > { %11156 = vst [vmem:[#allocation19_spill] sm:$0xff] %v7316_v24  ;;  %611 = vmatpush.msra.mxu0 %v7302_v20  ;;  %807 = vmatpush.msra.mxu3 %v7302_v20  ;;  %v7485_v38 = vsub.f32 %v533_v56, %v7439_v1  ;;  %v7487_v41 = vand.u32 4294901760, %v527_v9  ;;  %v7494_v44 = vand.u32 4294901760, %v684_v4  ;;  %v696_v51 = vsub.f32 %v7407_v55, %v7451_v5 }
  0x29   : > { %11157 = vst [vmem:[#allocation20_spill] sm:$0xff] %v7319_v25  ;;  %662 = vmatpush.msra.mxu1 %v7399_v52  ;;  %760 = vmatpush.msra.mxu2 %v7337_v31  ;;  %v7499_v53 = vsub.f32 %v573_v63, %v7462_v15  ;;  %v7501_v56 = vand.u32 4294901760, %v567_v16  ;;  %v7512_v4 = vsub.f32 %v570_v2, %v7477_v34  ;;  %v7516_v63 = vand.u32 4294901760, %v690_v28 }
  0x2a   : > { %11158 = vst [vmem:[#allocation21_spill] sm:$0xff] %v7322_v26  ;;  %613 = vmatpush.msra.mxu0 %v7324_v27  ;;  %809 = vmatpush.msra.mxu3 %v7324_v27  ;;  %v7523_v23 = vand.u32 4294901760, %v564_v43  ;;  %v7530_v2 = vand.u32 4294901760, %v7485_v38  ;;  %v7532_v28 = vand.u32 4294901760, %v561_v57  ;;  %v7539_v22 = vand.u32 4294901760, %v696_v51 }
  0x2b   : > { %11159 = vst [vmem:[#allocation22_spill] sm:$0xff] %v7324_v27  ;;  %668 = vmatpush.msra.mxu1 %v7418_v58  ;;  %763 = vmatpush.msra.mxu2 %v7368_v42  ;;  %v7542_v21 = vsub.f32 %v527_v9, %v7487_v41  ;;  %v7545_v19 = vand.u32 4294901760, %v7499_v53  ;;  %v7548_v18 = vsub.f32 %v567_v16, %v7501_v56  ;;  %v555_v9 = vld [vmem:[%s10563_s4 + $0xe0] sm:$0xff] }
  0x2c   : > { %11160 = vst [vmem:[#allocation23_spill] sm:$0xff] %v7331_v29  ;;  %615 = vmatpush.msra.mxu0 %v7351_v36  ;;  %811 = vmatpush.msra.mxu3 %v7351_v36 }
  0x2d   : > { %11161 = vst [vmem:[#allocation24_spill] sm:$0xff] %v7334_v30  ;;  %674 = vmatpush.msra.mxu1 %v7446_v3  ;;  %766 = vmatpush.msra.mxu2 %v7384_v47 }
  0x2e   : > { %11162 = vst [vmem:[#allocation25_spill] sm:$0xff] %v7337_v31  ;;  %617 = vmatpush.msra.mxu0 %v7386_v48  ;;  %813 = vmatpush.msra.mxu3 %v7386_v48  ;;  %v7521_v31 = vand.u32 4294901760, %v7475_v33 }
  0x2f   : > { %11163 = vst [vmem:[#allocation26_spill] sm:$0xff] %v7349_v35  ;;  %680 = vmatpush.msra.mxu1 %v7457_v10  ;;  %769 = vmatpush.msra.mxu2 %v7407_v55 }
  0x30   : > { %11164 = vst [vmem:[#allocation27_spill] sm:$0xff] %v7351_v36  ;;  %619 = vmatpush.msra.mxu0 %v7388_v49  ;;  %815 = vmatpush.msra.mxu3 %v7388_v49  ;;  %v714_v51 = vsub.f32 %v7475_v33, %v7521_v31 }
  0x31   : > { %11165 = vst [vmem:[#allocation28_spill] sm:$0xff] %v7359_v39  ;;  %686 = vmatpush.msra.mxu1 %v7494_v44  ;;  %772 = vmatpush.msra.mxu2 %v7424_v60 }
  0x32   : > { %11166 = vst [vmem:[#allocation29_spill] sm:$0xff] %v7362_v40  ;;  %621 = vmatpush.msra.mxu0 %v7392_v50  ;;  %817 = vmatpush.msra.mxu3 %v7392_v50 }
  0x33   : > { %11167 = vst [vmem:[#allocation30_spill] sm:$0xff] %v7368_v42  ;;  %v702_v42 = vsub.f32 %v7424_v60, %v7472_v32  ;;  %692 = vmatpush.msra.mxu1 %v7516_v63  ;;  %775 = vmatpush.msra.mxu2 %v7437_v0 }
  0x34   : > { %11168 = vst [vmem:[#allocation31_spill] sm:$0xff] %v7377_v45  ;;  %623 = vmatpush.msra.mxu0 %v7426_v61  ;;  %819 = vmatpush.msra.mxu3 %v7426_v61 }
  0x35   : > { %11169 = vst [vmem:[#allocation32_spill] sm:$0xff] %v7381_v46  ;;  %v7563_v16 = vand.u32 4294901760, %v702_v42  ;;  %v7579_v42 = vsub.f32 %v561_v57, %v7532_v28  ;;  %698 = vmatpush.msra.mxu1 %v7539_v22  ;;  %778 = vmatpush.msra.mxu2 %v7475_v33  ;;  %v549_v57 = vld [vmem:[%s10563_s4 + $0xb0] sm:$0xff]  ;;  %v7607_v46 = vand.u32 4294901760, %v714_v51  ;;  %v546_v51 = vld [vmem:[%s10563_s4 + $0x98] sm:$0xff] }
  0x36   : > { %11170 = vst [vmem:[#allocation33_spill] sm:$0xff] %v7384_v47  ;;  %v7509_v47 = vsub.f32 %v530_v62, %v7460_v11  ;;  %v708_v62 = vsub.f32 %v7437_v0, %v7482_v37  ;;  %625 = vmatpush.msra.mxu0 %v7439_v1  ;;  %821 = vmatpush.msra.mxu3 %v7439_v1 }
  0x37   : > { %11171 = vst [vmem:[#allocation34_spill] sm:$0xff] %v7386_v48  ;;  %704 = vmatpush.msra.mxu1 %v7563_v16  ;;  %781 = vmatpush.msra.mxu2 %v7485_v38 }
  0x38   : > { %11172 = vst [vmem:[#allocation35_spill] sm:$0xff] %v7388_v49  ;;  %v7553_v17 = vand.u32 4294901760, %v7509_v47  ;;  %627 = vmatpush.msra.mxu0 %v7460_v11  ;;  %823 = vmatpush.msra.mxu3 %v7460_v11 }
  0x39   : > { %11173 = vst [vmem:[#allocation36_spill] sm:$0xff] %v7392_v50  ;;  %784 = vmatpush.msra.mxu2 %v7509_v47 }
  0x3a   : > { %11174 = vst [vmem:[#allocation37_spill] sm:$0xff] %v7399_v52  ;;  %v7594_v52 = vand.u32 4294901760, %v555_v9  ;;  %629 = vmatpush.msra.mxu0 %v7487_v41  ;;  %825 = vmatpush.msra.mxu3 %v7487_v41 }
  0x3b   : > { %11175 = vst [vmem:[#allocation38_spill] sm:$0xff] %v7404_v54  ;;  %787 = vmatpush.msra.mxu2 %v7542_v21 }
  0x3c   : > { %11176 = vst [vmem:[#allocation39_spill] sm:$0xff] %v7407_v55  ;;  %v558_v55 = vld [vmem:[%s10563_s4 + $0xf8] sm:$0xff]  ;;  %836 = vmatpush.msrb.mxu0 %v7316_v24  ;;  %v591_v24 = vld [vmem:[#allocation2] sm:$0xff] }
  0x3d   : > { %11177 = vst [vmem:[#allocation40_spill] sm:$0xff] %v7418_v58  ;;  %v7592_v58 = vand.u32 4294901760, %v7548_v18  ;;  %940 = vmatpush.msrb.mxu2 %v7462_v15 }
  0x3e   : > { %11178 = vst [vmem:[#allocation41_spill] sm:$0xff] %v7421_v59  ;;  %840 = vmatpush.msrb.mxu0 %v7319_v25 }
  0x3f   : > { %11179 = vst [vmem:[#allocation42_spill] sm:$0xff] %v7424_v60  ;;  %v7556_v60 = vand.u32 4294901760, %v7512_v4  ;;  %942 = vmatpush.msrb.mxu2 %v7477_v34 }
  0x40   : > { %11180 = vst [vmem:[#allocation43_spill] sm:$0xff] %v7426_v61  ;;  %844 = vmatpush.msrb.mxu0 %v7322_v26 }
  0x41   : > { %11181 = vst [vmem:[#allocation44_spill] sm:$0xff] %v7437_v0  ;;  %v552_v0 = vld [vmem:[%s10563_s4 + $0xc8] sm:$0xff]  ;;  %944 = vmatpush.msrb.mxu2 %v7501_v56 }
  0x42   : > { %11182 = vst [vmem:[#allocation45_spill] sm:$0xff] %v7439_v1  ;;  %848 = vmatpush.msrb.mxu0 %v7331_v29 }
  0x43   : > { %11183 = vst [vmem:[#allocation46_spill] sm:$0xff] %v7446_v3  ;;  %v7573_v3 = vand.u32 4294901760, %v708_v62  ;;  %v7589_v62 = vand.u32 4294901760, %v7542_v21  ;;  %946 = vmatpush.msrb.mxu2 %v7523_v23 }
  0x44   : > { %11184 = vst [vmem:[#allocation47_spill] sm:$0xff] %v7451_v5  ;;  %852 = vmatpush.msrb.mxu0 %v7334_v30  ;;  %v531_v30 = vld [vmem:[%s10563_s4 + $0x20] sm:$0xff] }
  0x45   : > { %11185 = vst [vmem:[#allocation48_spill] sm:$0xff] %v7457_v10  ;;  %v7570_v10 = vand.u32 4294901760, %v558_v55  ;;  %710 = vmatpush.msra.mxu1 %v7573_v3  ;;  %948 = vmatpush.msrb.mxu2 %v7532_v28 }
  0x46   : > { %11186 = vst [vmem:[#allocation49_spill] sm:$0xff] %v7460_v11  ;;  %856 = vmatpush.msrb.mxu0 %v7349_v35 }
  0x47   : > { %11187 = vst [vmem:[#allocation50_spill] sm:$0xff] %v7462_v15  ;;  %v7613_v39 = vsub.f32 %v558_v55, %v7570_v10  ;;  %716 = vmatpush.msra.mxu1 %v7607_v46  ;;  %950 = vmatpush.msrb.mxu2 %v7570_v10 }
  0x48   : > { %11188 = vst [vmem:[#allocation51_spill] sm:$0xff] %v7472_v32  ;;  %860 = vmatpush.msrb.mxu0 %v7377_v45 }
  0x49   : > { %11189 = vst [vmem:[#allocation52_spill] sm:$0xff] %v7475_v33  ;;  %v726_v33 = vsub.f32 %v7509_v47, %v7553_v17  ;;  %952 = vmatpush.msrb.mxu2 %v7594_v52 }
  0x4a   : > { %11190 = vst [vmem:[#allocation53_spill] sm:$0xff] %v7477_v34  ;;  %864 = vmatpush.msrb.mxu0 %v7404_v54 }
  0x4b   : > { %11191 = vst [vmem:[#allocation54_spill] sm:$0xff] %v7482_v37  ;;  %v7641_v11 = vand.u32 4294901760, %v726_v33 }
  0x4c   : > { %11192 = vst [vmem:[#allocation55_spill] sm:$0xff] %v7485_v38  ;;  %868 = vmatpush.msrb.mxu0 %v7421_v59 }
  0x4d   : > { %11193 = vst [vmem:[#allocation56_spill] sm:$0xff] %v7487_v41 }
  0x4e   : > { %11194 = vst [vmem:[#allocation57_spill] sm:$0xff] %v7494_v44  ;;  %v7568_v44 = vsub.f32 %v564_v43, %v7523_v23  ;;  %v983_v43 = vsub.f32 %v7499_v53, %v7545_v19  ;;  %872 = vmatpush.msrb.mxu0 %v7451_v5 }
  0x4f   : > { %11195 = vst [vmem:[#allocation58_spill] sm:$0xff] %v7499_v53  ;;  %v7615_v53 = vand.u32 4294901760, %v552_v0 }
  0x50   : > { %11196 = vst [vmem:[#allocation59_spill] sm:$0xff] %v7501_v56  ;;  %v7610_v40 = vand.u32 4294901760, %v7568_v44  ;;  %v7631_v55 = vand.u32 4294901760, %v983_v43  ;;  %v543_v43 = vld [vmem:[%s10563_s4 + $0x80] sm:$0xff]  ;;  %876 = vmatpush.msrb.mxu0 %v7472_v32 }
  0x51   : > { %11197 = vst [vmem:[#allocation60_spill] sm:$0xff] %v7509_v47  ;;  %v7654_v47 = vand.u32 4294901760, %v7613_v39  ;;  %v7657_v33 = vsub.f32 %v552_v0, %v7615_v53  ;;  %954 = vmatpush.msrb.mxu2 %v7615_v53 }
  0x52   : > { %11198 = vst [vmem:[#allocation61_spill] sm:$0xff] %v7512_v4  ;;  %985 = vmatpush.msrb.mxu3 %v7631_v55  ;;  %880 = vmatpush.msrb.mxu0 %v7482_v37 }
  0x53   : > { %11199 = vst [vmem:[#allocation62_spill] sm:$0xff] %v7516_v63  ;;  %v720_v63 = vsub.f32 %v7485_v38, %v7530_v2  ;;  %v7624_v38 = vand.u32 4294901760, %v549_v57 }
  0x54   : > { %11200 = vst [vmem:[#allocation63_spill] sm:$0xff] %v7521_v31  ;;  %884 = vmatpush.msrb.mxu0 %v7521_v31 }
  0x55   : > { %11201 = vst [vmem:[#allocation64_spill] sm:$0xff] %v7523_v23  ;;  %956 = vmatpush.msrb.mxu2 %v7624_v38 }
  0x56   : > { %11202 = vst [vmem:[#allocation65_spill] sm:$0xff] %v7530_v2  ;;  %888 = vmatpush.msrb.mxu0 %v7530_v2 }
  0x57   : > { %11203 = vst [vmem:[#allocation66_spill] sm:$0xff] %v7532_v28 }
  0x58   : > { %11204 = vst [vmem:[#allocation67_spill] sm:$0xff] %v7539_v22  ;;  %v989_v22 = vsub.f32 %v7512_v4, %v7556_v60  ;;  %v995_v4 = vsub.f32 %v7548_v18, %v7592_v58  ;;  %892 = vmatpush.msrb.mxu0 %v7553_v17 }
  0x59   : > { %11205 = vst [vmem:[#allocation68_spill] sm:$0xff] %v7542_v21 }
  0x5a   : > { %11206 = vst [vmem:[#allocation69_spill] sm:$0xff] %v7545_v19  ;;  %v7618_v19 = vand.u32 4294901760, %v720_v63  ;;  %v732_v63 = vsub.f32 %v7542_v21, %v7589_v62  ;;  %v7666_v21 = vsub.f32 %v549_v57, %v7624_v38  ;;  %v7672_v0 = vand.u32 4294901760, %v995_v4  ;;  %v540_v57 = vld [vmem:[%s10563_s4 + $0x68] sm:$0xff]  ;;  %896 = vmatpush.msrb.mxu0 %v7589_v62 }
  0x5b   : > { %11207 = vst [vmem:[#allocation70_spill] sm:$0xff] %v7548_v18  ;;  %v7659_v18 = vand.u32 4294901760, %v546_v51 }
  0x5c   : > { %11208 = vst [vmem:[#allocation71_spill] sm:$0xff] %v7553_v17  ;;  %722 = vmatpush.msra.mxu1 %v7618_v19 }
  0x5d   : > { %11209 = vst [vmem:[#allocation72_spill] sm:$0xff] %v7556_v60  ;;  %v7638_v60 = vsub.f32 %v555_v9, %v7594_v52  ;;  %v1001_v9 = vsub.f32 %v7568_v44, %v7610_v40  ;;  %958 = vmatpush.msrb.mxu2 %v7659_v18 }
  0x5e   : > { %11210 = vst [vmem:[#allocation73_spill] sm:$0xff] %v7563_v16  ;;  %v7622_v16 = vand.u32 4294901760, %v7579_v42  ;;  %728 = vmatpush.msra.mxu1 %v7641_v11 }
  0x5f   : > { %11211 = vst [vmem:[#allocation74_spill] sm:$0xff] %v7568_v44  ;;  %v7675_v44 = vand.u32 4294901760, %v7638_v60  ;;  %v7686_v4 = vand.u32 4294901760, %v1001_v9 }
  0x60   : > { %11212 = vst [vmem:[#allocation75_spill] sm:$0xff] %v7570_v10 }
  0x61   : > { %11213 = vst [vmem:[#allocation76_spill] sm:$0xff] %v7573_v3  ;;  %v7644_v3 = vand.u32 4294901760, %v989_v22  ;;  %v1007_v22 = vsub.f32 %v7579_v42, %v7622_v16  ;;  %v1019_v9 = vsub.f32 %v7638_v60, %v7675_v44 }
  0x62   : > { %11214 = vst [vmem:[#allocation77_spill] sm:$0xff] %v7579_v42 }
  0x63   : > { %11215 = vst [vmem:[#allocation78_spill] sm:$0xff] %v7589_v62  ;;  %991 = vmatpush.msrb.mxu3 %v7644_v3  ;;  %v7698_v25 = vand.u32 4294901760, %v1007_v22  ;;  %v537_v22 = vld [vmem:[%s10563_s4 + $0x50] sm:$0xff] }
  0x64   : > { %11216 = vst [vmem:[#allocation79_spill] sm:$0xff] %v7592_v58 }
  0x65   : > { %11217 = vst [vmem:[#allocation80_spill] sm:$0xff] %v7594_v52  ;;  %997 = vmatpush.msrb.mxu3 %v7672_v0 }
  0x66   : > { %11218 = vst [vmem:[#allocation81_spill] sm:$0xff] %v7607_v46  ;;  %v7670_v46 = vand.u32 4294901760, %v732_v63  ;;  %v1013_v63 = vsub.f32 %v7613_v39, %v7654_v47 }
  0x67   : > { %11219 = vst [vmem:[#allocation82_spill] sm:$0xff] %v7610_v40  ;;  %v7677_v40 = vand.u32 4294901760, %v543_v43  ;;  %1003 = vmatpush.msrb.mxu3 %v7686_v4 }
  0x68   : > { %11220 = vst [vmem:[#allocation83_spill] sm:$0xff] %v7613_v39  ;;  %734 = vmatpush.msra.mxu1 %v7670_v46  ;;  %v7712_v39 = vand.u32 4294901760, %v591_v24 }
  0x69   : > { %11221 = vst [vmem:[#allocation84_spill] sm:$0xff] %v7615_v53  ;;  %1009 = vmatpush.msrb.mxu3 %v7698_v25  ;;  %960 = vmatpush.msrb.mxu2 %v7677_v40 }
  0x6a   : > { %11222 = vst [vmem:[#allocation85_spill] sm:$0xff] %v7618_v19  ;;  %v7694_v19 = vsub.f32 %v546_v51, %v7659_v18  ;;  %v7710_v51 = vsub.f32 %v543_v43, %v7677_v40  ;;  %903 = vmatpush.msrb.mxu1 %v7264_v6  ;;  %v7732_v6 = vand.u32 4294901760, %v537_v22 }
  0x6b   : > { %11223 = vst [vmem:[#allocation86_spill] sm:$0xff] %v7622_v16  ;;  %736 = vmatmul.f32.vlgmr.msra.gmra.mxu1 %v7712_v39 }
  0x6c   : > { %11224 = vst [vmem:[#allocation87_spill] sm:$0xff] %v7624_v38  ;;  %v7726_v26 = vand.u32 4294901760, %v7694_v19  ;;  %905 = vmatpush.msrb.mxu1 %v7266_v7  ;;  %v7742_v29 = vand.u32 4294901760, %v7710_v51  ;;  %v7745_v7 = vsub.f32 %v591_v24, %v7712_v39 }
  0x6d   : > { %11225 = vst [vmem:[#allocation88_spill] sm:$0xff] %v7631_v55  ;;  %v7691_v55 = vand.u32 4294901760, %v7657_v33 }
  0x6e   : > { %11226 = vst [vmem:[#allocation89_spill] sm:$0xff] %v7638_v60  ;;  %907 = vmatpush.msrb.mxu1 %v7268_v8  ;;  %v1037_v24 = vsub.f32 %v7694_v19, %v7726_v26  ;;  %v7768_v8 = vsub.f32 %v537_v22, %v7732_v6  ;;  %790 = vmatmul.f32.vlgmr.msra.gmra.mxu2 %v7745_v7 }
  0x6f   : > { %11227 = vst [vmem:[#allocation90_spill] sm:$0xff] %v7641_v11  ;;  %v7701_v11 = vand.u32 4294901760, %v7666_v21  ;;  %v1025_v43 = vsub.f32 %v7657_v33, %v7691_v55 }
  0x70   : > { %11228 = vst [vmem:[#allocation91_spill] sm:$0xff] %v7644_v3  ;;  %v7707_v3 = vand.u32 4294901760, %v540_v57  ;;  %909 = vmatpush.msrb.mxu1 %v7279_v12  ;;  %v7783_v12 = vand.u32 4294901760, %v531_v30  ;;  %v7789_v22 = vand.u32 4294901760, %v1037_v24 }
  0x71   : > { %11229 = vst [vmem:[#allocation92_spill] sm:$0xff] %v7654_v47 }
  0x72   : > { %11230 = vst [vmem:[#allocation93_spill] sm:$0xff] %v7657_v33  ;;  %911 = vmatpush.msrb.mxu1 %v7281_v13  ;;  %962 = vmatpush.msrb.mxu2 %v7707_v3 }
  0x73   : > { %11231 = vst [vmem:[#allocation94_spill] sm:$0xff] %v7659_v18 }
  0x74   : > { %11232 = vst [vmem:[#allocation95_spill] sm:$0xff] %v7666_v21  ;;  %913 = vmatpush.msrb.mxu1 %v7283_v14  ;;  %964 = vmatpush.msrb.mxu2 %v7732_v6 }
  0x75   : > { %11233 = vst [vmem:[#allocation96_spill] sm:$0xff] %v7670_v46  ;;  %v1031_v46 = vsub.f32 %v7666_v21, %v7701_v11  ;;  %v7748_v21 = vsub.f32 %v540_v57, %v7707_v3 }
  0x76   : > { %11234 = vst [vmem:[#allocation97_spill] sm:$0xff] %v7672_v0  ;;  %v7721_v0 = vand.u32 4294901760, %v1013_v63  ;;  %v534_v63 = vld [vmem:[%s10563_s4 + $0x38] sm:$0xff]  ;;  %915 = vmatpush.msrb.mxu1 %v7302_v20 }
  0x77   : > { %11235 = vst [vmem:[#allocation98_spill] sm:$0xff] %v7675_v44  ;;  %v7765_v57 = vand.u32 4294901760, %v1031_v46  ;;  %v7778_v35 = vand.u32 4294901760, %v7748_v21  ;;  %v7781_v46 = vand.u32 4294901760, %v7745_v7 }
  0x78   : > { %11236 = vst [vmem:[#allocation99_spill] sm:$0xff] %v7677_v40  ;;  %1015 = vmatpush.msrb.mxu3 %v7721_v0  ;;  %917 = vmatpush.msrb.mxu1 %v7324_v27 }
  0x79   : > { %11237 = vst [vmem:[#allocation100_spill] sm:$0xff] %v7686_v4  ;;  %v7739_v4 = vand.u32 4294901760, %v1019_v9  ;;  %v7757_v9 = vand.u32 4294901760, %v1025_v43  ;;  %v1043_v43 = vsub.f32 %v7710_v51, %v7742_v29  ;;  %v1049_v24 = vsub.f32 %v7748_v21, %v7778_v35  ;;  %829 = vmatmul.f32.vlgmr.msra.gmra.mxu3 %v7781_v46 }
  0x7a   : > { %11238 = vst [vmem:[#allocation101_spill] sm:$0xff] %v7691_v55  ;;  %919 = vmatpush.msrb.mxu1 %v7351_v36 }
  0x7b   : > { %11239 = vst [vmem:[#allocation102_spill] sm:$0xff] %v7694_v19  ;;  %1021 = vmatpush.msrb.mxu3 %v7739_v4  ;;  %v7803_v54 = vand.u32 4294901760, %v1043_v43  ;;  %v7828_v5 = vand.u32 4294901760, %v1049_v24 }
  0x7c   : > { %11240 = vst [vmem:[#allocation103_spill] sm:$0xff] %v7698_v25  ;;  %v7761_v25 = vand.u32 4294901760, %v534_v63  ;;  %921 = vmatpush.msrb.mxu1 %v7386_v48 }
  0x7d   : > { %11241 = vst [vmem:[#allocation104_spill] sm:$0xff] %v7701_v11  ;;  %1027 = vmatpush.msrb.mxu3 %v7757_v9 }
  0x7e   : > { %11242 = vst [vmem:[#allocation105_spill] sm:$0xff] %v7707_v3  ;;  %923 = vmatpush.msrb.mxu1 %v7388_v49  ;;  %966 = vmatpush.msrb.mxu2 %v7761_v25 }
  0x7f   : > { %11243 = vst [vmem:[#allocation106_spill] sm:$0xff] %v7710_v51  ;;  %v7799_v51 = vand.u32 4294901760, %v7768_v8  ;;  %1033 = vmatpush.msrb.mxu3 %v7765_v57 }
  0x80   : > { %11244 = vst [vmem:[#allocation107_spill] sm:$0xff] %v7721_v0  ;;  %v528_v0 = vld [vmem:[%s10563_s4 + $0x8] sm:$0xff]  ;;  %925 = vmatpush.msrb.mxu1 %v7392_v50  ;;  %968 = vmatpush.msrb.mxu2 %v7783_v12 }
  0x81   : > { %11245 = vst [vmem:[#allocation108_spill] sm:$0xff] %v7726_v26  ;;  %v7794_v45 = vand.u32 4294901760, %v528_v0  ;;  %1039 = vmatpush.msrb.mxu3 %v7789_v22 }
  0x82   : > { %11246 = vst [vmem:[#allocation109_spill] sm:$0xff] %v7732_v6  ;;  %927 = vmatpush.msrb.mxu1 %v7426_v61 }
  0x83   : > { %11247 = vst [vmem:[#allocation110_spill] sm:$0xff] %v7739_v4  ;;  %v7792_v4 = vsub.f32 %v534_v63, %v7761_v25  ;;  %v633_v63 = vsub.f32 %v7745_v7, %v7781_v46  ;;  %1045 = vmatpush.msrb.mxu3 %v7803_v54  ;;  %970 = vmatpush.msrb.mxu2 %v7794_v45 }
  0x84   : > { %11248 = vst [vmem:[#allocation111_spill] sm:$0xff] %v7742_v29  ;;  %929 = vmatpush.msrb.mxu1 %v7439_v1 }
  0x85   : > { %11249 = vst [vmem:[#allocation112_spill] sm:$0xff] %v7745_v7  ;;  %v7817_v43 = vand.u32 4294901760, %v7792_v4  ;;  %1051 = vmatpush.msrb.mxu3 %v7828_v5 }
  0x86   : > { %11250 = vst [vmem:[#allocation113_spill] sm:$0xff] %v7748_v21 }
  0x87   : > { %11251 = vst [vmem:[#allocation114_spill] sm:$0xff] %v7757_v9  ;;  %v7810_v9 = vsub.f32 %v531_v30, %v7783_v12  ;;  %v1055_v30 = vsub.f32 %v7768_v8, %v7799_v51 }
  0x88   : > { %11252 = vst [vmem:[#allocation115_spill] sm:$0xff] %v7761_v25 }
  0x89   : > { %11253 = vst [vmem:[#allocation116_spill] sm:$0xff] %v7765_v57  ;;  %v7820_v57 = vsub.f32 %v528_v0, %v7794_v45  ;;  %v7833_v59 = vand.u32 4294901760, %v7810_v9  ;;  %v1061_v0 = vsub.f32 %v7792_v4, %v7817_v43  ;;  %v7846_v24 = vand.u32 4294901760, %v1055_v30 }
  0x8a   : > { %11254 = vst [vmem:[#allocation117_spill] sm:$0xff] %v7768_v8 }
  0x8b   : > { %11255 = vst [vmem:[#allocation118_spill] sm:$0xff] %v7778_v35  ;;  %v7856_v37 = vand.u32 4294901760, %v1061_v0  ;;  %1057 = vmatpush.msrb.mxu3 %v7846_v24 }
  0x8c   : > { %11256 = vst [vmem:[#allocation119_spill] sm:$0xff] %v7781_v46 }
  0x8d   : > { %11257 = vst [vmem:[#allocation120_spill] sm:$0xff] %v7783_v12  ;;  %1063 = vmatpush.msrb.mxu3 %v7856_v37 }
  0x8e   : > { %11258 = vst [vmem:[#allocation121_spill] sm:$0xff] %v7789_v22  ;;  %v7830_v22 = vand.u32 4294901760, %v633_v63  ;;  %v1067_v63 = vsub.f32 %v7810_v9, %v7833_v59 }
  0x8f   : > { %11259 = vst [vmem:[#allocation122_spill] sm:$0xff] %v7792_v4 }
  0x90   : > { %11260 = vst [vmem:[#allocation123_spill] sm:$0xff] %v7794_v45  ;;  %635 = vmatmul.f32.vlgmr.msra.gmra.mxu0 %v7830_v22  ;;  %976 = vmatmul.f32.vlgmr.msrb.gmra.mxu2 %v7830_v22 }
  0x91   : > { %11261 = vst [vmem:[#allocation124_spill] sm:$0xff] %v7799_v51 }
  0x92   : > { %11262 = vst [vmem:[#allocation125_spill] sm:$0xff] %v7803_v54  ;;  %v7842_v54 = vand.u32 4294901760, %v7820_v57 }
  0x93   : > { %11263 = vst [vmem:[#allocation126_spill] sm:$0xff] %v7810_v9 }
  0x94   : > { %11264 = vst [vmem:[#allocation127_spill] sm:$0xff] %v7817_v43  ;;  %v1073_v30 = vsub.f32 %v7820_v57, %v7842_v54 }
  0x95   : > { %11265 = vst [vmem:[#allocation128_spill] sm:$0xff] %v7820_v57 }
  0x96   : > { %11266 = vst [vmem:[#allocation129_spill] sm:$0xff] %v7828_v5  ;;  %v7864_v5 = vand.u32 4294901760, %v1067_v63  ;;  %v7870_v0 = vand.u32 4294901760, %v1073_v30  ;;  %v11274_v63 = vld [vmem:[#allocation49_spill] sm:$0xff]  ;;  %v11276_v30 = vld [vmem:[#allocation72_spill] sm:$0xff] }
  0x97   : > { %11267 = vst [vmem:[#allocation130_spill] sm:$0xff] %v7833_v59  ;;  %931 = vmatpush.msrb.mxu1 %v11274_v63 }
  0x98   : > { %11268 = vst [vmem:[#allocation131_spill] sm:$0xff] %v7842_v54  ;;  %1069 = vmatpush.msrb.mxu3 %v7864_v5  ;;  %898 = vmatmul.f32.vlgmr.msrb.gmra.mxu0 %v7712_v39 }
  0x99   : > { %11269 = vst [vmem:[#allocation132_spill] sm:$0xff] %v7846_v24  ;;  %v11273_v24 = vld [vmem:[#allocation69_spill] sm:$0xff]  ;;  %933 = vmatpush.msrb.mxu1 %v7487_v41 }
  0x9a   : > { %11270 = vst [vmem:[#allocation133_spill] sm:$0xff] %v7856_v37  ;;  %1177 = vmatpush.msra.mxu2 %v11273_v24  ;;  %1075 = vmatpush.msrb.mxu3 %v7870_v0  ;;  %v11275_v37 = vld [vmem:[#allocation58_spill] sm:$0xff] }
  0x9b   : > { %11271 = vst [vmem:[#allocation134_spill] sm:$0xff] %v7864_v5  ;;  %1083 = vmatpush.msra.mxu0 %v11275_v37  ;;  %935 = vmatmul.f32.vlgmr.msrb.gmra.mxu1 %v7712_v39  ;;  %v11277_v5 = vld [vmem:[#allocation61_spill] sm:$0xff]  ;;  %v11278_v24 = vld [vmem:[#allocation70_spill] sm:$0xff] }
  0x9c   : > { %11272 = vst [vmem:[#allocation135_spill] sm:$0xff] %v7870_v0  ;;  %1181 = vmatpush.msra.mxu2 %v11276_v30  ;;  %1244 = vmatpush.msra.mxu3 %v7462_v15  ;;  %v11279_v37 = vld [vmem:[#allocation82_spill] sm:$0xff] }
  0x9d   : > { %1086 = vmatpush.msra.mxu0 %v11277_v5  ;;  %1136 = vmatpush.msra.mxu1 %v7462_v15  ;;  %v11280_v30 = vld [vmem:[#allocation74_spill] sm:$0xff]  ;;  %v553_v5 = vld [vmem:[%s10563_s4 + $0xd0] sm:$0xff] }
  0x9e   : > { %1185 = vmatpush.msra.mxu2 %v7592_v58  ;;  %1246 = vmatpush.msra.mxu3 %v7477_v34  ;;  %v550_v58 = vld [vmem:[%s10563_s4 + $0xb8] sm:$0xff] }
  0x9f   : > { %1089 = vmatpush.msra.mxu0 %v11278_v24  ;;  %1138 = vmatpush.msra.mxu1 %v7477_v34  ;;  %v11281_v24 = vld [vmem:[#allocation83_spill] sm:$0xff] }
  0xa0   : > { %1189 = vmatpush.msra.mxu2 %v11279_v37  ;;  %1248 = vmatpush.msra.mxu3 %v7501_v56 }
  0xa1   : > { %1092 = vmatpush.msra.mxu0 %v11280_v30  ;;  %1140 = vmatpush.msra.mxu1 %v7501_v56 }
  0xa2   : > { %1193 = vmatpush.msra.mxu2 %v7622_v16  ;;  %1250 = vmatpush.msra.mxu3 %v7523_v23 }
  0xa3   : > { %1095 = vmatpush.msra.mxu0 %v7579_v42  ;;  %1142 = vmatpush.msra.mxu1 %v7523_v23  ;;  %v574_v42 = vld [vmem:[%s10563_s4 + $0x178] sm:$0xff] }
  0xa4   : > { %1197 = vmatpush.msra.mxu2 %v7654_v47  ;;  %1252 = vmatpush.msra.mxu3 %v7532_v28 }
  0xa5   : > { %1098 = vmatpush.msra.mxu0 %v11281_v24  ;;  %1144 = vmatpush.msra.mxu1 %v7532_v28  ;;  %v11282_v24 = vld [vmem:[#allocation95_spill] sm:$0xff] }
  0xa6   : > { %1201 = vmatpush.msra.mxu2 %v7675_v44  ;;  %1254 = vmatpush.msra.mxu3 %v7570_v10 }
  0xa7   : > { %1101 = vmatpush.msra.mxu0 %v7638_v60  ;;  %1146 = vmatpush.msra.mxu1 %v7570_v10  ;;  %v571_v60 = vld [vmem:[%s10563_s4 + $0x160] sm:$0xff] }
  0xa8   : > { %1205 = vmatpush.msra.mxu2 %v7691_v55  ;;  %1256 = vmatpush.msra.mxu3 %v7594_v52  ;;  %v7920_v55 = vand.u32 4294901760, %v574_v42 }
  0xa9   : > { %1104 = vmatpush.msra.mxu0 %v7657_v33  ;;  %1148 = vmatpush.msra.mxu1 %v7594_v52  ;;  %v568_v33 = vld [vmem:[%s10563_s4 + $0x148] sm:$0xff] }
  0xaa   : > { %1209 = vmatpush.msra.mxu2 %v7701_v11  ;;  %1258 = vmatpush.msra.mxu3 %v7615_v53  ;;  %11283 = vst [vmem:[#allocation136_spill] sm:$0xff] %v7920_v55  ;;  %v7929_v11 = vand.u32 4294901760, %v571_v60  ;;  %v7939_v44 = vsub.f32 %v574_v42, %v7920_v55  ;;  %v7941_v30 = vand.u32 4294901760, %v568_v33  ;;  %v559_v42 = vld [vmem:[%s10563_s4 + $0x100] sm:$0xff] }
  0xab   : > { %1107 = vmatpush.msra.mxu0 %v11282_v24  ;;  %1150 = vmatpush.msra.mxu1 %v7615_v53  ;;  %v565_v24 = vld [vmem:[%s10563_s4 + $0x130] sm:$0xff]  ;;  %v7983_v16 = vand.u32 4294901760, %v559_v42 }
  0xac   : > { %1213 = vmatpush.msra.mxu2 %v7726_v26  ;;  %1260 = vmatpush.msra.mxu3 %v7624_v38  ;;  %11284 = vst [vmem:[#allocation137_spill] sm:$0xff] %v7929_v11  ;;  %v11285_v26 = vld [vmem:[#allocation106_spill] sm:$0xff] }
  0xad   : > { %1110 = vmatpush.msra.mxu0 %v7694_v19  ;;  %1152 = vmatpush.msra.mxu1 %v7624_v38  ;;  %11286 = vst [vmem:[#allocation138_spill] sm:$0xff] %v7939_v44  ;;  %v562_v19 = vld [vmem:[%s10563_s4 + $0x118] sm:$0xff] }
  0xae   : > { %1217 = vmatpush.msra.mxu2 %v7742_v29  ;;  %1262 = vmatpush.msra.mxu3 %v7659_v18  ;;  %11287 = vst [vmem:[#allocation139_spill] sm:$0xff] %v7941_v30  ;;  %v7951_v29 = vsub.f32 %v571_v60, %v7929_v11  ;;  %v7966_v60 = vsub.f32 %v568_v33, %v7941_v30  ;;  %v7968_v47 = vand.u32 4294901760, %v562_v19 }
  0xaf   : > { %1113 = vmatpush.msra.mxu0 %v11285_v26  ;;  %1154 = vmatpush.msra.mxu1 %v7659_v18  ;;  %v7953_v26 = vand.u32 4294901760, %v565_v24  ;;  %11294 = vst [vmem:[#allocation146_spill] sm:$0xff] %v7983_v16 }
  0xb0   : > { %1221 = vmatpush.msra.mxu2 %v7778_v35  ;;  %1264 = vmatpush.msra.mxu3 %v7677_v40  ;;  %11288 = vst [vmem:[#allocation140_spill] sm:$0xff] %v7951_v29  ;;  %v7963_v35 = vand.u32 4294901760, %v7939_v44  ;;  %v8000_v37 = vsub.f32 %v562_v19, %v7968_v47 }
  0xb1   : > { %11289 = vst [vmem:[#allocation141_spill] sm:$0xff] %v7953_v26  ;;  %1116 = vmatpush.msra.mxu0 %v7748_v21  ;;  %1156 = vmatpush.msra.mxu1 %v7677_v40  ;;  %v556_v21 = vld [vmem:[%s10563_s4 + $0xe8] sm:$0xff]  ;;  %v7981_v33 = vsub.f32 %v565_v24, %v7953_v26 }
  0xb2   : > { %1225 = vmatpush.msra.mxu2 %v7799_v51  ;;  %1266 = vmatpush.msra.mxu3 %v7707_v3  ;;  %11290 = vst [vmem:[#allocation142_spill] sm:$0xff] %v7963_v35  ;;  %v7978_v51 = vand.u32 4294901760, %v7951_v29  ;;  %v1324_v24 = vsub.f32 %v7939_v44, %v7963_v35  ;;  %v8034_v0 = vand.u32 4294901760, %v8000_v37 }
  0xb3   : > { %11291 = vst [vmem:[#allocation143_spill] sm:$0xff] %v7966_v60  ;;  %1077 = vmatmul.f32.vlgmr.msrb.gmra.mxu3 %v7712_v39  ;;  %1119 = vmatpush.msra.mxu0 %v7768_v8  ;;  %v7990_v8 = vand.u32 4294901760, %v556_v21  ;;  %v8014_v19 = vand.u32 4294901760, %v7981_v33 }
  0xb4   : > { %1158 = vmatpush.msra.mxu1 %v7707_v3  ;;  %1229 = vmatpush.msra.mxu2 %v7817_v43  ;;  %11292 = vst [vmem:[#allocation144_spill] sm:$0xff] %v7978_v51  ;;  %v7997_v43 = vand.u32 4294901760, %v7966_v60  ;;  %v8036_v3 = vand.u32 4294901760, %v550_v58  ;;  %v1348_v38 = vsub.f32 %v8000_v37, %v8034_v0 }
  0xb5   : > { %11293 = vst [vmem:[#allocation145_spill] sm:$0xff] %v7981_v33  ;;  %1268 = vmatpush.msra.mxu3 %v7732_v6  ;;  %1122 = vmatpush.msra.mxu0 %v7792_v4  ;;  %v8004_v4 = vand.u32 4294901760, %v553_v5 }
  0xb6   : > { %11295 = vst [vmem:[#allocation147_spill] sm:$0xff] %v7990_v8  ;;  %1160 = vmatpush.msra.mxu1 %v7732_v6  ;;  %1233 = vmatpush.msra.mxu2 %v7833_v59  ;;  %v1330_v59 = vsub.f32 %v7951_v29, %v7978_v51  ;;  %v8017_v6 = vsub.f32 %v559_v42, %v7983_v16 }
  0xb7   : > { %11296 = vst [vmem:[#allocation148_spill] sm:$0xff] %v7997_v43  ;;  %1270 = vmatpush.msra.mxu3 %v7761_v25  ;;  %1125 = vmatpush.msra.mxu0 %v7810_v9  ;;  %v8022_v9 = vsub.f32 %v556_v21, %v7990_v8  ;;  %v1336_v42 = vsub.f32 %v7966_v60, %v7997_v43 }
  0xb8   : > { %11297 = vst [vmem:[#allocation149_spill] sm:$0xff] %v8000_v37  ;;  %1162 = vmatpush.msra.mxu1 %v7761_v25  ;;  %1237 = vmatpush.msra.mxu2 %v7842_v54  ;;  %v547_v54 = vld [vmem:[%s10563_s4 + $0xa0] sm:$0xff]  ;;  %v8029_v25 = vand.u32 4294901760, %v1324_v24  ;;  %v8041_v21 = vsub.f32 %v553_v5, %v8004_v4  ;;  %v544_v24 = vld [vmem:[%s10563_s4 + $0x88] sm:$0xff]  ;;  %v8053_v40 = vand.u32 4294901760, %v8017_v6  ;;  %v8072_v53 = vsub.f32 %v550_v58, %v8036_v3 }
  0xb9   : > { %11298 = vst [vmem:[#allocation150_spill] sm:$0xff] %v8004_v4  ;;  %1272 = vmatpush.msra.mxu3 %v7783_v12  ;;  %1239 = vmatmul.f32.vlgmr.msra.gmra.mxu2 %v7712_v39  ;;  %v8055_v18 = vand.u32 4294901760, %v547_v54  ;;  %v8060_v5 = vand.u32 4294901760, %v8022_v9  ;;  %v8074_v52 = vand.u32 4294901760, %v544_v24 }
  0xba   : > { %11299 = vst [vmem:[#allocation151_spill] sm:$0xff] %v8014_v19  ;;  %1128 = vmatpush.msra.mxu0 %v7820_v57  ;;  %1164 = vmatpush.msra.mxu1 %v7783_v12  ;;  %v8048_v57 = vand.u32 4294901760, %v1330_v59  ;;  %v1342_v12 = vsub.f32 %v7981_v33, %v8014_v19  ;;  %v541_v59 = vld [vmem:[%s10563_s4 + $0x70] sm:$0xff]  ;;  %v8079_v10 = vand.u32 4294901760, %v8041_v21  ;;  %v1354_v58 = vsub.f32 %v8017_v6, %v8053_v40 }
  0xbb   : > { %11300 = vst [vmem:[#allocation152_spill] sm:$0xff] %v8017_v6  ;;  %1274 = vmatpush.msra.mxu3 %v7794_v45  ;;  %1131 = vmatmul.f32.vlgmr.msra.gmra.mxu0 %v7745_v7  ;;  %v8091_v62 = vsub.f32 %v547_v54, %v8055_v18  ;;  %v1360_v28 = vsub.f32 %v8022_v9, %v8060_v5  ;;  %v8107_v54 = vand.u32 4294901760, %v8072_v53 }
  0xbc   : > { %11301 = vst [vmem:[#allocation153_spill] sm:$0xff] %v8022_v9  ;;  %1276 = vmatmul.f32.vlgmr.msra.gmra.mxu3 %v7712_v39  ;;  %1166 = vmatpush.msra.mxu1 %v7794_v45  ;;  %v8066_v45 = vand.u32 4294901760, %v1336_v42  ;;  %v538_v42 = vld [vmem:[%s10563_s4 + $0x58] sm:$0xff]  ;;  %v8110_v17 = vsub.f32 %v544_v24, %v8074_v52 }
  0xbd   : > { %11302 = vst [vmem:[#allocation154_spill] sm:$0xff] %v8029_v25  ;;  %1170 = vmatmul.f32.vlgmr.msra.gmra.mxu1 %v7781_v46  ;;  %1281 = vmatpush.msrb.mxu0 %v7920_v55  ;;  %v8112_v23 = vand.u32 4294901760, %v538_v42  ;;  %v8126_v24 = vand.u32 4294901760, %v8091_v62 }
  0xbe   : > { %11303 = vst [vmem:[#allocation155_spill] sm:$0xff] %v8034_v0  ;;  %1326 = vmatpush.msrb.mxu1 %v8029_v25  ;;  %1477 = vmatpush.msrb.mxu3 %v7920_v55  ;;  %v8085_v25 = vand.u32 4294901760, %v1342_v12  ;;  %v535_v12 = vld [vmem:[%s10563_s4 + $0x40] sm:$0xff] }
  0xbf   : > { %11304 = vst [vmem:[#allocation156_spill] sm:$0xff] %v8036_v3  ;;  %1283 = vmatpush.msrb.mxu0 %v7929_v11  ;;  %1424 = vmatpush.msrb.mxu2 %v7939_v44  ;;  %v8093_v44 = vand.u32 4294901760, %v541_v59  ;;  %v8131_v56 = vand.u32 4294901760, %v535_v12  ;;  %v8148_v31 = vsub.f32 %v538_v42, %v8112_v23  ;;  %v1378_v42 = vsub.f32 %v8091_v62, %v8126_v24 }
  0xc0   : > { %11305 = vst [vmem:[#allocation157_spill] sm:$0xff] %v8041_v21  ;;  %1332 = vmatpush.msrb.mxu1 %v8048_v57  ;;  %1479 = vmatpush.msrb.mxu3 %v7929_v11 }
  0xc1   : > { %11306 = vst [vmem:[#allocation158_spill] sm:$0xff] %v8048_v57  ;;  %1285 = vmatpush.msrb.mxu0 %v7941_v30  ;;  %1427 = vmatpush.msrb.mxu2 %v7951_v29  ;;  %v8103_v57 = vand.u32 4294901760, %v1348_v38  ;;  %v1366_v29 = vsub.f32 %v8041_v21, %v8079_v10  ;;  %v532_v38 = vld [vmem:[%s10563_s4 + $0x28] sm:$0xff]  ;;  %v8129_v2 = vsub.f32 %v541_v59, %v8093_v44  ;;  %v8185_v41 = vand.u32 4294901760, %v8148_v31 }
  0xc2   : > { %11307 = vst [vmem:[#allocation159_spill] sm:$0xff] %v8053_v40  ;;  %1338 = vmatpush.msrb.mxu1 %v8066_v45  ;;  %1481 = vmatpush.msrb.mxu3 %v7941_v30  ;;  %v1372_v59 = vsub.f32 %v8072_v53, %v8107_v54  ;;  %v8167_v15 = vsub.f32 %v535_v12, %v8131_v56 }
  0xc3   : > { %11308 = vst [vmem:[#allocation160_spill] sm:$0xff] %v8055_v18  ;;  %1287 = vmatpush.msrb.mxu0 %v7953_v26  ;;  %1430 = vmatpush.msrb.mxu2 %v7966_v60  ;;  %v8134_v60 = vand.u32 4294901760, %v1360_v28  ;;  %v8150_v28 = vand.u32 4294901760, %v532_v38  ;;  %v8164_v34 = vand.u32 4294901760, %v8129_v2 }
  0xc4   : > { %11309 = vst [vmem:[#allocation161_spill] sm:$0xff] %v8060_v5  ;;  %1344 = vmatpush.msrb.mxu1 %v8085_v25  ;;  %1483 = vmatpush.msrb.mxu3 %v7953_v26  ;;  %v8204_v1 = vand.u32 4294901760, %v8167_v15 }
  0xc5   : > { %11310 = vst [vmem:[#allocation162_spill] sm:$0xff] %v8066_v45  ;;  %v8122_v45 = vand.u32 4294901760, %v1354_v58  ;;  %1289 = vmatpush.msrb.mxu0 %v7968_v47  ;;  %1433 = vmatpush.msrb.mxu2 %v7981_v33  ;;  %v529_v58 = vld [vmem:[%s10563_s4 + $0x10] sm:$0xff]  ;;  %v590_v33 = vld [vmem:[%s10564_s5 + $0x78] sm:$0xff]  ;;  %v8188_v63 = vsub.f32 %v532_v38, %v8150_v28  ;;  %v1390_v38 = vsub.f32 %v8129_v2, %v8164_v34 }
  0xc6   : > { %11311 = vst [vmem:[#allocation163_spill] sm:$0xff] %v8072_v53  ;;  %1350 = vmatpush.msrb.mxu1 %v8103_v57  ;;  %1485 = vmatpush.msrb.mxu3 %v7968_v47  ;;  %v8169_v32 = vand.u32 4294901760, %v529_v58  ;;  %v1402_v49 = vsub.f32 %v8167_v15, %v8204_v1 }
  0xc7   : > { %11312 = vst [vmem:[#allocation164_spill] sm:$0xff] %v8074_v52  ;;  %1291 = vmatpush.msrb.mxu0 %v7983_v16  ;;  %1436 = vmatpush.msrb.mxu2 %v8000_v37  ;;  %v8176_v37 = vand.u32 4294901760, %v590_v33  ;;  %v8224_v50 = vand.u32 4294901760, %v8188_v63 }
  0xc8   : > { %11313 = vst [vmem:[#allocation165_spill] sm:$0xff] %v8079_v10  ;;  %1356 = vmatpush.msrb.mxu1 %v8122_v45  ;;  %1487 = vmatpush.msrb.mxu3 %v7983_v16 }
  0xc9   : > { %11314 = vst [vmem:[#allocation166_spill] sm:$0xff] %v8085_v25  ;;  %v8145_v25 = vand.u32 4294901760, %v8110_v17  ;;  %1293 = vmatpush.msrb.mxu0 %v7990_v8  ;;  %1439 = vmatpush.msrb.mxu2 %v8017_v6  ;;  %v8212_v61 = vsub.f32 %v590_v33, %v8176_v37  ;;  %v1408_v36 = vsub.f32 %v8188_v63, %v8224_v50 }
  0xca   : > { %11315 = vst [vmem:[#allocation167_spill] sm:$0xff] %v8091_v62  ;;  %1362 = vmatpush.msrb.mxu1 %v8134_v60  ;;  %1489 = vmatpush.msrb.mxu3 %v7990_v8 }
  0xcb   : > { %11316 = vst [vmem:[#allocation168_spill] sm:$0xff] %v8093_v44  ;;  %v1384_v12 = vsub.f32 %v8110_v17, %v8145_v25  ;;  %1295 = vmatpush.msrb.mxu0 %v8004_v4  ;;  %1442 = vmatpush.msrb.mxu2 %v8022_v9  ;;  %v8207_v9 = vsub.f32 %v529_v58, %v8169_v32 }
  0xcc   : > { %11317 = vst [vmem:[#allocation169_spill] sm:$0xff] %v8103_v57  ;;  %v8156_v57 = vand.u32 4294901760, %v1366_v29  ;;  %v589_v29 = vld [vmem:[%s10564_s5 + $0x70] sm:$0xff]  ;;  %1491 = vmatpush.msrb.mxu3 %v8004_v4  ;;  %v1396_v58 = vsub.f32 %v8148_v31, %v8185_v41 }
  0xcd   : > { %11318 = vst [vmem:[#allocation170_spill] sm:$0xff] %v8107_v54  ;;  %v8192_v6 = vand.u32 4294901760, %v589_v29  ;;  %1297 = vmatpush.msrb.mxu0 %v8036_v3  ;;  %1445 = vmatpush.msrb.mxu2 %v8041_v21  ;;  %v8243_v48 = vand.u32 4294901760, %v8207_v9 }
  0xce   : > { %11319 = vst [vmem:[#allocation171_spill] sm:$0xff] %v8110_v17  ;;  %1368 = vmatpush.msrb.mxu1 %v8156_v57  ;;  %1493 = vmatpush.msrb.mxu3 %v8036_v3 }
  0xcf   : > { %11320 = vst [vmem:[#allocation172_spill] sm:$0xff] %v8112_v23  ;;  %1299 = vmatpush.msrb.mxu0 %v8055_v18  ;;  %1448 = vmatpush.msrb.mxu2 %v8072_v53  ;;  %v8231_v33 = vsub.f32 %v589_v29, %v8192_v6  ;;  %v8250_v29 = vand.u32 4294901760, %v8212_v61 }
  0xd0   : > { %11321 = vst [vmem:[#allocation173_spill] sm:$0xff] %v8122_v45  ;;  %v8179_v45 = vand.u32 4294901760, %v1372_v59  ;;  %v588_v59 = vld [vmem:[%s10564_s5 + $0x68] sm:$0xff]  ;;  %1495 = vmatpush.msrb.mxu3 %v8055_v18 }
  0xd1   : > { %11322 = vst [vmem:[#allocation174_spill] sm:$0xff] %v8126_v24  ;;  %v8226_v21 = vand.u32 4294901760, %v588_v59  ;;  %1301 = vmatpush.msrb.mxu0 %v8074_v52  ;;  %1451 = vmatpush.msrb.mxu2 %v8091_v62  ;;  %v8269_v20 = vand.u32 4294901760, %v8231_v33  ;;  %v1684_v13 = vsub.f32 %v8212_v61, %v8250_v29 }
  0xd2   : > { %11323 = vst [vmem:[#allocation175_spill] sm:$0xff] %v8129_v2  ;;  %1374 = vmatpush.msrb.mxu1 %v8179_v45  ;;  %1497 = vmatpush.msrb.mxu3 %v8074_v52 }
  0xd3   : > { %11324 = vst [vmem:[#allocation176_spill] sm:$0xff] %v8131_v56  ;;  %v8262_v27 = vsub.f32 %v588_v59, %v8226_v21  ;;  %1303 = vmatpush.msrb.mxu0 %v8093_v44  ;;  %1454 = vmatpush.msrb.mxu2 %v8110_v17  ;;  %v1414_v59 = vsub.f32 %v8207_v9, %v8243_v48 }
  0xd4   : > { %11325 = vst [vmem:[#allocation177_spill] sm:$0xff] %v8134_v60  ;;  %v8198_v60 = vand.u32 4294901760, %v1378_v42  ;;  %v587_v42 = vld [vmem:[%s10564_s5 + $0x60] sm:$0xff]  ;;  %1499 = vmatpush.msrb.mxu3 %v8093_v44 }
  0xd5   : > { %11326 = vst [vmem:[#allocation178_spill] sm:$0xff] %v8145_v25  ;;  %v8245_v53 = vand.u32 4294901760, %v587_v42  ;;  %1305 = vmatpush.msrb.mxu0 %v8112_v23  ;;  %1457 = vmatpush.msrb.mxu2 %v8129_v2 }
  0xd6   : > { %11327 = vst [vmem:[#allocation179_spill] sm:$0xff] %v8148_v31  ;;  %1380 = vmatpush.msrb.mxu1 %v8198_v60  ;;  %1501 = vmatpush.msrb.mxu3 %v8112_v23 }
  0xd7   : > { %11328 = vst [vmem:[#allocation180_spill] sm:$0xff] %v8150_v28  ;;  %v8281_v14 = vsub.f32 %v587_v42, %v8245_v53  ;;  %v8297_v42 = vand.u32 4294901760, %v8262_v27  ;;  %1307 = vmatpush.msrb.mxu0 %v8131_v56  ;;  %1460 = vmatpush.msrb.mxu2 %v8148_v31 }
  0xd8   : > { %11329 = vst [vmem:[#allocation181_spill] sm:$0xff] %v8156_v57  ;;  %v8218_v57 = vand.u32 4294901760, %v1384_v12  ;;  %v586_v12 = vld [vmem:[%s10564_s5 + $0x58] sm:$0xff]  ;;  %1503 = vmatpush.msrb.mxu3 %v8131_v56 }
  0xd9   : > { %11330 = vst [vmem:[#allocation182_spill] sm:$0xff] %v8164_v34  ;;  %v8264_v62 = vand.u32 4294901760, %v586_v12  ;;  %1309 = vmatpush.msrb.mxu0 %v8150_v28  ;;  %1463 = vmatpush.msrb.mxu2 %v8167_v15 }
  0xda   : > { %11331 = vst [vmem:[#allocation183_spill] sm:$0xff] %v8167_v15  ;;  %1386 = vmatpush.msrb.mxu1 %v8218_v57  ;;  %1505 = vmatpush.msrb.mxu3 %v8150_v28  ;;  %v580_v15 = vld [vmem:[%s10564_s5 + $0x28] sm:$0xff] }
  0xdb   : > { %11332 = vst [vmem:[#allocation184_spill] sm:$0xff] %v8169_v32  ;;  %v8300_v7 = vsub.f32 %v586_v12, %v8264_v62  ;;  %v8316_v12 = vand.u32 4294901760, %v8281_v14  ;;  %1311 = vmatpush.msrb.mxu0 %v8169_v32  ;;  %1466 = vmatpush.msrb.mxu2 %v8188_v63 }
  0xdc   : > { %11333 = vst [vmem:[#allocation185_spill] sm:$0xff] %v8176_v37  ;;  %1507 = vmatpush.msrb.mxu3 %v8169_v32  ;;  %1317 = vmatmul.f32.vlgmr.msrb.gmra.mxu0 %v7830_v22 }
  0xdd   : > { %11334 = vst [vmem:[#allocation186_spill] sm:$0xff] %v8179_v45  ;;  %v8237_v45 = vand.u32 4294901760, %v1390_v38  ;;  %v585_v38 = vld [vmem:[%s10564_s5 + $0x50] sm:$0xff]  ;;  %1518 = vmatpush.msra.mxu0 %v7963_v35  ;;  %1469 = vmatpush.msrb.mxu2 %v8207_v9 }
  0xde   : > { %11335 = vst [vmem:[#allocation187_spill] sm:$0xff] %v8185_v41  ;;  %v8283_v17 = vand.u32 4294901760, %v585_v38 }
  0xdf   : > { %11336 = vst [vmem:[#allocation188_spill] sm:$0xff] %v8188_v63  ;;  %1392 = vmatpush.msrb.mxu1 %v8237_v45  ;;  %1522 = vmatpush.msra.mxu0 %v7978_v51 }
  0xe0   : > { %11337 = vst [vmem:[#allocation189_spill] sm:$0xff] %v8192_v6  ;;  %v8319_v46 = vsub.f32 %v585_v38, %v8283_v17  ;;  %v1696_v38 = vsub.f32 %v8262_v27, %v8297_v42  ;;  %1641 = vmatpush.msra.mxu2 %v8176_v37 }
  0xe1   : > { %11338 = vst [vmem:[#allocation190_spill] sm:$0xff] %v8198_v60  ;;  %v8256_v60 = vand.u32 4294901760, %v1396_v58  ;;  %v584_v58 = vld [vmem:[%s10564_s5 + $0x48] sm:$0xff]  ;;  %1526 = vmatpush.msra.mxu0 %v7997_v43 }
  0xe2   : > { %11339 = vst [vmem:[#allocation191_spill] sm:$0xff] %v8204_v1  ;;  %v8302_v2 = vand.u32 4294901760, %v584_v58  ;;  %v8367_v35 = vand.u32 4294901760, %v1696_v38  ;;  %1643 = vmatpush.msra.mxu2 %v8192_v6 }
  0xe3   : > { %11340 = vst [vmem:[#allocation192_spill] sm:$0xff] %v8207_v9  ;;  %1398 = vmatpush.msrb.mxu1 %v8256_v60  ;;  %1530 = vmatpush.msra.mxu0 %v8014_v19 }
  0xe4   : > { %11341 = vst [vmem:[#allocation193_spill] sm:$0xff] %v8212_v61  ;;  %1645 = vmatpush.msra.mxu2 %v8226_v21 }
  0xe5   : > { %11342 = vst [vmem:[#allocation194_spill] sm:$0xff] %v8218_v57  ;;  %v8275_v57 = vand.u32 4294901760, %v1402_v49  ;;  %v583_v49 = vld [vmem:[%s10564_s5 + $0x40] sm:$0xff]  ;;  %1534 = vmatpush.msra.mxu0 %v8034_v0 }
  0xe6   : > { %11343 = vst [vmem:[#allocation195_spill] sm:$0xff] %v8224_v50  ;;  %v8321_v31 = vand.u32 4294901760, %v583_v49  ;;  %1647 = vmatpush.msra.mxu2 %v8245_v53 }
  0xe7   : > { %11344 = vst [vmem:[#allocation196_spill] sm:$0xff] %v8226_v21  ;;  %1404 = vmatpush.msrb.mxu1 %v8275_v57  ;;  %1538 = vmatpush.msra.mxu0 %v8053_v40 }
  0xe8   : > { %11345 = vst [vmem:[#allocation197_spill] sm:$0xff] %v8231_v33  ;;  %1649 = vmatpush.msra.mxu2 %v8264_v62 }
  0xe9   : > { %11346 = vst [vmem:[#allocation198_spill] sm:$0xff] %v8237_v45  ;;  %v8293_v45 = vand.u32 4294901760, %v1408_v36  ;;  %v582_v36 = vld [vmem:[%s10564_s5 + $0x38] sm:$0xff]  ;;  %1542 = vmatpush.msra.mxu0 %v8060_v5 }
  0xea   : > { %11347 = vst [vmem:[#allocation199_spill] sm:$0xff] %v8243_v48  ;;  %v578_v5 = vld [vmem:[%s10564_s5 + $0x18] sm:$0xff]  ;;  %1651 = vmatpush.msra.mxu2 %v8283_v17 }
  0xeb   : > { %11348 = vst [vmem:[#allocation200_spill] sm:$0xff] %v8245_v53  ;;  %1410 = vmatpush.msrb.mxu1 %v8293_v45  ;;  %1546 = vmatpush.msra.mxu0 %v8079_v10  ;;  %v8454_v9 = vand.u32 4294901760, %v578_v5 }
  0xec   : > { %11349 = vst [vmem:[#allocation201_spill] sm:$0xff] %v8250_v29  ;;  %v1690_v29 = vsub.f32 %v8231_v33, %v8269_v20  ;;  %v8338_v33 = vsub.f32 %v584_v58, %v8302_v2  ;;  %v1702_v58 = vsub.f32 %v8281_v14, %v8316_v12  ;;  %1653 = vmatpush.msra.mxu2 %v8302_v2 }
  0xed   : > { %11350 = vst [vmem:[#allocation202_spill] sm:$0xff] %v8256_v60  ;;  %v8312_v60 = vand.u32 4294901760, %v1414_v59  ;;  %v581_v59 = vld [vmem:[%s10564_s5 + $0x30] sm:$0xff]  ;;  %1550 = vmatpush.msra.mxu0 %v8107_v54  ;;  %v576_v54 = vld [vmem:[%s10564_s5 + $0x8] sm:$0xff] }
  0xee   : > { %11351 = vst [vmem:[#allocation203_spill] sm:$0xff] %v8262_v27  ;;  %v8357_v27 = vsub.f32 %v583_v49, %v8321_v31  ;;  %v8359_v61 = vand.u32 4294901760, %v581_v59  ;;  %v8372_v49 = vand.u32 4294901760, %v8338_v33  ;;  %v8381_v51 = vand.u32 4294901760, %v1702_v58  ;;  %1655 = vmatpush.msra.mxu2 %v8321_v31 }
  0xef   : > { %11352 = vst [vmem:[#allocation204_spill] sm:$0xff] %v8264_v62  ;;  %1416 = vmatpush.msrb.mxu1 %v8312_v60  ;;  %1554 = vmatpush.msra.mxu0 %v8126_v24 }
  0xf0   : > { %11353 = vst [vmem:[#allocation205_spill] sm:$0xff] %v8269_v20  ;;  %v8324_v20 = vand.u32 4294901760, %v1684_v13  ;;  %v8340_v13 = vand.u32 4294901760, %v582_v36  ;;  %v1720_v43 = vsub.f32 %v8338_v33, %v8372_v49  ;;  %1418 = vmatmul.f32.vlgmr.msrb.gmra.mxu1 %v7712_v39 }
  0xf1   : > { %11354 = vst [vmem:[#allocation206_spill] sm:$0xff] %v8275_v57  ;;  %v8335_v57 = vand.u32 4294901760, %v8300_v7  ;;  %1585 = vmatpush.msra.mxu1 %v7920_v55  ;;  %v8389_v55 = vsub.f32 %v581_v59, %v8359_v61  ;;  %1558 = vmatpush.msra.mxu0 %v8145_v25 }
  0xf2   : > { %11355 = vst [vmem:[#allocation207_spill] sm:$0xff] %v8281_v14  ;;  %1686 = vmatpush.msra.mxu3 %v8324_v20  ;;  %v8423_v0 = vand.u32 4294901760, %v1720_v43  ;;  %1657 = vmatpush.msra.mxu2 %v8340_v13 }
  0xf3   : > { %11356 = vst [vmem:[#allocation208_spill] sm:$0xff] %v8283_v17  ;;  %v1708_v63 = vsub.f32 %v8300_v7, %v8335_v57  ;;  %1587 = vmatpush.msra.mxu1 %v7929_v11  ;;  %v8414_v59 = vand.u32 4294901760, %v8389_v55  ;;  %1562 = vmatpush.msra.mxu0 %v8164_v34 }
  0xf4   : > { %11357 = vst [vmem:[#allocation209_spill] sm:$0xff] %v8293_v45  ;;  %v8346_v45 = vand.u32 4294901760, %v1690_v29  ;;  %v8363_v29 = vand.u32 4294901760, %v580_v15  ;;  %1659 = vmatpush.msra.mxu2 %v8359_v61 }
  0xf5   : > { %11358 = vst [vmem:[#allocation210_spill] sm:$0xff] %v8297_v42  ;;  %v8354_v42 = vand.u32 4294901760, %v8319_v46  ;;  %1589 = vmatpush.msra.mxu1 %v7941_v30  ;;  %v8398_v58 = vand.u32 4294901760, %v1708_v63  ;;  %v1738_v43 = vsub.f32 %v8389_v55, %v8414_v59  ;;  %1566 = vmatpush.msra.mxu0 %v8185_v41 }
  0xf6   : > { %11359 = vst [vmem:[#allocation211_spill] sm:$0xff] %v8300_v7  ;;  %1692 = vmatpush.msra.mxu3 %v8346_v45  ;;  %1661 = vmatpush.msra.mxu2 %v8363_v29 }
  0xf7   : > { %11360 = vst [vmem:[#allocation212_spill] sm:$0xff] %v8302_v2  ;;  %v1714_v38 = vsub.f32 %v8319_v46, %v8354_v42  ;;  %1591 = vmatpush.msra.mxu1 %v7953_v26  ;;  %v8463_v10 = vand.u32 4294901760, %v1738_v43  ;;  %1570 = vmatpush.msra.mxu0 %v8204_v1  ;;  %v11411_v1 = vld [vmem:[#allocation193_spill] sm:$0xff] }
  0xf8   : > { %11361 = vst [vmem:[#allocation213_spill] sm:$0xff] %v8312_v60  ;;  %v8375_v60 = vsub.f32 %v582_v36, %v8340_v13  ;;  %v8394_v36 = vsub.f32 %v580_v15, %v8363_v29  ;;  %1698 = vmatpush.msra.mxu3 %v8367_v35 }
  0xf9   : > { %11362 = vst [vmem:[#allocation214_spill] sm:$0xff] %v8316_v12  ;;  %v8409_v15 = vand.u32 4294901760, %v1714_v38  ;;  %1593 = vmatpush.msra.mxu1 %v7968_v47  ;;  %1574 = vmatpush.msra.mxu0 %v8224_v50  ;;  %v11413_v50 = vld [vmem:[#allocation119_spill] sm:$0xff] }
  0xfa   : > { %11363 = vst [vmem:[#allocation215_spill] sm:$0xff] %v8319_v46  ;;  %1704 = vmatpush.msra.mxu3 %v8381_v51  ;;  %v8419_v19 = vand.u32 4294901760, %v8394_v36 }
  0xfb   : > { %11364 = vst [vmem:[#allocation216_spill] sm:$0xff] %v8321_v31  ;;  %1595 = vmatpush.msra.mxu1 %v7983_v16  ;;  %1578 = vmatpush.msra.mxu0 %v8243_v48  ;;  %v11414_v48 = vld [vmem:[#allocation203_spill] sm:$0xff] }
  0xfc   : > { %11365 = vst [vmem:[#allocation217_spill] sm:$0xff] %v8324_v20  ;;  %v8386_v20 = vand.u32 4294901760, %v8357_v27  ;;  %1710 = vmatpush.msra.mxu3 %v8398_v58  ;;  %1580 = vmatmul.f32.vlgmr.msra.gmra.mxu0 %v7712_v39 }
  0xfd   : > { %11366 = vst [vmem:[#allocation218_spill] sm:$0xff] %v8335_v57  ;;  %1597 = vmatpush.msra.mxu1 %v7990_v8  ;;  %v577_v8 = vld [vmem:[%s10564_s5 + $0x10] sm:$0xff]  ;;  %1784 = vmatpush.msrb.mxu0 %v11411_v1 }
  0xfe   : > { %11367 = vst [vmem:[#allocation219_spill] sm:$0xff] %v8338_v33  ;;  %v1726_v63 = vsub.f32 %v8357_v27, %v8386_v20  ;;  %1716 = vmatpush.msra.mxu3 %v8409_v15 }
  0xff   : > { %11368 = vst [vmem:[#allocation220_spill] sm:$0xff] %v8340_v13  ;;  %1599 = vmatpush.msra.mxu1 %v8004_v4  ;;  %1511 = vmatmul.f32.vlgmr.msrb.gmra.mxu3 %v11413_v50  ;;  %v11415_v50 = vld [vmem:[#allocation112_spill] sm:$0xff] }
 0x100   : > { %11369 = vst [vmem:[#allocation221_spill] sm:$0xff] %v8346_v45  ;;  %v8403_v45 = vand.u32 4294901760, %v8375_v60  ;;  %v8434_v40 = vand.u32 4294901760, %v1726_v63  ;;  %1722 = vmatpush.msra.mxu3 %v8423_v0  ;;  %1472 = vmatmul.f32.vlgmr.msrb.gmra.mxu2 %v11415_v50  ;;  %v11418_v50 = vld [vmem:[#allocation210_spill] sm:$0xff] }
 0x101   : > { %11370 = vst [vmem:[#allocation222_spill] sm:$0xff] %v8354_v42  ;;  %1601 = vmatpush.msra.mxu1 %v8036_v3  ;;  %v8490_v3 = vand.u32 4294901760, %v576_v54 }
 0x102   : > { %11371 = vst [vmem:[#allocation223_spill] sm:$0xff] %v8357_v27  ;;  %v1732_v38 = vsub.f32 %v8375_v60, %v8403_v45  ;;  %1728 = vmatpush.msra.mxu3 %v8434_v40 }
 0x103   : > { %11372 = vst [vmem:[#allocation224_spill] sm:$0xff] %v8359_v61  ;;  %1603 = vmatpush.msra.mxu1 %v8055_v18  ;;  %v8507_v18 = vsub.f32 %v576_v54, %v8490_v3 }
 0x104   : > { %11373 = vst [vmem:[#allocation225_spill] sm:$0xff] %v8363_v29  ;;  %v8449_v63 = vand.u32 4294901760, %v1732_v38 }
 0x105   : > { %11374 = vst [vmem:[#allocation226_spill] sm:$0xff] %v8367_v35  ;;  %v1744_v35 = vsub.f32 %v8394_v36, %v8419_v19  ;;  %1605 = vmatpush.msra.mxu1 %v8074_v52 }
 0x106   : > { %11375 = vst [vmem:[#allocation227_spill] sm:$0xff] %v8372_v49  ;;  %1734 = vmatpush.msra.mxu3 %v8449_v63 }
 0x107   : > { %11376 = vst [vmem:[#allocation228_spill] sm:$0xff] %v8375_v60  ;;  %v8475_v4 = vand.u32 4294901760, %v1744_v35  ;;  %v575_v35 = vld [vmem:[%s10564_s5] sm:$0xff]  ;;  %1607 = vmatpush.msra.mxu1 %v8093_v44 }
 0x108   : > { %11377 = vst [vmem:[#allocation229_spill] sm:$0xff] %v8381_v51  ;;  %v579_v51 = vld [vmem:[%s10564_s5 + $0x20] sm:$0xff]  ;;  %1740 = vmatpush.msra.mxu3 %v8463_v10  ;;  %v8511_v16 = vand.u32 4294901760, %v575_v35 }
 0x109   : > { %11378 = vst [vmem:[#allocation230_spill] sm:$0xff] %v8386_v20  ;;  %1609 = vmatpush.msra.mxu1 %v8112_v23 }
 0x10a   : > { %11379 = vst [vmem:[#allocation231_spill] sm:$0xff] %v8389_v55  ;;  %1746 = vmatpush.msra.mxu3 %v8475_v4  ;;  %v8525_v54 = vsub.f32 %v575_v35, %v8511_v16 }
 0x10b   : > { %11380 = vst [vmem:[#allocation232_spill] sm:$0xff] %v8394_v36  ;;  %1611 = vmatpush.msra.mxu1 %v8131_v56 }
 0x10c   : > { %11381 = vst [vmem:[#allocation233_spill] sm:$0xff] %v8398_v58  ;;  %v8438_v58 = vand.u32 4294901760, %v579_v51 }
 0x10d   : > { %11382 = vst [vmem:[#allocation234_spill] sm:$0xff] %v8403_v45  ;;  %1613 = vmatpush.msra.mxu1 %v8150_v28 }
 0x10e   : > { %11383 = vst [vmem:[#allocation235_spill] sm:$0xff] %v8409_v15  ;;  %v8452_v15 = vsub.f32 %v579_v51, %v8438_v58  ;;  %v8469_v51 = vsub.f32 %v578_v5, %v8454_v9  ;;  %1663 = vmatpush.msra.mxu2 %v8438_v58 }
 0x10f   : > { %11384 = vst [vmem:[#allocation236_spill] sm:$0xff] %v8414_v59  ;;  %1615 = vmatpush.msra.mxu1 %v8169_v32 }
 0x110   : > { %11385 = vst [vmem:[#allocation237_spill] sm:$0xff] %v8419_v19  ;;  %v8466_v38 = vand.u32 4294901760, %v8452_v15  ;;  %v8485_v43 = vand.u32 4294901760, %v8469_v51  ;;  %1665 = vmatpush.msra.mxu2 %v8454_v9  ;;  %1617 = vmatmul.f32.vlgmr.msra.gmra.mxu1 %v7712_v39 }
 0x111   : > { %11386 = vst [vmem:[#allocation238_spill] sm:$0xff] %v8423_v0  ;;  %v8471_v0 = vand.u32 4294901760, %v577_v8  ;;  %1837 = vmatpush.msrb.mxu1 %v8176_v37 }
 0x112   : > { %11387 = vst [vmem:[#allocation239_spill] sm:$0xff] %v8434_v40  ;;  %v1750_v5 = vsub.f32 %v8452_v15, %v8466_v38 }
 0x113   : > { %11388 = vst [vmem:[#allocation240_spill] sm:$0xff] %v8438_v58  ;;  %v8488_v40 = vsub.f32 %v577_v8, %v8471_v0  ;;  %v1756_v8 = vsub.f32 %v8469_v51, %v8485_v43  ;;  %1839 = vmatpush.msrb.mxu1 %v8192_v6  ;;  %1667 = vmatpush.msra.mxu2 %v8471_v0 }
 0x114   : > { %11389 = vst [vmem:[#allocation241_spill] sm:$0xff] %v8449_v63  ;;  %v8499_v24 = vand.u32 4294901760, %v1750_v5 }
 0x115   : > { %11390 = vst [vmem:[#allocation242_spill] sm:$0xff] %v8452_v15  ;;  %v8504_v63 = vand.u32 4294901760, %v8488_v40  ;;  %v8515_v5 = vand.u32 4294901760, %v1756_v8  ;;  %1841 = vmatpush.msrb.mxu1 %v8226_v21  ;;  %1669 = vmatpush.msra.mxu2 %v8490_v3 }
 0x116   : > { %11391 = vst [vmem:[#allocation243_spill] sm:$0xff] %v8454_v9  ;;  %1752 = vmatpush.msra.mxu3 %v8499_v24 }
 0x117   : > { %11392 = vst [vmem:[#allocation244_spill] sm:$0xff] %v8463_v10  ;;  %v1762_v25 = vsub.f32 %v8488_v40, %v8504_v63  ;;  %v8520_v10 = vand.u32 4294901760, %v8507_v18  ;;  %1843 = vmatpush.msrb.mxu1 %v8245_v53  ;;  %1671 = vmatpush.msra.mxu2 %v8511_v16 }
 0x118   : > { %11393 = vst [vmem:[#allocation245_spill] sm:$0xff] %v8466_v38  ;;  %1758 = vmatpush.msra.mxu3 %v8515_v5 }
 0x119   : > { %11394 = vst [vmem:[#allocation246_spill] sm:$0xff] %v8469_v51  ;;  %v8529_v34 = vand.u32 4294901760, %v1762_v25  ;;  %v1768_v8 = vsub.f32 %v8507_v18, %v8520_v10  ;;  %1845 = vmatpush.msrb.mxu1 %v8264_v62 }
 0x11a   : > { %11395 = vst [vmem:[#allocation247_spill] sm:$0xff] %v8471_v0 }
 0x11b   : > { %11396 = vst [vmem:[#allocation248_spill] sm:$0xff] %v8475_v4  ;;  %v8536_v4 = vand.u32 4294901760, %v8525_v54  ;;  %1764 = vmatpush.msra.mxu3 %v8529_v34  ;;  %v8546_v22 = vand.u32 4294901760, %v1768_v8  ;;  %v11412_v8 = vld [vmem:[#allocation197_spill] sm:$0xff]  ;;  %1847 = vmatpush.msrb.mxu1 %v8283_v17 }
 0x11c   : > { %11397 = vst [vmem:[#allocation249_spill] sm:$0xff] %v8485_v43  ;;  %1787 = vmatpush.msrb.mxu0 %v11412_v8  ;;  %v11446_v8 = vld [vmem:[#allocation12_spill] sm:$0xff] }
 0x11d   : > { %11398 = vst [vmem:[#allocation250_spill] sm:$0xff] %v8488_v40  ;;  %v1774_v25 = vsub.f32 %v8525_v54, %v8536_v4  ;;  %1770 = vmatpush.msra.mxu3 %v8546_v22  ;;  %1849 = vmatpush.msrb.mxu1 %v8302_v2 }
 0x11e   : > { %11399 = vst [vmem:[#allocation251_spill] sm:$0xff] %v8490_v3  ;;  %1790 = vmatpush.msrb.mxu0 %v11414_v48  ;;  %v11445_v48 = vld [vmem:[#allocation81_spill] sm:$0xff] }
 0x11f   : > { %11400 = vst [vmem:[#allocation252_spill] sm:$0xff] %v8499_v24  ;;  %v8552_v35 = vand.u32 4294901760, %v1774_v25  ;;  %v11416_v25 = vld [vmem:[#allocation201_spill] sm:$0xff]  ;;  %1851 = vmatpush.msrb.mxu1 %v8321_v31 }
 0x120   : > { %11401 = vst [vmem:[#allocation253_spill] sm:$0xff] %v8504_v63  ;;  %1793 = vmatpush.msrb.mxu0 %v8281_v14  ;;  %1878 = vmatpush.msrb.mxu2 %v11416_v25 }
 0x121   : > { %11402 = vst [vmem:[#allocation254_spill] sm:$0xff] %v8507_v18  ;;  %1776 = vmatpush.msra.mxu3 %v8552_v35  ;;  %1853 = vmatpush.msrb.mxu1 %v8340_v13 }
 0x122   : > { %11403 = vst [vmem:[#allocation255_spill] sm:$0xff] %v8511_v16  ;;  %1796 = vmatpush.msrb.mxu0 %v8300_v7  ;;  %v594_v7 = vld [vmem:[%s7238_s29] sm:$0xff] }
 0x123   : > { %11404 = vst [vmem:[#allocation256_spill] sm:$0xff] %v8515_v5  ;;  %1945 = vmatpush.msrb.mxu3 %v8176_v37  ;;  %1855 = vmatpush.msrb.mxu1 %v8359_v61 }
 0x124   : > { %11405 = vst [vmem:[#allocation257_spill] sm:$0xff] %v8520_v10  ;;  %1799 = vmatpush.msrb.mxu0 %v8319_v46  ;;  %v11417_v46 = vld [vmem:[#allocation205_spill] sm:$0xff] }
 0x125   : > { %11406 = vst [vmem:[#allocation258_spill] sm:$0xff] %v8525_v54  ;;  %1947 = vmatpush.msrb.mxu3 %v8192_v6  ;;  %1882 = vmatpush.msrb.mxu2 %v11417_v46 }
 0x126   : > { %11407 = vst [vmem:[#allocation259_spill] sm:$0xff] %v8529_v34  ;;  %1802 = vmatpush.msrb.mxu0 %v8338_v33  ;;  %v636_v33 = vpop.f32.mrf.mxu0  ;;  %1857 = vmatpush.msrb.mxu1 %v8363_v29 }
 0x127   : > { %11408 = vst [vmem:[#allocation260_spill] sm:$0xff] %v8536_v4  ;;  %1949 = vmatpush.msrb.mxu3 %v8226_v21  ;;  %1886 = vmatpush.msrb.mxu2 %v11418_v50  ;;  %v637_v14 = vadd.f32 %v636_v33, %v594_v7  ;;  %v830_v33 = vpop.f32.mrf.mxu3 }
 0x128   : > { %11409 = vst [vmem:[#allocation261_spill] sm:$0xff] %v8546_v22  ;;  %1805 = vmatpush.msrb.mxu0 %v8357_v27  ;;  %v791_v27 = vpop.f32.mrf.mxu2  ;;  %1859 = vmatpush.msrb.mxu1 %v8438_v58 }
 0x129   : > { %11410 = vst [vmem:[#allocation262_spill] sm:$0xff] %v8552_v35  ;;  %1951 = vmatpush.msrb.mxu3 %v8245_v53  ;;  %1890 = vmatpush.msrb.mxu2 %v8316_v12 }
 0x12a   : > { %1808 = vmatpush.msrb.mxu0 %v8375_v60  ;;  %v737_v60 = vpop.f32.mrf.mxu1  ;;  %1861 = vmatpush.msrb.mxu1 %v8454_v9 }
 0x12b   : > { %1953 = vmatpush.msrb.mxu3 %v8264_v62  ;;  %1894 = vmatpush.msrb.mxu2 %v8335_v57  ;;  %v738_v50 = vadd.f32 %v737_v60, %v637_v14  ;;  %v11444_v57 = vld [vmem:[#allocation43_spill] sm:$0xff] }
 0x12c   : > { %1811 = vmatpush.msrb.mxu0 %v8389_v55  ;;  %1863 = vmatpush.msrb.mxu1 %v8471_v0  ;;  %v11439_v55 = vld [vmem:[#allocation67_spill] sm:$0xff] }
 0x12d   : > { %1955 = vmatpush.msrb.mxu3 %v8283_v17  ;;  %v792_v7 = vadd.f32 %v791_v27, %v738_v50  ;;  %1898 = vmatpush.msrb.mxu2 %v8354_v42  ;;  %v11420_v50 = vld [vmem:[#allocation28_spill] sm:$0xff] }
 0x12e   : > { %1814 = vmatpush.msrb.mxu0 %v8394_v36  ;;  %v899_v14 = vpop.f32.mrf.mxu0  ;;  %1865 = vmatpush.msrb.mxu1 %v8490_v3 }
 0x12f   : > { %1957 = vmatpush.msrb.mxu3 %v8302_v2  ;;  %v831_v36 = vadd.f32 %v830_v33, %v792_v7  ;;  %1902 = vmatpush.msrb.mxu2 %v8372_v49  ;;  %v11421_v7 = vld [vmem:[#allocation7_spill] sm:$0xff]  ;;  %v11422_v33 = vld [vmem:[#allocation29_spill] sm:$0xff] }
 0x130   : > { %1817 = vmatpush.msrb.mxu0 %v8452_v15  ;;  %1867 = vmatpush.msrb.mxu1 %v8511_v16  ;;  %v8642_v15 = vld [vmem:[#allocation3] sm:$0xff] }
 0x131   : > { %1959 = vmatpush.msrb.mxu3 %v8321_v31  ;;  %v900_v27 = vadd.f32 %v899_v14, %v831_v36  ;;  %1906 = vmatpush.msrb.mxu2 %v8386_v20  ;;  %v11419_v36 = vld [vmem:[#allocation6_spill] sm:$0xff]  ;;  %v11423_v14 = vld [vmem:[#allocation8_spill] sm:$0xff]  ;;  %v11441_v20 = vld [vmem:[#allocation73_spill] sm:$0xff] }
 0x132   : > { %1820 = vmatpush.msrb.mxu0 %v8469_v51  ;;  %v936_v39 = vpop.f32.mrf.mxu1  ;;  %2040 = vmatpush.msra.mxu1 %v11420_v50  ;;  %v11427_v51 = vld [vmem:[#allocation10_spill] sm:$0xff]  ;;  %v11428_v50 = vld [vmem:[#allocation40_spill] sm:$0xff] }
 0x133   : > { %1961 = vmatpush.msrb.mxu3 %v8340_v13  ;;  %v937_v60 = vadd.f32 %v936_v39, %v900_v27  ;;  %1910 = vmatpush.msrb.mxu2 %v8403_v45  ;;  %v593_v27 = vld [vmem:[#allocation4] sm:$0xff]  ;;  %v11424_v39 = vld [vmem:[#allocation32_spill] sm:$0xff] }
 0x134   : > { %1823 = vmatpush.msrb.mxu0 %v8488_v40  ;;  %2046 = vmatpush.msra.mxu1 %v11422_v33  ;;  %v11426_v40 = vld [vmem:[#allocation37_spill] sm:$0xff]  ;;  %v595_v45 = vld [vmem:[%s7238_s29 + $0x8] sm:$0xff] }
 0x135   : > { %1963 = vmatpush.msrb.mxu3 %v8359_v61  ;;  %7083 = vtanh.f32 %v937_v60  ;;  %1914 = vmatpush.msrb.mxu2 %v8414_v59  ;;  %v11425_v60 = vld [vmem:[#allocation9_spill] sm:$0xff] }
 0x136   : > { %1826 = vmatpush.msrb.mxu0 %v8507_v18  ;;  %2052 = vmatpush.msra.mxu1 %v11424_v39  ;;  %v1078_v12 = vpop.f32.mrf.mxu3 }
 0x137   : > { %1965 = vmatpush.msrb.mxu3 %v8363_v29  ;;  %1918 = vmatpush.msrb.mxu2 %v8419_v19  ;;  %v11430_v19 = vld [vmem:[#allocation46_spill] sm:$0xff] }
 0x138   : > { %1829 = vmatpush.msrb.mxu0 %v8525_v54  ;;  %2058 = vmatpush.msra.mxu1 %v11426_v40  ;;  %v11435_v40 = vld [vmem:[#allocation57_spill] sm:$0xff]  ;;  %v1132_v46 = vpop.f32.mrf.mxu0 }
 0x139   : > { %1967 = vmatpush.msrb.mxu3 %v8438_v58  ;;  %1922 = vmatpush.msrb.mxu2 %v8466_v38  ;;  %v11429_v38 = vld [vmem:[#allocation11_spill] sm:$0xff] }
 0x13a   : > { %1995 = vmatpush.msra.mxu0 %v11419_v36  ;;  %2064 = vmatpush.msra.mxu1 %v11428_v50 }
 0x13b   : > { %1969 = vmatpush.msrb.mxu3 %v8454_v9  ;;  %v7084_v54 = vpop.eup %7083  ;;  %1926 = vmatpush.msrb.mxu2 %v8485_v43  ;;  %v11438_v43 = vld [vmem:[#allocation34_spill] sm:$0xff] }
 0x13c   : > { %1997 = vmatpush.msra.mxu0 %v11421_v7  ;;  %v1630_v18 = vadd.f32 %v7084_v54, %v593_v27  ;;  %2070 = vmatpush.msra.mxu1 %v11430_v19  ;;  %v11431_v54 = vld [vmem:[#allocation15_spill] sm:$0xff]  ;;  %v11432_v27 = vld [vmem:[#allocation48_spill] sm:$0xff] }
 0x13d   : > { %1971 = vmatpush.msrb.mxu3 %v8471_v0  ;;  %1930 = vmatpush.msrb.mxu2 %v8504_v63  ;;  %v8658_v19 = vld [vmem:[#allocation2] sm:$0xff]  ;;  %v11437_v63 = vld [vmem:[#allocation62_spill] sm:$0xff] }
 0x13e   : > { %1999 = vmatpush.msra.mxu0 %v11423_v14  ;;  %v1631_v33 = vmax.f32 %v1630_v18, 0.0  ;;  %2076 = vmatpush.msra.mxu1 %v11432_v27  ;;  %v11433_v18 = vld [vmem:[#allocation22_spill] sm:$0xff] }
 0x13f   : > { %1973 = vmatpush.msrb.mxu3 %v8490_v3  ;;  %1934 = vmatpush.msrb.mxu2 %v8520_v10  ;;  %v11436_v10 = vld [vmem:[#allocation27_spill] sm:$0xff] }
 0x140   : > { %2001 = vmatpush.msra.mxu0 %v11425_v60  ;;  %v8640_v39 = vadd.f32 -1.0, %v1631_v33  ;;  %2082 = vmatpush.msra.mxu1 %v11435_v40  ;;  %v11442_v40 = vld [vmem:[#allocation36_spill] sm:$0xff] }
 0x141   : > { %1975 = vmatpush.msrb.mxu3 %v8511_v16  ;;  %1938 = vmatpush.msrb.mxu2 %v8536_v4 }
 0x142   : > { %2003 = vmatpush.msra.mxu0 %v11427_v51  ;;  %vm1633_vm0 = vcmp.le.f32.partialorder %v8640_v39, 0.0  ;;  %2088 = vmatpush.msra.mxu1 %v11437_v63  ;;  %v977_v63 = vpop.f32.mrf.mxu2 }
 0x143   : > { %v1635_v33 = vsel %vm1633_vm0, %v8642_v15, 0.0  ;;  %v8656_v50 = vsel %vm1633_vm0, 0.0, %v8640_v39  ;;  %v978_v42 = vadd.f32 %v977_v63, %v595_v45  ;;  %v11448_v63 = vld [vmem:[#allocation45_spill] sm:$0xff]  ;;  %v11476_v39 = vld [vmem:[#allocation55_spill] sm:$0xff] }
 0x144   : > { %2005 = vmatpush.msra.mxu0 %v11429_v38  ;;  %11434 = vst [vmem:[#allocation119_spill] sm:$0xff] %v8656_v50  ;;  %v1639_v4 = vmul.f32 %v8658_v19, %v1635_v33  ;;  %2094 = vmatpush.msra.mxu1 %v11439_v55  ;;  %v11440_v50 = vld [vmem:[#allocation35_spill] sm:$0xff] }
 0x146   : > { %2007 = vmatpush.msra.mxu0 %v11431_v54  ;;  %v1672_v27 = vand.u32 4294901760, %v1639_v4  ;;  %2100 = vmatpush.msra.mxu1 %v11441_v20  ;;  %v1079_v20 = vadd.f32 %v1078_v12, %v978_v42  ;;  %v11452_v12 = vld [vmem:[#allocation14_spill] sm:$0xff] }
 0x148   : > { %2009 = vmatpush.msra.mxu0 %v11433_v18  ;;  %1778 = vmatmul.f32.vlgmr.msra.gmra.mxu3 %v1672_v27  ;;  %v1673_v59 = vsub.f32 %v1639_v4, %v1672_v27  ;;  %v11443_v4 = vld [vmem:[#allocation76_spill] sm:$0xff]  ;;  %v1133_v45 = vadd.f32 %v1132_v46, %v1079_v20 }
 0x149   : > { %2191 = vmatpush.msra.mxu3 %v11419_v36  ;;  %2106 = vmatpush.msra.mxu1 %v11443_v4  ;;  %v11453_v46 = vld [vmem:[#allocation96_spill] sm:$0xff] }
 0x14a   : > { %2011 = vmatpush.msra.mxu0 %v11436_v10  ;;  %v1674_v33 = vand.u32 4294901760, %v1673_v59  ;;  %v1240_v42 = vpop.f32.mrf.mxu2 }
 0x14b   : > { %1832 = vmatmul.f32.vlgmr.msrb.gmra.mxu0 %v1673_v59  ;;  %2193 = vmatpush.msra.mxu3 %v11421_v7 }
 0x14c   : > { %2013 = vmatpush.msra.mxu0 %v11438_v43  ;;  %1871 = vmatmul.f32.vlgmr.msrb.gmra.mxu1 %v1674_v33  ;;  %v1675_v49 = vsub.f32 %v1673_v59, %v1674_v33  ;;  %v11447_v59 = vld [vmem:[#allocation85_spill] sm:$0xff] }
 0x14d   : > { %2195 = vmatpush.msra.mxu3 %v11423_v14  ;;  %2112 = vmatpush.msra.mxu1 %v11445_v48  ;;  %v11449_v33 = vld [vmem:[#allocation13_spill] sm:$0xff]  ;;  %v11450_v48 = vld [vmem:[#allocation90_spill] sm:$0xff] }
 0x14e   : > { %2015 = vmatpush.msra.mxu0 %v11440_v50  ;;  %v1676_v55 = vand.u32 4294901760, %v1675_v49  ;;  %v1171_v49 = vpop.f32.mrf.mxu1 }
 0x14f   : > { %2197 = vmatpush.msra.mxu3 %v11425_v60  ;;  %2118 = vmatpush.msra.mxu1 %v11447_v59  ;;  %v1172_v4 = vadd.f32 %v1171_v49, %v1133_v45  ;;  %v11455_v59 = vld [vmem:[#allocation16_spill] sm:$0xff]  ;;  %v11456_v49 = vld [vmem:[#allocation17_spill] sm:$0xff] }
 0x150   : > { %2017 = vmatpush.msra.mxu0 %v11442_v40  ;;  %1677 = vmatmul.f32.vlgmr.msra.gmra.mxu2 %v1676_v55  ;;  %v11451_v55 = vld [vmem:[#allocation49_spill] sm:$0xff] }
 0x151   : > { %1977 = vmatmul.f32.vlgmr.msrb.gmra.mxu3 %v1672_v27  ;;  %2138 = vmatpush.msra.mxu2 %v11446_v8  ;;  %v1241_v20 = vadd.f32 %v1240_v42, %v1172_v4  ;;  %v11454_v8 = vld [vmem:[#allocation56_spill] sm:$0xff]  ;;  %v11457_v4 = vld [vmem:[#allocation19_spill] sm:$0xff] }
 0x152   : > { %2019 = vmatpush.msra.mxu0 %v11444_v57  ;;  %2199 = vmatpush.msra.mxu3 %v11427_v51 }
 0x153   : > { %2141 = vmatpush.msra.mxu2 %v11449_v33  ;;  %2124 = vmatpush.msra.mxu1 %v11450_v48  ;;  %v1277_v33 = vpop.f32.mrf.mxu3  ;;  %v11511_v48 = vld [vmem:[#allocation105_spill] sm:$0xff] }
 0x154   : > { %2021 = vmatpush.msra.mxu0 %v11448_v63  ;;  %2201 = vmatpush.msra.mxu3 %v11429_v38  ;;  %v1278_v45 = vadd.f32 %v1277_v33, %v1241_v20  ;;  %v11461_v33 = vld [vmem:[#allocation21_spill] sm:$0xff]  ;;  %v11462_v20 = vld [vmem:[#allocation30_spill] sm:$0xff] }
 0x155   : > { %2144 = vmatpush.msra.mxu2 %v11452_v12  ;;  %2130 = vmatpush.msra.mxu1 %v11453_v46  ;;  %v11458_v12 = vld [vmem:[#allocation18_spill] sm:$0xff]  ;;  %v11506_v46 = vld [vmem:[#allocation132_spill] sm:$0xff] }
 0x156   : > { %2023 = vmatpush.msra.mxu0 %v11451_v55  ;;  %2203 = vmatpush.msra.mxu3 %v11431_v54  ;;  %v1622_v42 = vmul.f32 0.5, %v1278_v45  ;;  %v11463_v45 = vld [vmem:[#allocation23_spill] sm:$0xff] }
 0x157   : > { %2147 = vmatpush.msra.mxu2 %v11455_v59  ;;  %2299 = vmatpush.msrb.mxu1 %v11419_v36  ;;  %v11459_v59 = vld [vmem:[#allocation20_spill] sm:$0xff] }
 0x158   : > { %2025 = vmatpush.msra.mxu0 %v11454_v8  ;;  %2205 = vmatpush.msra.mxu3 %v11433_v18  ;;  %7085 = vtanh.f32 %v1622_v42  ;;  %v11465_v42 = vld [vmem:[#allocation24_spill] sm:$0xff] }
 0x159   : > { %1940 = vmatmul.f32.vlgmr.msrb.gmra.mxu2 %v1672_v27  ;;  %2301 = vmatpush.msrb.mxu1 %v11421_v7  ;;  %v11460_v27 = vld [vmem:[#allocation25_spill] sm:$0xff] }
 0x15a   : > { %2150 = vmatpush.msra.mxu2 %v11456_v49  ;;  %2207 = vmatpush.msra.mxu3 %v11436_v10  ;;  %v11466_v49 = vld [vmem:[#allocation39_spill] sm:$0xff] }
 0x15b   : > { %2232 = vmatpush.msrb.mxu0 %v11457_v4  ;;  %2303 = vmatpush.msrb.mxu1 %v11423_v14  ;;  %v11475_v4 = vld [vmem:[#allocation91_spill] sm:$0xff] }
 0x15c   : > { %2153 = vmatpush.msra.mxu2 %v11458_v12  ;;  %2209 = vmatpush.msra.mxu3 %v11438_v43  ;;  %v11464_v12 = vld [vmem:[#allocation33_spill] sm:$0xff] }
 0x15d   : > { %2236 = vmatpush.msrb.mxu0 %v11459_v59  ;;  %2305 = vmatpush.msrb.mxu1 %v11425_v60  ;;  %v11468_v59 = vld [vmem:[#allocation42_spill] sm:$0xff] }
 0x15e   : > { %2156 = vmatpush.msra.mxu2 %v11460_v27  ;;  %2211 = vmatpush.msra.mxu3 %v11440_v50  ;;  %v7086_v27 = vpop.eup %7085 }
 0x15f   : > { %2240 = vmatpush.msrb.mxu0 %v11461_v33  ;;  %2307 = vmatpush.msrb.mxu1 %v11427_v51  ;;  %v11467_v33 = vld [vmem:[#allocation26_spill] sm:$0xff] }
 0x160   : > { %2159 = vmatpush.msra.mxu2 %v11462_v20  ;;  %2213 = vmatpush.msra.mxu3 %v11442_v40  ;;  %v1624_v20 = vadd.f32 1.0, %v7086_v27 }
 0x161   : > { %2244 = vmatpush.msrb.mxu0 %v11463_v45  ;;  %2309 = vmatpush.msrb.mxu1 %v11429_v38  ;;  %v11469_v45 = vld [vmem:[#allocation31_spill] sm:$0xff] }
 0x162   : > { %2162 = vmatpush.msra.mxu2 %v11464_v12  ;;  %2215 = vmatpush.msra.mxu3 %v11444_v57  ;;  %v1625_v12 = vmul.f32 0.5, %v1624_v20  ;;  %v11474_v20 = vld [vmem:[#allocation38_spill] sm:$0xff] }
 0x163   : > { %2248 = vmatpush.msrb.mxu0 %v11465_v42  ;;  %2311 = vmatpush.msrb.mxu1 %v11431_v54  ;;  %v11470_v42 = vld [vmem:[#allocation44_spill] sm:$0xff] }
 0x164   : > { %2165 = vmatpush.msra.mxu2 %v11466_v49  ;;  %2217 = vmatpush.msra.mxu3 %v11448_v63  ;;  %v1636_v49 = vsel %vm1633_vm0, 0.0, %v8642_v15  ;;  %v11477_v15 = vld [vmem:[#allocation41_spill] sm:$0xff] }
 0x165   : > { %2252 = vmatpush.msrb.mxu0 %v11467_v33  ;;  %2313 = vmatpush.msrb.mxu1 %v11433_v18  ;;  %v8725_v27 = vadd.f32 %v1636_v49, %v1625_v12  ;;  %v11472_v33 = vld [vmem:[#allocation88_spill] sm:$0xff]  ;;  %v11480_v49 = vld [vmem:[#allocation47_spill] sm:$0xff] }
 0x166   : > { %2168 = vmatpush.msra.mxu2 %v11468_v59  ;;  %2219 = vmatpush.msra.mxu3 %v11451_v55  ;;  %v11473_v59 = vld [vmem:[#allocation52_spill] sm:$0xff] }
 0x167   : > { %2256 = vmatpush.msrb.mxu0 %v11469_v45  ;;  %11471 = vst [vmem:[#allocation112_spill] sm:$0xff] %v8725_v27  ;;  %2315 = vmatpush.msrb.mxu1 %v11436_v10  ;;  %v11479_v12 = vld [vmem:[#allocation60_spill] sm:$0xff]  ;;  %v11494_v45 = vld [vmem:[#allocation114_spill] sm:$0xff]  ;;  %v11516_v27 = vld [vmem:[#allocation123_spill] sm:$0xff]  ;;  %v1318_v10 = vpop.f32.mrf.mxu0 }
 0x168   : > { %2171 = vmatpush.msra.mxu2 %v11470_v42  ;;  %2221 = vmatpush.msra.mxu3 %v11454_v8  ;;  %v11478_v42 = vld [vmem:[#allocation97_spill] sm:$0xff] }
 0x169   : > { %2260 = vmatpush.msrb.mxu0 %v11474_v20  ;;  %2317 = vmatpush.msrb.mxu1 %v11438_v43  ;;  %v11484_v20 = vld [vmem:[#allocation50_spill] sm:$0xff]  ;;  %v11514_v43 = vld [vmem:[#allocation115_spill] sm:$0xff] }
 0x16a   : > { %2381 = vmatpush.msrb.mxu3 %v11472_v33  ;;  %2174 = vmatpush.msra.mxu2 %v11473_v59  ;;  %v11481_v33 = vld [vmem:[#allocation100_spill] sm:$0xff] }
 0x16b   : > { %2264 = vmatpush.msrb.mxu0 %v11477_v15  ;;  %2319 = vmatpush.msrb.mxu1 %v11440_v50  ;;  %v11482_v59 = vld [vmem:[#allocation68_spill] sm:$0xff]  ;;  %v11487_v15 = vld [vmem:[#allocation53_spill] sm:$0xff]  ;;  %v11512_v50 = vld [vmem:[#allocation135_spill] sm:$0xff] }
 0x16c   : > { %2387 = vmatpush.msrb.mxu3 %v11475_v4  ;;  %2177 = vmatpush.msra.mxu2 %v11476_v39  ;;  %v11483_v4 = vld [vmem:[#allocation51_spill] sm:$0xff] }
 0x16d   : > { %2268 = vmatpush.msrb.mxu0 %v11480_v49  ;;  %2321 = vmatpush.msrb.mxu1 %v11442_v40  ;;  %v11485_v39 = vld [vmem:[#allocation103_spill] sm:$0xff] }
 0x16e   : > { %2393 = vmatpush.msrb.mxu3 %v11478_v42  ;;  %2180 = vmatpush.msra.mxu2 %v11479_v12  ;;  %v11486_v42 = vld [vmem:[#allocation54_spill] sm:$0xff]  ;;  %v11488_v12 = vld [vmem:[#allocation107_spill] sm:$0xff] }
 0x16f   : > { %2272 = vmatpush.msrb.mxu0 %v11483_v4  ;;  %2323 = vmatpush.msrb.mxu1 %v11444_v57  ;;  %v11490_v49 = vld [vmem:[#allocation59_spill] sm:$0xff]  ;;  %v11492_v4 = vld [vmem:[#allocation65_spill] sm:$0xff] }
 0x170   : > { %2399 = vmatpush.msrb.mxu3 %v11481_v33  ;;  %2183 = vmatpush.msra.mxu2 %v11482_v59  ;;  %v11489_v33 = vld [vmem:[#allocation63_spill] sm:$0xff]  ;;  %v11491_v59 = vld [vmem:[#allocation110_spill] sm:$0xff] }
 0x171   : > { %2276 = vmatpush.msrb.mxu0 %v11486_v42  ;;  %2325 = vmatpush.msrb.mxu1 %v11448_v63  ;;  %v11495_v42 = vld [vmem:[#allocation71_spill] sm:$0xff]  ;;  %v11497_v63 = vld [vmem:[#allocation116_spill] sm:$0xff] }
 0x172   : > { %2336 = vmatpush.msrb.mxu2 %v11484_v20  ;;  %2405 = vmatpush.msrb.mxu3 %v11485_v39  ;;  %v11493_v39 = vld [vmem:[#allocation64_spill] sm:$0xff]  ;;  %v11499_v57 = vld [vmem:[#allocation75_spill] sm:$0xff] }
 0x173   : > { %2280 = vmatpush.msrb.mxu0 %v11489_v33  ;;  %2327 = vmatpush.msrb.mxu1 %v11451_v55  ;;  %v11498_v33 = vld [vmem:[#allocation78_spill] sm:$0xff]  ;;  %v11501_v55 = vld [vmem:[#allocation80_spill] sm:$0xff]  ;;  %v11509_v40 = vld [vmem:[#allocation99_spill] sm:$0xff] }
 0x174   : > { %2338 = vmatpush.msrb.mxu2 %v11487_v15  ;;  %2411 = vmatpush.msrb.mxu3 %v11488_v12  ;;  %v11496_v12 = vld [vmem:[#allocation66_spill] sm:$0xff] }
 0x175   : > { %2284 = vmatpush.msrb.mxu0 %v11492_v4  ;;  %2329 = vmatpush.msrb.mxu1 %v11454_v8  ;;  %v11502_v4 = vld [vmem:[#allocation125_spill] sm:$0xff] }
 0x176   : > { %2340 = vmatpush.msrb.mxu2 %v11490_v49  ;;  %2417 = vmatpush.msrb.mxu3 %v11491_v59  ;;  %v11500_v59 = vld [vmem:[#allocation121_spill] sm:$0xff] }
 0x177   : > { %2288 = vmatpush.msrb.mxu0 %v11495_v42  ;;  %v11504_v8 = vld [vmem:[#allocation129_spill] sm:$0xff]  ;;  %v11505_v42 = vld [vmem:[#allocation87_spill] sm:$0xff] }
 0x178   : > { %2342 = vmatpush.msrb.mxu2 %v11493_v39  ;;  %2423 = vmatpush.msrb.mxu3 %v11494_v45  ;;  %v11503_v45 = vld [vmem:[#allocation84_spill] sm:$0xff] }
 0x179   : > { %2292 = vmatpush.msrb.mxu0 %v11498_v33  ;;  %v11508_v33 = vld [vmem:[#allocation133_spill] sm:$0xff]  ;;  %v1581_v14 = vpop.f32.mrf.mxu0 }
 0x17a   : > { %2344 = vmatpush.msrb.mxu2 %v11496_v12  ;;  %2429 = vmatpush.msrb.mxu3 %v11497_v63  ;;  %v11507_v63 = vld [vmem:[#allocation94_spill] sm:$0xff] }
 0x17c   : > { %2346 = vmatpush.msrb.mxu2 %v11499_v57  ;;  %2435 = vmatpush.msrb.mxu3 %v11500_v59  ;;  %v11510_v59 = vld [vmem:[#allocation134_spill] sm:$0xff] }
 0x17e   : > { %2348 = vmatpush.msrb.mxu2 %v11501_v55  ;;  %2441 = vmatpush.msrb.mxu3 %v11502_v4  ;;  %v11513_v4 = vld [vmem:[#allocation109_spill] sm:$0xff] }
 0x180   : > { %2350 = vmatpush.msrb.mxu2 %v11503_v45  ;;  %2447 = vmatpush.msrb.mxu3 %v11504_v8  ;;  %v11515_v8 = vld [vmem:[#allocation120_spill] sm:$0xff] }
 0x182   : > { %2352 = vmatpush.msrb.mxu2 %v11505_v42  ;;  %2453 = vmatpush.msrb.mxu3 %v11506_v46  ;;  %v596_v46 = vld [vmem:[%s7238_s29 + $0x10] sm:$0xff] }
 0x183   : > { %v1319_v18 = vadd.f32 %v1318_v10, %v596_v46  ;;  %v1473_v38 = vpop.f32.mrf.mxu2 }
 0x184   : > { %2354 = vmatpush.msrb.mxu2 %v11507_v63  ;;  %2459 = vmatpush.msrb.mxu3 %v11508_v33  ;;  %v1419_v33 = vpop.f32.mrf.mxu1 }
 0x185   : > { %v1420_v54 = vadd.f32 %v1419_v33, %v1319_v18 }
 0x186   : > { %2356 = vmatpush.msrb.mxu2 %v11509_v40  ;;  %2465 = vmatpush.msrb.mxu3 %v11510_v59  ;;  %v1512_v59 = vpop.f32.mrf.mxu3 }
 0x187   : > { %v1474_v51 = vadd.f32 %v1473_v38, %v1420_v54 }
 0x188   : > { %2358 = vmatpush.msrb.mxu2 %v11511_v48  ;;  %2471 = vmatpush.msrb.mxu3 %v11512_v50 }
 0x189   : > { %v1513_v60 = vadd.f32 %v1512_v59, %v1474_v51  ;;  %v597_v59 = vld [vmem:[%s7238_s29 + $0x18] sm:$0xff] }
 0x18a   : > { %2360 = vmatpush.msrb.mxu2 %v11513_v4 }
 0x18b   : > { %v1582_v7 = vadd.f32 %v1581_v14, %v1513_v60 }
 0x18c   : > { %2362 = vmatpush.msrb.mxu2 %v11514_v43 }
 0x18d   : > { %v1618_v50 = vpop.f32.mrf.mxu1 }
 0x18e   : > { %2364 = vmatpush.msrb.mxu2 %v11515_v8  ;;  %v1619_v36 = vadd.f32 %v1618_v50, %v1582_v7 }
 0x190   : > { %2366 = vmatpush.msrb.mxu2 %v11516_v27  ;;  %v1626_v25 = vmul.f32 0.5, %v1619_v36 }
 0x192   : > { %7087 = vtanh.f32 %v1626_v25 }
 0x198   : > { %v7088_v10 = vpop.eup %7087 }
 0x199   : > { %v1628_v54 = vadd.f32 1.0, %v7088_v10  ;;  %v11518_v10 = vld [vmem:[#allocation72_spill] sm:$0xff] }
 0x19b   : > { %v1629_v33 = vmul.f32 0.5, %v1628_v54  ;;  %v11521_v54 = vld [vmem:[#allocation82_spill] sm:$0xff] }
 0x19d   : > { %v1983_v36 = vsub.f32 1.0, %v1629_v33 }
 0x19f   : > { %v1984_v25 = vmul.f32 %v8658_v19, %v1983_v36  ;;  %v11527_v36 = vld [vmem:[#allocation98_spill] sm:$0xff] }
 0x1c8   : > { %v1833_v3 = vpop.f32.mrf.mxu0 }
 0x1c9   : > { %v1872_v0 = vpop.f32.mrf.mxu1 }
 0x1cb   : > { %v1779_v1 = vpop.f32.mrf.mxu3 }
 0x1d3   : > { %v1678_v16 = vpop.f32.mrf.mxu2 }
 0x1d4   : > { %v1780_v35 = vadd.f32 %v1779_v1, %v1678_v16  ;;  %v1978_v51 = vpop.f32.mrf.mxu3 }
 0x1d6   : > { %v1834_v22 = vadd.f32 %v1833_v3, %v1780_v35  ;;  %v11517_v35 = vld [vmem:[#allocation69_spill] sm:$0xff] }
 0x1d8   : > { %v1873_v46 = vadd.f32 %v1872_v0, %v1834_v22 }
 0x1dc   : > { %v1941_v18 = vpop.f32.mrf.mxu2 }
 0x1dd   : > { %v1942_v38 = vadd.f32 %v1941_v18, %v1873_v46  ;;  %v11519_v18 = vld [vmem:[#allocation79_spill] sm:$0xff] }
 0x1df   : > { %v1979_v14 = vadd.f32 %v1978_v51, %v1942_v38  ;;  %v11520_v38 = vld [vmem:[#allocation58_spill] sm:$0xff]  ;;  %v11522_v51 = vld [vmem:[#allocation61_spill] sm:$0xff] }
 0x1e1   : > { %v1981_v60 = vadd.f32 %v1979_v14, %v597_v59  ;;  %v11523_v59 = vld [vmem:[#allocation86_spill] sm:$0xff] }
 0x1e2   : > { %v11524_v14 = vld [vmem:[#allocation70_spill] sm:$0xff] }
 0x1e3   : > { %7089 = vtanh.f32 %v1981_v60  ;;  %v11525_v60 = vld [vmem:[#allocation92_spill] sm:$0xff] }
 0x1e9   : > { %v7090_v50 = vpop.eup %7089 }
 0x1ea   : > { %v1985_v1 = vmul.f32 %v7090_v50, %v1629_v33  ;;  %v11526_v33 = vld [vmem:[#allocation74_spill] sm:$0xff]  ;;  %v11528_v50 = vld [vmem:[#allocation77_spill] sm:$0xff] }
 0x1ec   : > { %v1986_v16 = vadd.f32 %v1985_v1, %v1984_v25  ;;  %v11529_v25 = vld [vmem:[#allocation101_spill] sm:$0xff]  ;;  %v11530_v1 = vld [vmem:[#allocation83_spill] sm:$0xff] }
 0x1ee   : > { %7091 = vtanh.f32 %v1986_v16  ;;  %v11531_v16 = vld [vmem:[#allocation104_spill] sm:$0xff] }
 0x1f4   : > { %v8783_v3 = vpop.eup %7091 }
 0x1f5   : > { %1988 = vst [vmem:[%s7243_s17] sm:$0xff] %v8783_v3  ;;  %v8788_v0 = vand.u32 4294901760, %v8783_v3 }
 0x1f7   : > { %2132 = vmatmul.f32.vlgmr.msra.gmra.mxu1 %v8788_v0  ;;  %v8793_v22 = vsub.f32 %v8783_v3, %v8788_v0 }
 0x1f8   : > { %2532 = vmatpush.msra.mxu1 %v11484_v20 }
 0x1f9   : > { %2186 = vmatmul.f32.vlgmr.msra.gmra.mxu2 %v8793_v22  ;;  %v8798_v19 = vand.u32 4294901760, %v8793_v22 }
 0x1fa   : > { %2534 = vmatpush.msra.mxu1 %v11487_v15  ;;  %2573 = vmatpush.msra.mxu2 %v11517_v35 }
 0x1fb   : > { %2225 = vmatmul.f32.vlgmr.msra.gmra.mxu3 %v8798_v19  ;;  %v2029_v7 = vsub.f32 %v8793_v22, %v8798_v19 }
 0x1fc   : > { %2536 = vmatpush.msra.mxu1 %v11490_v49  ;;  %2577 = vmatpush.msra.mxu2 %v11518_v10 }
 0x1fd   : > { %2640 = vmatpush.msra.mxu3 %v11484_v20  ;;  %v8808_v46 = vand.u32 4294901760, %v2029_v7  ;;  %v11532_v7 = vld [vmem:[#allocation89_spill] sm:$0xff] }
 0x1fe   : > { %2538 = vmatpush.msra.mxu1 %v11493_v39  ;;  %2581 = vmatpush.msra.mxu2 %v11519_v18 }
 0x1ff   : > { %2642 = vmatpush.msra.mxu3 %v11487_v15  ;;  %2031 = vmatmul.f32.vlgmr.msra.gmra.mxu0 %v8808_v46 }
 0x200   : > { %2331 = vmatmul.f32.vlgmr.msrb.gmra.mxu1 %v8788_v0  ;;  %2479 = vmatpush.msra.mxu0 %v11520_v38 }
 0x201   : > { %2540 = vmatpush.msra.mxu1 %v11496_v12  ;;  %2585 = vmatpush.msra.mxu2 %v11521_v54  ;;  %v11579_v54 = vld [vmem:[#allocation175_spill] sm:$0xff] }
 0x202   : > { %2644 = vmatpush.msra.mxu3 %v11490_v49  ;;  %2372 = vmatmul.f32.vlgmr.msrb.gmra.mxu2 %v8808_v46 }
 0x203   : > { %2482 = vmatpush.msra.mxu0 %v11522_v51  ;;  %2542 = vmatpush.msra.mxu1 %v11499_v57  ;;  %v11576_v51 = vld [vmem:[#allocation171_spill] sm:$0xff] }
 0x204   : > { %2589 = vmatpush.msra.mxu2 %v11523_v59  ;;  %2646 = vmatpush.msra.mxu3 %v11493_v39  ;;  %v11573_v59 = vld [vmem:[#allocation167_spill] sm:$0xff] }
 0x205   : > { %2473 = vmatmul.f32.vlgmr.msrb.gmra.mxu3 %v8788_v0  ;;  %2485 = vmatpush.msra.mxu0 %v11524_v14  ;;  %v11555_v14 = vld [vmem:[#allocation143_spill] sm:$0xff] }
 0x206   : > { %2544 = vmatpush.msra.mxu1 %v11501_v55  ;;  %2593 = vmatpush.msra.mxu2 %v11525_v60  ;;  %v11554_v60 = vld [vmem:[#allocation166_spill] sm:$0xff] }
 0x207   : > { %2648 = vmatpush.msra.mxu3 %v11496_v12  ;;  %2488 = vmatpush.msra.mxu0 %v11526_v33  ;;  %v11549_v33 = vld [vmem:[#allocation122_spill] sm:$0xff] }
 0x208   : > { %2546 = vmatpush.msra.mxu1 %v11503_v45  ;;  %2597 = vmatpush.msra.mxu2 %v11527_v36  ;;  %v11533_v36 = vld [vmem:[#allocation108_spill] sm:$0xff] }
 0x209   : > { %2650 = vmatpush.msra.mxu3 %v11499_v57  ;;  %2294 = vmatmul.f32.vlgmr.msrb.gmra.mxu0 %v8788_v0 }
 0x20a   : > { %2491 = vmatpush.msra.mxu0 %v11528_v50  ;;  %2548 = vmatpush.msra.mxu1 %v11505_v42  ;;  %v11534_v50 = vld [vmem:[#allocation93_spill] sm:$0xff] }
 0x20b   : > { %2601 = vmatpush.msra.mxu2 %v11529_v25  ;;  %2652 = vmatpush.msra.mxu3 %v11501_v55  ;;  %v11535_v25 = vld [vmem:[#allocation111_spill] sm:$0xff] }
 0x20c   : > { %2494 = vmatpush.msra.mxu0 %v11530_v1  ;;  %2550 = vmatpush.msra.mxu1 %v11507_v63  ;;  %v11536_v1 = vld [vmem:[#allocation95_spill] sm:$0xff] }
 0x20d   : > { %2605 = vmatpush.msra.mxu2 %v11531_v16  ;;  %2654 = vmatpush.msra.mxu3 %v11503_v45  ;;  %v11537_v16 = vld [vmem:[#allocation118_spill] sm:$0xff] }
 0x20e   : > { %2497 = vmatpush.msra.mxu0 %v11532_v7  ;;  %2552 = vmatpush.msra.mxu1 %v11509_v40  ;;  %v11538_v7 = vld [vmem:[#allocation102_spill] sm:$0xff] }
 0x20f   : > { %2609 = vmatpush.msra.mxu2 %v11533_v36  ;;  %2656 = vmatpush.msra.mxu3 %v11505_v42  ;;  %v11539_v36 = vld [vmem:[#allocation124_spill] sm:$0xff] }
 0x210   : > { %2500 = vmatpush.msra.mxu0 %v11534_v50  ;;  %2554 = vmatpush.msra.mxu1 %v11511_v48  ;;  %v11540_v50 = vld [vmem:[#allocation106_spill] sm:$0xff] }
 0x211   : > { %2613 = vmatpush.msra.mxu2 %v11535_v25  ;;  %2658 = vmatpush.msra.mxu3 %v11507_v63  ;;  %v11541_v25 = vld [vmem:[#allocation127_spill] sm:$0xff] }
 0x212   : > { %2503 = vmatpush.msra.mxu0 %v11536_v1  ;;  %2556 = vmatpush.msra.mxu1 %v11513_v4  ;;  %v11542_v1 = vld [vmem:[#allocation113_spill] sm:$0xff] }
 0x213   : > { %2617 = vmatpush.msra.mxu2 %v11537_v16  ;;  %2660 = vmatpush.msra.mxu3 %v11509_v40  ;;  %v11543_v16 = vld [vmem:[#allocation130_spill] sm:$0xff] }
 0x214   : > { %2506 = vmatpush.msra.mxu0 %v11538_v7  ;;  %2558 = vmatpush.msra.mxu1 %v11514_v43  ;;  %v11545_v7 = vld [vmem:[#allocation154_spill] sm:$0xff] }
 0x215   : > { %2621 = vmatpush.msra.mxu2 %v11539_v36  ;;  %2662 = vmatpush.msra.mxu3 %v11511_v48  ;;  %v11544_v36 = vld [vmem:[#allocation117_spill] sm:$0xff] }
 0x216   : > { %2509 = vmatpush.msra.mxu0 %v11540_v50  ;;  %2560 = vmatpush.msra.mxu1 %v11515_v8  ;;  %v11546_v50 = vld [vmem:[#allocation131_spill] sm:$0xff] }
 0x217   : > { %2625 = vmatpush.msra.mxu2 %v11541_v25  ;;  %2664 = vmatpush.msra.mxu3 %v11513_v4  ;;  %v11547_v25 = vld [vmem:[#allocation158_spill] sm:$0xff] }
 0x218   : > { %2512 = vmatpush.msra.mxu0 %v11542_v1  ;;  %2562 = vmatpush.msra.mxu1 %v11516_v27  ;;  %v11548_v1 = vld [vmem:[#allocation138_spill] sm:$0xff] }
 0x219   : > { %2629 = vmatpush.msra.mxu2 %v11543_v16  ;;  %2666 = vmatpush.msra.mxu3 %v11514_v43  ;;  %v11550_v16 = vld [vmem:[#allocation162_spill] sm:$0xff] }
 0x21a   : > { %2566 = vmatmul.f32.vlgmr.msra.gmra.mxu1 %v8798_v19  ;;  %2515 = vmatpush.msra.mxu0 %v11544_v36  ;;  %v11551_v36 = vld [vmem:[#allocation140_spill] sm:$0xff] }
 0x21b   : > { %2722 = vmatpush.msrb.mxu1 %v11545_v7  ;;  %2633 = vmatpush.msra.mxu2 %v11546_v50  ;;  %v11552_v7 = vld [vmem:[#allocation136_spill] sm:$0xff]  ;;  %v11553_v50 = vld [vmem:[#allocation126_spill] sm:$0xff] }
 0x21c   : > { %2668 = vmatpush.msra.mxu3 %v11515_v8  ;;  %2635 = vmatmul.f32.vlgmr.msra.gmra.mxu2 %v8788_v0 }
 0x21d   : > { %2728 = vmatpush.msrb.mxu1 %v11547_v25  ;;  %2820 = vmatpush.msrb.mxu2 %v11548_v1  ;;  %v11556_v1 = vld [vmem:[#allocation128_spill] sm:$0xff]  ;;  %v11558_v25 = vld [vmem:[#allocation145_spill] sm:$0xff] }
 0x21e   : > { %2518 = vmatpush.msra.mxu0 %v11549_v33  ;;  %2670 = vmatpush.msra.mxu3 %v11516_v27  ;;  %v11557_v33 = vld [vmem:[#allocation169_spill] sm:$0xff] }
 0x21f   : > { %2672 = vmatmul.f32.vlgmr.msra.gmra.mxu3 %v8788_v0  ;;  %2734 = vmatpush.msrb.mxu1 %v11550_v16  ;;  %v11570_v16 = vld [vmem:[#allocation163_spill] sm:$0xff] }
 0x220   : > { %2823 = vmatpush.msrb.mxu2 %v11551_v36  ;;  %2873 = vmatpush.msrb.mxu3 %v11552_v7  ;;  %v11559_v36 = vld [vmem:[#allocation173_spill] sm:$0xff] }
 0x221   : > { %2521 = vmatpush.msra.mxu0 %v11553_v50  ;;  %2740 = vmatpush.msrb.mxu1 %v11554_v60  ;;  %v11560_v50 = vld [vmem:[#allocation149_spill] sm:$0xff] }
 0x222   : > { %2826 = vmatpush.msrb.mxu2 %v11555_v14  ;;  %2875 = vmatpush.msrb.mxu3 %v7929_v11  ;;  %v11561_v14 = vld [vmem:[#allocation177_spill] sm:$0xff] }
 0x223   : > { %2524 = vmatpush.msra.mxu0 %v11556_v1  ;;  %2746 = vmatpush.msrb.mxu1 %v11557_v33  ;;  %v11562_v1 = vld [vmem:[#allocation152_spill] sm:$0xff]  ;;  %v11564_v33 = vld [vmem:[#allocation153_spill] sm:$0xff] }
 0x224   : > { %2527 = vmatmul.f32.vlgmr.msra.gmra.mxu0 %v8793_v22  ;;  %2829 = vmatpush.msrb.mxu2 %v11558_v25  ;;  %v11563_v25 = vld [vmem:[#allocation181_spill] sm:$0xff] }
 0x225   : > { %2677 = vmatpush.msrb.mxu0 %v11552_v7  ;;  %2877 = vmatpush.msrb.mxu3 %v7941_v30  ;;  %v11567_v60 = vld [vmem:[#allocation157_spill] sm:$0xff] }
 0x226   : > { %2752 = vmatpush.msrb.mxu1 %v11559_v36  ;;  %2832 = vmatpush.msrb.mxu2 %v11560_v50  ;;  %v11565_v36 = vld [vmem:[#allocation146_spill] sm:$0xff] }
 0x227   : > { %2679 = vmatpush.msrb.mxu0 %v7929_v11  ;;  %2879 = vmatpush.msrb.mxu3 %v7953_v26  ;;  %v11566_v50 = vld [vmem:[#allocation186_spill] sm:$0xff] }
 0x228   : > { %2758 = vmatpush.msrb.mxu1 %v11561_v14  ;;  %2835 = vmatpush.msrb.mxu2 %v11562_v1  ;;  %v11568_v14 = vld [vmem:[#allocation147_spill] sm:$0xff]  ;;  %v11569_v1 = vld [vmem:[#allocation190_spill] sm:$0xff] }
 0x229   : > { %2681 = vmatpush.msrb.mxu0 %v7941_v30  ;;  %2881 = vmatpush.msrb.mxu3 %v7968_v47 }
 0x22a   : > { %2764 = vmatpush.msrb.mxu1 %v11563_v25  ;;  %2838 = vmatpush.msrb.mxu2 %v11564_v33  ;;  %v11571_v25 = vld [vmem:[#allocation150_spill] sm:$0xff] }
 0x22b   : > { %2683 = vmatpush.msrb.mxu0 %v7953_v26  ;;  %2883 = vmatpush.msrb.mxu3 %v11565_v36  ;;  %v11572_v33 = vld [vmem:[#allocation194_spill] sm:$0xff] }
 0x22c   : > { %2770 = vmatpush.msrb.mxu1 %v11566_v50  ;;  %2841 = vmatpush.msrb.mxu2 %v11567_v60  ;;  %v11574_v50 = vld [vmem:[#allocation156_spill] sm:$0xff]  ;;  %v11575_v60 = vld [vmem:[#allocation198_spill] sm:$0xff] }
 0x22d   : > { %2685 = vmatpush.msrb.mxu0 %v7968_v47  ;;  %2885 = vmatpush.msrb.mxu3 %v11568_v14 }
 0x22e   : > { %2776 = vmatpush.msrb.mxu1 %v11569_v1  ;;  %2844 = vmatpush.msrb.mxu2 %v11570_v16  ;;  %v11577_v1 = vld [vmem:[#allocation160_spill] sm:$0xff]  ;;  %v11578_v16 = vld [vmem:[#allocation202_spill] sm:$0xff] }
 0x22f   : > { %2687 = vmatpush.msrb.mxu0 %v11565_v36  ;;  %2887 = vmatpush.msrb.mxu3 %v11571_v25 }
 0x230   : > { %2782 = vmatpush.msrb.mxu1 %v11572_v33  ;;  %2847 = vmatpush.msrb.mxu2 %v11573_v59  ;;  %v11580_v59 = vld [vmem:[#allocation206_spill] sm:$0xff]  ;;  %v11581_v33 = vld [vmem:[#allocation179_spill] sm:$0xff] }
 0x231   : > { %2689 = vmatpush.msrb.mxu0 %v11568_v14  ;;  %2889 = vmatpush.msrb.mxu3 %v11574_v50 }
 0x232   : > { %2788 = vmatpush.msrb.mxu1 %v11575_v60  ;;  %2850 = vmatpush.msrb.mxu2 %v11576_v51  ;;  %v11582_v51 = vld [vmem:[#allocation209_spill] sm:$0xff]  ;;  %v11583_v60 = vld [vmem:[#allocation183_spill] sm:$0xff] }
 0x233   : > { %2691 = vmatpush.msrb.mxu0 %v11571_v25  ;;  %2891 = vmatpush.msrb.mxu3 %v11577_v1 }
 0x234   : > { %2794 = vmatpush.msrb.mxu1 %v11578_v16  ;;  %2853 = vmatpush.msrb.mxu2 %v11579_v54  ;;  %v11584_v54 = vld [vmem:[#allocation213_spill] sm:$0xff]  ;;  %v11585_v16 = vld [vmem:[#allocation188_spill] sm:$0xff] }
 0x235   : > { %2693 = vmatpush.msrb.mxu0 %v11574_v50  ;;  %2893 = vmatpush.msrb.mxu3 %v8074_v52 }
 0x236   : > { %2800 = vmatpush.msrb.mxu1 %v11580_v59  ;;  %2856 = vmatpush.msrb.mxu2 %v11581_v33  ;;  %v11586_v33 = vld [vmem:[#allocation192_spill] sm:$0xff] }
 0x237   : > { %2695 = vmatpush.msrb.mxu0 %v11577_v1  ;;  %2895 = vmatpush.msrb.mxu3 %v8093_v44 }
 0x238   : > { %2806 = vmatpush.msrb.mxu1 %v11582_v51  ;;  %2859 = vmatpush.msrb.mxu2 %v11583_v60 }
 0x239   : > { %2697 = vmatpush.msrb.mxu0 %v8074_v52  ;;  %2897 = vmatpush.msrb.mxu3 %v8112_v23 }
 0x23a   : > { %2812 = vmatpush.msrb.mxu1 %v11584_v54  ;;  %2862 = vmatpush.msrb.mxu2 %v11585_v16  ;;  %v11589_v16 = vld [vmem:[#allocation142_spill] sm:$0xff]  ;;  %v11592_v54 = vld [vmem:[#allocation229_spill] sm:$0xff] }
 0x23b   : > { %2699 = vmatpush.msrb.mxu0 %v8093_v44  ;;  %2899 = vmatpush.msrb.mxu3 %v8131_v56 }
 0x23c   : > { %2814 = vmatmul.f32.vlgmr.msrb.gmra.mxu1 %v8788_v0  ;;  %2865 = vmatpush.msrb.mxu2 %v11586_v33  ;;  %v11587_v33 = vld [vmem:[#allocation217_spill] sm:$0xff] }
 0x23d   : > { %2981 = vmatpush.msra.mxu1 %v11552_v7  ;;  %2701 = vmatpush.msrb.mxu0 %v8112_v23 }
 0x23e   : > { %2901 = vmatpush.msrb.mxu3 %v8150_v28  ;;  %2868 = vmatmul.f32.vlgmr.msrb.gmra.mxu2 %v8793_v22  ;;  %v11588_v22 = vld [vmem:[#allocation221_spill] sm:$0xff] }
 0x23f   : > { %2983 = vmatpush.msra.mxu1 %v7929_v11  ;;  %2703 = vmatpush.msrb.mxu0 %v8131_v56 }
 0x240   : > { %2903 = vmatpush.msrb.mxu3 %v8169_v32  ;;  %3037 = vmatpush.msra.mxu2 %v8176_v37 }
 0x241   : > { %2907 = vmatmul.f32.vlgmr.msrb.gmra.mxu3 %v8798_v19  ;;  %2985 = vmatpush.msra.mxu1 %v7941_v30  ;;  %v11590_v19 = vld [vmem:[#allocation226_spill] sm:$0xff] }
 0x242   : > { %2705 = vmatpush.msrb.mxu0 %v8150_v28  ;;  %3082 = vmatpush.msra.mxu3 %v11587_v33  ;;  %v11591_v33 = vld [vmem:[#allocation144_spill] sm:$0xff] }
 0x243   : > { %2987 = vmatpush.msra.mxu1 %v7953_v26  ;;  %3039 = vmatpush.msra.mxu2 %v8192_v6 }
 0x244   : > { %2707 = vmatpush.msrb.mxu0 %v8169_v32  ;;  %3088 = vmatpush.msra.mxu3 %v11588_v22  ;;  %v11593_v22 = vld [vmem:[#allocation148_spill] sm:$0xff] }
 0x245   : > { %2713 = vmatmul.f32.vlgmr.msrb.gmra.mxu0 %v8808_v46  ;;  %2989 = vmatpush.msra.mxu1 %v7968_v47  ;;  %v11594_v46 = vld [vmem:[#allocation233_spill] sm:$0xff] }
 0x246   : > { %2914 = vmatpush.msra.mxu0 %v11589_v16  ;;  %3094 = vmatpush.msra.mxu3 %v11590_v19  ;;  %v11595_v19 = vld [vmem:[#allocation151_spill] sm:$0xff] }
 0x247   : > { %2991 = vmatpush.msra.mxu1 %v11565_v36  ;;  %3041 = vmatpush.msra.mxu2 %v8226_v21  ;;  %v11596_v16 = vld [vmem:[#allocation235_spill] sm:$0xff] }
 0x248   : > { %2918 = vmatpush.msra.mxu0 %v11591_v33  ;;  %3100 = vmatpush.msra.mxu3 %v11592_v54  ;;  %v11597_v54 = vld [vmem:[#allocation155_spill] sm:$0xff]  ;;  %v11598_v33 = vld [vmem:[#allocation238_spill] sm:$0xff] }
 0x249   : > { %2993 = vmatpush.msra.mxu1 %v11568_v14  ;;  %3043 = vmatpush.msra.mxu2 %v8245_v53 }
 0x24a   : > { %2922 = vmatpush.msra.mxu0 %v11593_v22  ;;  %3106 = vmatpush.msra.mxu3 %v11594_v46  ;;  %v11599_v46 = vld [vmem:[#allocation159_spill] sm:$0xff] }
 0x24b   : > { %2995 = vmatpush.msra.mxu1 %v11571_v25  ;;  %3045 = vmatpush.msra.mxu2 %v8264_v62  ;;  %v11600_v22 = vld [vmem:[#allocation239_spill] sm:$0xff] }
 0x24c   : > { %2926 = vmatpush.msra.mxu0 %v11595_v19  ;;  %3112 = vmatpush.msra.mxu3 %v11596_v16  ;;  %v11601_v16 = vld [vmem:[#allocation161_spill] sm:$0xff] }
 0x24d   : > { %2997 = vmatpush.msra.mxu1 %v11574_v50  ;;  %3047 = vmatpush.msra.mxu2 %v8283_v17  ;;  %v11602_v19 = vld [vmem:[#allocation241_spill] sm:$0xff] }
 0x24e   : > { %2930 = vmatpush.msra.mxu0 %v11597_v54  ;;  %3118 = vmatpush.msra.mxu3 %v11598_v33  ;;  %v11603_v33 = vld [vmem:[#allocation165_spill] sm:$0xff]  ;;  %v11604_v54 = vld [vmem:[#allocation244_spill] sm:$0xff] }
 0x24f   : > { %2999 = vmatpush.msra.mxu1 %v11577_v1  ;;  %3049 = vmatpush.msra.mxu2 %v8302_v2 }
 0x250   : > { %2934 = vmatpush.msra.mxu0 %v11599_v46  ;;  %3124 = vmatpush.msra.mxu3 %v11600_v22  ;;  %v11605_v22 = vld [vmem:[#allocation170_spill] sm:$0xff]  ;;  %v11606_v46 = vld [vmem:[#allocation248_spill] sm:$0xff] }
 0x251   : > { %3001 = vmatpush.msra.mxu1 %v8074_v52  ;;  %3051 = vmatpush.msra.mxu2 %v8321_v31 }
 0x252   : > { %2938 = vmatpush.msra.mxu0 %v11601_v16  ;;  %3130 = vmatpush.msra.mxu3 %v11602_v19  ;;  %v11607_v19 = vld [vmem:[#allocation174_spill] sm:$0xff]  ;;  %v11645_v16 = vld [vmem:[#allocation29_spill] sm:$0xff] }
 0x253   : > { %3003 = vmatpush.msra.mxu1 %v8093_v44  ;;  %3053 = vmatpush.msra.mxu2 %v8340_v13 }
 0x254   : > { %2942 = vmatpush.msra.mxu0 %v11603_v33  ;;  %3136 = vmatpush.msra.mxu3 %v11604_v54  ;;  %v11608_v54 = vld [vmem:[#allocation178_spill] sm:$0xff]  ;;  %v11642_v33 = vld [vmem:[#allocation28_spill] sm:$0xff] }
 0x255   : > { %3005 = vmatpush.msra.mxu1 %v8112_v23  ;;  %3055 = vmatpush.msra.mxu2 %v8359_v61 }
 0x256   : > { %2946 = vmatpush.msra.mxu0 %v11605_v22  ;;  %3142 = vmatpush.msra.mxu3 %v11606_v46  ;;  %v11609_v46 = vld [vmem:[#allocation182_spill] sm:$0xff] }
 0x257   : > { %3007 = vmatpush.msra.mxu1 %v8131_v56  ;;  %3057 = vmatpush.msra.mxu2 %v8363_v29  ;;  %v11614_v22 = vld [vmem:[#allocation262_spill] sm:$0xff]  ;;  %v11684_v56 = vld [vmem:[#allocation56_spill] sm:$0xff] }
 0x258   : > { %2950 = vmatpush.msra.mxu0 %v11607_v19  ;;  %3148 = vmatpush.msra.mxu3 %v8499_v24  ;;  %v11610_v24 = vld [vmem:[#allocation247_spill] sm:$0xff]  ;;  %v11611_v19 = vld [vmem:[#allocation261_spill] sm:$0xff] }
 0x259   : > { %3009 = vmatpush.msra.mxu1 %v8150_v28  ;;  %3059 = vmatpush.msra.mxu2 %v8438_v58 }
 0x25a   : > { %2954 = vmatpush.msra.mxu0 %v11608_v54  ;;  %3154 = vmatpush.msra.mxu3 %v8515_v5  ;;  %v11612_v5 = vld [vmem:[#allocation191_spill] sm:$0xff] }
 0x25b   : > { %3011 = vmatpush.msra.mxu1 %v8169_v32  ;;  %3061 = vmatpush.msra.mxu2 %v8454_v9  ;;  %v11613_v54 = vld [vmem:[#allocation251_spill] sm:$0xff] }
 0x25c   : > { %2958 = vmatpush.msra.mxu0 %v11609_v46  ;;  %3013 = vmatmul.f32.vlgmr.msra.gmra.mxu1 %v8788_v0  ;;  %v11615_v46 = vld [vmem:[#allocation195_spill] sm:$0xff] }
 0x25d   : > { %3160 = vmatpush.msra.mxu3 %v8529_v34  ;;  %3233 = vmatpush.msrb.mxu1 %v8176_v37  ;;  %v11617_v34 = vld [vmem:[#allocation199_spill] sm:$0xff] }
 0x25e   : > { %2962 = vmatpush.msra.mxu0 %v8185_v41  ;;  %3063 = vmatpush.msra.mxu2 %v11610_v24  ;;  %v11616_v41 = vld [vmem:[#allocation255_spill] sm:$0xff] }
 0x25f   : > { %3166 = vmatpush.msra.mxu3 %v11611_v19  ;;  %3235 = vmatpush.msrb.mxu1 %v8192_v6  ;;  %v11622_v19 = vld [vmem:[#allocation203_spill] sm:$0xff] }
 0x260   : > { %2966 = vmatpush.msra.mxu0 %v11612_v5  ;;  %3065 = vmatpush.msra.mxu2 %v11613_v54  ;;  %v11618_v5 = vld [vmem:[#allocation193_spill] sm:$0xff] }
 0x261   : > { %3172 = vmatpush.msra.mxu3 %v11614_v22  ;;  %3237 = vmatpush.msrb.mxu1 %v8226_v21  ;;  %v11620_v22 = vld [vmem:[#allocation197_spill] sm:$0xff] }
 0x262   : > { %2970 = vmatpush.msra.mxu0 %v11615_v46  ;;  %3067 = vmatpush.msra.mxu2 %v11616_v41  ;;  %v11619_v46 = vld [vmem:[#allocation201_spill] sm:$0xff] }
 0x263   : > { %3341 = vmatpush.msrb.mxu3 %v8176_v37  ;;  %3239 = vmatpush.msrb.mxu1 %v8245_v53  ;;  %v11681_v37 = vld [vmem:[#allocation43_spill] sm:$0xff] }
 0x264   : > { %2974 = vmatpush.msra.mxu0 %v11617_v34  ;;  %3274 = vmatpush.msrb.mxu2 %v11619_v46  ;;  %v11621_v34 = vld [vmem:[#allocation205_spill] sm:$0xff]  ;;  %v11626_v46 = vld [vmem:[#allocation211_spill] sm:$0xff] }
 0x265   : > { %3343 = vmatpush.msrb.mxu3 %v8192_v6  ;;  %2976 = vmatmul.f32.vlgmr.msra.gmra.mxu0 %v8788_v0  ;;  %v11623_v0 = vld [vmem:[#allocation210_spill] sm:$0xff] }
 0x266   : > { %3241 = vmatpush.msrb.mxu1 %v8264_v62  ;;  %3180 = vmatpush.msrb.mxu0 %v11618_v5  ;;  %v11624_v5 = vld [vmem:[#allocation207_spill] sm:$0xff]  ;;  %v11678_v6 = vld [vmem:[#allocation90_spill] sm:$0xff] }
 0x267   : > { %3345 = vmatpush.msrb.mxu3 %v8226_v21  ;;  %3278 = vmatpush.msrb.mxu2 %v11621_v34  ;;  %v11628_v34 = vld [vmem:[#allocation215_spill] sm:$0xff]  ;;  %v11675_v21 = vld [vmem:[#allocation85_spill] sm:$0xff] }
 0x268   : > { %3243 = vmatpush.msrb.mxu1 %v8283_v17  ;;  %3183 = vmatpush.msrb.mxu0 %v11620_v22  ;;  %v11625_v22 = vld [vmem:[#allocation214_spill] sm:$0xff] }
 0x269   : > { %3347 = vmatpush.msrb.mxu3 %v8245_v53  ;;  %3282 = vmatpush.msrb.mxu2 %v11623_v0  ;;  %v11630_v0 = vld [vmem:[#allocation219_spill] sm:$0xff] }
 0x26a   : > { %3245 = vmatpush.msrb.mxu1 %v8302_v2  ;;  %3186 = vmatpush.msrb.mxu0 %v11622_v19  ;;  %v11627_v19 = vld [vmem:[#allocation218_spill] sm:$0xff] }
 0x26b   : > { %3349 = vmatpush.msrb.mxu3 %v8264_v62  ;;  %3286 = vmatpush.msrb.mxu2 %v11625_v22  ;;  %v11632_v22 = vld [vmem:[#allocation223_spill] sm:$0xff]  ;;  %v11673_v62 = vld [vmem:[#allocation112_spill] sm:$0xff] }
 0x26c   : > { %3247 = vmatpush.msrb.mxu1 %v8321_v31  ;;  %3189 = vmatpush.msrb.mxu0 %v11624_v5  ;;  %v11629_v5 = vld [vmem:[#allocation222_spill] sm:$0xff]  ;;  %v1638_v53 = vmax.f32 %v11673_v62, 0.0  ;;  %v11680_v62 = vld [vmem:[#allocation96_spill] sm:$0xff] }
 0x26d   : > { %3351 = vmatpush.msrb.mxu3 %v8283_v17  ;;  %3290 = vmatpush.msrb.mxu2 %v11627_v19  ;;  %v11634_v19 = vld [vmem:[#allocation228_spill] sm:$0xff] }
 0x26e   : > { %3249 = vmatpush.msrb.mxu1 %v8340_v13  ;;  %3192 = vmatpush.msrb.mxu0 %v11626_v46  ;;  %v11631_v46 = vld [vmem:[#allocation227_spill] sm:$0xff] }
 0x26f   : > { %3353 = vmatpush.msrb.mxu3 %v8302_v2  ;;  %3294 = vmatpush.msrb.mxu2 %v11629_v5  ;;  %v11636_v5 = vld [vmem:[#allocation231_spill] sm:$0xff]  ;;  %v11661_v2 = vld [vmem:[#allocation57_spill] sm:$0xff] }
 0x270   : > { %3251 = vmatpush.msrb.mxu1 %v8359_v61  ;;  %3195 = vmatpush.msrb.mxu0 %v11628_v34  ;;  %v11633_v34 = vld [vmem:[#allocation230_spill] sm:$0xff] }
 0x271   : > { %3355 = vmatpush.msrb.mxu3 %v8321_v31  ;;  %3298 = vmatpush.msrb.mxu2 %v11631_v46  ;;  %v7051_v46 = vld [vmem:[%s7238_s29 + $0x20] sm:$0xff]  ;;  %v11650_v31 = vld [vmem:[#allocation257_spill] sm:$0xff] }
 0x272   : > { %3253 = vmatpush.msrb.mxu1 %v8363_v29  ;;  %3198 = vmatpush.msrb.mxu0 %v11630_v0  ;;  %v11635_v0 = vld [vmem:[#allocation234_spill] sm:$0xff] }
 0x273   : > { %3357 = vmatpush.msrb.mxu3 %v8340_v13  ;;  %3302 = vmatpush.msrb.mxu2 %v11633_v34  ;;  %v11643_v13 = vld [vmem:[#allocation246_spill] sm:$0xff] }
 0x274   : > { %3255 = vmatpush.msrb.mxu1 %v8438_v58  ;;  %3201 = vmatpush.msrb.mxu0 %v11632_v22  ;;  %v11637_v22 = vld [vmem:[#allocation236_spill] sm:$0xff] }
 0x275   : > { %3359 = vmatpush.msrb.mxu3 %v8359_v61  ;;  %3306 = vmatpush.msrb.mxu2 %v11635_v0  ;;  %v11638_v61 = vld [vmem:[#allocation232_spill] sm:$0xff]  ;;  %v11640_v0 = vld [vmem:[#allocation242_spill] sm:$0xff] }
 0x276   : > { %3257 = vmatpush.msrb.mxu1 %v8454_v9  ;;  %3204 = vmatpush.msrb.mxu0 %v11634_v19  ;;  %v11639_v19 = vld [vmem:[#allocation237_spill] sm:$0xff] }
 0x277   : > { %3361 = vmatpush.msrb.mxu3 %v8363_v29  ;;  %3310 = vmatpush.msrb.mxu2 %v11637_v22  ;;  %v2133_v22 = vpop.f32.mrf.mxu1 }
 0x278   : > { %3259 = vmatpush.msrb.mxu1 %v11610_v24  ;;  %3207 = vmatpush.msrb.mxu0 %v11636_v5 }
 0x279   : > { %3363 = vmatpush.msrb.mxu3 %v8438_v58  ;;  %3314 = vmatpush.msrb.mxu2 %v11639_v19  ;;  %v11641_v58 = vld [vmem:[#allocation245_spill] sm:$0xff] }
 0x27a   : > { %3261 = vmatpush.msrb.mxu1 %v11613_v54  ;;  %3210 = vmatpush.msrb.mxu0 %v11638_v61  ;;  %v11644_v19 = vld [vmem:[#allocation249_spill] sm:$0xff] }
 0x27b   : > { %3365 = vmatpush.msrb.mxu3 %v8454_v9  ;;  %3318 = vmatpush.msrb.mxu2 %v11641_v58  ;;  %v11648_v58 = vld [vmem:[#allocation32_spill] sm:$0xff] }
 0x27c   : > { %3263 = vmatpush.msrb.mxu1 %v11616_v41  ;;  %v2032_v34 = vpop.f32.mrf.mxu0  ;;  %v2187_v29 = vpop.f32.mrf.mxu2  ;;  %3213 = vmatpush.msrb.mxu0 %v11640_v0  ;;  %v11646_v0 = vld [vmem:[#allocation250_spill] sm:$0xff] }
 0x27d   : > { %3367 = vmatpush.msrb.mxu3 %v11610_v24  ;;  %v2033_v5 = vadd.f32 %v7051_v46, %v2032_v34  ;;  %3322 = vmatpush.msrb.mxu2 %v11644_v19  ;;  %v11647_v46 = vld [vmem:[#allocation253_spill] sm:$0xff]  ;;  %v11653_v19 = vld [vmem:[#allocation260_spill] sm:$0xff] }
 0x27e   : > { %3437 = vmatpush.msra.mxu1 %v11642_v33  ;;  %v2226_v61 = vpop.f32.mrf.mxu3  ;;  %3216 = vmatpush.msrb.mxu0 %v11643_v13  ;;  %v11649_v33 = vld [vmem:[#allocation254_spill] sm:$0xff]  ;;  %v7052_v13 = vld [vmem:[%s7238_s29 + $0x28] sm:$0xff] }
 0x27f   : > { %3369 = vmatpush.msrb.mxu3 %v11613_v54  ;;  %v2134_v9 = vadd.f32 %v2133_v22, %v2033_v5  ;;  %3326 = vmatpush.msrb.mxu2 %v11647_v46  ;;  %v11651_v5 = vld [vmem:[#allocation37_spill] sm:$0xff]  ;;  %v11652_v22 = vld [vmem:[#allocation258_spill] sm:$0xff]  ;;  %v11655_v46 = vld [vmem:[#allocation40_spill] sm:$0xff] }
 0x280   : > { %3443 = vmatpush.msra.mxu1 %v11645_v16  ;;  %3219 = vmatpush.msrb.mxu0 %v11646_v0  ;;  %v11654_v0 = vld [vmem:[#allocation6_spill] sm:$0xff]  ;;  %v11658_v54 = vld [vmem:[#allocation8_spill] sm:$0xff] }
 0x281   : > { %3371 = vmatpush.msrb.mxu3 %v11616_v41  ;;  %v2188_v34 = vadd.f32 %v2187_v29, %v2134_v9  ;;  %3330 = vmatpush.msrb.mxu2 %v11650_v31  ;;  %v11656_v41 = vld [vmem:[#allocation7_spill] sm:$0xff] }
 0x282   : > { %3449 = vmatpush.msra.mxu1 %v11648_v58  ;;  %3222 = vmatpush.msrb.mxu0 %v11649_v33  ;;  %v11657_v33 = vld [vmem:[#allocation46_spill] sm:$0xff] }
 0x283   : > { %v2227_v24 = vadd.f32 %v2226_v61, %v2188_v34  ;;  %3334 = vmatpush.msrb.mxu2 %v11653_v19  ;;  %v2332_v61 = vpop.f32.mrf.mxu1  ;;  %v11660_v19 = vld [vmem:[#allocation9_spill] sm:$0xff] }
 0x284   : > { %3455 = vmatpush.msra.mxu1 %v11651_v5  ;;  %3225 = vmatpush.msrb.mxu0 %v11652_v22  ;;  %v11659_v22 = vld [vmem:[#allocation48_spill] sm:$0xff] }
 0x285   : > { %v2373_v16 = vpop.f32.mrf.mxu2 }
 0x286   : > { %3392 = vmatpush.msra.mxu0 %v11654_v0  ;;  %v2295_v9 = vpop.f32.mrf.mxu0  ;;  %v2374_v29 = vadd.f32 %v7052_v13, %v2373_v16  ;;  %3461 = vmatpush.msra.mxu1 %v11655_v46  ;;  %v11662_v13 = vld [vmem:[#allocation10_spill] sm:$0xff]  ;;  %v11664_v16 = vld [vmem:[#allocation11_spill] sm:$0xff]  ;;  %v11670_v46 = vld [vmem:[#allocation76_spill] sm:$0xff] }
 0x287   : > { %v2296_v58 = vadd.f32 %v2295_v9, %v2227_v24  ;;  %v11663_v24 = vld [vmem:[#allocation62_spill] sm:$0xff]  ;;  %v11665_v9 = vld [vmem:[#allocation67_spill] sm:$0xff] }
 0x288   : > { %3394 = vmatpush.msra.mxu0 %v11656_v41  ;;  %v2474_v34 = vpop.f32.mrf.mxu3  ;;  %3467 = vmatpush.msra.mxu1 %v11657_v33 }
 0x289   : > { %v2333_v31 = vadd.f32 %v2332_v61, %v2296_v58  ;;  %v2475_v5 = vadd.f32 %v2474_v34, %v2374_v29  ;;  %v11666_v58 = vld [vmem:[#allocation15_spill] sm:$0xff]  ;;  %v11668_v34 = vld [vmem:[#allocation73_spill] sm:$0xff] }
 0x28a   : > { %3396 = vmatpush.msra.mxu0 %v11658_v54  ;;  %3473 = vmatpush.msra.mxu1 %v11659_v22  ;;  %v11667_v29 = vld [vmem:[#allocation119_spill] sm:$0xff] }
 0x28b   : > { %7093 = vtanh.f32 %v2333_v31  ;;  %v11669_v31 = vld [vmem:[#allocation22_spill] sm:$0xff] }
 0x28c   : > { %3398 = vmatpush.msra.mxu0 %v11660_v19  ;;  %3479 = vmatpush.msra.mxu1 %v11661_v2  ;;  %v11671_v2 = vld [vmem:[#allocation27_spill] sm:$0xff] }
 0x28e   : > { %3400 = vmatpush.msra.mxu0 %v11662_v13  ;;  %3485 = vmatpush.msra.mxu1 %v11663_v24  ;;  %v11672_v24 = vld [vmem:[#allocation81_spill] sm:$0xff] }
 0x290   : > { %3402 = vmatpush.msra.mxu0 %v11664_v16  ;;  %3491 = vmatpush.msra.mxu1 %v11665_v9  ;;  %v11674_v9 = vld [vmem:[#allocation34_spill] sm:$0xff] }
 0x291   : > { %v7094_v33 = vpop.eup %7093 }
 0x292   : > { %3404 = vmatpush.msra.mxu0 %v11666_v58  ;;  %v3026_v61 = vadd.f32 %v7094_v33, %v11667_v29  ;;  %3497 = vmatpush.msra.mxu1 %v11668_v34  ;;  %v11676_v34 = vld [vmem:[#allocation35_spill] sm:$0xff] }
 0x294   : > { %3406 = vmatpush.msra.mxu0 %v11669_v31  ;;  %v3027_v22 = vmax.f32 %v3026_v61, 0.0  ;;  %3503 = vmatpush.msra.mxu1 %v11670_v46 }
 0x296   : > { %3408 = vmatpush.msra.mxu0 %v11671_v2  ;;  %v7055_v17 = vadd.f32 -1.0, %v3027_v22  ;;  %3509 = vmatpush.msra.mxu1 %v11672_v24  ;;  %v11679_v22 = vld [vmem:[#allocation36_spill] sm:$0xff] }
 0x297   : > { %v2567_v28 = vpop.f32.mrf.mxu1 }
 0x298   : > { %3410 = vmatpush.msra.mxu0 %v11674_v9  ;;  %vm3029_vm1 = vcmp.le.f32.partialorder %v7055_v17, 0.0  ;;  %3515 = vmatpush.msra.mxu1 %v11675_v21 }
 0x299   : > { %v3031_v33 = vsel %vm3029_vm1, %v1638_v53, 0.0  ;;  %v9103_v29 = vsel %vm3029_vm1, 0.0, %v1638_v53  ;;  %v9106_v61 = vsel %vm3029_vm1, 0.0, %v7055_v17  ;;  %v11682_v53 = vld [vmem:[#allocation45_spill] sm:$0xff] }
 0x29a   : > { %3412 = vmatpush.msra.mxu0 %v11676_v34  ;;  %11677 = vst [vmem:[#allocation50_spill] sm:$0xff] %v9106_v61  ;;  %v3035_v46 = vmul.f32 %v8783_v3, %v3031_v33  ;;  %3521 = vmatpush.msra.mxu1 %v11678_v6  ;;  %v11683_v33 = vld [vmem:[#allocation49_spill] sm:$0xff] }
 0x29c   : > { %3414 = vmatpush.msra.mxu0 %v11679_v22  ;;  %v3068_v24 = vand.u32 4294901760, %v3035_v46  ;;  %3527 = vmatpush.msra.mxu1 %v11680_v62 }
 0x29e   : > { %3416 = vmatpush.msra.mxu0 %v11681_v37  ;;  %3174 = vmatmul.f32.vlgmr.msra.gmra.mxu3 %v3068_v24  ;;  %v3069_v21 = vsub.f32 %v3035_v46, %v3068_v24 }
 0x29f   : > { %3588 = vmatpush.msra.mxu3 %v11654_v0  ;;  %v2636_v23 = vpop.f32.mrf.mxu2 }
 0x2a0   : > { %3418 = vmatpush.msra.mxu0 %v11682_v53  ;;  %v3070_v17 = vand.u32 4294901760, %v3069_v21 }
 0x2a1   : > { %3228 = vmatmul.f32.vlgmr.msrb.gmra.mxu0 %v3069_v21  ;;  %v2528_v61 = vpop.f32.mrf.mxu0  ;;  %3590 = vmatpush.msra.mxu3 %v11656_v41 }
 0x2a2   : > { %3420 = vmatpush.msra.mxu0 %v11683_v33  ;;  %v2529_v6 = vadd.f32 %v2528_v61, %v2475_v5  ;;  %3267 = vmatmul.f32.vlgmr.msrb.gmra.mxu1 %v3070_v17  ;;  %v3071_v32 = vsub.f32 %v3069_v21, %v3070_v17  ;;  %v2673_v5 = vpop.f32.mrf.mxu3  ;;  %v11685_v61 = vld [vmem:[#allocation12_spill] sm:$0xff] }
 0x2a3   : > { %3592 = vmatpush.msra.mxu3 %v11658_v54  ;;  %3696 = vmatpush.msrb.mxu1 %v11654_v0  ;;  %v11691_v17 = vld [vmem:[#allocation16_spill] sm:$0xff] }
 0x2a4   : > { %v2568_v46 = vadd.f32 %v2567_v28, %v2529_v6  ;;  %v3072_v62 = vand.u32 4294901760, %v3071_v32  ;;  %3422 = vmatpush.msra.mxu0 %v11684_v56  ;;  %v11686_v6 = vld [vmem:[#allocation19_spill] sm:$0xff]  ;;  %v11687_v32 = vld [vmem:[#allocation13_spill] sm:$0xff] }
 0x2a5   : > { %3594 = vmatpush.msra.mxu3 %v11660_v19  ;;  %3698 = vmatpush.msrb.mxu1 %v11656_v41 }
 0x2a6   : > { %v2637_v60 = vadd.f32 %v2636_v23, %v2568_v46  ;;  %3073 = vmatmul.f32.vlgmr.msra.gmra.mxu2 %v3072_v62  ;;  %3373 = vmatmul.f32.vlgmr.msrb.gmra.mxu3 %v3068_v24  ;;  %v11688_v23 = vld [vmem:[#allocation20_spill] sm:$0xff]  ;;  %v11689_v62 = vld [vmem:[#allocation14_spill] sm:$0xff]  ;;  %v11692_v46 = vld [vmem:[#allocation17_spill] sm:$0xff] }
 0x2a7   : > { %3535 = vmatpush.msra.mxu2 %v11685_v61  ;;  %3596 = vmatpush.msra.mxu3 %v11662_v13 }
 0x2a8   : > { %v2674_v21 = vadd.f32 %v2673_v5, %v2637_v60  ;;  %3700 = vmatpush.msrb.mxu1 %v11658_v54  ;;  %3629 = vmatpush.msrb.mxu0 %v11686_v6  ;;  %v11690_v60 = vld [vmem:[#allocation21_spill] sm:$0xff]  ;;  %v11693_v5 = vld [vmem:[#allocation23_spill] sm:$0xff] }
 0x2a9   : > { %3538 = vmatpush.msra.mxu2 %v11687_v32  ;;  %3598 = vmatpush.msra.mxu3 %v11664_v16 }
 0x2aa   : > { %v3018_v28 = vmul.f32 0.5, %v2674_v21  ;;  %3702 = vmatpush.msrb.mxu1 %v11660_v19  ;;  %3633 = vmatpush.msrb.mxu0 %v11688_v23  ;;  %v11694_v21 = vld [vmem:[#allocation18_spill] sm:$0xff]  ;;  %v11717_v23 = vld [vmem:[#allocation100_spill] sm:$0xff] }
 0x2ab   : > { %3541 = vmatpush.msra.mxu2 %v11689_v62  ;;  %3600 = vmatpush.msra.mxu3 %v11666_v58 }
 0x2ac   : > { %7095 = vtanh.f32 %v3018_v28  ;;  %3704 = vmatpush.msrb.mxu1 %v11662_v13  ;;  %3637 = vmatpush.msrb.mxu0 %v11690_v60  ;;  %v11696_v60 = vld [vmem:[#allocation25_spill] sm:$0xff] }
 0x2ad   : > { %3544 = vmatpush.msra.mxu2 %v11691_v17  ;;  %3602 = vmatpush.msra.mxu3 %v11669_v31  ;;  %v11695_v17 = vld [vmem:[#allocation24_spill] sm:$0xff] }
 0x2ae   : > { %3336 = vmatmul.f32.vlgmr.msrb.gmra.mxu2 %v3068_v24  ;;  %3706 = vmatpush.msrb.mxu1 %v11664_v16 }
 0x2af   : > { %3547 = vmatpush.msra.mxu2 %v11692_v46  ;;  %3604 = vmatpush.msra.mxu3 %v11671_v2  ;;  %v11697_v46 = vld [vmem:[#allocation26_spill] sm:$0xff] }
 0x2b0   : > { %3708 = vmatpush.msrb.mxu1 %v11666_v58  ;;  %3641 = vmatpush.msrb.mxu0 %v11693_v5  ;;  %v11698_v5 = vld [vmem:[#allocation30_spill] sm:$0xff] }
 0x2b1   : > { %3550 = vmatpush.msra.mxu2 %v11694_v21  ;;  %3606 = vmatpush.msra.mxu3 %v11674_v9  ;;  %v11699_v21 = vld [vmem:[#allocation31_spill] sm:$0xff] }
 0x2b2   : > { %v7096_v28 = vpop.eup %7095  ;;  %3710 = vmatpush.msrb.mxu1 %v11669_v31  ;;  %3645 = vmatpush.msrb.mxu0 %v11695_v17 }
 0x2b3   : > { %v3020_v24 = vadd.f32 1.0, %v7096_v28  ;;  %3553 = vmatpush.msra.mxu2 %v11696_v60  ;;  %3608 = vmatpush.msra.mxu3 %v11676_v34  ;;  %v11701_v28 = vld [vmem:[#allocation33_spill] sm:$0xff]  ;;  %v11702_v60 = vld [vmem:[#allocation38_spill] sm:$0xff] }
 0x2b4   : > { %3712 = vmatpush.msrb.mxu1 %v11671_v2  ;;  %3649 = vmatpush.msrb.mxu0 %v11697_v46  ;;  %v11713_v46 = vld [vmem:[#allocation54_spill] sm:$0xff] }
 0x2b5   : > { %v3021_v62 = vmul.f32 0.5, %v3020_v24  ;;  %3556 = vmatpush.msra.mxu2 %v11698_v5  ;;  %3610 = vmatpush.msra.mxu3 %v11679_v22  ;;  %v11703_v24 = vld [vmem:[#allocation39_spill] sm:$0xff]  ;;  %v11704_v5 = vld [vmem:[#allocation41_spill] sm:$0xff] }
 0x2b6   : > { %3714 = vmatpush.msrb.mxu1 %v11674_v9  ;;  %3653 = vmatpush.msrb.mxu0 %v11699_v21  ;;  %v11705_v21 = vld [vmem:[#allocation42_spill] sm:$0xff] }
 0x2b7   : > { %v9154_v17 = vadd.f32 %v9103_v29, %v3021_v62  ;;  %3559 = vmatpush.msra.mxu2 %v11701_v28  ;;  %3612 = vmatpush.msra.mxu3 %v11681_v37  ;;  %v11706_v29 = vld [vmem:[#allocation47_spill] sm:$0xff]  ;;  %v11707_v62 = vld [vmem:[#allocation44_spill] sm:$0xff] }
 0x2b8   : > { %3716 = vmatpush.msrb.mxu1 %v11676_v34  ;;  %3657 = vmatpush.msrb.mxu0 %v11702_v60  ;;  %v11708_v60 = vld [vmem:[#allocation88_spill] sm:$0xff]  ;;  %v11710_v28 = vld [vmem:[#allocation51_spill] sm:$0xff] }
 0x2b9   : > { %11700 = vst [vmem:[#allocation53_spill] sm:$0xff] %v9154_v17  ;;  %3562 = vmatpush.msra.mxu2 %v11703_v24  ;;  %3614 = vmatpush.msra.mxu3 %v11682_v53  ;;  %v11709_v24 = vld [vmem:[#allocation52_spill] sm:$0xff] }
 0x2ba   : > { %3718 = vmatpush.msrb.mxu1 %v11679_v22  ;;  %3661 = vmatpush.msrb.mxu0 %v11704_v5  ;;  %v11711_v5 = vld [vmem:[#allocation91_spill] sm:$0xff] }
 0x2bb   : > { %3565 = vmatpush.msra.mxu2 %v11705_v21  ;;  %3616 = vmatpush.msra.mxu3 %v11683_v33  ;;  %v11712_v21 = vld [vmem:[#allocation55_spill] sm:$0xff] }
 0x2bc   : > { %3720 = vmatpush.msrb.mxu1 %v11681_v37  ;;  %3665 = vmatpush.msrb.mxu0 %v11706_v29  ;;  %v11714_v29 = vld [vmem:[#allocation97_spill] sm:$0xff] }
 0x2bd   : > { %3568 = vmatpush.msra.mxu2 %v11707_v62  ;;  %3618 = vmatpush.msra.mxu3 %v11684_v56  ;;  %v11715_v62 = vld [vmem:[#allocation60_spill] sm:$0xff] }
 0x2be   : > { %3722 = vmatpush.msrb.mxu1 %v11682_v53  ;;  %3669 = vmatpush.msrb.mxu0 %v11710_v28  ;;  %v11719_v28 = vld [vmem:[#allocation65_spill] sm:$0xff] }
 0x2bf   : > { %3778 = vmatpush.msrb.mxu3 %v11708_v60  ;;  %3571 = vmatpush.msra.mxu2 %v11709_v24  ;;  %v11716_v60 = vld [vmem:[#allocation63_spill] sm:$0xff]  ;;  %v11718_v24 = vld [vmem:[#allocation68_spill] sm:$0xff] }
 0x2c0   : > { %3724 = vmatpush.msrb.mxu1 %v11683_v33  ;;  %3673 = vmatpush.msrb.mxu0 %v11713_v46  ;;  %v11723_v46 = vld [vmem:[#allocation78_spill] sm:$0xff] }
 0x2c1   : > { %3784 = vmatpush.msrb.mxu3 %v11711_v5  ;;  %3574 = vmatpush.msra.mxu2 %v11712_v21  ;;  %v11720_v5 = vld [vmem:[#allocation103_spill] sm:$0xff] }
 0x2c2   : > { %3726 = vmatpush.msrb.mxu1 %v11684_v56  ;;  %3677 = vmatpush.msrb.mxu0 %v11716_v60  ;;  %v11721_v21 = vld [vmem:[#allocation71_spill] sm:$0xff]  ;;  %v11724_v60 = vld [vmem:[#allocation110_spill] sm:$0xff] }
 0x2c3   : > { %3790 = vmatpush.msrb.mxu3 %v11714_v29  ;;  %3577 = vmatpush.msra.mxu2 %v11715_v62  ;;  %v11722_v29 = vld [vmem:[#allocation107_spill] sm:$0xff] }
 0x2c4   : > { %3681 = vmatpush.msrb.mxu0 %v11719_v28  ;;  %v11726_v28 = vld [vmem:[#allocation116_spill] sm:$0xff] }
 0x2c5   : > { %3796 = vmatpush.msrb.mxu3 %v11717_v23  ;;  %3580 = vmatpush.msra.mxu2 %v11718_v24  ;;  %v11725_v24 = vld [vmem:[#allocation114_spill] sm:$0xff]  ;;  %v2869_v23 = vpop.f32.mrf.mxu2 }
 0x2c6   : > { %3685 = vmatpush.msrb.mxu0 %v11721_v21  ;;  %v11727_v21 = vld [vmem:[#allocation121_spill] sm:$0xff] }
 0x2c7   : > { %3733 = vmatpush.msrb.mxu2 %v11484_v20  ;;  %3802 = vmatpush.msrb.mxu3 %v11720_v5 }
 0x2c8   : > { %3689 = vmatpush.msrb.mxu0 %v11723_v46  ;;  %v11733_v46 = vld [vmem:[#allocation135_spill] sm:$0xff] }
 0x2c9   : > { %3735 = vmatpush.msrb.mxu2 %v11487_v15  ;;  %3808 = vmatpush.msrb.mxu3 %v11722_v29  ;;  %v11728_v29 = vld [vmem:[#allocation125_spill] sm:$0xff] }
 0x2cb   : > { %3737 = vmatpush.msrb.mxu2 %v11490_v49  ;;  %3814 = vmatpush.msrb.mxu3 %v11724_v60  ;;  %v11729_v60 = vld [vmem:[#allocation129_spill] sm:$0xff] }
 0x2cd   : > { %3739 = vmatpush.msrb.mxu2 %v11493_v39  ;;  %3820 = vmatpush.msrb.mxu3 %v11725_v24  ;;  %v11730_v24 = vld [vmem:[#allocation132_spill] sm:$0xff] }
 0x2cf   : > { %3741 = vmatpush.msrb.mxu2 %v11496_v12  ;;  %3826 = vmatpush.msrb.mxu3 %v11726_v28  ;;  %v11731_v28 = vld [vmem:[#allocation133_spill] sm:$0xff] }
 0x2d1   : > { %3743 = vmatpush.msrb.mxu2 %v11499_v57  ;;  %3832 = vmatpush.msrb.mxu3 %v11727_v21  ;;  %v11732_v21 = vld [vmem:[#allocation134_spill] sm:$0xff] }
 0x2d3   : > { %3745 = vmatpush.msrb.mxu2 %v11501_v55  ;;  %3838 = vmatpush.msrb.mxu3 %v11728_v29 }
 0x2d5   : > { %3747 = vmatpush.msrb.mxu2 %v11503_v45  ;;  %3844 = vmatpush.msrb.mxu3 %v11729_v60  ;;  %v2714_v60 = vpop.f32.mrf.mxu0 }
 0x2d7   : > { %3749 = vmatpush.msrb.mxu2 %v11505_v42  ;;  %3850 = vmatpush.msrb.mxu3 %v11730_v24  ;;  %v7053_v24 = vld [vmem:[%s7238_s29 + $0x30] sm:$0xff] }
 0x2d8   : > { %v2715_v29 = vadd.f32 %v7053_v24, %v2714_v60 }
 0x2d9   : > { %3751 = vmatpush.msrb.mxu2 %v11507_v63  ;;  %3856 = vmatpush.msrb.mxu3 %v11731_v28  ;;  %v2815_v28 = vpop.f32.mrf.mxu1 }
 0x2da   : > { %v2816_v5 = vadd.f32 %v2815_v28, %v2715_v29 }
 0x2db   : > { %3753 = vmatpush.msrb.mxu2 %v11509_v40  ;;  %3862 = vmatpush.msrb.mxu3 %v11732_v21  ;;  %v2908_v21 = vpop.f32.mrf.mxu3 }
 0x2dc   : > { %v2870_v62 = vadd.f32 %v2869_v23, %v2816_v5 }
 0x2dd   : > { %3755 = vmatpush.msrb.mxu2 %v11511_v48  ;;  %3868 = vmatpush.msrb.mxu3 %v11733_v46 }
 0x2de   : > { %v2909_v6 = vadd.f32 %v2908_v21, %v2870_v62  ;;  %v7054_v21 = vld [vmem:[%s7238_s29 + $0x38] sm:$0xff] }
 0x2df   : > { %3757 = vmatpush.msrb.mxu2 %v11513_v4 }
 0x2e1   : > { %3759 = vmatpush.msrb.mxu2 %v11514_v43  ;;  %v3014_v46 = vpop.f32.mrf.mxu1 }
 0x2e2   : > { %v2977_v32 = vpop.f32.mrf.mxu0 }
 0x2e3   : > { %3761 = vmatpush.msrb.mxu2 %v11515_v8  ;;  %v2978_v61 = vadd.f32 %v2977_v32, %v2909_v6 }
 0x2e5   : > { %3763 = vmatpush.msrb.mxu2 %v11516_v27  ;;  %v3015_v56 = vadd.f32 %v3014_v46, %v2978_v61 }
 0x2e7   : > { %v3022_v33 = vmul.f32 0.5, %v3015_v56 }
 0x2e9   : > { %7097 = vtanh.f32 %v3022_v33 }
 0x2ef   : > { %v7098_v60 = vpop.eup %7097 }
 0x2f0   : > { %v3024_v5 = vadd.f32 1.0, %v7098_v60  ;;  %v11734_v60 = vld [vmem:[#allocation82_spill] sm:$0xff] }
 0x2f2   : > { %v3025_v62 = vmul.f32 0.5, %v3024_v5  ;;  %v11738_v5 = vld [vmem:[#allocation92_spill] sm:$0xff] }
 0x2f4   : > { %v3379_v56 = vsub.f32 1.0, %v3025_v62 }
 0x2f6   : > { %v3380_v33 = vmul.f32 %v8783_v3, %v3379_v56  ;;  %v11744_v56 = vld [vmem:[#allocation104_spill] sm:$0xff] }
 0x31e   : > { %v3229_v34 = vpop.f32.mrf.mxu0 }
 0x31f   : > { %v3268_v17 = vpop.f32.mrf.mxu1 }
 0x321   : > { %v3175_v53 = vpop.f32.mrf.mxu3 }
 0x329   : > { %v3074_v37 = vpop.f32.mrf.mxu2  ;;  %v3374_v29 = vpop.f32.mrf.mxu3 }
 0x32a   : > { %v3176_v22 = vadd.f32 %v3175_v53, %v3074_v37 }
 0x32c   : > { %v3230_v9 = vadd.f32 %v3229_v34, %v3176_v22 }
 0x32e   : > { %v3269_v24 = vadd.f32 %v3268_v17, %v3230_v9 }
 0x331   : > { %v3337_v28 = vpop.f32.mrf.mxu2 }
 0x332   : > { %v3338_v23 = vadd.f32 %v3337_v28, %v3269_v24  ;;  %v11735_v24 = vld [vmem:[#allocation61_spill] sm:$0xff]  ;;  %v11736_v28 = vld [vmem:[#allocation86_spill] sm:$0xff] }
 0x334   : > { %v3375_v6 = vadd.f32 %v3374_v29, %v3338_v23  ;;  %v11737_v23 = vld [vmem:[#allocation70_spill] sm:$0xff] }
 0x335   : > { %v11739_v29 = vld [vmem:[#allocation74_spill] sm:$0xff] }
 0x336   : > { %v3377_v32 = vadd.f32 %v7054_v21, %v3375_v6  ;;  %v11740_v21 = vld [vmem:[#allocation98_spill] sm:$0xff]  ;;  %v11741_v6 = vld [vmem:[#allocation77_spill] sm:$0xff] }
 0x338   : > { %7099 = vtanh.f32 %v3377_v32  ;;  %v11742_v32 = vld [vmem:[#allocation101_spill] sm:$0xff] }
 0x33e   : > { %v7100_v61 = vpop.eup %7099 }
 0x33f   : > { %v3381_v37 = vmul.f32 %v7100_v61, %v3025_v62  ;;  %v11743_v62 = vld [vmem:[#allocation83_spill] sm:$0xff]  ;;  %v11745_v61 = vld [vmem:[#allocation89_spill] sm:$0xff] }
 0x341   : > { %v3382_v53 = vadd.f32 %v3381_v37, %v3380_v33  ;;  %v11746_v33 = vld [vmem:[#allocation108_spill] sm:$0xff]  ;;  %v11747_v37 = vld [vmem:[#allocation93_spill] sm:$0xff] }
 0x343   : > { %7101 = vtanh.f32 %v3382_v53  ;;  %v11748_v53 = vld [vmem:[#allocation111_spill] sm:$0xff] }
 0x349   : > { %v9218_v34 = vpop.eup %7101 }
 0x34a   : > { %7056 = vst [vmem:[%s7243_s17 + $0x8] sm:$0xff] %v9218_v34  ;;  %v9223_v9 = vand.u32 4294901760, %v9218_v34 }
 0x34c   : > { %3529 = vmatmul.f32.vlgmr.msra.gmra.mxu1 %v9223_v9  ;;  %v9228_v22 = vsub.f32 %v9218_v34, %v9223_v9 }
 0x34d   : > { %3929 = vmatpush.msra.mxu1 %v11484_v20 }
 0x34e   : > { %3583 = vmatmul.f32.vlgmr.msra.gmra.mxu2 %v9228_v22  ;;  %v9233_v3 = vand.u32 4294901760, %v9228_v22 }
 0x34f   : > { %3931 = vmatpush.msra.mxu1 %v11487_v15  ;;  %3970 = vmatpush.msra.mxu2 %v11517_v35 }
 0x350   : > { %3622 = vmatmul.f32.vlgmr.msra.gmra.mxu3 %v9233_v3  ;;  %v3426_v17 = vsub.f32 %v9228_v22, %v9233_v3 }
 0x351   : > { %3933 = vmatpush.msra.mxu1 %v11490_v49  ;;  %3974 = vmatpush.msra.mxu2 %v11518_v10 }
 0x352   : > { %4037 = vmatpush.msra.mxu3 %v11484_v20  ;;  %v9243_v46 = vand.u32 4294901760, %v3426_v17  ;;  %v11749_v17 = vld [vmem:[#allocation95_spill] sm:$0xff] }
 0x353   : > { %3935 = vmatpush.msra.mxu1 %v11493_v39  ;;  %3978 = vmatpush.msra.mxu2 %v11519_v18 }
 0x354   : > { %4039 = vmatpush.msra.mxu3 %v11487_v15  ;;  %3428 = vmatmul.f32.vlgmr.msra.gmra.mxu0 %v9243_v46 }
 0x355   : > { %3728 = vmatmul.f32.vlgmr.msrb.gmra.mxu1 %v9223_v9  ;;  %3876 = vmatpush.msra.mxu0 %v11520_v38 }
 0x356   : > { %3937 = vmatpush.msra.mxu1 %v11496_v12  ;;  %3982 = vmatpush.msra.mxu2 %v11734_v60 }
 0x357   : > { %4041 = vmatpush.msra.mxu3 %v11490_v49  ;;  %3769 = vmatmul.f32.vlgmr.msrb.gmra.mxu2 %v9243_v46 }
 0x358   : > { %3879 = vmatpush.msra.mxu0 %v11735_v24  ;;  %3939 = vmatpush.msra.mxu1 %v11499_v57 }
 0x359   : > { %3986 = vmatpush.msra.mxu2 %v11736_v28  ;;  %4043 = vmatpush.msra.mxu3 %v11493_v39 }
 0x35a   : > { %3870 = vmatmul.f32.vlgmr.msrb.gmra.mxu3 %v9223_v9  ;;  %3882 = vmatpush.msra.mxu0 %v11737_v23 }
 0x35b   : > { %3941 = vmatpush.msra.mxu1 %v11501_v55  ;;  %3990 = vmatpush.msra.mxu2 %v11738_v5 }
 0x35c   : > { %4045 = vmatpush.msra.mxu3 %v11496_v12  ;;  %3885 = vmatpush.msra.mxu0 %v11739_v29 }
 0x35d   : > { %3943 = vmatpush.msra.mxu1 %v11503_v45  ;;  %3994 = vmatpush.msra.mxu2 %v11740_v21 }
 0x35e   : > { %4047 = vmatpush.msra.mxu3 %v11499_v57  ;;  %3691 = vmatmul.f32.vlgmr.msrb.gmra.mxu0 %v9223_v9 }
 0x35f   : > { %3888 = vmatpush.msra.mxu0 %v11741_v6  ;;  %3945 = vmatpush.msra.mxu1 %v11505_v42 }
 0x360   : > { %3998 = vmatpush.msra.mxu2 %v11742_v32  ;;  %4049 = vmatpush.msra.mxu3 %v11501_v55  ;;  %v11767_v32 = vld [vmem:[#allocation143_spill] sm:$0xff] }
 0x361   : > { %3891 = vmatpush.msra.mxu0 %v11743_v62  ;;  %3947 = vmatpush.msra.mxu1 %v11507_v63  ;;  %v11762_v62 = vld [vmem:[#allocation122_spill] sm:$0xff] }
 0x362   : > { %4002 = vmatpush.msra.mxu2 %v11744_v56  ;;  %4051 = vmatpush.msra.mxu3 %v11503_v45  ;;  %v11750_v56 = vld [vmem:[#allocation118_spill] sm:$0xff] }
 0x363   : > { %3894 = vmatpush.msra.mxu0 %v11745_v61  ;;  %3949 = vmatpush.msra.mxu1 %v11509_v40  ;;  %v11751_v61 = vld [vmem:[#allocation102_spill] sm:$0xff] }
 0x364   : > { %4006 = vmatpush.msra.mxu2 %v11746_v33  ;;  %4053 = vmatpush.msra.mxu3 %v11505_v42  ;;  %v11752_v33 = vld [vmem:[#allocation124_spill] sm:$0xff] }
 0x365   : > { %3897 = vmatpush.msra.mxu0 %v11747_v37  ;;  %3951 = vmatpush.msra.mxu1 %v11511_v48  ;;  %v11753_v37 = vld [vmem:[#allocation106_spill] sm:$0xff] }
 0x366   : > { %4010 = vmatpush.msra.mxu2 %v11748_v53  ;;  %4055 = vmatpush.msra.mxu3 %v11507_v63  ;;  %v11754_v53 = vld [vmem:[#allocation127_spill] sm:$0xff] }
 0x367   : > { %3900 = vmatpush.msra.mxu0 %v11749_v17  ;;  %3953 = vmatpush.msra.mxu1 %v11513_v4  ;;  %v11755_v17 = vld [vmem:[#allocation113_spill] sm:$0xff] }
 0x368   : > { %4014 = vmatpush.msra.mxu2 %v11750_v56  ;;  %4057 = vmatpush.msra.mxu3 %v11509_v40  ;;  %v11756_v56 = vld [vmem:[#allocation130_spill] sm:$0xff] }
 0x369   : > { %3903 = vmatpush.msra.mxu0 %v11751_v61  ;;  %3955 = vmatpush.msra.mxu1 %v11514_v43  ;;  %v11758_v61 = vld [vmem:[#allocation154_spill] sm:$0xff] }
 0x36a   : > { %4018 = vmatpush.msra.mxu2 %v11752_v33  ;;  %4059 = vmatpush.msra.mxu3 %v11511_v48  ;;  %v11757_v33 = vld [vmem:[#allocation117_spill] sm:$0xff] }
 0x36b   : > { %3906 = vmatpush.msra.mxu0 %v11753_v37  ;;  %3957 = vmatpush.msra.mxu1 %v11515_v8  ;;  %v11759_v37 = vld [vmem:[#allocation131_spill] sm:$0xff] }
 0x36c   : > { %4022 = vmatpush.msra.mxu2 %v11754_v53  ;;  %4061 = vmatpush.msra.mxu3 %v11513_v4  ;;  %v11760_v53 = vld [vmem:[#allocation158_spill] sm:$0xff] }
 0x36d   : > { %3909 = vmatpush.msra.mxu0 %v11755_v17  ;;  %3959 = vmatpush.msra.mxu1 %v11516_v27  ;;  %v11761_v17 = vld [vmem:[#allocation138_spill] sm:$0xff] }
 0x36e   : > { %4026 = vmatpush.msra.mxu2 %v11756_v56  ;;  %4063 = vmatpush.msra.mxu3 %v11514_v43  ;;  %v11763_v56 = vld [vmem:[#allocation162_spill] sm:$0xff] }
 0x36f   : > { %3963 = vmatmul.f32.vlgmr.msra.gmra.mxu1 %v9233_v3  ;;  %3912 = vmatpush.msra.mxu0 %v11757_v33  ;;  %v11764_v33 = vld [vmem:[#allocation140_spill] sm:$0xff] }
 0x370   : > { %4119 = vmatpush.msrb.mxu1 %v11758_v61  ;;  %4030 = vmatpush.msra.mxu2 %v11759_v37  ;;  %v11765_v37 = vld [vmem:[#allocation126_spill] sm:$0xff] }
 0x371   : > { %4065 = vmatpush.msra.mxu3 %v11515_v8  ;;  %4032 = vmatmul.f32.vlgmr.msra.gmra.mxu2 %v9223_v9  ;;  %v11766_v61 = vld [vmem:[#allocation166_spill] sm:$0xff] }
 0x372   : > { %4125 = vmatpush.msrb.mxu1 %v11760_v53  ;;  %4217 = vmatpush.msrb.mxu2 %v11761_v17  ;;  %v11768_v17 = vld [vmem:[#allocation128_spill] sm:$0xff]  ;;  %v11770_v53 = vld [vmem:[#allocation145_spill] sm:$0xff] }
 0x373   : > { %3915 = vmatpush.msra.mxu0 %v11762_v62  ;;  %4067 = vmatpush.msra.mxu3 %v11516_v27  ;;  %v11769_v62 = vld [vmem:[#allocation169_spill] sm:$0xff] }
 0x374   : > { %4069 = vmatmul.f32.vlgmr.msra.gmra.mxu3 %v9223_v9  ;;  %4131 = vmatpush.msrb.mxu1 %v11763_v56 }
 0x375   : > { %4220 = vmatpush.msrb.mxu2 %v11764_v33  ;;  %4270 = vmatpush.msrb.mxu3 %v11552_v7  ;;  %v11771_v33 = vld [vmem:[#allocation173_spill] sm:$0xff] }
 0x376   : > { %3918 = vmatpush.msra.mxu0 %v11765_v37  ;;  %4137 = vmatpush.msrb.mxu1 %v11766_v61  ;;  %v11772_v37 = vld [vmem:[#allocation149_spill] sm:$0xff] }
 0x377   : > { %4223 = vmatpush.msrb.mxu2 %v11767_v32  ;;  %4272 = vmatpush.msrb.mxu3 %v7929_v11  ;;  %v11773_v32 = vld [vmem:[#allocation177_spill] sm:$0xff] }
 0x378   : > { %3921 = vmatpush.msra.mxu0 %v11768_v17  ;;  %4143 = vmatpush.msrb.mxu1 %v11769_v62  ;;  %v11774_v17 = vld [vmem:[#allocation152_spill] sm:$0xff]  ;;  %v11776_v62 = vld [vmem:[#allocation153_spill] sm:$0xff] }
 0x379   : > { %3924 = vmatmul.f32.vlgmr.msra.gmra.mxu0 %v9228_v22  ;;  %4226 = vmatpush.msrb.mxu2 %v11770_v53  ;;  %v11775_v53 = vld [vmem:[#allocation181_spill] sm:$0xff] }
 0x37a   : > { %4074 = vmatpush.msrb.mxu0 %v11552_v7  ;;  %4274 = vmatpush.msrb.mxu3 %v7941_v30 }
 0x37b   : > { %4149 = vmatpush.msrb.mxu1 %v11771_v33  ;;  %4229 = vmatpush.msrb.mxu2 %v11772_v37  ;;  %v11777_v37 = vld [vmem:[#allocation186_spill] sm:$0xff]  ;;  %v11778_v33 = vld [vmem:[#allocation157_spill] sm:$0xff] }
 0x37c   : > { %4076 = vmatpush.msrb.mxu0 %v7929_v11  ;;  %4276 = vmatpush.msrb.mxu3 %v7953_v26 }
 0x37d   : > { %4155 = vmatpush.msrb.mxu1 %v11773_v32  ;;  %4232 = vmatpush.msrb.mxu2 %v11774_v17  ;;  %v11779_v17 = vld [vmem:[#allocation190_spill] sm:$0xff]  ;;  %v11780_v32 = vld [vmem:[#allocation163_spill] sm:$0xff] }
 0x37e   : > { %4078 = vmatpush.msrb.mxu0 %v7941_v30  ;;  %4278 = vmatpush.msrb.mxu3 %v7968_v47 }
 0x37f   : > { %4161 = vmatpush.msrb.mxu1 %v11775_v53  ;;  %4235 = vmatpush.msrb.mxu2 %v11776_v62  ;;  %v11781_v62 = vld [vmem:[#allocation194_spill] sm:$0xff]  ;;  %v11782_v53 = vld [vmem:[#allocation167_spill] sm:$0xff] }
 0x380   : > { %4080 = vmatpush.msrb.mxu0 %v7953_v26  ;;  %4280 = vmatpush.msrb.mxu3 %v11565_v36 }
 0x381   : > { %4167 = vmatpush.msrb.mxu1 %v11777_v37  ;;  %4238 = vmatpush.msrb.mxu2 %v11778_v33  ;;  %v11783_v33 = vld [vmem:[#allocation198_spill] sm:$0xff]  ;;  %v11784_v37 = vld [vmem:[#allocation171_spill] sm:$0xff] }
 0x382   : > { %4082 = vmatpush.msrb.mxu0 %v7968_v47  ;;  %4282 = vmatpush.msrb.mxu3 %v11568_v14 }
 0x383   : > { %4173 = vmatpush.msrb.mxu1 %v11779_v17  ;;  %4241 = vmatpush.msrb.mxu2 %v11780_v32  ;;  %v11785_v32 = vld [vmem:[#allocation202_spill] sm:$0xff]  ;;  %v11786_v17 = vld [vmem:[#allocation175_spill] sm:$0xff] }
 0x384   : > { %4084 = vmatpush.msrb.mxu0 %v11565_v36  ;;  %4284 = vmatpush.msrb.mxu3 %v11571_v25 }
 0x385   : > { %4179 = vmatpush.msrb.mxu1 %v11781_v62  ;;  %4244 = vmatpush.msrb.mxu2 %v11782_v53  ;;  %v11787_v53 = vld [vmem:[#allocation179_spill] sm:$0xff]  ;;  %v11800_v62 = vld [vmem:[#allocation142_spill] sm:$0xff] }
 0x386   : > { %4086 = vmatpush.msrb.mxu0 %v11568_v14  ;;  %4286 = vmatpush.msrb.mxu3 %v11574_v50 }
 0x387   : > { %4185 = vmatpush.msrb.mxu1 %v11783_v33  ;;  %4247 = vmatpush.msrb.mxu2 %v11784_v37  ;;  %v11788_v37 = vld [vmem:[#allocation183_spill] sm:$0xff]  ;;  %v11791_v33 = vld [vmem:[#allocation188_spill] sm:$0xff] }
 0x388   : > { %4088 = vmatpush.msrb.mxu0 %v11571_v25  ;;  %4288 = vmatpush.msrb.mxu3 %v11577_v1 }
 0x389   : > { %4191 = vmatpush.msrb.mxu1 %v11785_v32  ;;  %4250 = vmatpush.msrb.mxu2 %v11786_v17  ;;  %v11789_v32 = vld [vmem:[#allocation172_spill] sm:$0xff]  ;;  %v11790_v17 = vld [vmem:[#allocation213_spill] sm:$0xff] }
 0x38a   : > { %4090 = vmatpush.msrb.mxu0 %v11574_v50  ;;  %4290 = vmatpush.msrb.mxu3 %v8074_v52 }
 0x38b   : > { %4197 = vmatpush.msrb.mxu1 %v11580_v59  ;;  %4253 = vmatpush.msrb.mxu2 %v11787_v53  ;;  %v11792_v59 = vld [vmem:[#allocation176_spill] sm:$0xff] }
 0x38c   : > { %4092 = vmatpush.msrb.mxu0 %v11577_v1  ;;  %4292 = vmatpush.msrb.mxu3 %v8093_v44  ;;  %v11793_v53 = vld [vmem:[#allocation192_spill] sm:$0xff] }
 0x38d   : > { %4203 = vmatpush.msrb.mxu1 %v11582_v51  ;;  %4256 = vmatpush.msrb.mxu2 %v11788_v37  ;;  %v11794_v37 = vld [vmem:[#allocation180_spill] sm:$0xff]  ;;  %v11798_v51 = vld [vmem:[#allocation189_spill] sm:$0xff] }
 0x38e   : > { %4094 = vmatpush.msrb.mxu0 %v8074_v52  ;;  %4294 = vmatpush.msrb.mxu3 %v11789_v32 }
 0x38f   : > { %4209 = vmatpush.msrb.mxu1 %v11790_v17  ;;  %4259 = vmatpush.msrb.mxu2 %v11791_v33  ;;  %v11795_v33 = vld [vmem:[#allocation184_spill] sm:$0xff]  ;;  %v11796_v17 = vld [vmem:[#allocation185_spill] sm:$0xff] }
 0x390   : > { %4096 = vmatpush.msrb.mxu0 %v8093_v44  ;;  %4296 = vmatpush.msrb.mxu3 %v11792_v59 }
 0x391   : > { %4211 = vmatmul.f32.vlgmr.msrb.gmra.mxu1 %v9223_v9  ;;  %4262 = vmatpush.msrb.mxu2 %v11793_v53  ;;  %v11797_v53 = vld [vmem:[#allocation217_spill] sm:$0xff] }
 0x392   : > { %4378 = vmatpush.msra.mxu1 %v11552_v7  ;;  %4098 = vmatpush.msrb.mxu0 %v11789_v32 }
 0x393   : > { %4298 = vmatpush.msrb.mxu3 %v11794_v37  ;;  %4265 = vmatmul.f32.vlgmr.msrb.gmra.mxu2 %v9228_v22  ;;  %v11799_v22 = vld [vmem:[#allocation221_spill] sm:$0xff] }
 0x394   : > { %4380 = vmatpush.msra.mxu1 %v7929_v11  ;;  %4100 = vmatpush.msrb.mxu0 %v11792_v59  ;;  %v11805_v11 = vld [vmem:[#allocation200_spill] sm:$0xff] }
 0x395   : > { %4300 = vmatpush.msrb.mxu3 %v11795_v33  ;;  %4434 = vmatpush.msra.mxu2 %v11796_v17 }
 0x396   : > { %4304 = vmatmul.f32.vlgmr.msrb.gmra.mxu3 %v9233_v3  ;;  %4382 = vmatpush.msra.mxu1 %v7941_v30  ;;  %v11801_v3 = vld [vmem:[#allocation226_spill] sm:$0xff]  ;;  %v11802_v30 = vld [vmem:[#allocation196_spill] sm:$0xff] }
 0x397   : > { %4102 = vmatpush.msrb.mxu0 %v11794_v37  ;;  %4479 = vmatpush.msra.mxu3 %v11797_v53  ;;  %v11803_v53 = vld [vmem:[#allocation144_spill] sm:$0xff] }
 0x398   : > { %4384 = vmatpush.msra.mxu1 %v7953_v26  ;;  %4436 = vmatpush.msra.mxu2 %v11798_v51  ;;  %v11804_v26 = vld [vmem:[#allocation229_spill] sm:$0xff] }
 0x399   : > { %4104 = vmatpush.msrb.mxu0 %v11795_v33  ;;  %4485 = vmatpush.msra.mxu3 %v11799_v22  ;;  %v11806_v22 = vld [vmem:[#allocation148_spill] sm:$0xff] }
 0x39a   : > { %4110 = vmatmul.f32.vlgmr.msrb.gmra.mxu0 %v9243_v46  ;;  %4386 = vmatpush.msra.mxu1 %v7968_v47  ;;  %v11807_v46 = vld [vmem:[#allocation233_spill] sm:$0xff] }
 0x39b   : > { %4311 = vmatpush.msra.mxu0 %v11800_v62  ;;  %4491 = vmatpush.msra.mxu3 %v11801_v3  ;;  %v11808_v62 = vld [vmem:[#allocation204_spill] sm:$0xff]  ;;  %v11809_v3 = vld [vmem:[#allocation151_spill] sm:$0xff] }
 0x39c   : > { %4388 = vmatpush.msra.mxu1 %v11565_v36  ;;  %4438 = vmatpush.msra.mxu2 %v11802_v30  ;;  %v11810_v36 = vld [vmem:[#allocation235_spill] sm:$0xff] }
 0x39d   : > { %4315 = vmatpush.msra.mxu0 %v11803_v53  ;;  %4497 = vmatpush.msra.mxu3 %v11804_v26  ;;  %v11811_v53 = vld [vmem:[#allocation208_spill] sm:$0xff]  ;;  %v11812_v26 = vld [vmem:[#allocation155_spill] sm:$0xff] }
 0x39e   : > { %4390 = vmatpush.msra.mxu1 %v11568_v14  ;;  %4440 = vmatpush.msra.mxu2 %v11805_v11  ;;  %v11813_v14 = vld [vmem:[#allocation238_spill] sm:$0xff] }
 0x39f   : > { %4319 = vmatpush.msra.mxu0 %v11806_v22  ;;  %4503 = vmatpush.msra.mxu3 %v11807_v46  ;;  %v11814_v22 = vld [vmem:[#allocation212_spill] sm:$0xff]  ;;  %v11815_v46 = vld [vmem:[#allocation159_spill] sm:$0xff] }
 0x3a0   : > { %4392 = vmatpush.msra.mxu1 %v11571_v25  ;;  %4442 = vmatpush.msra.mxu2 %v11808_v62  ;;  %v11816_v25 = vld [vmem:[#allocation239_spill] sm:$0xff] }
 0x3a1   : > { %4323 = vmatpush.msra.mxu0 %v11809_v3  ;;  %4509 = vmatpush.msra.mxu3 %v11810_v36  ;;  %v11817_v3 = vld [vmem:[#allocation216_spill] sm:$0xff]  ;;  %v11818_v36 = vld [vmem:[#allocation161_spill] sm:$0xff] }
 0x3a2   : > { %4394 = vmatpush.msra.mxu1 %v11574_v50  ;;  %4444 = vmatpush.msra.mxu2 %v11811_v53  ;;  %v11819_v50 = vld [vmem:[#allocation241_spill] sm:$0xff] }
 0x3a3   : > { %4327 = vmatpush.msra.mxu0 %v11812_v26  ;;  %4515 = vmatpush.msra.mxu3 %v11813_v14  ;;  %v11820_v26 = vld [vmem:[#allocation220_spill] sm:$0xff]  ;;  %v11821_v14 = vld [vmem:[#allocation165_spill] sm:$0xff] }
 0x3a4   : > { %4396 = vmatpush.msra.mxu1 %v11577_v1  ;;  %4446 = vmatpush.msra.mxu2 %v11814_v22  ;;  %v11822_v1 = vld [vmem:[#allocation244_spill] sm:$0xff] }
 0x3a5   : > { %4331 = vmatpush.msra.mxu0 %v11815_v46  ;;  %4521 = vmatpush.msra.mxu3 %v11816_v25  ;;  %v11823_v46 = vld [vmem:[#allocation224_spill] sm:$0xff]  ;;  %v11824_v25 = vld [vmem:[#allocation170_spill] sm:$0xff] }
 0x3a6   : > { %4398 = vmatpush.msra.mxu1 %v8074_v52  ;;  %4448 = vmatpush.msra.mxu2 %v11817_v3  ;;  %v11825_v52 = vld [vmem:[#allocation248_spill] sm:$0xff] }
 0x3a7   : > { %4335 = vmatpush.msra.mxu0 %v11818_v36  ;;  %4527 = vmatpush.msra.mxu3 %v11819_v50  ;;  %v11826_v36 = vld [vmem:[#allocation225_spill] sm:$0xff]  ;;  %v11827_v50 = vld [vmem:[#allocation174_spill] sm:$0xff] }
 0x3a8   : > { %4400 = vmatpush.msra.mxu1 %v8093_v44  ;;  %4450 = vmatpush.msra.mxu2 %v11820_v26  ;;  %v11828_v44 = vld [vmem:[#allocation252_spill] sm:$0xff] }
 0x3a9   : > { %4339 = vmatpush.msra.mxu0 %v11821_v14  ;;  %4533 = vmatpush.msra.mxu3 %v11822_v1  ;;  %v11829_v14 = vld [vmem:[#allocation240_spill] sm:$0xff]  ;;  %v11830_v1 = vld [vmem:[#allocation178_spill] sm:$0xff] }
 0x3aa   : > { %4402 = vmatpush.msra.mxu1 %v11789_v32  ;;  %4452 = vmatpush.msra.mxu2 %v11823_v46  ;;  %v11831_v32 = vld [vmem:[#allocation256_spill] sm:$0xff] }
 0x3ab   : > { %4343 = vmatpush.msra.mxu0 %v11824_v25  ;;  %4539 = vmatpush.msra.mxu3 %v11825_v52  ;;  %v11832_v25 = vld [vmem:[#allocation243_spill] sm:$0xff]  ;;  %v11833_v52 = vld [vmem:[#allocation182_spill] sm:$0xff] }
 0x3ac   : > { %4404 = vmatpush.msra.mxu1 %v11792_v59  ;;  %4454 = vmatpush.msra.mxu2 %v11826_v36  ;;  %v11834_v59 = vld [vmem:[#allocation259_spill] sm:$0xff] }
 0x3ad   : > { %4347 = vmatpush.msra.mxu0 %v11827_v50  ;;  %4545 = vmatpush.msra.mxu3 %v11828_v44  ;;  %v11835_v44 = vld [vmem:[#allocation187_spill] sm:$0xff] }
 0x3ae   : > { %4406 = vmatpush.msra.mxu1 %v11794_v37  ;;  %4456 = vmatpush.msra.mxu2 %v11829_v14  ;;  %v11836_v50 = vld [vmem:[#allocation247_spill] sm:$0xff]  ;;  %v11837_v37 = vld [vmem:[#allocation261_spill] sm:$0xff] }
 0x3af   : > { %4351 = vmatpush.msra.mxu0 %v11830_v1  ;;  %4551 = vmatpush.msra.mxu3 %v11831_v32  ;;  %v11838_v32 = vld [vmem:[#allocation191_spill] sm:$0xff] }
 0x3b0   : > { %4408 = vmatpush.msra.mxu1 %v11795_v33  ;;  %4458 = vmatpush.msra.mxu2 %v11832_v25  ;;  %v11839_v1 = vld [vmem:[#allocation251_spill] sm:$0xff]  ;;  %v11840_v33 = vld [vmem:[#allocation262_spill] sm:$0xff] }
 0x3b1   : > { %4355 = vmatpush.msra.mxu0 %v11833_v52  ;;  %4410 = vmatmul.f32.vlgmr.msra.gmra.mxu1 %v9223_v9  ;;  %v11841_v52 = vld [vmem:[#allocation195_spill] sm:$0xff] }
 0x3b2   : > { %4557 = vmatpush.msra.mxu3 %v11834_v59  ;;  %4630 = vmatpush.msrb.mxu1 %v11796_v17  ;;  %v11843_v59 = vld [vmem:[#allocation199_spill] sm:$0xff] }
 0x3b3   : > { %4359 = vmatpush.msra.mxu0 %v11835_v44  ;;  %4460 = vmatpush.msra.mxu2 %v11836_v50  ;;  %v11842_v44 = vld [vmem:[#allocation255_spill] sm:$0xff] }
 0x3b4   : > { %4563 = vmatpush.msra.mxu3 %v11837_v37  ;;  %4632 = vmatpush.msrb.mxu1 %v11798_v51  ;;  %v11848_v37 = vld [vmem:[#allocation203_spill] sm:$0xff] }
 0x3b5   : > { %4363 = vmatpush.msra.mxu0 %v11838_v32  ;;  %4462 = vmatpush.msra.mxu2 %v11839_v1  ;;  %v11844_v32 = vld [vmem:[#allocation193_spill] sm:$0xff] }
 0x3b6   : > { %4569 = vmatpush.msra.mxu3 %v11840_v33  ;;  %4634 = vmatpush.msrb.mxu1 %v11802_v30  ;;  %v11846_v33 = vld [vmem:[#allocation197_spill] sm:$0xff] }
 0x3b7   : > { %4367 = vmatpush.msra.mxu0 %v11841_v52  ;;  %4464 = vmatpush.msra.mxu2 %v11842_v44  ;;  %v11845_v52 = vld [vmem:[#allocation201_spill] sm:$0xff] }
 0x3b8   : > { %4738 = vmatpush.msrb.mxu3 %v11796_v17  ;;  %4636 = vmatpush.msrb.mxu1 %v11805_v11 }
 0x3b9   : > { %4371 = vmatpush.msra.mxu0 %v11843_v59  ;;  %4671 = vmatpush.msrb.mxu2 %v11845_v52  ;;  %v11847_v59 = vld [vmem:[#allocation205_spill] sm:$0xff]  ;;  %v11852_v52 = vld [vmem:[#allocation211_spill] sm:$0xff] }
 0x3ba   : > { %4740 = vmatpush.msrb.mxu3 %v11798_v51  ;;  %4373 = vmatmul.f32.vlgmr.msra.gmra.mxu0 %v9223_v9  ;;  %v11849_v9 = vld [vmem:[#allocation210_spill] sm:$0xff] }
 0x3bb   : > { %4638 = vmatpush.msrb.mxu1 %v11808_v62  ;;  %4577 = vmatpush.msrb.mxu0 %v11844_v32  ;;  %v11850_v32 = vld [vmem:[#allocation207_spill] sm:$0xff] }
 0x3bc   : > { %4742 = vmatpush.msrb.mxu3 %v11802_v30  ;;  %4675 = vmatpush.msrb.mxu2 %v11847_v59  ;;  %v11854_v59 = vld [vmem:[#allocation215_spill] sm:$0xff] }
 0x3bd   : > { %4640 = vmatpush.msrb.mxu1 %v11811_v53  ;;  %4580 = vmatpush.msrb.mxu0 %v11846_v33  ;;  %v11851_v33 = vld [vmem:[#allocation214_spill] sm:$0xff] }
 0x3be   : > { %4744 = vmatpush.msrb.mxu3 %v11805_v11  ;;  %4679 = vmatpush.msrb.mxu2 %v11849_v9  ;;  %v11856_v9 = vld [vmem:[#allocation219_spill] sm:$0xff] }
 0x3bf   : > { %4642 = vmatpush.msrb.mxu1 %v11814_v22  ;;  %4583 = vmatpush.msrb.mxu0 %v11848_v37  ;;  %v11853_v37 = vld [vmem:[#allocation218_spill] sm:$0xff] }
 0x3c0   : > { %4746 = vmatpush.msrb.mxu3 %v11808_v62  ;;  %4683 = vmatpush.msrb.mxu2 %v11851_v33  ;;  %v11858_v33 = vld [vmem:[#allocation223_spill] sm:$0xff]  ;;  %v11901_v62 = vld [vmem:[#allocation56_spill] sm:$0xff] }
 0x3c1   : > { %4644 = vmatpush.msrb.mxu1 %v11817_v3  ;;  %4586 = vmatpush.msrb.mxu0 %v11850_v32  ;;  %v11855_v32 = vld [vmem:[#allocation222_spill] sm:$0xff] }
 0x3c2   : > { %4748 = vmatpush.msrb.mxu3 %v11811_v53  ;;  %4687 = vmatpush.msrb.mxu2 %v11853_v37  ;;  %v11860_v37 = vld [vmem:[#allocation228_spill] sm:$0xff]  ;;  %v11876_v53 = vld [vmem:[#allocation257_spill] sm:$0xff] }
 0x3c3   : > { %4646 = vmatpush.msrb.mxu1 %v11820_v26  ;;  %4589 = vmatpush.msrb.mxu0 %v11852_v52  ;;  %v11857_v52 = vld [vmem:[#allocation227_spill] sm:$0xff] }
 0x3c4   : > { %4750 = vmatpush.msrb.mxu3 %v11814_v22  ;;  %4691 = vmatpush.msrb.mxu2 %v11855_v32  ;;  %v11862_v32 = vld [vmem:[#allocation231_spill] sm:$0xff]  ;;  %v11871_v22 = vld [vmem:[#allocation29_spill] sm:$0xff] }
 0x3c5   : > { %4648 = vmatpush.msrb.mxu1 %v11823_v46  ;;  %4592 = vmatpush.msrb.mxu0 %v11854_v59  ;;  %v11859_v59 = vld [vmem:[#allocation230_spill] sm:$0xff] }
 0x3c6   : > { %4752 = vmatpush.msrb.mxu3 %v11817_v3  ;;  %4695 = vmatpush.msrb.mxu2 %v11857_v52  ;;  %v7057_v52 = vld [vmem:[%s7238_s29 + $0x40] sm:$0xff]  ;;  %v11869_v3 = vld [vmem:[#allocation246_spill] sm:$0xff] }
 0x3c7   : > { %4650 = vmatpush.msrb.mxu1 %v11826_v36  ;;  %4595 = vmatpush.msrb.mxu0 %v11856_v9  ;;  %v11861_v9 = vld [vmem:[#allocation234_spill] sm:$0xff] }
 0x3c8   : > { %4754 = vmatpush.msrb.mxu3 %v11820_v26  ;;  %4699 = vmatpush.msrb.mxu2 %v11859_v59  ;;  %v11868_v26 = vld [vmem:[#allocation28_spill] sm:$0xff] }
 0x3c9   : > { %4652 = vmatpush.msrb.mxu1 %v11829_v14  ;;  %4598 = vmatpush.msrb.mxu0 %v11858_v33  ;;  %v11863_v33 = vld [vmem:[#allocation236_spill] sm:$0xff] }
 0x3ca   : > { %4756 = vmatpush.msrb.mxu3 %v11823_v46  ;;  %4703 = vmatpush.msrb.mxu2 %v11861_v9  ;;  %v11864_v46 = vld [vmem:[#allocation232_spill] sm:$0xff]  ;;  %v11866_v9 = vld [vmem:[#allocation242_spill] sm:$0xff] }
 0x3cb   : > { %4654 = vmatpush.msrb.mxu1 %v11832_v25  ;;  %4601 = vmatpush.msrb.mxu0 %v11860_v37  ;;  %v11865_v37 = vld [vmem:[#allocation237_spill] sm:$0xff] }
 0x3cc   : > { %4758 = vmatpush.msrb.mxu3 %v11826_v36  ;;  %4707 = vmatpush.msrb.mxu2 %v11863_v33  ;;  %v3530_v33 = vpop.f32.mrf.mxu1 }
 0x3cd   : > { %4656 = vmatpush.msrb.mxu1 %v11836_v50  ;;  %4604 = vmatpush.msrb.mxu0 %v11862_v32 }
 0x3ce   : > { %4760 = vmatpush.msrb.mxu3 %v11829_v14  ;;  %4711 = vmatpush.msrb.mxu2 %v11865_v37  ;;  %v11867_v14 = vld [vmem:[#allocation245_spill] sm:$0xff] }
 0x3cf   : > { %4658 = vmatpush.msrb.mxu1 %v11839_v1  ;;  %4607 = vmatpush.msrb.mxu0 %v11864_v46  ;;  %v11870_v37 = vld [vmem:[#allocation249_spill] sm:$0xff] }
 0x3d0   : > { %4762 = vmatpush.msrb.mxu3 %v11832_v25  ;;  %4715 = vmatpush.msrb.mxu2 %v11867_v14  ;;  %v11874_v14 = vld [vmem:[#allocation32_spill] sm:$0xff] }
 0x3d1   : > { %4660 = vmatpush.msrb.mxu1 %v11842_v44  ;;  %v3429_v59 = vpop.f32.mrf.mxu0  ;;  %v3584_v36 = vpop.f32.mrf.mxu2  ;;  %4610 = vmatpush.msrb.mxu0 %v11866_v9  ;;  %v11872_v9 = vld [vmem:[#allocation250_spill] sm:$0xff] }
 0x3d2   : > { %4764 = vmatpush.msrb.mxu3 %v11836_v50  ;;  %v3430_v32 = vadd.f32 %v7057_v52, %v3429_v59  ;;  %4719 = vmatpush.msrb.mxu2 %v11870_v37  ;;  %v11873_v59 = vld [vmem:[#allocation253_spill] sm:$0xff]  ;;  %v11879_v37 = vld [vmem:[#allocation260_spill] sm:$0xff] }
 0x3d3   : > { %4834 = vmatpush.msra.mxu1 %v11868_v26  ;;  %v3623_v46 = vpop.f32.mrf.mxu3  ;;  %4613 = vmatpush.msrb.mxu0 %v11869_v3  ;;  %v11875_v26 = vld [vmem:[#allocation254_spill] sm:$0xff]  ;;  %v7058_v3 = vld [vmem:[%s7238_s29 + $0x48] sm:$0xff] }
 0x3d4   : > { %4766 = vmatpush.msrb.mxu3 %v11839_v1  ;;  %v3531_v25 = vadd.f32 %v3530_v33, %v3430_v32  ;;  %4723 = vmatpush.msrb.mxu2 %v11873_v59  ;;  %v11877_v32 = vld [vmem:[#allocation37_spill] sm:$0xff]  ;;  %v11878_v33 = vld [vmem:[#allocation258_spill] sm:$0xff]  ;;  %v11880_v59 = vld [vmem:[#allocation40_spill] sm:$0xff] }
 0x3d5   : > { %4840 = vmatpush.msra.mxu1 %v11871_v22  ;;  %4616 = vmatpush.msrb.mxu0 %v11872_v9  ;;  %v11898_v9 = vld [vmem:[#allocation43_spill] sm:$0xff] }
 0x3d6   : > { %4768 = vmatpush.msrb.mxu3 %v11842_v44  ;;  %v3585_v52 = vadd.f32 %v3584_v36, %v3531_v25  ;;  %4727 = vmatpush.msrb.mxu2 %v11876_v53 }
 0x3d7   : > { %4846 = vmatpush.msra.mxu1 %v11874_v14  ;;  %4619 = vmatpush.msrb.mxu0 %v11875_v26  ;;  %v11881_v26 = vld [vmem:[#allocation46_spill] sm:$0xff] }
 0x3d8   : > { %v3624_v50 = vadd.f32 %v3623_v46, %v3585_v52  ;;  %4731 = vmatpush.msrb.mxu2 %v11879_v37  ;;  %v3729_v46 = vpop.f32.mrf.mxu1  ;;  %v11883_v37 = vld [vmem:[#allocation57_spill] sm:$0xff] }
 0x3d9   : > { %4852 = vmatpush.msra.mxu1 %v11877_v32  ;;  %4622 = vmatpush.msrb.mxu0 %v11878_v33  ;;  %v11882_v33 = vld [vmem:[#allocation48_spill] sm:$0xff] }
 0x3da   : > { %v3770_v22 = vpop.f32.mrf.mxu2 }
 0x3db   : > { %4789 = vmatpush.msra.mxu0 %v11654_v0  ;;  %v3692_v36 = vpop.f32.mrf.mxu0  ;;  %v3771_v25 = vadd.f32 %v7058_v3, %v3770_v22  ;;  %4858 = vmatpush.msra.mxu1 %v11880_v59  ;;  %v11885_v3 = vld [vmem:[#allocation67_spill] sm:$0xff] }
 0x3dc   : > { %v3693_v14 = vadd.f32 %v3692_v36, %v3624_v50  ;;  %v11884_v50 = vld [vmem:[#allocation62_spill] sm:$0xff]  ;;  %v11887_v36 = vld [vmem:[#allocation73_spill] sm:$0xff] }
 0x3dd   : > { %4791 = vmatpush.msra.mxu0 %v11656_v41  ;;  %v3871_v52 = vpop.f32.mrf.mxu3  ;;  %4864 = vmatpush.msra.mxu1 %v11881_v26  ;;  %v11886_v26 = vld [vmem:[#allocation50_spill] sm:$0xff] }
 0x3de   : > { %v3730_v53 = vadd.f32 %v3729_v46, %v3693_v14  ;;  %v3872_v32 = vadd.f32 %v3871_v52, %v3771_v25  ;;  %v11889_v25 = vld [vmem:[#allocation81_spill] sm:$0xff]  ;;  %v11891_v52 = vld [vmem:[#allocation34_spill] sm:$0xff] }
 0x3df   : > { %4793 = vmatpush.msra.mxu0 %v11658_v54  ;;  %4870 = vmatpush.msra.mxu1 %v11882_v33  ;;  %v11888_v33 = vld [vmem:[#allocation76_spill] sm:$0xff]  ;;  %v11890_v14 = vld [vmem:[#allocation53_spill] sm:$0xff] }
 0x3e0   : > { %7103 = vtanh.f32 %v3730_v53  ;;  %v3034_v46 = vmax.f32 %v11890_v14, 0.0  ;;  %v11897_v14 = vld [vmem:[#allocation96_spill] sm:$0xff] }
 0x3e1   : > { %4795 = vmatpush.msra.mxu0 %v11660_v19  ;;  %4876 = vmatpush.msra.mxu1 %v11883_v37 }
 0x3e3   : > { %4797 = vmatpush.msra.mxu0 %v11662_v13  ;;  %4882 = vmatpush.msra.mxu1 %v11884_v50  ;;  %v11892_v50 = vld [vmem:[#allocation85_spill] sm:$0xff] }
 0x3e5   : > { %4799 = vmatpush.msra.mxu0 %v11664_v16  ;;  %4888 = vmatpush.msra.mxu1 %v11885_v3 }
 0x3e6   : > { %v7104_v59 = vpop.eup %7103 }
 0x3e7   : > { %4801 = vmatpush.msra.mxu0 %v11666_v58  ;;  %v4423_v22 = vadd.f32 %v7104_v59, %v11886_v26  ;;  %4894 = vmatpush.msra.mxu1 %v11887_v36  ;;  %v11893_v26 = vld [vmem:[#allocation35_spill] sm:$0xff] }
 0x3e9   : > { %4803 = vmatpush.msra.mxu0 %v11669_v31  ;;  %v4424_v53 = vmax.f32 %v4423_v22, 0.0  ;;  %4900 = vmatpush.msra.mxu1 %v11888_v33  ;;  %v11895_v33 = vld [vmem:[#allocation90_spill] sm:$0xff] }
 0x3eb   : > { %4805 = vmatpush.msra.mxu0 %v11671_v2  ;;  %v7061_v37 = vadd.f32 -1.0, %v4424_v53  ;;  %4906 = vmatpush.msra.mxu1 %v11889_v25  ;;  %v11896_v53 = vld [vmem:[#allocation36_spill] sm:$0xff] }
 0x3ec   : > { %v3964_v1 = vpop.f32.mrf.mxu1 }
 0x3ed   : > { %4807 = vmatpush.msra.mxu0 %v11891_v52  ;;  %vm4426_vm2 = vcmp.le.f32.partialorder %v7061_v37, 0.0  ;;  %4912 = vmatpush.msra.mxu1 %v11892_v50 }
 0x3ee   : > { %v4428_v3 = vsel %vm4426_vm2, %v3034_v46, 0.0  ;;  %v9538_v59 = vsel %vm4426_vm2, 0.0, %v3034_v46  ;;  %v9541_v22 = vsel %vm4426_vm2, 0.0, %v7061_v37  ;;  %v11899_v46 = vld [vmem:[#allocation45_spill] sm:$0xff] }
 0x3ef   : > { %4809 = vmatpush.msra.mxu0 %v11893_v26  ;;  %11894 = vst [vmem:[#allocation59_spill] sm:$0xff] %v9541_v22  ;;  %v4432_v36 = vmul.f32 %v9218_v34, %v4428_v3  ;;  %4918 = vmatpush.msra.mxu1 %v11895_v33  ;;  %v11900_v3 = vld [vmem:[#allocation49_spill] sm:$0xff] }
 0x3f1   : > { %4811 = vmatpush.msra.mxu0 %v11896_v53  ;;  %v4465_v25 = vand.u32 4294901760, %v4432_v36  ;;  %4924 = vmatpush.msra.mxu1 %v11897_v14 }
 0x3f3   : > { %4813 = vmatpush.msra.mxu0 %v11898_v9  ;;  %4571 = vmatmul.f32.vlgmr.msra.gmra.mxu3 %v4465_v25  ;;  %v4466_v50 = vsub.f32 %v4432_v36, %v4465_v25 }
 0x3f4   : > { %4985 = vmatpush.msra.mxu3 %v11654_v0  ;;  %v4033_v11 = vpop.f32.mrf.mxu2 }
 0x3f5   : > { %4815 = vmatpush.msra.mxu0 %v11899_v46  ;;  %v4467_v37 = vand.u32 4294901760, %v4466_v50 }
 0x3f6   : > { %4625 = vmatmul.f32.vlgmr.msrb.gmra.mxu0 %v4466_v50  ;;  %v3925_v22 = vpop.f32.mrf.mxu0  ;;  %4987 = vmatpush.msra.mxu3 %v11656_v41 }
 0x3f7   : > { %4817 = vmatpush.msra.mxu0 %v11900_v3  ;;  %v3926_v33 = vadd.f32 %v3925_v22, %v3872_v32  ;;  %4664 = vmatmul.f32.vlgmr.msrb.gmra.mxu1 %v4467_v37  ;;  %v4468_v44 = vsub.f32 %v4466_v50, %v4467_v37  ;;  %v4070_v32 = vpop.f32.mrf.mxu3  ;;  %v11902_v22 = vld [vmem:[#allocation12_spill] sm:$0xff]  ;;  %v11909_v37 = vld [vmem:[#allocation17_spill] sm:$0xff] }
 0x3f8   : > { %4989 = vmatpush.msra.mxu3 %v11658_v54  ;;  %5093 = vmatpush.msrb.mxu1 %v11654_v0 }
 0x3f9   : > { %v3965_v36 = vadd.f32 %v3964_v1, %v3926_v33  ;;  %v4469_v14 = vand.u32 4294901760, %v4468_v44  ;;  %4819 = vmatpush.msra.mxu0 %v11901_v62  ;;  %v11903_v1 = vld [vmem:[#allocation19_spill] sm:$0xff]  ;;  %v11904_v44 = vld [vmem:[#allocation13_spill] sm:$0xff]  ;;  %v11911_v33 = vld [vmem:[#allocation18_spill] sm:$0xff] }
 0x3fa   : > { %4991 = vmatpush.msra.mxu3 %v11660_v19  ;;  %5095 = vmatpush.msrb.mxu1 %v11656_v41  ;;  %v11906_v41 = vld [vmem:[#allocation14_spill] sm:$0xff] }
 0x3fb   : > { %v4034_v30 = vadd.f32 %v4033_v11, %v3965_v36  ;;  %4470 = vmatmul.f32.vlgmr.msra.gmra.mxu2 %v4469_v14  ;;  %4770 = vmatmul.f32.vlgmr.msrb.gmra.mxu3 %v4465_v25  ;;  %v11905_v11 = vld [vmem:[#allocation20_spill] sm:$0xff]  ;;  %v11913_v14 = vld [vmem:[#allocation25_spill] sm:$0xff] }
 0x3fc   : > { %4932 = vmatpush.msra.mxu2 %v11902_v22  ;;  %4993 = vmatpush.msra.mxu3 %v11662_v13  ;;  %v11912_v36 = vld [vmem:[#allocation24_spill] sm:$0xff]  ;;  %v11916_v22 = vld [vmem:[#allocation31_spill] sm:$0xff] }
 0x3fd   : > { %v4071_v50 = vadd.f32 %v4070_v32, %v4034_v30  ;;  %5097 = vmatpush.msrb.mxu1 %v11658_v54  ;;  %5026 = vmatpush.msrb.mxu0 %v11903_v1  ;;  %v11907_v30 = vld [vmem:[#allocation21_spill] sm:$0xff]  ;;  %v11908_v54 = vld [vmem:[#allocation16_spill] sm:$0xff]  ;;  %v11915_v32 = vld [vmem:[#allocation30_spill] sm:$0xff] }
 0x3fe   : > { %4935 = vmatpush.msra.mxu2 %v11904_v44  ;;  %4995 = vmatpush.msra.mxu3 %v11664_v16  ;;  %v11919_v1 = vld [vmem:[#allocation39_spill] sm:$0xff]  ;;  %v11921_v44 = vld [vmem:[#allocation42_spill] sm:$0xff] }
 0x3ff   : > { %v4415_v0 = vmul.f32 0.5, %v4071_v50  ;;  %5099 = vmatpush.msrb.mxu1 %v11660_v19  ;;  %5030 = vmatpush.msrb.mxu0 %v11905_v11  ;;  %v11910_v19 = vld [vmem:[#allocation23_spill] sm:$0xff]  ;;  %v11917_v50 = vld [vmem:[#allocation33_spill] sm:$0xff]  ;;  %v11925_v11 = vld [vmem:[#allocation52_spill] sm:$0xff] }
 0x400   : > { %4938 = vmatpush.msra.mxu2 %v11906_v41  ;;  %4997 = vmatpush.msra.mxu3 %v11666_v58  ;;  %v11927_v41 = vld [vmem:[#allocation91_spill] sm:$0xff] }
 0x401   : > { %7105 = vtanh.f32 %v4415_v0  ;;  %5101 = vmatpush.msrb.mxu1 %v11662_v13  ;;  %5034 = vmatpush.msrb.mxu0 %v11907_v30  ;;  %v11923_v0 = vld [vmem:[#allocation44_spill] sm:$0xff]  ;;  %v11928_v30 = vld [vmem:[#allocation55_spill] sm:$0xff] }
 0x402   : > { %4941 = vmatpush.msra.mxu2 %v11908_v54  ;;  %4999 = vmatpush.msra.mxu3 %v11669_v31  ;;  %v11930_v54 = vld [vmem:[#allocation97_spill] sm:$0xff] }
 0x403   : > { %4733 = vmatmul.f32.vlgmr.msrb.gmra.mxu2 %v4465_v25  ;;  %5103 = vmatpush.msrb.mxu1 %v11664_v16  ;;  %v11914_v16 = vld [vmem:[#allocation26_spill] sm:$0xff] }
 0x404   : > { %4944 = vmatpush.msra.mxu2 %v11909_v37  ;;  %5001 = vmatpush.msra.mxu3 %v11671_v2  ;;  %v11931_v37 = vld [vmem:[#allocation60_spill] sm:$0xff] }
 0x405   : > { %5105 = vmatpush.msrb.mxu1 %v11666_v58  ;;  %5038 = vmatpush.msrb.mxu0 %v11910_v19  ;;  %v11932_v19 = vld [vmem:[#allocation63_spill] sm:$0xff] }
 0x406   : > { %4947 = vmatpush.msra.mxu2 %v11911_v33  ;;  %5003 = vmatpush.msra.mxu3 %v11891_v52  ;;  %v11934_v33 = vld [vmem:[#allocation68_spill] sm:$0xff] }
 0x407   : > { %v7106_v13 = vpop.eup %7105  ;;  %5107 = vmatpush.msrb.mxu1 %v11669_v31  ;;  %5042 = vmatpush.msrb.mxu0 %v11912_v36  ;;  %v11937_v36 = vld [vmem:[#allocation71_spill] sm:$0xff] }
 0x408   : > { %v4417_v25 = vadd.f32 1.0, %v7106_v13  ;;  %4950 = vmatpush.msra.mxu2 %v11913_v14  ;;  %5005 = vmatpush.msra.mxu3 %v11893_v26  ;;  %v11935_v13 = vld [vmem:[#allocation65_spill] sm:$0xff]  ;;  %v11940_v14 = vld [vmem:[#allocation110_spill] sm:$0xff] }
 0x409   : > { %5109 = vmatpush.msrb.mxu1 %v11671_v2  ;;  %5046 = vmatpush.msrb.mxu0 %v11914_v16  ;;  %v11918_v2 = vld [vmem:[#allocation38_spill] sm:$0xff] }
 0x40a   : > { %v4418_v58 = vmul.f32 0.5, %v4417_v25  ;;  %4953 = vmatpush.msra.mxu2 %v11915_v32  ;;  %5007 = vmatpush.msra.mxu3 %v11896_v53  ;;  %v11938_v25 = vld [vmem:[#allocation107_spill] sm:$0xff]  ;;  %v11941_v16 = vld [vmem:[#allocation114_spill] sm:$0xff]  ;;  %v11943_v32 = vld [vmem:[#allocation121_spill] sm:$0xff] }
 0x40b   : > { %5111 = vmatpush.msrb.mxu1 %v11891_v52  ;;  %5050 = vmatpush.msrb.mxu0 %v11916_v22  ;;  %v11920_v52 = vld [vmem:[#allocation41_spill] sm:$0xff] }
 0x40c   : > { %v9589_v31 = vadd.f32 %v9538_v59, %v4418_v58  ;;  %4956 = vmatpush.msra.mxu2 %v11917_v50  ;;  %5009 = vmatpush.msra.mxu3 %v11898_v9  ;;  %v11922_v59 = vld [vmem:[#allocation47_spill] sm:$0xff]  ;;  %v11942_v58 = vld [vmem:[#allocation116_spill] sm:$0xff]  ;;  %v11944_v22 = vld [vmem:[#allocation125_spill] sm:$0xff] }
 0x40d   : > { %5113 = vmatpush.msrb.mxu1 %v11893_v26  ;;  %5054 = vmatpush.msrb.mxu0 %v11918_v2  ;;  %v11924_v26 = vld [vmem:[#allocation88_spill] sm:$0xff]  ;;  %v11945_v50 = vld [vmem:[#allocation129_spill] sm:$0xff] }
 0x40e   : > { %4959 = vmatpush.msra.mxu2 %v11919_v1  ;;  %5011 = vmatpush.msra.mxu3 %v11899_v46  ;;  %v11946_v2 = vld [vmem:[#allocation132_spill] sm:$0xff]  ;;  %v11947_v1 = vld [vmem:[#allocation133_spill] sm:$0xff] }
 0x40f   : > { %5115 = vmatpush.msrb.mxu1 %v11896_v53  ;;  %5058 = vmatpush.msrb.mxu0 %v11920_v52  ;;  %v11926_v53 = vld [vmem:[#allocation51_spill] sm:$0xff]  ;;  %v11948_v52 = vld [vmem:[#allocation134_spill] sm:$0xff] }
 0x410   : > { %4962 = vmatpush.msra.mxu2 %v11921_v44  ;;  %5013 = vmatpush.msra.mxu3 %v11900_v3  ;;  %v11949_v44 = vld [vmem:[#allocation135_spill] sm:$0xff] }
 0x411   : > { %5117 = vmatpush.msrb.mxu1 %v11898_v9  ;;  %5062 = vmatpush.msrb.mxu0 %v11922_v59  ;;  %v11929_v9 = vld [vmem:[#allocation54_spill] sm:$0xff]  ;;  %v7059_v59 = vld [vmem:[%s7238_s29 + $0x50] sm:$0xff] }
 0x412   : > { %4965 = vmatpush.msra.mxu2 %v11923_v0  ;;  %5015 = vmatpush.msra.mxu3 %v11901_v62 }
 0x413   : > { %5119 = vmatpush.msrb.mxu1 %v11899_v46  ;;  %5066 = vmatpush.msrb.mxu0 %v11926_v53  ;;  %v11933_v46 = vld [vmem:[#allocation100_spill] sm:$0xff] }
 0x414   : > { %5175 = vmatpush.msrb.mxu3 %v11924_v26  ;;  %4968 = vmatpush.msra.mxu2 %v11925_v11  ;;  %v4212_v11 = vpop.f32.mrf.mxu1 }
 0x415   : > { %5121 = vmatpush.msrb.mxu1 %v11900_v3  ;;  %5070 = vmatpush.msrb.mxu0 %v11929_v9  ;;  %v11936_v3 = vld [vmem:[#allocation103_spill] sm:$0xff] }
 0x416   : > { %5181 = vmatpush.msrb.mxu3 %v11927_v41  ;;  %4971 = vmatpush.msra.mxu2 %v11928_v30  ;;  %v4266_v41 = vpop.f32.mrf.mxu2 }
 0x417   : > { %5123 = vmatpush.msrb.mxu1 %v11901_v62  ;;  %5074 = vmatpush.msrb.mxu0 %v11932_v19  ;;  %v11939_v62 = vld [vmem:[#allocation78_spill] sm:$0xff]  ;;  %v4111_v0 = vpop.f32.mrf.mxu0 }
 0x418   : > { %5187 = vmatpush.msrb.mxu3 %v11930_v54  ;;  %4974 = vmatpush.msra.mxu2 %v11931_v37  ;;  %v4112_v26 = vadd.f32 %v7059_v59, %v4111_v0 }
 0x419   : > { %5078 = vmatpush.msrb.mxu0 %v11935_v13  ;;  %v4305_v9 = vpop.f32.mrf.mxu3 }
 0x41a   : > { %5193 = vmatpush.msrb.mxu3 %v11933_v46  ;;  %4977 = vmatpush.msra.mxu2 %v11934_v33  ;;  %v4213_v53 = vadd.f32 %v4212_v11, %v4112_v26 }
 0x41b   : > { %5082 = vmatpush.msrb.mxu0 %v11937_v36 }
 0x41c   : > { %5130 = vmatpush.msrb.mxu2 %v11484_v20  ;;  %5199 = vmatpush.msrb.mxu3 %v11936_v3  ;;  %v4267_v30 = vadd.f32 %v4266_v41, %v4213_v53 }
 0x41d   : > { %5086 = vmatpush.msrb.mxu0 %v11939_v62 }
 0x41e   : > { %5132 = vmatpush.msrb.mxu2 %v11487_v15  ;;  %5205 = vmatpush.msrb.mxu3 %v11938_v25  ;;  %v4306_v37 = vadd.f32 %v4305_v9, %v4267_v30 }
 0x420   : > { %5134 = vmatpush.msrb.mxu2 %v11490_v49  ;;  %5211 = vmatpush.msrb.mxu3 %v11940_v14 }
 0x422   : > { %5136 = vmatpush.msrb.mxu2 %v11493_v39  ;;  %5217 = vmatpush.msrb.mxu3 %v11941_v16 }
 0x424   : > { %5138 = vmatpush.msrb.mxu2 %v11496_v12  ;;  %5223 = vmatpush.msrb.mxu3 %v11942_v58 }
 0x426   : > { %5140 = vmatpush.msrb.mxu2 %v11499_v57  ;;  %5229 = vmatpush.msrb.mxu3 %v11943_v32 }
 0x428   : > { %5142 = vmatpush.msrb.mxu2 %v11501_v55  ;;  %5235 = vmatpush.msrb.mxu3 %v11944_v22 }
 0x42a   : > { %5144 = vmatpush.msrb.mxu2 %v11503_v45  ;;  %5241 = vmatpush.msrb.mxu3 %v11945_v50 }
 0x42c   : > { %5146 = vmatpush.msrb.mxu2 %v11505_v42  ;;  %5247 = vmatpush.msrb.mxu3 %v11946_v2 }
 0x42e   : > { %5148 = vmatpush.msrb.mxu2 %v11507_v63  ;;  %5253 = vmatpush.msrb.mxu3 %v11947_v1  ;;  %v4411_v46 = vpop.f32.mrf.mxu1 }
 0x430   : > { %5150 = vmatpush.msrb.mxu2 %v11509_v40  ;;  %5259 = vmatpush.msrb.mxu3 %v11948_v52  ;;  %v7060_v52 = vld [vmem:[%s7238_s29 + $0x58] sm:$0xff] }
 0x432   : > { %5152 = vmatpush.msrb.mxu2 %v11511_v48  ;;  %5265 = vmatpush.msrb.mxu3 %v11949_v44 }
 0x434   : > { %5154 = vmatpush.msrb.mxu2 %v11513_v4 }
 0x436   : > { %5156 = vmatpush.msrb.mxu2 %v11514_v43 }
 0x437   : > { %v4374_v54 = vpop.f32.mrf.mxu0 }
 0x438   : > { %5158 = vmatpush.msrb.mxu2 %v11515_v8  ;;  %v4375_v19 = vadd.f32 %v4374_v54, %v4306_v37 }
 0x43a   : > { %5160 = vmatpush.msrb.mxu2 %v11516_v27  ;;  %v4412_v33 = vadd.f32 %v4411_v46, %v4375_v19 }
 0x43c   : > { %v4419_v13 = vmul.f32 0.5, %v4412_v33  ;;  %v11979_v33 = vld [vmem:[#allocation173_spill] sm:$0xff] }
 0x43e   : > { %7107 = vtanh.f32 %v4419_v13  ;;  %v11980_v13 = vld [vmem:[#allocation149_spill] sm:$0xff] }
 0x444   : > { %v7108_v58 = vpop.eup %7107 }
 0x445   : > { %v4421_v2 = vadd.f32 1.0, %v7108_v58  ;;  %v11988_v58 = vld [vmem:[#allocation157_spill] sm:$0xff] }
 0x447   : > { %v4422_v0 = vmul.f32 0.5, %v4421_v2  ;;  %v11992_v2 = vld [vmem:[#allocation150_spill] sm:$0xff] }
 0x449   : > { %v4776_v26 = vsub.f32 1.0, %v4422_v0 }
 0x44b   : > { %v4777_v53 = vmul.f32 %v9218_v34, %v4776_v26  ;;  %v11998_v26 = vld [vmem:[#allocation160_spill] sm:$0xff] }
 0x473   : > { %v4626_v62 = vpop.f32.mrf.mxu0 }
 0x474   : > { %v4665_v16 = vpop.f32.mrf.mxu1 }
 0x476   : > { %v4572_v3 = vpop.f32.mrf.mxu3 }
 0x47e   : > { %v4471_v36 = vpop.f32.mrf.mxu2  ;;  %v4771_v1 = vpop.f32.mrf.mxu3 }
 0x47f   : > { %v4573_v25 = vadd.f32 %v4572_v3, %v4471_v36  ;;  %v11982_v3 = vld [vmem:[#allocation177_spill] sm:$0xff]  ;;  %v11983_v36 = vld [vmem:[#allocation152_spill] sm:$0xff] }
 0x481   : > { %v4627_v14 = vadd.f32 %v4626_v62, %v4573_v25  ;;  %v11984_v25 = vld [vmem:[#allocation181_spill] sm:$0xff] }
 0x482   : > { %v11985_v62 = vld [vmem:[#allocation153_spill] sm:$0xff] }
 0x483   : > { %v4666_v32 = vadd.f32 %v4665_v16, %v4627_v14  ;;  %v11986_v14 = vld [vmem:[#allocation146_spill] sm:$0xff] }
 0x484   : > { %v11987_v16 = vld [vmem:[#allocation186_spill] sm:$0xff] }
 0x486   : > { %v4734_v22 = vpop.f32.mrf.mxu2 }
 0x487   : > { %v4735_v50 = vadd.f32 %v4734_v22, %v4666_v32  ;;  %v11989_v32 = vld [vmem:[#allocation147_spill] sm:$0xff]  ;;  %v11990_v22 = vld [vmem:[#allocation190_spill] sm:$0xff] }
 0x489   : > { %v4772_v44 = vadd.f32 %v4771_v1, %v4735_v50  ;;  %v11991_v50 = vld [vmem:[#allocation163_spill] sm:$0xff]  ;;  %v11993_v1 = vld [vmem:[#allocation194_spill] sm:$0xff] }
 0x48b   : > { %v4774_v59 = vadd.f32 %v7060_v52, %v4772_v44  ;;  %v11994_v52 = vld [vmem:[#allocation167_spill] sm:$0xff]  ;;  %v11995_v44 = vld [vmem:[#allocation156_spill] sm:$0xff] }
 0x48d   : > { %7109 = vtanh.f32 %v4774_v59  ;;  %v11996_v59 = vld [vmem:[#allocation198_spill] sm:$0xff] }
 0x493   : > { %v7110_v11 = vpop.eup %7109 }
 0x494   : > { %v4778_v41 = vmul.f32 %v7110_v11, %v4422_v0  ;;  %v11997_v0 = vld [vmem:[#allocation171_spill] sm:$0xff]  ;;  %v11999_v11 = vld [vmem:[#allocation202_spill] sm:$0xff] }
 0x496   : > { %v4779_v30 = vadd.f32 %v4778_v41, %v4777_v53  ;;  %v12000_v53 = vld [vmem:[#allocation175_spill] sm:$0xff]  ;;  %v12001_v41 = vld [vmem:[#allocation164_spill] sm:$0xff] }
 0x498   : > { %7111 = vtanh.f32 %v4779_v30  ;;  %v12002_v30 = vld [vmem:[#allocation206_spill] sm:$0xff] }
 0x49e   : > { %v9653_v9 = vpop.eup %7111 }
 0x49f   : > { %7062 = vst [vmem:[%s7243_s17 + $0x10] sm:$0xff] %v9653_v9  ;;  %v9658_v54 = vand.u32 4294901760, %v9653_v9 }
 0x4a1   : > { %4926 = vmatmul.f32.vlgmr.msra.gmra.mxu1 %v9658_v54  ;;  %v9663_v37 = vsub.f32 %v9653_v9, %v9658_v54 }
 0x4a2   : > { %5326 = vmatpush.msra.mxu1 %v11484_v20 }
 0x4a3   : > { %4980 = vmatmul.f32.vlgmr.msra.gmra.mxu2 %v9663_v37  ;;  %v9668_v34 = vand.u32 4294901760, %v9663_v37 }
 0x4a4   : > { %5328 = vmatpush.msra.mxu1 %v11487_v15  ;;  %5367 = vmatpush.msra.mxu2 %v11517_v35  ;;  %v11957_v35 = vld [vmem:[#allocation95_spill] sm:$0xff] }
 0x4a5   : > { %5019 = vmatmul.f32.vlgmr.msra.gmra.mxu3 %v9668_v34  ;;  %v4823_v19 = vsub.f32 %v9663_v37, %v9668_v34 }
 0x4a6   : > { %5330 = vmatpush.msra.mxu1 %v11490_v49  ;;  %5371 = vmatpush.msra.mxu2 %v11518_v10  ;;  %v11959_v10 = vld [vmem:[#allocation102_spill] sm:$0xff] }
 0x4a7   : > { %5434 = vmatpush.msra.mxu3 %v11484_v20  ;;  %v9678_v46 = vand.u32 4294901760, %v4823_v19  ;;  %v11950_v20 = vld [vmem:[#allocation101_spill] sm:$0xff]  ;;  %v12003_v19 = vld [vmem:[#allocation179_spill] sm:$0xff] }
 0x4a8   : > { %5332 = vmatpush.msra.mxu1 %v11493_v39  ;;  %5375 = vmatpush.msra.mxu2 %v11519_v18  ;;  %v11961_v18 = vld [vmem:[#allocation106_spill] sm:$0xff] }
 0x4a9   : > { %5436 = vmatpush.msra.mxu3 %v11487_v15  ;;  %4825 = vmatmul.f32.vlgmr.msra.gmra.mxu0 %v9678_v46  ;;  %v11952_v15 = vld [vmem:[#allocation104_spill] sm:$0xff] }
 0x4aa   : > { %5125 = vmatmul.f32.vlgmr.msrb.gmra.mxu1 %v9658_v54  ;;  %5273 = vmatpush.msra.mxu0 %v11520_v38  ;;  %v11963_v38 = vld [vmem:[#allocation113_spill] sm:$0xff] }
 0x4ab   : > { %5334 = vmatpush.msra.mxu1 %v11496_v12  ;;  %5379 = vmatpush.msra.mxu2 %v11734_v60  ;;  %v11965_v60 = vld [vmem:[#allocation117_spill] sm:$0xff] }
 0x4ac   : > { %5438 = vmatpush.msra.mxu3 %v11490_v49  ;;  %5166 = vmatmul.f32.vlgmr.msrb.gmra.mxu2 %v9678_v46  ;;  %v11955_v49 = vld [vmem:[#allocation93_spill] sm:$0xff] }
 0x4ad   : > { %5276 = vmatpush.msra.mxu0 %v11735_v24  ;;  %5336 = vmatpush.msra.mxu1 %v11499_v57  ;;  %v11967_v24 = vld [vmem:[#allocation131_spill] sm:$0xff] }
 0x4ae   : > { %5383 = vmatpush.msra.mxu2 %v11736_v28  ;;  %5440 = vmatpush.msra.mxu3 %v11493_v39  ;;  %v11951_v39 = vld [vmem:[#allocation83_spill] sm:$0xff]  ;;  %v11969_v28 = vld [vmem:[#allocation138_spill] sm:$0xff] }
 0x4af   : > { %5267 = vmatmul.f32.vlgmr.msrb.gmra.mxu3 %v9658_v54  ;;  %5279 = vmatpush.msra.mxu0 %v11737_v23  ;;  %v11970_v23 = vld [vmem:[#allocation122_spill] sm:$0xff] }
 0x4b0   : > { %5338 = vmatpush.msra.mxu1 %v11501_v55  ;;  %5387 = vmatpush.msra.mxu2 %v11738_v5  ;;  %v11972_v5 = vld [vmem:[#allocation126_spill] sm:$0xff] }
 0x4b1   : > { %5442 = vmatpush.msra.mxu3 %v11496_v12  ;;  %5282 = vmatpush.msra.mxu0 %v11739_v29  ;;  %v11953_v12 = vld [vmem:[#allocation89_spill] sm:$0xff] }
 0x4b2   : > { %5340 = vmatpush.msra.mxu1 %v11503_v45  ;;  %5391 = vmatpush.msra.mxu2 %v11740_v21  ;;  %v11974_v29 = vld [vmem:[#allocation137_spill] sm:$0xff]  ;;  %v11975_v21 = vld [vmem:[#allocation128_spill] sm:$0xff] }
 0x4b3   : > { %5444 = vmatpush.msra.mxu3 %v11499_v57  ;;  %5088 = vmatmul.f32.vlgmr.msrb.gmra.mxu0 %v9658_v54  ;;  %v11954_v57 = vld [vmem:[#allocation108_spill] sm:$0xff] }
 0x4b4   : > { %5285 = vmatpush.msra.mxu0 %v11741_v6  ;;  %5342 = vmatpush.msra.mxu1 %v11505_v42  ;;  %v11976_v6 = vld [vmem:[#allocation169_spill] sm:$0xff] }
 0x4b5   : > { %5395 = vmatpush.msra.mxu2 %v11950_v20  ;;  %5446 = vmatpush.msra.mxu3 %v11501_v55  ;;  %v11956_v55 = vld [vmem:[#allocation111_spill] sm:$0xff]  ;;  %v12004_v20 = vld [vmem:[#allocation168_spill] sm:$0xff] }
 0x4b6   : > { %5288 = vmatpush.msra.mxu0 %v11951_v39  ;;  %5344 = vmatpush.msra.mxu1 %v11507_v63  ;;  %v12005_v39 = vld [vmem:[#allocation209_spill] sm:$0xff] }
 0x4b7   : > { %5399 = vmatpush.msra.mxu2 %v11952_v15  ;;  %5448 = vmatpush.msra.mxu3 %v11503_v45  ;;  %v11958_v45 = vld [vmem:[#allocation118_spill] sm:$0xff]  ;;  %v12006_v15 = vld [vmem:[#allocation183_spill] sm:$0xff] }
 0x4b8   : > { %5291 = vmatpush.msra.mxu0 %v11953_v12  ;;  %5346 = vmatpush.msra.mxu1 %v11509_v40  ;;  %v12007_v12 = vld [vmem:[#allocation172_spill] sm:$0xff] }
 0x4b9   : > { %5403 = vmatpush.msra.mxu2 %v11954_v57  ;;  %5450 = vmatpush.msra.mxu3 %v11505_v42  ;;  %v11960_v42 = vld [vmem:[#allocation124_spill] sm:$0xff]  ;;  %v12008_v57 = vld [vmem:[#allocation213_spill] sm:$0xff] }
 0x4ba   : > { %5294 = vmatpush.msra.mxu0 %v11955_v49  ;;  %5348 = vmatpush.msra.mxu1 %v11511_v48  ;;  %v12009_v49 = vld [vmem:[#allocation188_spill] sm:$0xff] }
 0x4bb   : > { %5407 = vmatpush.msra.mxu2 %v11956_v55  ;;  %5452 = vmatpush.msra.mxu3 %v11507_v63  ;;  %v11962_v63 = vld [vmem:[#allocation127_spill] sm:$0xff]  ;;  %v12010_v55 = vld [vmem:[#allocation176_spill] sm:$0xff] }
 0x4bc   : > { %5297 = vmatpush.msra.mxu0 %v11957_v35  ;;  %5350 = vmatpush.msra.mxu1 %v11513_v4  ;;  %v12011_v35 = vld [vmem:[#allocation192_spill] sm:$0xff] }
 0x4bd   : > { %5411 = vmatpush.msra.mxu2 %v11958_v45  ;;  %5454 = vmatpush.msra.mxu3 %v11509_v40  ;;  %v11964_v40 = vld [vmem:[#allocation130_spill] sm:$0xff]  ;;  %v12012_v45 = vld [vmem:[#allocation180_spill] sm:$0xff] }
 0x4be   : > { %5300 = vmatpush.msra.mxu0 %v11959_v10  ;;  %5352 = vmatpush.msra.mxu1 %v11514_v43  ;;  %v12013_v10 = vld [vmem:[#allocation184_spill] sm:$0xff] }
 0x4bf   : > { %5415 = vmatpush.msra.mxu2 %v11960_v42  ;;  %5456 = vmatpush.msra.mxu3 %v11511_v48  ;;  %v11966_v48 = vld [vmem:[#allocation154_spill] sm:$0xff] }
 0x4c0   : > { %5303 = vmatpush.msra.mxu0 %v11961_v18  ;;  %5354 = vmatpush.msra.mxu1 %v11515_v8  ;;  %v12016_v42 = vld [vmem:[#allocation142_spill] sm:$0xff]  ;;  %v12018_v18 = vld [vmem:[#allocation196_spill] sm:$0xff] }
 0x4c1   : > { %5419 = vmatpush.msra.mxu2 %v11962_v63  ;;  %5458 = vmatpush.msra.mxu3 %v11513_v4  ;;  %v11968_v4 = vld [vmem:[#allocation158_spill] sm:$0xff]  ;;  %v12019_v63 = vld [vmem:[#allocation144_spill] sm:$0xff] }
 0x4c2   : > { %5306 = vmatpush.msra.mxu0 %v11963_v38  ;;  %5356 = vmatpush.msra.mxu1 %v11516_v27  ;;  %v12020_v38 = vld [vmem:[#allocation229_spill] sm:$0xff] }
 0x4c3   : > { %5423 = vmatpush.msra.mxu2 %v11964_v40  ;;  %5460 = vmatpush.msra.mxu3 %v11514_v43  ;;  %v11971_v43 = vld [vmem:[#allocation140_spill] sm:$0xff] }
 0x4c4   : > { %5360 = vmatmul.f32.vlgmr.msra.gmra.mxu1 %v9668_v34  ;;  %5309 = vmatpush.msra.mxu0 %v11965_v60  ;;  %v12021_v40 = vld [vmem:[#allocation200_spill] sm:$0xff] }
 0x4c5   : > { %5516 = vmatpush.msrb.mxu1 %v11966_v48  ;;  %5427 = vmatpush.msra.mxu2 %v11967_v24  ;;  %v12022_v60 = vld [vmem:[#allocation148_spill] sm:$0xff]  ;;  %v12025_v48 = vld [vmem:[#allocation151_spill] sm:$0xff] }
 0x4c6   : > { %5462 = vmatpush.msra.mxu3 %v11515_v8  ;;  %5429 = vmatmul.f32.vlgmr.msra.gmra.mxu2 %v9658_v54  ;;  %v11973_v8 = vld [vmem:[#allocation143_spill] sm:$0xff] }
 0x4c7   : > { %5522 = vmatpush.msrb.mxu1 %v11968_v4  ;;  %5614 = vmatpush.msrb.mxu2 %v11969_v28  ;;  %v12026_v24 = vld [vmem:[#allocation235_spill] sm:$0xff]  ;;  %v12027_v4 = vld [vmem:[#allocation208_spill] sm:$0xff] }
 0x4c8   : > { %5312 = vmatpush.msra.mxu0 %v11970_v23  ;;  %5464 = vmatpush.msra.mxu3 %v11516_v27  ;;  %v11977_v27 = vld [vmem:[#allocation145_spill] sm:$0xff]  ;;  %v12028_v28 = vld [vmem:[#allocation155_spill] sm:$0xff]  ;;  %v12029_v23 = vld [vmem:[#allocation238_spill] sm:$0xff] }
 0x4c9   : > { %5466 = vmatmul.f32.vlgmr.msra.gmra.mxu3 %v9658_v54  ;;  %5528 = vmatpush.msrb.mxu1 %v11763_v56  ;;  %v11978_v56 = vld [vmem:[#allocation139_spill] sm:$0xff] }
 0x4ca   : > { %5617 = vmatpush.msrb.mxu2 %v11971_v43  ;;  %5667 = vmatpush.msrb.mxu3 %v11552_v7  ;;  %v12030_v43 = vld [vmem:[#allocation212_spill] sm:$0xff] }
 0x4cb   : > { %5315 = vmatpush.msra.mxu0 %v11972_v5  ;;  %5534 = vmatpush.msrb.mxu1 %v11766_v61  ;;  %v11981_v61 = vld [vmem:[#allocation141_spill] sm:$0xff]  ;;  %v12031_v5 = vld [vmem:[#allocation159_spill] sm:$0xff] }
 0x4cc   : > { %5620 = vmatpush.msrb.mxu2 %v11973_v8  ;;  %5669 = vmatpush.msrb.mxu3 %v11974_v29  ;;  %v12032_v8 = vld [vmem:[#allocation239_spill] sm:$0xff] }
 0x4cd   : > { %5318 = vmatpush.msra.mxu0 %v11975_v21  ;;  %5540 = vmatpush.msrb.mxu1 %v11976_v6  ;;  %v12034_v21 = vld [vmem:[#allocation161_spill] sm:$0xff] }
 0x4ce   : > { %5321 = vmatmul.f32.vlgmr.msra.gmra.mxu0 %v9663_v37  ;;  %5623 = vmatpush.msrb.mxu2 %v11977_v27  ;;  %v12035_v6 = vld [vmem:[#allocation241_spill] sm:$0xff]  ;;  %v12036_v27 = vld [vmem:[#allocation220_spill] sm:$0xff] }
 0x4cf   : > { %5471 = vmatpush.msrb.mxu0 %v11552_v7  ;;  %5671 = vmatpush.msrb.mxu3 %v11978_v56 }
 0x4d0   : > { %5546 = vmatpush.msrb.mxu1 %v11979_v33  ;;  %5626 = vmatpush.msrb.mxu2 %v11980_v13  ;;  %v12038_v33 = vld [vmem:[#allocation244_spill] sm:$0xff] }
 0x4d1   : > { %5473 = vmatpush.msrb.mxu0 %v11974_v29  ;;  %5673 = vmatpush.msrb.mxu3 %v11981_v61  ;;  %v12039_v13 = vld [vmem:[#allocation224_spill] sm:$0xff] }
 0x4d2   : > { %5552 = vmatpush.msrb.mxu1 %v11982_v3  ;;  %5629 = vmatpush.msrb.mxu2 %v11983_v36  ;;  %v12041_v3 = vld [vmem:[#allocation248_spill] sm:$0xff]  ;;  %v12042_v36 = vld [vmem:[#allocation225_spill] sm:$0xff] }
 0x4d3   : > { %5475 = vmatpush.msrb.mxu0 %v11978_v56  ;;  %5675 = vmatpush.msrb.mxu3 %v7968_v47 }
 0x4d4   : > { %5558 = vmatpush.msrb.mxu1 %v11984_v25  ;;  %5632 = vmatpush.msrb.mxu2 %v11985_v62  ;;  %v12043_v25 = vld [vmem:[#allocation174_spill] sm:$0xff]  ;;  %v12044_v62 = vld [vmem:[#allocation252_spill] sm:$0xff] }
 0x4d5   : > { %5477 = vmatpush.msrb.mxu0 %v11981_v61  ;;  %5677 = vmatpush.msrb.mxu3 %v11986_v14 }
 0x4d6   : > { %5564 = vmatpush.msrb.mxu1 %v11987_v16  ;;  %5635 = vmatpush.msrb.mxu2 %v11988_v58  ;;  %v12046_v16 = vld [vmem:[#allocation178_spill] sm:$0xff]  ;;  %v12047_v58 = vld [vmem:[#allocation256_spill] sm:$0xff] }
 0x4d7   : > { %5479 = vmatpush.msrb.mxu0 %v7968_v47  ;;  %5679 = vmatpush.msrb.mxu3 %v11989_v32 }
 0x4d8   : > { %5570 = vmatpush.msrb.mxu1 %v11990_v22  ;;  %5638 = vmatpush.msrb.mxu2 %v11991_v50  ;;  %v12049_v22 = vld [vmem:[#allocation182_spill] sm:$0xff]  ;;  %v12050_v50 = vld [vmem:[#allocation259_spill] sm:$0xff] }
 0x4d9   : > { %5481 = vmatpush.msrb.mxu0 %v11986_v14  ;;  %5681 = vmatpush.msrb.mxu3 %v11992_v2 }
 0x4da   : > { %5576 = vmatpush.msrb.mxu1 %v11993_v1  ;;  %5641 = vmatpush.msrb.mxu2 %v11994_v52  ;;  %v12052_v1 = vld [vmem:[#allocation247_spill] sm:$0xff]  ;;  %v12053_v52 = vld [vmem:[#allocation261_spill] sm:$0xff] }
 0x4db   : > { %5483 = vmatpush.msrb.mxu0 %v11989_v32  ;;  %5683 = vmatpush.msrb.mxu3 %v11995_v44 }
 0x4dc   : > { %5582 = vmatpush.msrb.mxu1 %v11996_v59  ;;  %5644 = vmatpush.msrb.mxu2 %v11997_v0  ;;  %v12055_v59 = vld [vmem:[#allocation251_spill] sm:$0xff]  ;;  %v12056_v0 = vld [vmem:[#allocation262_spill] sm:$0xff] }
 0x4dd   : > { %5485 = vmatpush.msrb.mxu0 %v11992_v2  ;;  %5685 = vmatpush.msrb.mxu3 %v11998_v26 }
 0x4de   : > { %5588 = vmatpush.msrb.mxu1 %v11999_v11  ;;  %5647 = vmatpush.msrb.mxu2 %v12000_v53  ;;  %v12058_v11 = vld [vmem:[#allocation255_spill] sm:$0xff] }
 0x4df   : > { %5487 = vmatpush.msrb.mxu0 %v11995_v44  ;;  %5687 = vmatpush.msrb.mxu3 %v12001_v41  ;;  %v12059_v53 = vld [vmem:[#allocation199_spill] sm:$0xff] }
 0x4e0   : > { %5594 = vmatpush.msrb.mxu1 %v12002_v30  ;;  %5650 = vmatpush.msrb.mxu2 %v12003_v19  ;;  %v12061_v30 = vld [vmem:[#allocation201_spill] sm:$0xff] }
 0x4e1   : > { %5489 = vmatpush.msrb.mxu0 %v11998_v26  ;;  %5689 = vmatpush.msrb.mxu3 %v12004_v20  ;;  %v12063_v19 = vld [vmem:[#allocation205_spill] sm:$0xff] }
 0x4e2   : > { %5600 = vmatpush.msrb.mxu1 %v12005_v39  ;;  %5653 = vmatpush.msrb.mxu2 %v12006_v15  ;;  %v12067_v39 = vld [vmem:[#allocation214_spill] sm:$0xff]  ;;  %v12068_v15 = vld [vmem:[#allocation211_spill] sm:$0xff] }
 0x4e3   : > { %5491 = vmatpush.msrb.mxu0 %v12001_v41  ;;  %5691 = vmatpush.msrb.mxu3 %v12007_v12 }
 0x4e4   : > { %5606 = vmatpush.msrb.mxu1 %v12008_v57  ;;  %5656 = vmatpush.msrb.mxu2 %v12009_v49  ;;  %v12070_v57 = vld [vmem:[#allocation215_spill] sm:$0xff]  ;;  %v12071_v49 = vld [vmem:[#allocation222_spill] sm:$0xff] }
 0x4e5   : > { %5493 = vmatpush.msrb.mxu0 %v12004_v20  ;;  %5693 = vmatpush.msrb.mxu3 %v12010_v55 }
 0x4e6   : > { %5608 = vmatmul.f32.vlgmr.msrb.gmra.mxu1 %v9658_v54  ;;  %5659 = vmatpush.msrb.mxu2 %v12011_v35  ;;  %v12073_v35 = vld [vmem:[#allocation227_spill] sm:$0xff] }
 0x4e7   : > { %5775 = vmatpush.msra.mxu1 %v11552_v7  ;;  %5495 = vmatpush.msrb.mxu0 %v12007_v12  ;;  %v12014_v7 = vld [vmem:[#allocation217_spill] sm:$0xff] }
 0x4e8   : > { %5695 = vmatpush.msrb.mxu3 %v12012_v45  ;;  %5662 = vmatmul.f32.vlgmr.msrb.gmra.mxu2 %v9663_v37  ;;  %v12015_v37 = vld [vmem:[#allocation221_spill] sm:$0xff] }
 0x4e9   : > { %5777 = vmatpush.msra.mxu1 %v11974_v29  ;;  %5497 = vmatpush.msrb.mxu0 %v12010_v55  ;;  %v12033_v29 = vld [vmem:[#allocation216_spill] sm:$0xff] }
 0x4ea   : > { %5697 = vmatpush.msrb.mxu3 %v12013_v10  ;;  %5831 = vmatpush.msra.mxu2 %v11796_v17 }
 0x4eb   : > { %5701 = vmatmul.f32.vlgmr.msrb.gmra.mxu3 %v9668_v34  ;;  %5779 = vmatpush.msra.mxu1 %v11978_v56  ;;  %v12017_v34 = vld [vmem:[#allocation226_spill] sm:$0xff]  ;;  %v12037_v56 = vld [vmem:[#allocation165_spill] sm:$0xff] }
 0x4ec   : > { %5499 = vmatpush.msrb.mxu0 %v12012_v45  ;;  %5876 = vmatpush.msra.mxu3 %v12014_v7  ;;  %v12076_v7 = vld [vmem:[#allocation228_spill] sm:$0xff] }
 0x4ed   : > { %5781 = vmatpush.msra.mxu1 %v11981_v61  ;;  %5833 = vmatpush.msra.mxu2 %v11798_v51  ;;  %v12040_v61 = vld [vmem:[#allocation170_spill] sm:$0xff] }
 0x4ee   : > { %5501 = vmatpush.msrb.mxu0 %v12013_v10  ;;  %5882 = vmatpush.msra.mxu3 %v12015_v37  ;;  %v12077_v37 = vld [vmem:[#allocation234_spill] sm:$0xff] }
 0x4ef   : > { %5507 = vmatmul.f32.vlgmr.msrb.gmra.mxu0 %v9678_v46  ;;  %5783 = vmatpush.msra.mxu1 %v7968_v47  ;;  %v12023_v46 = vld [vmem:[#allocation233_spill] sm:$0xff]  ;;  %v12024_v47 = vld [vmem:[#allocation204_spill] sm:$0xff] }
 0x4f0   : > { %5708 = vmatpush.msra.mxu0 %v12016_v42  ;;  %5888 = vmatpush.msra.mxu3 %v12017_v34  ;;  %v12078_v42 = vld [vmem:[#allocation231_spill] sm:$0xff]  ;;  %v12079_v34 = vld [vmem:[#allocation236_spill] sm:$0xff] }
 0x4f1   : > { %5785 = vmatpush.msra.mxu1 %v11986_v14  ;;  %5835 = vmatpush.msra.mxu2 %v12018_v18  ;;  %v12045_v14 = vld [vmem:[#allocation240_spill] sm:$0xff] }
 0x4f2   : > { %5712 = vmatpush.msra.mxu0 %v12019_v63  ;;  %5894 = vmatpush.msra.mxu3 %v12020_v38  ;;  %v12080_v63 = vld [vmem:[#allocation232_spill] sm:$0xff]  ;;  %v12081_v38 = vld [vmem:[#allocation237_spill] sm:$0xff] }
 0x4f3   : > { %5787 = vmatpush.msra.mxu1 %v11989_v32  ;;  %5837 = vmatpush.msra.mxu2 %v12021_v40  ;;  %v12048_v32 = vld [vmem:[#allocation243_spill] sm:$0xff] }
 0x4f4   : > { %5716 = vmatpush.msra.mxu0 %v12022_v60  ;;  %5900 = vmatpush.msra.mxu3 %v12023_v46  ;;  %v12082_v60 = vld [vmem:[#allocation242_spill] sm:$0xff] }
 0x4f5   : > { %5789 = vmatpush.msra.mxu1 %v11992_v2  ;;  %5839 = vmatpush.msra.mxu2 %v12024_v47  ;;  %v12051_v2 = vld [vmem:[#allocation187_spill] sm:$0xff] }
 0x4f6   : > { %5720 = vmatpush.msra.mxu0 %v12025_v48  ;;  %5906 = vmatpush.msra.mxu3 %v12026_v24  ;;  %v12084_v24 = vld [vmem:[#allocation246_spill] sm:$0xff] }
 0x4f7   : > { %5791 = vmatpush.msra.mxu1 %v11995_v44  ;;  %5841 = vmatpush.msra.mxu2 %v12027_v4  ;;  %v12054_v44 = vld [vmem:[#allocation191_spill] sm:$0xff] }
 0x4f8   : > { %5724 = vmatpush.msra.mxu0 %v12028_v28  ;;  %5912 = vmatpush.msra.mxu3 %v12029_v23  ;;  %v12085_v28 = vld [vmem:[#allocation249_spill] sm:$0xff] }
 0x4f9   : > { %5793 = vmatpush.msra.mxu1 %v11998_v26  ;;  %5843 = vmatpush.msra.mxu2 %v12030_v43  ;;  %v12057_v26 = vld [vmem:[#allocation195_spill] sm:$0xff] }
 0x4fa   : > { %5728 = vmatpush.msra.mxu0 %v12031_v5  ;;  %5918 = vmatpush.msra.mxu3 %v12032_v8  ;;  %v12087_v8 = vld [vmem:[#allocation253_spill] sm:$0xff] }
 0x4fb   : > { %5795 = vmatpush.msra.mxu1 %v12001_v41  ;;  %5845 = vmatpush.msra.mxu2 %v12033_v29  ;;  %v12060_v41 = vld [vmem:[#allocation193_spill] sm:$0xff] }
 0x4fc   : > { %5732 = vmatpush.msra.mxu0 %v12034_v21  ;;  %5924 = vmatpush.msra.mxu3 %v12035_v6  ;;  %v12088_v21 = vld [vmem:[#allocation254_spill] sm:$0xff] }
 0x4fd   : > { %5797 = vmatpush.msra.mxu1 %v12004_v20  ;;  %5847 = vmatpush.msra.mxu2 %v12036_v27  ;;  %v12066_v20 = vld [vmem:[#allocation207_spill] sm:$0xff] }
 0x4fe   : > { %5736 = vmatpush.msra.mxu0 %v12037_v56  ;;  %5930 = vmatpush.msra.mxu3 %v12038_v33  ;;  %v12090_v56 = vld [vmem:[#allocation258_spill] sm:$0xff]  ;;  %v12091_v33 = vld [vmem:[#allocation260_spill] sm:$0xff] }
 0x4ff   : > { %5799 = vmatpush.msra.mxu1 %v12007_v12  ;;  %5849 = vmatpush.msra.mxu2 %v12039_v13  ;;  %v12069_v12 = vld [vmem:[#allocation218_spill] sm:$0xff] }
 0x500   : > { %5740 = vmatpush.msra.mxu0 %v12040_v61  ;;  %5936 = vmatpush.msra.mxu3 %v12041_v3 }
 0x501   : > { %5801 = vmatpush.msra.mxu1 %v12010_v55  ;;  %5851 = vmatpush.msra.mxu2 %v12042_v36  ;;  %v12072_v55 = vld [vmem:[#allocation219_spill] sm:$0xff] }
 0x502   : > { %5744 = vmatpush.msra.mxu0 %v12043_v25  ;;  %5942 = vmatpush.msra.mxu3 %v12044_v62  ;;  %v12092_v62 = vld [vmem:[#allocation59_spill] sm:$0xff] }
 0x503   : > { %5803 = vmatpush.msra.mxu1 %v12012_v45  ;;  %5853 = vmatpush.msra.mxu2 %v12045_v14  ;;  %v12074_v45 = vld [vmem:[#allocation223_spill] sm:$0xff] }
 0x504   : > { %5748 = vmatpush.msra.mxu0 %v12046_v16  ;;  %5948 = vmatpush.msra.mxu3 %v12047_v58 }
 0x505   : > { %5805 = vmatpush.msra.mxu1 %v12013_v10  ;;  %5855 = vmatpush.msra.mxu2 %v12048_v32  ;;  %v12075_v10 = vld [vmem:[#allocation230_spill] sm:$0xff] }
 0x506   : > { %5752 = vmatpush.msra.mxu0 %v12049_v22  ;;  %5807 = vmatmul.f32.vlgmr.msra.gmra.mxu1 %v9658_v54  ;;  %v7064_v22 = vld [vmem:[%s7238_s29 + $0x68] sm:$0xff] }
 0x507   : > { %5954 = vmatpush.msra.mxu3 %v12050_v50  ;;  %6027 = vmatpush.msrb.mxu1 %v11796_v17 }
 0x508   : > { %5756 = vmatpush.msra.mxu0 %v12051_v2  ;;  %5857 = vmatpush.msra.mxu2 %v12052_v1 }
 0x509   : > { %5960 = vmatpush.msra.mxu3 %v12053_v52  ;;  %6029 = vmatpush.msrb.mxu1 %v11798_v51 }
 0x50a   : > { %5760 = vmatpush.msra.mxu0 %v12054_v44  ;;  %5859 = vmatpush.msra.mxu2 %v12055_v59 }
 0x50b   : > { %5966 = vmatpush.msra.mxu3 %v12056_v0  ;;  %6031 = vmatpush.msrb.mxu1 %v12018_v18 }
 0x50c   : > { %5764 = vmatpush.msra.mxu0 %v12057_v26  ;;  %5861 = vmatpush.msra.mxu2 %v12058_v11 }
 0x50d   : > { %6135 = vmatpush.msrb.mxu3 %v11796_v17  ;;  %6033 = vmatpush.msrb.mxu1 %v12021_v40  ;;  %v12062_v17 = vld [vmem:[#allocation197_spill] sm:$0xff] }
 0x50e   : > { %5768 = vmatpush.msra.mxu0 %v12059_v53  ;;  %6068 = vmatpush.msrb.mxu2 %v12061_v30 }
 0x50f   : > { %6137 = vmatpush.msrb.mxu3 %v11798_v51  ;;  %5770 = vmatmul.f32.vlgmr.msra.gmra.mxu0 %v9658_v54  ;;  %v12064_v51 = vld [vmem:[#allocation203_spill] sm:$0xff]  ;;  %v12065_v54 = vld [vmem:[#allocation210_spill] sm:$0xff] }
 0x510   : > { %6035 = vmatpush.msrb.mxu1 %v12024_v47  ;;  %5974 = vmatpush.msrb.mxu0 %v12060_v41 }
 0x511   : > { %6139 = vmatpush.msrb.mxu3 %v12018_v18  ;;  %6072 = vmatpush.msrb.mxu2 %v12063_v19  ;;  %v7063_v18 = vld [vmem:[%s7238_s29 + $0x60] sm:$0xff] }
 0x512   : > { %6037 = vmatpush.msrb.mxu1 %v12027_v4  ;;  %5977 = vmatpush.msrb.mxu0 %v12062_v17 }
 0x513   : > { %6141 = vmatpush.msrb.mxu3 %v12021_v40  ;;  %6076 = vmatpush.msrb.mxu2 %v12065_v54 }
 0x514   : > { %6039 = vmatpush.msrb.mxu1 %v12030_v43  ;;  %5980 = vmatpush.msrb.mxu0 %v12064_v51 }
 0x515   : > { %6143 = vmatpush.msrb.mxu3 %v12024_v47  ;;  %6080 = vmatpush.msrb.mxu2 %v12067_v39  ;;  %v12083_v47 = vld [vmem:[#allocation245_spill] sm:$0xff] }
 0x516   : > { %6041 = vmatpush.msrb.mxu1 %v12033_v29  ;;  %5983 = vmatpush.msrb.mxu0 %v12066_v20 }
 0x517   : > { %6145 = vmatpush.msrb.mxu3 %v12027_v4  ;;  %6084 = vmatpush.msrb.mxu2 %v12069_v12 }
 0x518   : > { %6043 = vmatpush.msrb.mxu1 %v12036_v27  ;;  %5986 = vmatpush.msrb.mxu0 %v12068_v15 }
 0x519   : > { %6147 = vmatpush.msrb.mxu3 %v12030_v43  ;;  %6088 = vmatpush.msrb.mxu2 %v12071_v49  ;;  %v12086_v43 = vld [vmem:[#allocation250_spill] sm:$0xff] }
 0x51a   : > { %6045 = vmatpush.msrb.mxu1 %v12039_v13  ;;  %5989 = vmatpush.msrb.mxu0 %v12070_v57 }
 0x51b   : > { %6149 = vmatpush.msrb.mxu3 %v12033_v29  ;;  %6092 = vmatpush.msrb.mxu2 %v12073_v35 }
 0x51c   : > { %6047 = vmatpush.msrb.mxu1 %v12042_v36  ;;  %5992 = vmatpush.msrb.mxu0 %v12072_v55 }
 0x51d   : > { %6151 = vmatpush.msrb.mxu3 %v12036_v27  ;;  %6096 = vmatpush.msrb.mxu2 %v12075_v10  ;;  %v12089_v27 = vld [vmem:[#allocation257_spill] sm:$0xff] }
 0x51e   : > { %6049 = vmatpush.msrb.mxu1 %v12045_v14  ;;  %5995 = vmatpush.msrb.mxu0 %v12074_v45  ;;  %v4927_v48 = vpop.f32.mrf.mxu1 }
 0x51f   : > { %6153 = vmatpush.msrb.mxu3 %v12039_v13  ;;  %6100 = vmatpush.msrb.mxu2 %v12077_v37 }
 0x520   : > { %6051 = vmatpush.msrb.mxu1 %v12048_v32  ;;  %5998 = vmatpush.msrb.mxu0 %v12076_v7  ;;  %v7065_v7 = vld [vmem:[%s7238_s29 + $0x70] sm:$0xff] }
 0x521   : > { %6155 = vmatpush.msrb.mxu3 %v12042_v36  ;;  %6104 = vmatpush.msrb.mxu2 %v12079_v34 }
 0x522   : > { %6053 = vmatpush.msrb.mxu1 %v12052_v1  ;;  %6001 = vmatpush.msrb.mxu0 %v12078_v42 }
 0x523   : > { %6157 = vmatpush.msrb.mxu3 %v12045_v14  ;;  %6108 = vmatpush.msrb.mxu2 %v12081_v38 }
 0x524   : > { %6055 = vmatpush.msrb.mxu1 %v12055_v59  ;;  %6004 = vmatpush.msrb.mxu0 %v12080_v63 }
 0x525   : > { %6159 = vmatpush.msrb.mxu3 %v12048_v32  ;;  %6112 = vmatpush.msrb.mxu2 %v12083_v47  ;;  %v4431_v32 = vmax.f32 %v9589_v31, 0.0 }
 0x526   : > { %6057 = vmatpush.msrb.mxu1 %v12058_v11  ;;  %v4826_v40 = vpop.f32.mrf.mxu0  ;;  %6007 = vmatpush.msrb.mxu0 %v12082_v60  ;;  %v4981_v23 = vpop.f32.mrf.mxu2 }
 0x527   : > { %6161 = vmatpush.msrb.mxu3 %v12052_v1  ;;  %v4827_v46 = vadd.f32 %v7063_v18, %v4826_v40  ;;  %6116 = vmatpush.msrb.mxu2 %v12085_v28  ;;  %v5126_v3 = vpop.f32.mrf.mxu1 }
 0x528   : > { %6010 = vmatpush.msrb.mxu0 %v12084_v24  ;;  %v5020_v29 = vpop.f32.mrf.mxu3 }
 0x529   : > { %6163 = vmatpush.msrb.mxu3 %v12055_v59  ;;  %v4928_v4 = vadd.f32 %v4927_v48, %v4827_v46  ;;  %6120 = vmatpush.msrb.mxu2 %v12087_v8 }
 0x52a   : > { %6013 = vmatpush.msrb.mxu0 %v12086_v43 }
 0x52b   : > { %6165 = vmatpush.msrb.mxu3 %v12058_v11  ;;  %v4982_v5 = vadd.f32 %v4981_v23, %v4928_v4  ;;  %6124 = vmatpush.msrb.mxu2 %v12089_v27 }
 0x52c   : > { %6016 = vmatpush.msrb.mxu0 %v12088_v21 }
 0x52d   : > { %v5021_v6 = vadd.f32 %v5020_v29, %v4982_v5  ;;  %6128 = vmatpush.msrb.mxu2 %v12091_v33 }
 0x52e   : > { %6019 = vmatpush.msrb.mxu0 %v12090_v56 }
 0x52f   : > { %v5167_v50 = vpop.f32.mrf.mxu2 }
 0x530   : > { %v5089_v13 = vpop.f32.mrf.mxu0  ;;  %v5168_v59 = vadd.f32 %v7064_v22, %v5167_v50 }
 0x531   : > { %v5090_v61 = vadd.f32 %v5089_v13, %v5021_v6 }
 0x532   : > { %v5268_v26 = vpop.f32.mrf.mxu3 }
 0x533   : > { %v5127_v36 = vadd.f32 %v5126_v3, %v5090_v61  ;;  %v5269_v53 = vadd.f32 %v5268_v26, %v5168_v59  ;;  %v7066_v61 = vld [vmem:[%s7238_s29 + $0x78] sm:$0xff] }
 0x535   : > { %7113 = vtanh.f32 %v5127_v36 }
 0x53b   : > { %v7114_v25 = vpop.eup %7113 }
 0x53c   : > { %v5820_v14 = vadd.f32 %v7114_v25, %v12092_v62 }
 0x53e   : > { %v5821_v16 = vmax.f32 %v5820_v14, 0.0 }
 0x540   : > { %v7067_v58 = vadd.f32 -1.0, %v5821_v16 }
 0x541   : > { %v5361_v19 = vpop.f32.mrf.mxu1 }
 0x542   : > { %vm5823_vm3 = vcmp.le.f32.partialorder %v7067_v58, 0.0 }
 0x543   : > { %v9949_v2 = vsel %vm5823_vm3, 0.0, %v7067_v58  ;;  %v5825_v1 = vsel %vm5823_vm3, %v4431_v32, 0.0  ;;  %v5826_v52 = vsel %vm5823_vm3, 0.0, %v4431_v32 }
 0x544   : > { %v5829_v44 = vmul.f32 %v9653_v9, %v5825_v1  ;;  %6182 = vst [vmem:[#allocation4] sm:$0xff] %v9949_v2 }
 0x546   : > { %v5862_v0 = vand.u32 4294901760, %v5829_v44 }
 0x548   : > { %5968 = vmatmul.f32.vlgmr.msra.gmra.mxu3 %v5862_v0  ;;  %v5863_v11 = vsub.f32 %v5829_v44, %v5862_v0 }
 0x549   : > { %v5430_v20 = vpop.f32.mrf.mxu2 }
 0x54a   : > { %6022 = vmatmul.f32.vlgmr.msrb.gmra.mxu0 %v5863_v11  ;;  %v5864_v41 = vand.u32 4294901760, %v5863_v11 }
 0x54b   : > { %v5322_v31 = vpop.f32.mrf.mxu0 }
 0x54c   : > { %v5323_v30 = vadd.f32 %v5322_v31, %v5269_v53  ;;  %6061 = vmatmul.f32.vlgmr.msrb.gmra.mxu1 %v5864_v41  ;;  %v5865_v17 = vsub.f32 %v5863_v11, %v5864_v41  ;;  %v5467_v15 = vpop.f32.mrf.mxu3 }
 0x54e   : > { %v5362_v51 = vadd.f32 %v5361_v19, %v5323_v30  ;;  %v5866_v54 = vand.u32 4294901760, %v5865_v17 }
 0x550   : > { %v5431_v39 = vadd.f32 %v5430_v20, %v5362_v51  ;;  %5867 = vmatmul.f32.vlgmr.msra.gmra.mxu2 %v5866_v54  ;;  %6167 = vmatmul.f32.vlgmr.msrb.gmra.mxu3 %v5862_v0 }
 0x552   : > { %v5468_v12 = vadd.f32 %v5467_v15, %v5431_v39 }
 0x554   : > { %v5812_v57 = vmul.f32 0.5, %v5468_v12 }
 0x556   : > { %7115 = vtanh.f32 %v5812_v57 }
 0x558   : > { %6130 = vmatmul.f32.vlgmr.msrb.gmra.mxu2 %v5862_v0 }
 0x55c   : > { %v7116_v49 = vpop.eup %7115 }
 0x55d   : > { %v5814_v55 = vadd.f32 1.0, %v7116_v49 }
 0x55f   : > { %v5815_v35 = vmul.f32 0.5, %v5814_v55 }
 0x561   : > { %v5827_v45 = vadd.f32 %v5826_v52, %v5815_v35 }
 0x563   : > { %v5828_v10 = vmax.f32 %v5827_v45, 0.0  ;;  %v5609_v34 = vpop.f32.mrf.mxu1 }
 0x565   : > { %6181 = vst [vmem:[#allocation3] sm:$0xff] %v5828_v10 }
 0x56b   : > { %v5663_v63 = vpop.f32.mrf.mxu2 }
 0x56c   : > { %v5508_v37 = vpop.f32.mrf.mxu0 }
 0x56d   : > { %v5509_v42 = vadd.f32 %v7065_v7, %v5508_v37 }
 0x56e   : > { %v5702_v40 = vpop.f32.mrf.mxu3 }
 0x56f   : > { %v5610_v18 = vadd.f32 %v5609_v34, %v5509_v42 }
 0x571   : > { %v5664_v38 = vadd.f32 %v5663_v63, %v5610_v18 }
 0x573   : > { %v5703_v46 = vadd.f32 %v5702_v40, %v5664_v38 }
 0x583   : > { %v5808_v48 = vpop.f32.mrf.mxu1 }
 0x58c   : > { %v5771_v60 = vpop.f32.mrf.mxu0 }
 0x58d   : > { %v5772_v47 = vadd.f32 %v5771_v60, %v5703_v46 }
 0x58f   : > { %v5809_v24 = vadd.f32 %v5808_v48, %v5772_v47 }
 0x591   : > { %v5816_v4 = vmul.f32 0.5, %v5809_v24 }
 0x593   : > { %7117 = vtanh.f32 %v5816_v4 }
 0x599   : > { %v7118_v21 = vpop.eup %7117 }
 0x59a   : > { %v5818_v33 = vadd.f32 1.0, %v7118_v21 }
 0x59c   : > { %v5819_v25 = vmul.f32 0.5, %v5818_v33 }
 0x59e   : > { %v6173_v62 = vsub.f32 1.0, %v5819_v25 }
 0x5a0   : > { %v6174_v16 = vmul.f32 %v9653_v9, %v6173_v62 }
 0x5c7   : > { %v6023_v5 = vpop.f32.mrf.mxu0 }
 0x5c9   : > { %v6062_v29 = vpop.f32.mrf.mxu1 }
 0x5cb   : > { %v5969_v28 = vpop.f32.mrf.mxu3 }
 0x5d3   : > { %v5868_v23 = vpop.f32.mrf.mxu2  ;;  %v6168_v13 = vpop.f32.mrf.mxu3 }
 0x5d4   : > { %v5970_v43 = vadd.f32 %v5969_v28, %v5868_v23 }
 0x5d6   : > { %v6024_v8 = vadd.f32 %v6023_v5, %v5970_v43 }
 0x5d8   : > { %v6063_v6 = vadd.f32 %v6062_v29, %v6024_v8 }
 0x5db   : > { %v6131_v27 = vpop.f32.mrf.mxu2 }
 0x5dc   : > { %v6132_v56 = vadd.f32 %v6131_v27, %v6063_v6 }
 0x5de   : > { %v6169_v3 = vadd.f32 %v6168_v13, %v6132_v56 }
 0x5e0   : > { %v6171_v36 = vadd.f32 %v7066_v61, %v6169_v3 }
 0x5e2   : > { %7119 = vtanh.f32 %v6171_v36 }
 0x5e8   : > { %v7120_v14 = vpop.eup %7119 }
 0x5e9   : > { %v6175_v58 = vmul.f32 %v7120_v14, %v5819_v25 }
 0x5eb   : > { %v6176_v32 = vadd.f32 %v6175_v58, %v6174_v16 }
 0x5ed   : > { %7121 = vtanh.f32 %v6176_v32 }
 0x5f1   : > { %6186 = sbr.rel (%p7069_p5) target bundleno = 1947 (0x79b), region = 76 }
 0x5f3   : > { %v9956_v22 = vpop.eup %7121 }
 0x5f4   : > { %7068 = vst [vmem:[%s7243_s17 + $0x18] sm:$0xff] %v9956_v22 }
 0x5f5   : > { %6180 = vst [vmem:[#allocation2] sm:$0xff] %v9956_v22 }
 0x5f6   : > { %6187 = vst [vmem:[%s10572_s13] sm:$0xff] %v9956_v22  ;;  %v6205_v9 = vld [vmem:[%s10565_s6 + $0x78] sm:$0xff]  ;;  %v6204_v50 = vld [vmem:[%s10565_s6 + $0x70] sm:$0xff]  ;;  %v6203_v1 = vld [vmem:[%s10565_s6 + $0x68] sm:$0xff] }
 0x5f7   : > { %6188 = vst [vmem:[%s10573_s14] sm:$0xff] %v5828_v10  ;;  %v9978_v52 = vand.u32 4294901760, %v6205_v9  ;;  %v9980_v44 = vand.u32 4294901760, %v6204_v50  ;;  %v9982_v59 = vand.u32 4294901760, %v6203_v1  ;;  %v6202_v0 = vld [vmem:[%s10565_s6 + $0x60] sm:$0xff]  ;;  %v6201_v26 = vld [vmem:[%s10565_s6 + $0x58] sm:$0xff]  ;;  %v6200_v11 = vld [vmem:[%s10565_s6 + $0x50] sm:$0xff] }
 0x5f8   : > { %6189 = vst [vmem:[%s10574_s15] sm:$0xff] %v9949_v2  ;;  %v9997_v53 = vand.u32 4294901760, %v6202_v0  ;;  %v9999_v41 = vand.u32 4294901760, %v6201_v26  ;;  %v10001_v31 = vand.u32 4294901760, %v6200_v11  ;;  %v6199_v30 = vld [vmem:[%s10565_s6 + $0x48] sm:$0xff]  ;;  %v6198_v17 = vld [vmem:[%s10565_s6 + $0x40] sm:$0xff]  ;;  %v6197_v12 = vld [vmem:[%s10565_s6 + $0x38] sm:$0xff] }
 0x5f9   : > { %6211 = vmatpush.msra.mxu0 %v9978_v52  ;;  %v10011_v19 = vsub.f32 %v6205_v9, %v9978_v52  ;;  %v10014_v2 = vsub.f32 %v6204_v50, %v9980_v44  ;;  %v10017_v51 = vsub.f32 %v6203_v1, %v9982_v59  ;;  %v10019_v54 = vand.u32 4294901760, %v6199_v30  ;;  %6407 = vmatpush.msra.mxu3 %v9978_v52  ;;  %v6196_v38 = vld [vmem:[%s10565_s6 + $0x30] sm:$0xff]  ;;  %v6195_v40 = vld [vmem:[%s10565_s6 + $0x28] sm:$0xff]  ;;  %v6194_v28 = vld [vmem:[%s10565_s6 + $0x20] sm:$0xff] }
 0x5fa   : > { %v10023_v20 = vsub.f32 %v6202_v0, %v9997_v53  ;;  %v10026_v39 = vsub.f32 %v6201_v26, %v9999_v41  ;;  %v10028_v15 = vand.u32 4294901760, %v6198_v17  ;;  %v10038_v35 = vsub.f32 %v6200_v11, %v10001_v31  ;;  %v6193_v29 = vld [vmem:[%s10565_s6 + $0x18] sm:$0xff]  ;;  %v6192_v13 = vld [vmem:[%s10565_s6 + $0x10] sm:$0xff]  ;;  %v6191_v58 = vld [vmem:[%s10565_s6 + $0x8] sm:$0xff] }
 0x5fb   : > { %6213 = vmatpush.msra.mxu0 %v9980_v44  ;;  %v6253_v57 = vand.u32 4294901760, %v10011_v19  ;;  %v6259_v49 = vand.u32 4294901760, %v10014_v2  ;;  %v6265_v55 = vand.u32 4294901760, %v10017_v51  ;;  %6354 = vmatpush.msra.mxu2 %v10011_v19  ;;  %v10044_v7 = vsub.f32 %v6199_v30, %v10019_v54  ;;  %v6190_v0 = vld [vmem:[%s10565_s6] sm:$0xff] }
 0x5fc   : > { %v6271_v45 = vand.u32 4294901760, %v10023_v20  ;;  %v6277_v10 = vand.u32 4294901760, %v10026_v39  ;;  %6409 = vmatpush.msra.mxu3 %v9980_v44  ;;  %v10057_v18 = vand.u32 4294901760, %v6197_v12  ;;  %v10061_v63 = vsub.f32 %v6198_v17, %v10028_v15 }
 0x5fd   : > { %v6254_v37 = vsub.f32 %v10011_v19, %v6253_v57  ;;  %6215 = vmatpush.msra.mxu0 %v9982_v59  ;;  %v6260_v42 = vsub.f32 %v10014_v2, %v6259_v49  ;;  %v6266_v34 = vsub.f32 %v10017_v51, %v6265_v55  ;;  %6357 = vmatpush.msra.mxu2 %v10014_v2  ;;  %v6283_v48 = vand.u32 4294901760, %v10038_v35  ;;  %v6610_v19 = vld [vmem:[%s10569_s10 + $0x68] sm:$0xff] }
 0x5fe   : > { %6411 = vmatpush.msra.mxu3 %v9982_v59  ;;  %v6272_v47 = vsub.f32 %v10023_v20, %v6271_v45  ;;  %v6278_v24 = vsub.f32 %v10026_v39, %v6277_v10  ;;  %v6289_v4 = vand.u32 4294901760, %v10044_v7  ;;  %v10085_v43 = vand.u32 4294901760, %v6196_v38 }
 0x5ff   : > { %v6255_v60 = vand.u32 4294901760, %v6254_v37  ;;  %v6261_v46 = vand.u32 4294901760, %v6260_v42  ;;  %6217 = vmatpush.msra.mxu0 %v9997_v53  ;;  %6360 = vmatpush.msra.mxu2 %v10017_v51  ;;  %v6267_v23 = vand.u32 4294901760, %v6266_v34  ;;  %v10088_v5 = vsub.f32 %v6197_v12, %v10057_v18 }
 0x600   : > { %6413 = vmatpush.msra.mxu3 %v9997_v53  ;;  %v10090_v8 = vand.u32 4294901760, %v6195_v40  ;;  %v6295_v21 = vand.u32 4294901760, %v10061_v63  ;;  %v6273_v6 = vand.u32 4294901760, %v6272_v47  ;;  %v6284_v27 = vsub.f32 %v10038_v35, %v6283_v48 }
 0x601   : > { %6256 = vmatpush.msra.mxu1 %v6255_v60  ;;  %6219 = vmatpush.msra.mxu0 %v9999_v41  ;;  %v10103_v56 = vsub.f32 %v6196_v38, %v10085_v43  ;;  %v10105_v33 = vand.u32 4294901760, %v6194_v28  ;;  %v10110_v61 = vand.u32 4294901760, %v6193_v29  ;;  %v6279_v3 = vand.u32 4294901760, %v6278_v24 }
 0x602   : > { %6363 = vmatpush.msra.mxu2 %v10023_v20  ;;  %6415 = vmatpush.msra.mxu3 %v9999_v41  ;;  %v6290_v36 = vsub.f32 %v10044_v7, %v6289_v4  ;;  %v6301_v25 = vand.u32 4294901760, %v10088_v5  ;;  %v10120_v62 = vsub.f32 %v6195_v40, %v10090_v8  ;;  %v6296_v14 = vsub.f32 %v10061_v63, %v6295_v21 }
 0x603   : > { %6262 = vmatpush.msra.mxu1 %v6261_v46  ;;  %6221 = vmatpush.msra.mxu0 %v10001_v31  ;;  %v10125_v16 = vand.u32 4294901760, %v6192_v13  ;;  %v6285_v32 = vand.u32 4294901760, %v6284_v27  ;;  %v6307_v9 = vand.u32 4294901760, %v10103_v56  ;;  %v10135_v50 = vsub.f32 %v6194_v28, %v10105_v33 }
 0x604   : > { %6366 = vmatpush.msra.mxu2 %v10026_v39  ;;  %6417 = vmatpush.msra.mxu3 %v10001_v31  ;;  %v10138_v1 = vsub.f32 %v6193_v29, %v10110_v61  ;;  %v6291_v26 = vand.u32 4294901760, %v6290_v36  ;;  %v6302_v11 = vsub.f32 %v10088_v5, %v6301_v25  ;;  %v6313_v30 = vand.u32 4294901760, %v10120_v62  ;;  %v6609_v39 = vld [vmem:[%s10569_s10 + $0x60] sm:$0xff] }
 0x605   : > { %6268 = vmatpush.msra.mxu1 %v6267_v23  ;;  %6223 = vmatpush.msra.mxu0 %v10019_v54  ;;  %v10150_v17 = vand.u32 4294901760, %v6191_v58  ;;  %v6297_v12 = vand.u32 4294901760, %v6296_v14  ;;  %v10153_v37 = vsub.f32 %v6192_v13, %v10125_v16  ;;  %v6308_v42 = vsub.f32 %v10103_v56, %v6307_v9 }
 0x606   : > { %6369 = vmatpush.msra.mxu2 %v10038_v35  ;;  %6419 = vmatpush.msra.mxu3 %v10019_v54  ;;  %v6319_v34 = vand.u32 4294901760, %v10135_v50  ;;  %v10162_v38 = vand.u32 4294901760, %v6190_v0  ;;  %v10165_v40 = vand.u32 4294901760, %v9956_v22  ;;  %v6325_v60 = vand.u32 4294901760, %v10138_v1 }
 0x607   : > { %6274 = vmatpush.msra.mxu1 %v6273_v6  ;;  %6225 = vmatpush.msra.mxu0 %v10028_v15  ;;  %v6303_v46 = vand.u32 4294901760, %v6302_v11  ;;  %v6314_v47 = vsub.f32 %v10120_v62, %v6313_v30  ;;  %v10175_v24 = vsub.f32 %v6191_v58, %v10150_v17  ;;  %v6309_v23 = vand.u32 4294901760, %v6308_v42 }
 0x608   : > { %6372 = vmatpush.msra.mxu2 %v10044_v7  ;;  %6421 = vmatpush.msra.mxu3 %v10028_v15  ;;  %v6243_v28 = vsub.f32 %v9956_v22, %v10165_v40  ;;  %v6320_v29 = vsub.f32 %v10135_v50, %v6319_v34  ;;  %v6331_v6 = vand.u32 4294901760, %v10153_v37  ;;  %v10187_v27 = vsub.f32 %v6190_v0, %v10162_v38 }
 0x609   : > { %6280 = vmatpush.msra.mxu1 %v6279_v3  ;;  %6227 = vmatpush.msra.mxu0 %v10057_v18  ;;  %v6315_v22 = vand.u32 4294901760, %v6314_v47  ;;  %v6326_v13 = vsub.f32 %v10138_v1, %v6325_v60  ;;  %v6337_v3 = vand.u32 4294901760, %v10175_v24  ;;  %v10286_v20 = vand.u32 4294901760, %v6610_v19 }
 0x60a   : > { %6375 = vmatpush.msra.mxu2 %v10061_v63  ;;  %6423 = vmatpush.msra.mxu3 %v10057_v18  ;;  %v6244_v36 = vand.u32 4294901760, %v6243_v28  ;;  %v6321_v14 = vand.u32 4294901760, %v6320_v29  ;;  %v6332_v58 = vsub.f32 %v10153_v37, %v6331_v6  ;;  %v6604_v29 = vld [vmem:[%s10569_s10 + $0x38] sm:$0xff] }
 0x60b   : > { %6286 = vmatpush.msra.mxu1 %v6285_v32  ;;  %6229 = vmatpush.msra.mxu0 %v10085_v43  ;;  %v6343_v32 = vand.u32 4294901760, %v10187_v27  ;;  %v6327_v0 = vand.u32 4294901760, %v6326_v13  ;;  %v10375_v13 = vand.u32 4294901760, %v6604_v29 }
 0x60c   : > { %6378 = vmatpush.msra.mxu2 %v10088_v5  ;;  %6425 = vmatpush.msra.mxu3 %v10085_v43  ;;  %v6245_v11 = vsub.f32 %v6243_v28, %v6244_v36 }
 0x60d   : > { %6292 = vmatpush.msra.mxu1 %v6291_v26  ;;  %6231 = vmatpush.msra.mxu0 %v10090_v8  ;;  %v6338_v26 = vsub.f32 %v10175_v24, %v6337_v3  ;;  %v6344_v42 = vsub.f32 %v10187_v27, %v6343_v32 }
 0x60e   : > { %6381 = vmatpush.msra.mxu2 %v10103_v56  ;;  %6427 = vmatpush.msra.mxu3 %v10090_v8  ;;  %v6246_v47 = vand.u32 4294901760, %v6245_v11 }
 0x60f   : > { %6298 = vmatpush.msra.mxu1 %v6297_v12  ;;  %6233 = vmatpush.msra.mxu0 %v10105_v33  ;;  %v6333_v12 = vand.u32 4294901760, %v6332_v58 }
 0x610   : > { %6384 = vmatpush.msra.mxu2 %v10120_v62  ;;  %6429 = vmatpush.msra.mxu3 %v10105_v33 }
 0x611   : > { %6304 = vmatpush.msra.mxu1 %v6303_v46  ;;  %6235 = vmatpush.msra.mxu0 %v10110_v61  ;;  %v6339_v46 = vand.u32 4294901760, %v6338_v26  ;;  %v10388_v26 = vsub.f32 %v6604_v29, %v10375_v13 }
 0x612   : > { %6387 = vmatpush.msra.mxu2 %v10135_v50  ;;  %6431 = vmatpush.msra.mxu3 %v10110_v61 }
 0x613   : > { %6310 = vmatpush.msra.mxu1 %v6309_v23  ;;  %6237 = vmatpush.msra.mxu0 %v10125_v16  ;;  %v6345_v23 = vand.u32 4294901760, %v6344_v42  ;;  %v6602_v42 = vld [vmem:[%s10569_s10 + $0x28] sm:$0xff] }
 0x614   : > { %6390 = vmatpush.msra.mxu2 %v10138_v1  ;;  %6433 = vmatpush.msra.mxu3 %v10125_v16 }
 0x615   : > { %6316 = vmatpush.msra.mxu1 %v6315_v22  ;;  %6239 = vmatpush.msra.mxu0 %v10150_v17 }
 0x616   : > { %6393 = vmatpush.msra.mxu2 %v10153_v37  ;;  %6435 = vmatpush.msra.mxu3 %v10150_v17 }
 0x617   : > { %6322 = vmatpush.msra.mxu1 %v6321_v14  ;;  %6241 = vmatpush.msra.mxu0 %v10162_v38  ;;  %v6603_v14 = vld [vmem:[%s10569_s10 + $0x30] sm:$0xff] }
 0x618   : > { %6396 = vmatpush.msra.mxu2 %v10175_v24  ;;  %6437 = vmatpush.msra.mxu3 %v10162_v38  ;;  %v6551_v24 = vlaneseq }
 0x619   : > { %6448 = vmatpush.msrb.mxu0 %v6253_v57  ;;  %6328 = vmatpush.msra.mxu1 %v6327_v0 }
 0x61a   : > { %6399 = vmatpush.msra.mxu2 %v10187_v27  ;;  %6441 = vmatmul.f32.vlgmr.msra.gmra.mxu3 %v6244_v36  ;;  %v6552_v11 = vshrl.u32 %v6551_v24, 7 }
 0x61b   : > { %6452 = vmatpush.msrb.mxu0 %v6259_v49  ;;  %6334 = vmatpush.msra.mxu1 %v6333_v12  ;;  %v10299_v49 = vsub.f32 %v6610_v19, %v10286_v20  ;;  %v10391_v12 = vand.u32 4294901760, %v6603_v14  ;;  %v10406_v19 = vand.u32 4294901760, %v6602_v42 }
 0x61c   : > { %6402 = vmatmul.f32.vlgmr.msra.gmra.mxu2 %v6243_v28  ;;  %6247 = vmatmul.f32.vlgmr.msra.gmra.mxu0 %v6246_v47  ;;  %vm6553_vm4 = vcmp.lt.s32.totalorder %v6552_v11, 2 }
 0x61d   : > { %6456 = vmatpush.msrb.mxu0 %v6265_v55  ;;  %6340 = vmatpush.msra.mxu1 %v6339_v46  ;;  %v10301_v55 = vand.u32 4294901760, %v6609_v39  ;;  %v6672_v63 = vand.u32 4294901760, %v10299_v49 }
 0x61f   : > { %6460 = vmatpush.msrb.mxu0 %v6271_v45  ;;  %6346 = vmatpush.msra.mxu1 %v6345_v23  ;;  %v6608_v45 = vld [vmem:[%s10569_s10 + $0x58] sm:$0xff] }
 0x620   : > { %6348 = vmatmul.f32.vlgmr.msra.gmra.mxu1 %v10165_v40 }
 0x621   : > { %6515 = vmatpush.msrb.mxu1 %v9978_v52  ;;  %6464 = vmatpush.msrb.mxu0 %v6277_v10  ;;  %v6612_v52 = vld [vmem:[%s10569_s10 + $0x78] sm:$0xff] }
 0x623   : > { %6517 = vmatpush.msrb.mxu1 %v9980_v44  ;;  %6468 = vmatpush.msrb.mxu0 %v6283_v48  ;;  %v10264_v44 = vand.u32 4294901760, %v6612_v52  ;;  %v10314_v48 = vsub.f32 %v6609_v39, %v10301_v55 }
 0x625   : > { %6519 = vmatpush.msrb.mxu1 %v9982_v59  ;;  %6472 = vmatpush.msrb.mxu0 %v6289_v4  ;;  %v6611_v59 = vld [vmem:[%s10569_s10 + $0x70] sm:$0xff]  ;;  %v10318_v4 = vand.u32 4294901760, %v6608_v45 }
 0x626   : > { %6618 = vmatpush.msrb.mxu2 %v10264_v44 }
 0x627   : > { %6521 = vmatpush.msrb.mxu1 %v9997_v53  ;;  %6476 = vmatpush.msrb.mxu0 %v6295_v21  ;;  %v10270_v53 = vsub.f32 %v6612_v52, %v10264_v44  ;;  %v6678_v21 = vand.u32 4294901760, %v10314_v48  ;;  %v6708_v52 = vand.u32 4294901760, %v10388_v26 }
 0x629   : > { %6523 = vmatpush.msrb.mxu1 %v9999_v41  ;;  %6480 = vmatpush.msrb.mxu0 %v6301_v25  ;;  %v10272_v41 = vand.u32 4294901760, %v6611_v59  ;;  %v6660_v51 = vand.u32 4294901760, %v10270_v53  ;;  %v6606_v25 = vld [vmem:[%s10569_s10 + $0x48] sm:$0xff] }
 0x62a   : > { %v10345_v1 = vand.u32 4294901760, %v6606_v25 }
 0x62b   : > { %6525 = vmatpush.msrb.mxu1 %v10001_v31  ;;  %6484 = vmatpush.msrb.mxu0 %v6307_v9  ;;  %v7124_v31 = vld [vmem:[%s10566_s7] ss:$0 sm:$0xff]  ;;  %v6679_v9 = vsub.f32 %v10314_v48, %v6678_v21 }
 0x62c   : > { %6620 = vmatpush.msrb.mxu2 %v10272_v41 }
 0x62d   : > { %6527 = vmatpush.msrb.mxu1 %v10019_v54  ;;  %6488 = vmatpush.msrb.mxu0 %v6313_v30  ;;  %v10284_v54 = vsub.f32 %v6611_v59, %v10272_v41  ;;  %v6680_v37 = vand.u32 4294901760, %v6679_v9 }
 0x62e   : > { %6622 = vmatpush.msrb.mxu2 %v10286_v20 }
 0x62f   : > { %6529 = vmatpush.msrb.mxu1 %v10028_v15  ;;  %6492 = vmatpush.msrb.mxu0 %v6319_v34  ;;  %v6661_v15 = vsub.f32 %v10270_v53, %v6660_v51  ;;  %v6666_v57 = vand.u32 4294901760, %v10284_v54 }
 0x630   : > { %6624 = vmatpush.msrb.mxu2 %v10301_v55 }
 0x631   : > { %6531 = vmatpush.msrb.mxu1 %v10057_v18  ;;  %6496 = vmatpush.msrb.mxu0 %v6325_v60  ;;  %v6662_v7 = vand.u32 4294901760, %v6661_v15  ;;  %v6667_v18 = vsub.f32 %v10284_v54, %v6666_v57  ;;  %v6709_v15 = vsub.f32 %v10388_v26, %v6708_v52 }
 0x632   : > { %6626 = vmatpush.msrb.mxu2 %v10318_v4 }
 0x633   : > { %6533 = vmatpush.msrb.mxu1 %v10085_v43  ;;  %6500 = vmatpush.msrb.mxu0 %v6331_v6  ;;  %v6607_v43 = vld [vmem:[%s10569_s10 + $0x50] sm:$0xff]  ;;  %v6668_v5 = vand.u32 4294901760, %v6667_v18 }
 0x634   : > { %6663 = vmatpush.msrb.mxu3 %v6662_v7  ;;  %v10328_v56 = vand.u32 4294901760, %v6607_v43  ;;  %v6600_v7 = vld [vmem:[%s10569_s10 + $0x18] sm:$0xff] }
 0x635   : > { %6535 = vmatpush.msrb.mxu1 %v10090_v8  ;;  %6504 = vmatpush.msrb.mxu0 %v6337_v3  ;;  %v6673_v8 = vsub.f32 %v10299_v49, %v6672_v63 }
 0x636   : > { %6669 = vmatpush.msrb.mxu3 %v6668_v5  ;;  %v10343_v50 = vsub.f32 %v6607_v43, %v10328_v56  ;;  %6628 = vmatpush.msrb.mxu2 %v10328_v56  ;;  %v6710_v43 = vand.u32 4294901760, %v6709_v15 }
 0x637   : > { %6537 = vmatpush.msrb.mxu1 %v10105_v33  ;;  %6508 = vmatpush.msrb.mxu0 %v6343_v32 }
 0x638   : > { %6510 = vmatmul.f32.vlgmr.msrb.gmra.mxu0 %v10165_v40  ;;  %v6690_v34 = vand.u32 4294901760, %v10343_v50  ;;  %6630 = vmatpush.msrb.mxu2 %v10345_v1 }
 0x639   : > { %6539 = vmatpush.msrb.mxu1 %v10110_v61  ;;  %6761 = vmatpush.msra.mxu0 %v10270_v53  ;;  %v10332_v61 = vsub.f32 %v6608_v45, %v10318_v4 }
 0x63a   : > { %v6691_v6 = vsub.f32 %v10343_v50, %v6690_v34 }
 0x63b   : > { %6541 = vmatpush.msrb.mxu1 %v10125_v16  ;;  %6764 = vmatpush.msra.mxu0 %v10284_v54  ;;  %v6674_v16 = vand.u32 4294901760, %v6673_v8  ;;  %v6684_v30 = vand.u32 4294901760, %v10332_v61  ;;  %v10430_v8 = vand.u32 4294901760, %v6600_v7 }
 0x63c   : > { %v6692_v58 = vand.u32 4294901760, %v6691_v6  ;;  %v6598_v6 = vld [vmem:[%s10569_s10 + $0x8] sm:$0xff] }
 0x63d   : > { %6543 = vmatpush.msrb.mxu1 %v10150_v17  ;;  %6767 = vmatpush.msra.mxu0 %v10299_v49  ;;  %v6605_v17 = vld [vmem:[%s10569_s10 + $0x40] sm:$0xff]  ;;  %v6685_v28 = vsub.f32 %v10332_v61, %v6684_v30  ;;  %v10444_v9 = vsub.f32 %v6600_v7, %v10430_v8  ;;  %v10469_v11 = vand.u32 4294901760, %v6598_v6 }
 0x63e   : > { %6675 = vmatpush.msrb.mxu3 %v6674_v16 }
 0x63f   : > { %6545 = vmatpush.msrb.mxu1 %v10162_v38  ;;  %6770 = vmatpush.msra.mxu0 %v10314_v48  ;;  %v10355_v38 = vsub.f32 %v6606_v25, %v10345_v1  ;;  %v6686_v36 = vand.u32 4294901760, %v6685_v28 }
 0x640   : > { %6547 = vmatmul.f32.vlgmr.msrb.gmra.mxu1 %v10165_v40  ;;  %v10357_v40 = vand.u32 4294901760, %v6605_v17  ;;  %6681 = vmatpush.msrb.mxu3 %v6680_v37 }
 0x641   : > { %6814 = vmatpush.msra.mxu1 %v10264_v44  ;;  %6773 = vmatpush.msra.mxu0 %v10332_v61  ;;  %v6696_v27 = vand.u32 4294901760, %v10355_v38 }
 0x642   : > { %v10373_v22 = vsub.f32 %v6605_v17, %v10357_v40  ;;  %6632 = vmatpush.msrb.mxu2 %v10357_v40  ;;  %6687 = vmatpush.msrb.mxu3 %v6686_v36 }
 0x643   : > { %6816 = vmatpush.msra.mxu1 %v10272_v41  ;;  %6776 = vmatpush.msra.mxu0 %v10343_v50  ;;  %v6697_v32 = vsub.f32 %v10355_v38, %v6696_v27 }
 0x644   : > { %v6702_v0 = vand.u32 4294901760, %v10373_v22  ;;  %6634 = vmatpush.msrb.mxu2 %v10375_v13  ;;  %6693 = vmatpush.msrb.mxu3 %v6692_v58 }
 0x645   : > { %6818 = vmatpush.msra.mxu1 %v10286_v20  ;;  %6779 = vmatpush.msra.mxu0 %v10355_v38  ;;  %v6698_v47 = vand.u32 4294901760, %v6697_v32 }
 0x646   : > { %v6703_v23 = vsub.f32 %v10373_v22, %v6702_v0  ;;  %6636 = vmatpush.msrb.mxu2 %v10391_v12 }
 0x647   : > { %6820 = vmatpush.msra.mxu1 %v10301_v55  ;;  %6782 = vmatpush.msra.mxu0 %v10373_v22 }
 0x648   : > { %v6704_v39 = vand.u32 4294901760, %v6703_v23  ;;  %6699 = vmatpush.msrb.mxu3 %v6698_v47  ;;  %6638 = vmatpush.msrb.mxu2 %v10406_v19 }
 0x649   : > { %6822 = vmatpush.msra.mxu1 %v10318_v4  ;;  %6785 = vmatpush.msra.mxu0 %v10388_v26 }
 0x64a   : > { %6705 = vmatpush.msrb.mxu3 %v6704_v39 }
 0x64b   : > { %6824 = vmatpush.msra.mxu1 %v10328_v56 }
 0x64c   : > { %6711 = vmatpush.msrb.mxu3 %v6710_v43 }
 0x64d   : > { %6826 = vmatpush.msra.mxu1 %v10345_v1 }
 0x64f   : > { %6828 = vmatpush.msra.mxu1 %v10357_v40 }
 0x651   : > { %6830 = vmatpush.msra.mxu1 %v10375_v13 }
 0x653   : > { %6832 = vmatpush.msra.mxu1 %v10391_v12 }
 0x655   : > { %6834 = vmatpush.msra.mxu1 %v10406_v19 }
 0x699   : > { %v6248_v2 = vpop.f32.mrf.mxu0 }
 0x69a   : > { %v6249_v35 = vadd.f32 %v7124_v31, %v6248_v2  ;;  %v10404_v31 = vsub.f32 %v6603_v14, %v10391_v12  ;;  %v6601_v2 = vld [vmem:[%s10569_s10 + $0x20] sm:$0xff]  ;;  %v6732_v14 = vand.u32 4294901760, %v10444_v9 }
 0x69c   : > { %v6714_v45 = vand.u32 4294901760, %v10404_v31  ;;  %6788 = vmatpush.msra.mxu0 %v10404_v31  ;;  %v6733_v23 = vsub.f32 %v10444_v9, %v6732_v14 }
 0x69d   : > { %v6349_v10 = vpop.f32.mrf.mxu1  ;;  %v6442_v3 = vpop.f32.mrf.mxu3 }
 0x69e   : > { %v6350_v33 = vadd.f32 %v6349_v10, %v6249_v35  ;;  %v10415_v35 = vand.u32 4294901760, %v6601_v2  ;;  %v10421_v10 = vsub.f32 %v6602_v42, %v10406_v19  ;;  %v6597_v42 = vld [vmem:[%s10569_s10] sm:$0xff]  ;;  %v6734_v7 = vand.u32 4294901760, %v6733_v23 }
 0x69f   : > { %v6403_v62 = vpop.f32.mrf.mxu2  ;;  %v10485_v39 = vand.u32 4294901760, %v6597_v42 }
 0x6a0   : > { %v6404_v60 = vadd.f32 %v6403_v62, %v6350_v33  ;;  %v10428_v5 = vsub.f32 %v6601_v2, %v10415_v35  ;;  %v6715_v33 = vsub.f32 %v10404_v31, %v6714_v45  ;;  %v6720_v25 = vand.u32 4294901760, %v10421_v10  ;;  %v6599_v62 = vld [vmem:[%s10569_s10 + $0x10] sm:$0xff]  ;;  %6640 = vmatpush.msrb.mxu2 %v10415_v35  ;;  %6791 = vmatpush.msra.mxu0 %v10421_v10 }
 0x6a1   : > { %v10446_v17 = vand.u32 4294901760, %v6599_v62  ;;  %6836 = vmatpush.msra.mxu1 %v10415_v35  ;;  %v10483_v2 = vsub.f32 %v6598_v6, %v10469_v11 }
 0x6a2   : > { %v6443_v46 = vadd.f32 %v6442_v3, %v6404_v60  ;;  %v6726_v16 = vand.u32 4294901760, %v10428_v5  ;;  %v7138_v60 = vmov 0.0   ;;  %v6716_v28 = vand.u32 4294901760, %v6715_v33  ;;  %6642 = vmatpush.msrb.mxu2 %v10430_v8  ;;  %6794 = vmatpush.msra.mxu0 %v10428_v5 }
 0x6a3   : > { %v10451_v24 = vsel %vm6553_vm4, 1.0, %v7138_v60  ;;  %v6721_v29 = vsub.f32 %v10421_v10, %v6720_v25  ;;  %v10465_v58 = vsub.f32 %v6599_v62, %v10446_v17  ;;  %6838 = vmatpush.msra.mxu1 %v10430_v8  ;;  %v6744_v43 = vand.u32 4294901760, %v10483_v2  ;;  %v7127_v10 = vld [vmem:[%s10570_s11] ss:$0 sm:$0xff] }
 0x6a4   : > { %v6727_v36 = vsub.f32 %v10428_v5, %v6726_v16  ;;  %6717 = vmatpush.msrb.mxu3 %v6716_v28  ;;  %6644 = vmatpush.msrb.mxu2 %v10446_v17  ;;  %v6749_v33 = vsub.f32 %v6597_v42, %v10485_v39 }
 0x6a5   : > { %v6722_v32 = vand.u32 4294901760, %v6721_v29  ;;  %6797 = vmatpush.msra.mxu0 %v10444_v9  ;;  %6840 = vmatpush.msra.mxu1 %v10446_v17  ;;  %v6745_v60 = vsub.f32 %v10483_v2, %v6744_v43 }
 0x6a6   : > { %v6728_v47 = vand.u32 4294901760, %v6727_v36  ;;  %6646 = vmatpush.msrb.mxu2 %v10469_v11  ;;  %v6750_v28 = vand.u32 4294901760, %v6749_v33 }
 0x6a7   : > { %6723 = vmatpush.msrb.mxu3 %v6722_v32  ;;  %6800 = vmatpush.msra.mxu0 %v10465_v58  ;;  %v6746_v6 = vand.u32 4294901760, %v6745_v60 }
 0x6a8   : > { %6842 = vmatpush.msra.mxu1 %v10469_v11  ;;  %6648 = vmatpush.msrb.mxu2 %v10485_v39  ;;  %v6751_v36 = vsub.f32 %v6749_v33, %v6750_v28 }
 0x6a9   : > { %6729 = vmatpush.msrb.mxu3 %v6728_v47  ;;  %6803 = vmatpush.msra.mxu0 %v10483_v2 }
 0x6aa   : > { %6855 = vmatpush.msra.mxu2 %v6660_v51  ;;  %6844 = vmatpush.msra.mxu1 %v10485_v39  ;;  %v6752_v53 = vand.u32 4294901760, %v6751_v36 }
 0x6ab   : > { %6735 = vmatpush.msrb.mxu3 %v6734_v7  ;;  %6806 = vmatpush.msra.mxu0 %v6749_v33 }
 0x6ac   : > { %6859 = vmatpush.msra.mxu2 %v6666_v57 }
 0x6ae   : > { %6863 = vmatpush.msra.mxu2 %v6672_v63 }
 0x6b0   : > { %6867 = vmatpush.msra.mxu2 %v6678_v21 }
 0x6b2   : > { %6871 = vmatpush.msra.mxu2 %v6684_v30 }
 0x6b4   : > { %6875 = vmatpush.msra.mxu2 %v6690_v34 }
 0x6b5   : > { %v6511_v59 = vpop.f32.mrf.mxu0 }
 0x6b6   : > { %v6512_v18 = vadd.f32 %v6511_v59, %v6443_v46  ;;  %v6738_v59 = vand.u32 4294901760, %v10465_v58  ;;  %6879 = vmatpush.msra.mxu2 %v6696_v27 }
 0x6b8   : > { %6883 = vmatpush.msra.mxu2 %v6702_v0 }
 0x6ba   : > { %6887 = vmatpush.msra.mxu2 %v6708_v52 }
 0x6bc   : > { %6891 = vmatpush.msra.mxu2 %v6714_v45 }
 0x6bd   : > { %v6548_v37 = vpop.f32.mrf.mxu1 }
 0x6be   : > { %v6549_v3 = vadd.f32 %v6548_v37, %v6512_v18  ;;  %v6739_v18 = vsub.f32 %v10465_v58, %v6738_v59  ;;  %6895 = vmatpush.msra.mxu2 %v6720_v25 }
 0x6c0   : > { %v6556_v46 = vmul.f32 %v10451_v24, %v6549_v3  ;;  %v6740_v37 = vand.u32 4294901760, %v6739_v18  ;;  %6899 = vmatpush.msra.mxu2 %v6726_v16 }
 0x6c2   : > { %v6557_v15 = vrot.slane %v6556_v46, 4  ;;  %6741 = vmatpush.msrb.mxu3 %v6740_v37  ;;  %6903 = vmatpush.msra.mxu2 %v6732_v14 }
 0x6c4   : > { %v6558_v62 = vadd.f32 %v6557_v15, %v6556_v46  ;;  %6747 = vmatpush.msrb.mxu3 %v6746_v6  ;;  %6907 = vmatpush.msra.mxu2 %v6738_v59 }
 0x6c6   : > { %v6559_v29 = vrot.slane %v6558_v62, 2  ;;  %6753 = vmatpush.msrb.mxu3 %v6752_v53  ;;  %6911 = vmatpush.msra.mxu2 %v6744_v43 }
 0x6c8   : > { %v6560_v32 = vadd.f32 %v6559_v29, %v6558_v62  ;;  %6922 = vmatpush.msra.mxu3 %v10264_v44  ;;  %6915 = vmatpush.msra.mxu2 %v6750_v28 }
 0x6ca   : > { %v6561_v51 = vrot.slane %v6560_v32, 1  ;;  %6924 = vmatpush.msra.mxu3 %v10272_v41 }
 0x6cc   : > { %v6562_v42 = vadd.f32 %v6561_v51, %v6560_v32  ;;  %6926 = vmatpush.msra.mxu3 %v10286_v20 }
 0x6ce   : > { %v6563_v54 = vmul.f32 0.5, %v6562_v42  ;;  %6928 = vmatpush.msra.mxu3 %v10301_v55 }
 0x6d0   : > { %v6564_v57 = vsub.f32 %v6549_v3, %v6563_v54  ;;  %6930 = vmatpush.msra.mxu3 %v10318_v4 }
 0x6d2   : > { %v6565_v49 = vmul.f32 %v6564_v57, %v6564_v57  ;;  %6932 = vmatpush.msra.mxu3 %v10328_v56 }
 0x6d4   : > { %v6566_v44 = vmul.f32 %v10451_v24, %v6565_v49  ;;  %6934 = vmatpush.msra.mxu3 %v10345_v1 }
 0x6d6   : > { %v6567_v41 = vrot.slane %v6566_v44, 4  ;;  %6936 = vmatpush.msra.mxu3 %v10357_v40  ;;  %v7125_v40 = vld [vmem:[%s10567_s8] ss:$0 sm:$0xff] }
 0x6d8   : > { %v6568_v20 = vadd.f32 %v6567_v41, %v6566_v44  ;;  %6938 = vmatpush.msra.mxu3 %v10375_v13  ;;  %v7126_v13 = vld [vmem:[%s10568_s9] ss:$0 sm:$0xff] }
 0x6da   : > { %v6569_v55 = vrot.slane %v6568_v20, 2  ;;  %6940 = vmatpush.msra.mxu3 %v10391_v12 }
 0x6dc   : > { %v6570_v63 = vadd.f32 %v6569_v55, %v6568_v20  ;;  %6942 = vmatpush.msra.mxu3 %v10406_v19 }
 0x6de   : > { %v6571_v48 = vrot.slane %v6570_v63, 1  ;;  %6944 = vmatpush.msra.mxu3 %v10415_v35 }
 0x6e0   : > { %v6572_v4 = vadd.f32 %v6571_v48, %v6570_v63  ;;  %6946 = vmatpush.msra.mxu3 %v10430_v8 }
 0x6e2   : > { %v6573_v21 = vmul.f32 0.5, %v6572_v4  ;;  %6948 = vmatpush.msra.mxu3 %v10446_v17 }
 0x6e4   : > { %v6574_v56 = vadd.f32 1e-05, %v6573_v21  ;;  %6950 = vmatpush.msra.mxu3 %v10469_v11 }
 0x6e6   : > { %7128 = vrsqrt.f32 %v6574_v56  ;;  %6952 = vmatpush.msra.mxu3 %v10485_v39  ;;  %vm6581_vm6 = vweird.f32 %v6574_v56 }
 0x6ec   : > { %v7129_v61 = vpop.eup %7128 }
 0x6ed   : > { %v6576_v50 = vmul.f32 %v7129_v61, %v6574_v56  ;;  %vm6582_vm5 = vweird.f32 %v7129_v61 }
 0x6ee   : > { %vm6583_vm7 = vmor %vm6581_vm6, %vm6582_vm5 }
 0x6ef   : > { %v6577_v1 = vmul.f32 %v7129_v61, %v6576_v50 }
 0x6f1   : > { %v6578_v30 = vmul.f32 0.5, %v6577_v1 }
 0x6f3   : > { %v6579_v34 = vsub.f32 1.5, %v6578_v30 }
 0x6f5   : > { %v6580_v38 = vmul.f32 %v7129_v61, %v6579_v34 }
 0x6f7   : > { %v6584_v27 = vsel %vm6583_vm7, %v7129_v61, %v6580_v38 }
 0x6f8   : > { %v6585_v22 = vmul.f32 %v6584_v27, %v6564_v57 }
 0x6fa   : > { %v6590_v0 = vmul.f32 %v7125_v40, %v6585_v22 }
 0x6fc   : > { %v6595_v26 = vadd.f32 %v7126_v13, %v6590_v0 }
 0x6fe   : > { %v6596_v12 = vmax.f32 %v6595_v26, 0.0 }
 0x700   : > { %v6649_v52 = vand.u32 4294901760, %v6596_v12 }
 0x702   : > { %6755 = vmatmul.f32.vlgmr.msrb.gmra.mxu3 %v6649_v52  ;;  %v6650_v31 = vsub.f32 %v6596_v12, %v6649_v52 }
 0x704   : > { %6809 = vmatmul.f32.vlgmr.msra.gmra.mxu0 %v6650_v31  ;;  %v6651_v19 = vand.u32 4294901760, %v6650_v31 }
 0x706   : > { %6848 = vmatmul.f32.vlgmr.msra.gmra.mxu1 %v6651_v19  ;;  %v6652_v35 = vsub.f32 %v6650_v31, %v6651_v19 }
 0x708   : > { %v6653_v45 = vand.u32 4294901760, %v6652_v35 }
 0x70a   : > { %6654 = vmatmul.f32.vlgmr.msrb.gmra.mxu2 %v6653_v45  ;;  %6954 = vmatmul.f32.vlgmr.msra.gmra.mxu3 %v6649_v52 }
 0x712   : > { %6917 = vmatmul.f32.vlgmr.msra.gmra.mxu2 %v6649_v52 }
 0x781   : > { %v6810_v9 = vpop.f32.mrf.mxu0 }
 0x783   : > { %v6849_v24 = vpop.f32.mrf.mxu1 }
 0x785   : > { %v6756_v5 = vpop.f32.mrf.mxu3 }
 0x78d   : > { %v6655_v8 = vpop.f32.mrf.mxu2  ;;  %v6955_v11 = vpop.f32.mrf.mxu3 }
 0x78e   : > { %v6656_v25 = vadd.f32 %v7127_v10, %v6655_v8 }
 0x790   : > { %v6757_v16 = vadd.f32 %v6756_v5, %v6656_v25 }
 0x792   : > { %v6811_v17 = vadd.f32 %v6810_v9, %v6757_v16 }
 0x794   : > { %v6850_v3 = vadd.f32 %v6849_v24, %v6811_v17 }
 0x795   : > { %v6918_v14 = vpop.f32.mrf.mxu2 }
 0x796   : > { %v6919_v58 = vadd.f32 %v6918_v14, %v6850_v3 }
 0x798   : > { %v6956_v46 = vadd.f32 %v6955_v11, %v6919_v58 }
 0x79a   : > { %6958 = vst [vmem:[%s10575_s16] sm:$0xff] %v6956_v46 }
 0x79b PF: > { %s12093_s24 = sld [smem:[#allocation5_spill]] }
 0x7a1   : > { %s27_s21 = sadd.s32 1, %s12093_s24  }
 0x7a2   : > { %p24_p6 = scmp.ge.s32.totalorder %s27_s21, 4  }
 0x7a4   :  { %26 = sbr.rel (!%p24_p6) target bundleno = 2 (0x2), region = 144 }

</bundles_post_ra>
